<compile_context>
chip_gen: v7x
topology: tpu7x:2x2x1
jax: 0.10.0
libtpu: 0.0.40
codegen_flags: <defaults>
</compile_context>

<pallas_src>
import jax
import jax.numpy as jnp
from jax import lax
from jax.experimental import pallas as pl
from jax.experimental.pallas import tpu as pltpu

BN_EPS = 1e-5                      # PyTorch BatchNorm3d default eps
_VMEM_LIMIT = 48 * 1024 * 1024     # <= v7x physical (64 MiB); raise on v5e/v6e
_DT_MAX = 8                        # depth-tile cap; 16-32 ok on v5e/v6e VMEM


def _pick_dt(depth, max_dt=_DT_MAX):
    """Largest divisor of `depth` that is <= max_dt (any value is layout-legal
    because the flat last axis is depth*H*W and H*W is a multiple of 128)."""
    for cand in range(min(depth, max_dt), 0, -1):
        if depth % cand == 0:
            return cand
    return 1


# --------------------------- Pallas kernel factory ---------------------------

def _make_conv_kernel(*, c_in, c_out, dt, hgt, wid,
                      apply_bn, has_bias, relu_out, compute_stats):
    """3x3x3 conv (stride 1, pad 1) for one (n, depth-tile) block.

    Ref order: x_main (1, c_in, dt*m), x_lo (1, c_in, m), x_hi (1, c_in, m),
               weights (3, c_out, 9*c_in)  [kw, co, (kd, kh, ci)],
               [scale (c_in,1), shift (c_in,1)]  if apply_bn,
               [bias (c_out,1)]                  if has_bias,
               y (1, c_out, dt*m),
               [stats (1, 2, c_out, 1)]          if compute_stats.
    """
    m = hgt * wid            # one depth slab, flat H*W (lane axis)
    L = dt * m               # one depth tile, flat
    P = wid + 1              # zero pad on each end of the extended buffer
    w_ext = (dt + 2) * m + 2 * P

    def kernel(*refs):
        xm_ref, xlo_ref, xhi_ref, w_ref = refs[0:4]
        i = 4
        scale_ref = shift_ref = bias_ref = None
        if apply_bn:
            scale_ref, shift_ref = refs[i], refs[i + 1]
            i += 2
        if has_bias:
            bias_ref = refs[i]
            i += 1
        y_ref = refs[i]
        stats_ref = refs[i + 1] if compute_stats else None

        di = pl.program_id(1)
        nd = pl.num_programs(1)

        # ---- masks, built once per grid step (no inner depth loop) ----
        # Output W-column index (m is a multiple of wid, so flat % wid == w).
        ocol = lax.broadcasted_iota(jnp.int32, (1, L), 1) % wid
        kw0_ok = ocol >= 1                       # w-1 tap inside the image
        kw2_ok = ocol <= wid - 2                 # w+1 tap inside the image
        # Position within each depth slab of the extended buffer.
        epos = (lax.broadcasted_iota(jnp.int32, (1, w_ext), 1) - P) % m
        last_row = epos >= m - wid               # h == H-1 rows
        first_row = epos < wid                   # h == 0 rows

        # ---- load, fuse previous layer's BN+ReLU, zero the depth padding ----
        def prep(a):
            if apply_bn:
                a = jnp.maximum(a * scale_ref[...] + shift_ref[...], 0.0)
            return a

        main = prep(xm_ref[0])                             # (c_in, dt*m)
        lo = jnp.where(di > 0, prep(xlo_ref[0]), 0.0)      # (c_in, m)
        hi = jnp.where(di < nd - 1, prep(xhi_ref[0]), 0.0)

        # ---- flat extended buffer: [zeros | lo | main | hi | zeros] ----
        zpad = jnp.zeros((c_in, P), jnp.float32)
        ext = jnp.concatenate([zpad, lo, main, hi, zpad], axis=1)  # (c_in,w_ext)
        # kh=0 taps read the row above -> must see zeros where they would wrap
        # into the previous slab's last H-row; kh=2 symmetric with first rows.
        exts = (jnp.where(last_row, 0.0, ext),   # for kh = 0
                ext,                             # for kh = 1
                jnp.where(first_row, 0.0, ext))  # for kh = 2

        # ---- single wide tap buffer: 9 windows of width L+2, rows ordered
        #      (kd, kh, ci) to match the weight layout ----
        T = jnp.concatenate(
            [exts[kh][:, P + kd * m + (kh - 1) * wid - 1:
                         P + kd * m + (kh - 1) * wid + 1 + L]
             for kd in range(3) for kh in range(3)],
            axis=0)                                        # (9*c_in, L+2)

        # ---- 3 MXU matmuls (one per kw); W-wrap masked on the cheap
        #      (c_out, L) partial outputs ----
        acc = jnp.dot(w_ref[1], T[:, 1:1 + L],
                      preferred_element_type=jnp.float32)  # (c_out, L)
        acc = acc + jnp.where(
            kw0_ok, jnp.dot(w_ref[0], T[:, 0:L],
                            preferred_element_type=jnp.float32), 0.0)
        acc = acc + jnp.where(
            kw2_ok, jnp.dot(w_ref[2], T[:, 2:2 + L],
                            preferred_element_type=jnp.float32), 0.0)

        # ---- BN batch statistics of the raw conv output, accumulated into a
        #      per-n resident block (N axis can stay "parallel"/megacore) ----
        if compute_stats:
            @pl.when(di == 0)
            def _init():
                stats_ref[...] = jnp.zeros_like(stats_ref)

            stats_ref[0, 0] = stats_ref[0, 0] + jnp.sum(acc, axis=1,
                                                        keepdims=True)
            stats_ref[0, 1] = stats_ref[0, 1] + jnp.sum(acc * acc, axis=1,
                                                        keepdims=True)

        out = acc
        if has_bias:
            out = out + bias_ref[...]
        if relu_out:
            out = jnp.maximum(out, 0.0)
        y_ref[0] = out                                     # lane-dense store

    return kernel


# ------------------------------ layer wrapper --------------------------------

def _conv3d_layer(x, w_kw, *, n, depth, hgt, wid, c_in, c_out, dt,
                  scale=None, shift=None, bias=None,
                  relu_out=False, compute_stats=True):
    """One Conv3d(k=3, s=1, p=1) over x of shape (n, c_in, depth*hgt*wid)."""
    m = hgt * wid
    L = dt * m
    grid = (n, depth // dt)

    in_specs = [
        # main depth tile: each activation element is read exactly once here
        pl.BlockSpec((1, c_in, L), lambda ni, di: (ni, 0, di)),
        # one-slab halos (previous tile's last slab / next tile's first slab)
        pl.BlockSpec((1, c_in, m),
                     lambda ni, di: (ni, 0, jnp.maximum(di * dt - 1, 0))),
        pl.BlockSpec((1, c_in, m),
                     lambda ni, di: (ni, 0, jnp.minimum(di * dt + dt,
                                                        depth - 1))),
        pl.BlockSpec((3, c_out, 9 * c_in), lambda ni, di: (0, 0, 0)),
    ]
    operands = [x, x, x, w_kw]
    if scale is not None:
        in_specs += [pl.BlockSpec((c_in, 1), lambda ni, di: (0, 0))] * 2
        operands += [scale, shift]
    if bias is not None:
        in_specs.append(pl.BlockSpec((c_out, 1), lambda ni, di: (0, 0)))
        operands.append(bias)

    y_shape = jax.ShapeDtypeStruct((n, c_out, depth * m), jnp.float32)
    y_spec = pl.BlockSpec((1, c_out, L), lambda ni, di: (ni, 0, di))

    kernel = _make_conv_kernel(
        c_in=c_in, c_out=c_out, dt=dt, hgt=hgt, wid=wid,
        apply_bn=scale is not None, has_bias=bias is not None,
        relu_out=relu_out, compute_stats=compute_stats)

    if compute_stats:
        out_shape = (y_shape,
                     jax.ShapeDtypeStruct((n, 2, c_out, 1), jnp.float32))
        out_specs = (y_spec,
                     pl.BlockSpec((1, 2, c_out, 1),
                                  lambda ni, di: (ni, 0, 0, 0)))
        # Per-n stats block -> N can be megacore-sharded; D stays sequential
        # so the resident stats block accumulates across depth tiles.
        dims = ("parallel", "arbitrary")
    else:
        out_shape = y_shape
        out_specs = y_spec
        dims = ("parallel", "parallel")

    return pl.pallas_call(
        kernel,
        grid=grid,
        in_specs=in_specs,
        out_specs=out_specs,
        out_shape=out_shape,
        compiler_params=pltpu.CompilerParams(
            dimension_semantics=dims,
            vmem_limit_bytes=_VMEM_LIMIT),
    )(*operands)


# ------------------------------- JAX-side glue --------------------------------

def _prep_weight(wt):
    # PyTorch Conv3d weight (Cout, Cin, 3, 3, 3) -> (3_kw, Cout, 9*Cin) with
    # the contraction axis ordered (kd, kh, ci) to match the in-kernel taps.
    c_out, c_in = wt.shape[0], wt.shape[1]
    wt = jnp.transpose(wt, (4, 0, 2, 3, 1))     # (kw, co, kd, kh, ci)
    return wt.reshape(3, c_out, 9 * c_in).astype(jnp.float32)


def _bn_affine(stats, gamma, beta, count):
    # Training-mode BatchNorm: batch mean / biased variance -> scale & shift.
    s = jnp.sum(stats[:, 0, :, 0], axis=0)
    ss = jnp.sum(stats[:, 1, :, 0], axis=0)
    mean = s / count
    var = jnp.maximum(ss / count - mean * mean, 0.0)
    scale = gamma * lax.rsqrt(var + BN_EPS)
    shift = beta - mean * scale
    return scale.reshape(-1, 1), shift.reshape(-1, 1)


@jax.jit
def outconv_forward(x_ncdhw, params):
    n, c0, d, hgt, wid = x_ncdhw.shape
    m = hgt * wid
    # TODO(synk): arbitrary H*W needs lane padding to a multiple of 128; the
    # kernel assumes lane-aligned flat H*W blocks.
    assert m % 128 == 0, "H*W must be a multiple of 128"
    dt = _pick_dt(d)
    count = n * d * m
    x = x_ncdhw.reshape(n, c0, d * m).astype(jnp.float32)     # free reshape

    w1 = _prep_weight(params["w1"])
    w2 = _prep_weight(params["w2"])
    w3 = _prep_weight(params["w3"])
    c1, c2, c3 = w1.shape[1], w2.shape[1], w3.shape[1]

    # Conv(in,4): raw conv output + BN1 batch statistics.
    y1, stats1 = _conv3d_layer(x, w1, n=n, depth=d, hgt=hgt, wid=wid,
                               c_in=c0, c_out=c1, dt=dt, compute_stats=True)
    s1, t1 = _bn_affine(stats1, params["g1"], params["b1"], count)

    # BN1+ReLU (applied to the input slabs) fused with Conv(4,2); BN2 stats.
    y2, stats2 = _conv3d_layer(y1, w2, n=n, depth=d, hgt=hgt, wid=wid,
                               c_in=c1, c_out=c2, dt=dt, scale=s1, shift=t1,
                               compute_stats=True)
    s2, t2 = _bn_affine(stats2, params["g2"], params["b2"], count)

    # BN2+ReLU fused with Conv(2,out) + bias + final ReLU, written NCDHW.
    y3 = _conv3d_layer(y2, w3, n=n, depth=d, hgt=hgt, wid=wid,
                       c_in=c2, c_out=c3, dt=dt, scale=s2, shift=t2,
                       bias=params["bias3"].reshape(-1, 1).astype(jnp.float32),
                       relu_out=True, compute_stats=False)
    return y3.reshape(n, c3, d, hgt, wid)                      # free reshape


# --------------------------- pure-JAX reference -------------------------------

def _reference_forward(x, params):
    def conv(h, w, b=None):
        out = lax.conv_general_dilated(
            h, w, window_strides=(1, 1, 1), padding=[(1, 1)] * 3,
            dimension_numbers=("NCDHW", "OIDHW", "NCDHW"),
            precision=lax.Precision.HIGHEST)
        if b is not None:
            out = out + b.reshape(1, -1, 1, 1, 1)
        return out

    def bn_relu(h, gamma, beta):
        mean = jnp.mean(h, axis=(0, 2, 3, 4), keepdims=True)
        var = jnp.var(h, axis=(0, 2, 3, 4), keepdims=True)    # biased
        g = gamma.reshape(1, -1, 1, 1, 1)
        b = beta.reshape(1, -1, 1, 1, 1)
        return jnp.maximum((h - mean) * lax.rsqrt(var + BN_EPS) * g + b, 0.0)

    h = bn_relu(conv(x, params["w1"]), params["g1"], params["b1"])
    h = bn_relu(conv(h, params["w2"]), params["g2"], params["b2"])
    return jnp.maximum(conv(h, params["w3"], params["bias3"]), 0.0)


# --------------------- parameters (deterministic, PyTorch-shaped) ------------

def init_params(key, in_ch, out_ch):
    k = jax.random.split(key, 4)

    def conv_w(kk, cout, cin):
        fan_in = cin * 27
        bound = 1.0 / (fan_in ** 0.5)
        return jax.random.uniform(kk, (cout, cin, 3, 3, 3), jnp.float32,
                                  -bound, bound)

    return {
        "w1": conv_w(k[0], 4, in_ch),
        "g1": jnp.ones((4,), jnp.float32),
        "b1": jnp.zeros((4,), jnp.float32),
        "w2": conv_w(k[1], 2, 4),
        "g2": jnp.ones((2,), jnp.float32),
        "b2": jnp.zeros((2,), jnp.float32),
        "w3": conv_w(k[2], out_ch, 2),
        "bias3": jax.random.uniform(k[3], (out_ch,), jnp.float32, -0.1, 0.1),
    }


if __name__ == "__main__":
    key = jax.random.PRNGKey(0)
    kx, kp = jax.random.split(key)
    in_ch, out_ch = 4, 2
    N, D, H, W = 2, 16, 16, 16        # H*W = 256 (lane aligned); 2 depth tiles
    x = jax.random.normal(kx, (N, in_ch, D, H, W), jnp.float32)
    params = init_params(kp, in_ch, out_ch)

    y = outconv_forward(x, params)
    jax.block_until_ready(y)
    assert y.shape == (N, out_ch, D, H, W)

    y_ref = _reference_forward(x, params)
    err = float(jnp.max(jnp.abs(y - y_ref)))
    assert err < 5e-2, f"mismatch vs reference: max abs err {err}"
    print("KERNEL_OK")
</pallas_src>

<mosaic_0001>
module attributes {stable_mosaic.version = 11 : i64} {
  func.func @kernel(%arg0: i32, %arg1: i32, %arg2: memref<1x4x2048xf32, #tpu.memory_space<vmem>>, %arg3: memref<1x4x256xf32, #tpu.memory_space<vmem>>, %arg4: memref<1x4x256xf32, #tpu.memory_space<vmem>>, %arg5: memref<3x4x36xf32, #tpu.memory_space<vmem>>, %arg6: memref<1x4x2048xf32, #tpu.memory_space<vmem>>, %arg7: memref<1x2x4x1xf32, #tpu.memory_space<vmem>>) attributes {dimension_semantics = [#tpu.dimension_semantics<parallel>, #tpu.dimension_semantics<arbitrary>], iteration_bounds = array<i64: 2, 2>, scalar_prefetch = 0 : i64, scratch_operands = 0 : i64, tpu.core_type = #tpu.core_type<tc>, window_params = [{transform_indices = @transform_0, window_bounds = array<i64: 1, 4, 2048>}, {transform_indices = @transform_1, window_bounds = array<i64: 1, 4, 256>}, {transform_indices = @transform_2, window_bounds = array<i64: 1, 4, 256>}, {pipeline_mode = #tpu.pipeline_mode<synchronous>, transform_indices = @transform_3, window_bounds = array<i64: 3, 4, 36>}, {transform_indices = @transform_4, window_bounds = array<i64: 1, 4, 2048>}, {transform_indices = @transform_5, window_bounds = array<i64: 1, 2, 4, 1>}]} {
    %0 = tpu.iota {dimensions = array<i32: 1>} : vector<1x2048xi32>
    %c16_i32 = arith.constant 16 : i32
    %c0_i32 = arith.constant 0 : i32
    %1 = arith.cmpi eq, %c16_i32, %c0_i32 : i32
    %c1_i32 = arith.constant 1 : i32
    %2 = arith.select %1, %c1_i32, %c16_i32 : i32
    %3 = vector.broadcast %2 : i32 to vector<1x2048xi32>
    %4 = arith.remsi %0, %3 : vector<1x2048xi32>
    %c0_i32_0 = arith.constant 0 : i32
    %5 = vector.broadcast %c0_i32_0 : i32 to vector<1x2048xi32>
    %6 = arith.cmpi ne, %4, %5 : vector<1x2048xi32>
    %c0_i32_1 = arith.constant 0 : i32
    %7 = vector.broadcast %c0_i32_1 : i32 to vector<1x2048xi32>
    %8 = arith.cmpi slt, %4, %7 : vector<1x2048xi32>
    %c0_i32_2 = arith.constant 0 : i32
    %9 = arith.cmpi slt, %2, %c0_i32_2 : i32
    %10 = vector.broadcast %9 : i1 to vector<1x2048xi1>
    %11 = vector.broadcast %10 : vector<1x2048xi1> to vector<1x2048xi1>
    %12 = arith.xori %8, %11 : vector<1x2048xi1>
    %13 = arith.andi %12, %6 : vector<1x2048xi1>
    %14 = vector.broadcast %2 : i32 to vector<1x2048xi32>
    %15 = arith.addi %4, %14 : vector<1x2048xi32>
    %16 = arith.select %13, %15, %4 : vector<1x2048xi1>, vector<1x2048xi32>
    %c1_i32_3 = arith.constant 1 : i32
    %17 = vector.broadcast %c1_i32_3 : i32 to vector<1x2048xi32>
    %18 = arith.cmpi sge, %16, %17 : vector<1x2048xi32>
    %c14_i32 = arith.constant 14 : i32
    %19 = vector.broadcast %c14_i32 : i32 to vector<1x2048xi32>
    %20 = arith.cmpi sle, %16, %19 : vector<1x2048xi32>
    %21 = tpu.iota {dimensions = array<i32: 1>} : vector<1x2594xi32>
    %c17_i32 = arith.constant 17 : i32
    %22 = vector.broadcast %c17_i32 : i32 to vector<1x2594xi32>
    %23 = arith.subi %21, %22 : vector<1x2594xi32>
    %c256_i32 = arith.constant 256 : i32
    %c0_i32_4 = arith.constant 0 : i32
    %24 = arith.cmpi eq, %c256_i32, %c0_i32_4 : i32
    %c1_i32_5 = arith.constant 1 : i32
    %25 = arith.select %24, %c1_i32_5, %c256_i32 : i32
    %26 = vector.broadcast %25 : i32 to vector<1x2594xi32>
    %27 = arith.remsi %23, %26 : vector<1x2594xi32>
    %c0_i32_6 = arith.constant 0 : i32
    %28 = vector.broadcast %c0_i32_6 : i32 to vector<1x2594xi32>
    %29 = arith.cmpi ne, %27, %28 : vector<1x2594xi32>
    %c0_i32_7 = arith.constant 0 : i32
    %30 = vector.broadcast %c0_i32_7 : i32 to vector<1x2594xi32>
    %31 = arith.cmpi slt, %27, %30 : vector<1x2594xi32>
    %c0_i32_8 = arith.constant 0 : i32
    %32 = arith.cmpi slt, %25, %c0_i32_8 : i32
    %33 = vector.broadcast %32 : i1 to vector<1x2594xi1>
    %34 = vector.broadcast %33 : vector<1x2594xi1> to vector<1x2594xi1>
    %35 = arith.xori %31, %34 : vector<1x2594xi1>
    %36 = arith.andi %35, %29 : vector<1x2594xi1>
    %37 = vector.broadcast %25 : i32 to vector<1x2594xi32>
    %38 = arith.addi %27, %37 : vector<1x2594xi32>
    %39 = arith.select %36, %38, %27 : vector<1x2594xi1>, vector<1x2594xi32>
    %c240_i32 = arith.constant 240 : i32
    %40 = vector.broadcast %c240_i32 : i32 to vector<1x2594xi32>
    %41 = arith.cmpi sge, %39, %40 : vector<1x2594xi32>
    %c16_i32_9 = arith.constant 16 : i32
    %42 = vector.broadcast %c16_i32_9 : i32 to vector<1x2594xi32>
    %43 = arith.cmpi slt, %39, %42 : vector<1x2594xi32>
    %c0 = arith.constant 0 : index
    %c0_10 = arith.constant 0 : index
    %c0_11 = arith.constant 0 : index
    %44 = vector.load %arg2[%c0, %c0_10, %c0_11] : memref<1x4x2048xf32, #tpu.memory_space<vmem>>, vector<1x4x2048xf32>
    %45 = vector.shape_cast %44 : vector<1x4x2048xf32> to vector<4x2048xf32>
    %c0_i32_12 = arith.constant 0 : i32
    %46 = arith.cmpi sgt, %arg1, %c0_i32_12 : i32
    %c0_13 = arith.constant 0 : index
    %c0_14 = arith.constant 0 : index
    %c0_15 = arith.constant 0 : index
    %47 = vector.load %arg3[%c0_13, %c0_14, %c0_15] : memref<1x4x256xf32, #tpu.memory_space<vmem>>, vector<1x4x256xf32>
    %48 = vector.shape_cast %47 : vector<1x4x256xf32> to vector<4x256xf32>
    %cst = arith.constant 0.000000e+00 : f32
    %49 = vector.broadcast %cst : f32 to vector<4x256xf32>
    %50 = arith.select %46, %48, %49 : vector<4x256xf32>
    %c1_i32_16 = arith.constant 1 : i32
    %51 = arith.cmpi slt, %arg1, %c1_i32_16 : i32
    %c0_17 = arith.constant 0 : index
    %c0_18 = arith.constant 0 : index
    %c0_19 = arith.constant 0 : index
    %52 = vector.load %arg4[%c0_17, %c0_18, %c0_19] : memref<1x4x256xf32, #tpu.memory_space<vmem>>, vector<1x4x256xf32>
    %53 = vector.shape_cast %52 : vector<1x4x256xf32> to vector<4x256xf32>
    %cst_20 = arith.constant 0.000000e+00 : f32
    %54 = vector.broadcast %cst_20 : f32 to vector<4x256xf32>
    %55 = arith.select %51, %53, %54 : vector<4x256xf32>
    %cst_21 = arith.constant 0.000000e+00 : f32
    %56 = vector.broadcast %cst_21 : f32 to vector<4x17xf32>
    %57 = tpu.concatenate %56, %50, %45, %55, %56 in 1 : vector<4x17xf32>, vector<4x256xf32>, vector<4x2048xf32>, vector<4x256xf32>, vector<4x17xf32> -> vector<4x2594xf32>
    %cst_22 = arith.constant 0.000000e+00 : f32
    %58 = vector.shape_cast %41 : vector<1x2594xi1> to vector<1x2594xi1>
    %59 = vector.broadcast %58 : vector<1x2594xi1> to vector<4x2594xi1>
    %60 = vector.broadcast %cst_22 : f32 to vector<4x2594xf32>
    %61 = arith.select %59, %60, %57 : vector<4x2594xi1>, vector<4x2594xf32>
    %cst_23 = arith.constant 0.000000e+00 : f32
    %62 = vector.shape_cast %43 : vector<1x2594xi1> to vector<1x2594xi1>
    %63 = vector.broadcast %62 : vector<1x2594xi1> to vector<4x2594xi1>
    %64 = vector.broadcast %cst_23 : f32 to vector<4x2594xf32>
    %65 = arith.select %63, %64, %57 : vector<4x2594xi1>, vector<4x2594xf32>
    %66 = vector.extract_strided_slice %61 {offsets = [0, 0], sizes = [4, 2050], strides = [1, 1]} : vector<4x2594xf32> to vector<4x2050xf32>
    %67 = vector.extract_strided_slice %57 {offsets = [0, 16], sizes = [4, 2050], strides = [1, 1]} : vector<4x2594xf32> to vector<4x2050xf32>
    %68 = vector.extract_strided_slice %65 {offsets = [0, 32], sizes = [4, 2050], strides = [1, 1]} : vector<4x2594xf32> to vector<4x2050xf32>
    %69 = vector.extract_strided_slice %61 {offsets = [0, 256], sizes = [4, 2050], strides = [1, 1]} : vector<4x2594xf32> to vector<4x2050xf32>
    %70 = vector.extract_strided_slice %57 {offsets = [0, 272], sizes = [4, 2050], strides = [1, 1]} : vector<4x2594xf32> to vector<4x2050xf32>
    %71 = vector.extract_strided_slice %65 {offsets = [0, 288], sizes = [4, 2050], strides = [1, 1]} : vector<4x2594xf32> to vector<4x2050xf32>
    %72 = vector.extract_strided_slice %61 {offsets = [0, 512], sizes = [4, 2050], strides = [1, 1]} : vector<4x2594xf32> to vector<4x2050xf32>
    %73 = vector.extract_strided_slice %57 {offsets = [0, 528], sizes = [4, 2050], strides = [1, 1]} : vector<4x2594xf32> to vector<4x2050xf32>
    %74 = vector.extract_strided_slice %65 {offsets = [0, 544], sizes = [4, 2050], strides = [1, 1]} : vector<4x2594xf32> to vector<4x2050xf32>
    %75 = tpu.concatenate %66, %67, %68, %69, %70, %71, %72, %73, %74 in 0 : vector<4x2050xf32>, vector<4x2050xf32>, vector<4x2050xf32>, vector<4x2050xf32>, vector<4x2050xf32>, vector<4x2050xf32>, vector<4x2050xf32>, vector<4x2050xf32>, vector<4x2050xf32> -> vector<36x2050xf32>
    %c1 = arith.constant 1 : index
    %c0_24 = arith.constant 0 : index
    %c0_25 = arith.constant 0 : index
    %76 = vector.load %arg5[%c1, %c0_24, %c0_25] : memref<3x4x36xf32, #tpu.memory_space<vmem>>, vector<1x4x36xf32>
    %77 = vector.shape_cast %76 : vector<1x4x36xf32> to vector<4x36xf32>
    %78 = vector.extract_strided_slice %75 {offsets = [0, 1], sizes = [36, 2048], strides = [1, 1]} : vector<36x2050xf32> to vector<36x2048xf32>
    %cst_26 = arith.constant dense<0.000000e+00> : vector<4x2048xf32>
    %79 = tpu.matmul %77, %78, %cst_26 {dimension_numbers = #tpu.dot_dimension_numbers<[1], [0], [0], [1], [0, 0, 1, 1], [], []>} : vector<4x36xf32>, vector<36x2048xf32>, vector<4x2048xf32> -> vector<4x2048xf32>
    %c0_27 = arith.constant 0 : index
    %c0_28 = arith.constant 0 : index
    %c0_29 = arith.constant 0 : index
    %80 = vector.load %arg5[%c0_27, %c0_28, %c0_29] : memref<3x4x36xf32, #tpu.memory_space<vmem>>, vector<1x4x36xf32>
    %81 = vector.shape_cast %80 : vector<1x4x36xf32> to vector<4x36xf32>
    %82 = vector.extract_strided_slice %75 {offsets = [0, 0], sizes = [36, 2048], strides = [1, 1]} : vector<36x2050xf32> to vector<36x2048xf32>
    %cst_30 = arith.constant dense<0.000000e+00> : vector<4x2048xf32>
    %83 = tpu.matmul %81, %82, %cst_30 {dimension_numbers = #tpu.dot_dimension_numbers<[1], [0], [0], [1], [0, 0, 1, 1], [], []>} : vector<4x36xf32>, vector<36x2048xf32>, vector<4x2048xf32> -> vector<4x2048xf32>
    %cst_31 = arith.constant 0.000000e+00 : f32
    %84 = vector.shape_cast %18 : vector<1x2048xi1> to vector<1x2048xi1>
    %85 = vector.broadcast %84 : vector<1x2048xi1> to vector<4x2048xi1>
    %86 = vector.broadcast %cst_31 : f32 to vector<4x2048xf32>
    %87 = arith.select %85, %83, %86 : vector<4x2048xi1>, vector<4x2048xf32>
    %88 = arith.addf %79, %87 : vector<4x2048xf32>
    %c2 = arith.constant 2 : index
    %c0_32 = arith.constant 0 : index
    %c0_33 = arith.constant 0 : index
    %89 = vector.load %arg5[%c2, %c0_32, %c0_33] : memref<3x4x36xf32, #tpu.memory_space<vmem>>, vector<1x4x36xf32>
    %90 = vector.shape_cast %89 : vector<1x4x36xf32> to vector<4x36xf32>
    %91 = vector.extract_strided_slice %75 {offsets = [0, 2], sizes = [36, 2048], strides = [1, 1]} : vector<36x2050xf32> to vector<36x2048xf32>
    %cst_34 = arith.constant dense<0.000000e+00> : vector<4x2048xf32>
    %92 = tpu.matmul %90, %91, %cst_34 {dimension_numbers = #tpu.dot_dimension_numbers<[1], [0], [0], [1], [0, 0, 1, 1], [], []>} : vector<4x36xf32>, vector<36x2048xf32>, vector<4x2048xf32> -> vector<4x2048xf32>
    %cst_35 = arith.constant 0.000000e+00 : f32
    %93 = vector.shape_cast %20 : vector<1x2048xi1> to vector<1x2048xi1>
    %94 = vector.broadcast %93 : vector<1x2048xi1> to vector<4x2048xi1>
    %95 = vector.broadcast %cst_35 : f32 to vector<4x2048xf32>
    %96 = arith.select %94, %92, %95 : vector<4x2048xi1>, vector<4x2048xf32>
    %97 = arith.addf %88, %96 : vector<4x2048xf32>
    %c0_i32_36 = arith.constant 0 : i32
    %98 = arith.cmpi eq, %arg1, %c0_i32_36 : i32
    %99 = arith.extui %98 : i1 to i32
    %c0_i32_37 = arith.constant 0 : i32
    %100 = arith.cmpi ne, %99, %c0_i32_37 : i32
    scf.if %100 {
      %cst_59 = arith.constant 0.000000e+00 : f32
      %121 = vector.broadcast %cst_59 : f32 to vector<1x2x4x1xf32>
      %c0_60 = arith.constant 0 : index
      %c0_61 = arith.constant 0 : index
      %c0_62 = arith.constant 0 : index
      %c0_63 = arith.constant 0 : index
      %122 = vector.load %arg7[%c0_60, %c0_61, %c0_62, %c0_63] : memref<1x2x4x1xf32, #tpu.memory_space<vmem>>, vector<1x2x4x1xf32>
      tpu.vector_store %arg7[%c0_60, %c0_61, %c0_62, %c0_63], %121 {strides = array<i32>} : memref<1x2x4x1xf32, #tpu.memory_space<vmem>>, vector<1x2x4x1xf32>,
    } else {
    }
    %c0_38 = arith.constant 0 : index
    %c0_39 = arith.constant 0 : index
    %c0_40 = arith.constant 0 : index
    %c0_41 = arith.constant 0 : index
    %101 = vector.load %arg7[%c0_38, %c0_39, %c0_40, %c0_41] : memref<1x2x4x1xf32, #tpu.memory_space<vmem>>, vector<1x1x4x1xf32>
    %102 = vector.shape_cast %101 : vector<1x1x4x1xf32> to vector<4x1xf32>
    %cst_42 = arith.constant dense<0.000000e+00> : vector<4xf32>
    %103 = vector.multi_reduction <add>, %97, %cst_42 [1] : vector<4x2048xf32> to vector<4xf32>
    %104 = vector.shape_cast %103 : vector<4xf32> to vector<4x1xf32>
    %105 = arith.addf %102, %104 : vector<4x1xf32>
    %c0_43 = arith.constant 0 : index
    %c0_44 = arith.constant 0 : index
    %c0_45 = arith.constant 0 : index
    %c0_46 = arith.constant 0 : index
    %106 = vector.load %arg7[%c0_43, %c0_44, %c0_45, %c0_46] : memref<1x2x4x1xf32, #tpu.memory_space<vmem>>, vector<1x1x4x1xf32>
    %107 = vector.shape_cast %106 : vector<1x1x4x1xf32> to vector<4x1xf32>
    %108 = vector.shape_cast %105 : vector<4x1xf32> to vector<1x1x4x1xf32>
    tpu.vector_store %arg7[%c0_43, %c0_44, %c0_45, %c0_46], %108 {strides = array<i32>} : memref<1x2x4x1xf32, #tpu.memory_space<vmem>>, vector<1x1x4x1xf32>,
    %c0_47 = arith.constant 0 : index
    %c1_48 = arith.constant 1 : index
    %c0_49 = arith.constant 0 : index
    %c0_50 = arith.constant 0 : index
    %109 = vector.load %arg7[%c0_47, %c1_48, %c0_49, %c0_50] : memref<1x2x4x1xf32, #tpu.memory_space<vmem>>, vector<1x1x4x1xf32>
    %110 = vector.shape_cast %109 : vector<1x1x4x1xf32> to vector<4x1xf32>
    %111 = arith.mulf %97, %97 : vector<4x2048xf32>
    %cst_51 = arith.constant dense<0.000000e+00> : vector<4xf32>
    %112 = vector.multi_reduction <add>, %111, %cst_51 [1] : vector<4x2048xf32> to vector<4xf32>
    %113 = vector.shape_cast %112 : vector<4xf32> to vector<4x1xf32>
    %114 = arith.addf %110, %113 : vector<4x1xf32>
    %c0_52 = arith.constant 0 : index
    %c1_53 = arith.constant 1 : index
    %c0_54 = arith.constant 0 : index
    %c0_55 = arith.constant 0 : index
    %115 = vector.load %arg7[%c0_52, %c1_53, %c0_54, %c0_55] : memref<1x2x4x1xf32, #tpu.memory_space<vmem>>, vector<1x1x4x1xf32>
    %116 = vector.shape_cast %115 : vector<1x1x4x1xf32> to vector<4x1xf32>
    %117 = vector.shape_cast %114 : vector<4x1xf32> to vector<1x1x4x1xf32>
    tpu.vector_store %arg7[%c0_52, %c1_53, %c0_54, %c0_55], %117 {strides = array<i32>} : memref<1x2x4x1xf32, #tpu.memory_space<vmem>>, vector<1x1x4x1xf32>,
    %c0_56 = arith.constant 0 : index
    %c0_57 = arith.constant 0 : index
    %c0_58 = arith.constant 0 : index
    %118 = vector.load %arg6[%c0_56, %c0_57, %c0_58] : memref<1x4x2048xf32, #tpu.memory_space<vmem>>, vector<1x4x2048xf32>
    %119 = vector.shape_cast %118 : vector<1x4x2048xf32> to vector<4x2048xf32>
    %120 = vector.shape_cast %97 : vector<4x2048xf32> to vector<1x4x2048xf32>
    tpu.vector_store %arg6[%c0_56, %c0_57, %c0_58], %120 {strides = array<i32>} : memref<1x4x2048xf32, #tpu.memory_space<vmem>>, vector<1x4x2048xf32>,
    return
  }
  func.func @transform_0(%arg0: i32, %arg1: i32) -> (i32, i32, i32) {
    %c0_i32 = arith.constant 0 : i32
    %c0_i32_0 = arith.constant 0 : i32
    return %arg0, %c0_i32, %arg1 : i32, i32, i32
  }
  func.func @transform_1(%arg0: i32, %arg1: i32) -> (i32, i32, i32) {
    %c8_i32 = arith.constant 8 : i32
    %0 = arith.muli %arg1, %c8_i32 : i32
    %c1_i32 = arith.constant 1 : i32
    %1 = arith.subi %0, %c1_i32 : i32
    %c0_i32 = arith.constant 0 : i32
    %2 = arith.maxsi %1, %c0_i32 : i32
    %c0_i32_0 = arith.constant 0 : i32
    %c0_i32_1 = arith.constant 0 : i32
    return %arg0, %c0_i32_0, %2 : i32, i32, i32
  }
  func.func @transform_2(%arg0: i32, %arg1: i32) -> (i32, i32, i32) {
    %c8_i32 = arith.constant 8 : i32
    %0 = arith.muli %arg1, %c8_i32 : i32
    %c8_i32_0 = arith.constant 8 : i32
    %1 = arith.addi %0, %c8_i32_0 : i32
    %c15_i32 = arith.constant 15 : i32
    %2 = arith.minsi %1, %c15_i32 : i32
    %c0_i32 = arith.constant 0 : i32
    %c0_i32_1 = arith.constant 0 : i32
    return %arg0, %c0_i32, %2 : i32, i32, i32
  }
  func.func @transform_3(%arg0: i32, %arg1: i32) -> (i32, i32, i32) {
    %c0_i32 = arith.constant 0 : i32
    %c0_i32_0 = arith.constant 0 : i32
    %c0_i32_1 = arith.constant 0 : i32
    %c0_i32_2 = arith.constant 0 : i32
    return %c0_i32, %c0_i32_0, %c0_i32_1 : i32, i32, i32
  }
  func.func @transform_4(%arg0: i32, %arg1: i32) -> (i32, i32, i32) {
    %c0_i32 = arith.constant 0 : i32
    %c0_i32_0 = arith.constant 0 : i32
    return %arg0, %c0_i32, %arg1 : i32, i32, i32
  }
  func.func @transform_5(%arg0: i32, %arg1: i32) -> (i32, i32, i32, i32) {
    %c0_i32 = arith.constant 0 : i32
    %c0_i32_0 = arith.constant 0 : i32
    %c0_i32_1 = arith.constant 0 : i32
    %c0_i32_2 = arith.constant 0 : i32
    return %arg0, %c0_i32, %c0_i32_0, %c0_i32_1 : i32, i32, i32, i32
  }
}

module attributes {stable_mosaic.version = 11 : i64} {
  func.func @kernel(%arg0: i32, %arg1: i32, %arg2: memref<1x4x2048xf32, #tpu.memory_space<vmem>>, %arg3: memref<1x4x256xf32, #tpu.memory_space<vmem>>, %arg4: memref<1x4x256xf32, #tpu.memory_space<vmem>>, %arg5: memref<3x2x36xf32, #tpu.memory_space<vmem>>, %arg6: memref<4x1xf32, #tpu.memory_space<vmem>>, %arg7: memref<4x1xf32, #tpu.memory_space<vmem>>, %arg8: memref<1x2x2048xf32, #tpu.memory_space<vmem>>, %arg9: memref<1x2x2x1xf32, #tpu.memory_space<vmem>>) attributes {dimension_semantics = [#tpu.dimension_semantics<parallel>, #tpu.dimension_semantics<arbitrary>], iteration_bounds = array<i64: 2, 2>, scalar_prefetch = 0 : i64, scratch_operands = 0 : i64, tpu.core_type = #tpu.core_type<tc>, window_params = [{transform_indices = @transform_0, window_bounds = array<i64: 1, 4, 2048>}, {transform_indices = @transform_1, window_bounds = array<i64: 1, 4, 256>}, {transform_indices = @transform_2, window_bounds = array<i64: 1, 4, 256>}, {pipeline_mode = #tpu.pipeline_mode<synchronous>, transform_indices = @transform_3, window_bounds = array<i64: 3, 2, 36>}, {pipeline_mode = #tpu.pipeline_mode<synchronous>, transform_indices = @transform_4, window_bounds = array<i64: 4, 1>}, {pipeline_mode = #tpu.pipeline_mode<synchronous>, transform_indices = @transform_5, window_bounds = array<i64: 4, 1>}, {transform_indices = @transform_6, window_bounds = array<i64: 1, 2, 2048>}, {transform_indices = @transform_7, window_bounds = array<i64: 1, 2, 2, 1>}]} {
    %0 = tpu.iota {dimensions = array<i32: 1>} : vector<1x2048xi32>
    %c16_i32 = arith.constant 16 : i32
    %c0_i32 = arith.constant 0 : i32
    %1 = arith.cmpi eq, %c16_i32, %c0_i32 : i32
    %c1_i32 = arith.constant 1 : i32
    %2 = arith.select %1, %c1_i32, %c16_i32 : i32
    %3 = vector.broadcast %2 : i32 to vector<1x2048xi32>
    %4 = arith.remsi %0, %3 : vector<1x2048xi32>
    %c0_i32_0 = arith.constant 0 : i32
    %5 = vector.broadcast %c0_i32_0 : i32 to vector<1x2048xi32>
    %6 = arith.cmpi ne, %4, %5 : vector<1x2048xi32>
    %c0_i32_1 = arith.constant 0 : i32
    %7 = vector.broadcast %c0_i32_1 : i32 to vector<1x2048xi32>
    %8 = arith.cmpi slt, %4, %7 : vector<1x2048xi32>
    %c0_i32_2 = arith.constant 0 : i32
    %9 = arith.cmpi slt, %2, %c0_i32_2 : i32
    %10 = vector.broadcast %9 : i1 to vector<1x2048xi1>
    %11 = vector.broadcast %10 : vector<1x2048xi1> to vector<1x2048xi1>
    %12 = arith.xori %8, %11 : vector<1x2048xi1>
    %13 = arith.andi %12, %6 : vector<1x2048xi1>
    %14 = vector.broadcast %2 : i32 to vector<1x2048xi32>
    %15 = arith.addi %4, %14 : vector<1x2048xi32>
    %16 = arith.select %13, %15, %4 : vector<1x2048xi1>, vector<1x2048xi32>
    %c1_i32_3 = arith.constant 1 : i32
    %17 = vector.broadcast %c1_i32_3 : i32 to vector<1x2048xi32>
    %18 = arith.cmpi sge, %16, %17 : vector<1x2048xi32>
    %c14_i32 = arith.constant 14 : i32
    %19 = vector.broadcast %c14_i32 : i32 to vector<1x2048xi32>
    %20 = arith.cmpi sle, %16, %19 : vector<1x2048xi32>
    %21 = tpu.iota {dimensions = array<i32: 1>} : vector<1x2594xi32>
    %c17_i32 = arith.constant 17 : i32
    %22 = vector.broadcast %c17_i32 : i32 to vector<1x2594xi32>
    %23 = arith.subi %21, %22 : vector<1x2594xi32>
    %c256_i32 = arith.constant 256 : i32
    %c0_i32_4 = arith.constant 0 : i32
    %24 = arith.cmpi eq, %c256_i32, %c0_i32_4 : i32
    %c1_i32_5 = arith.constant 1 : i32
    %25 = arith.select %24, %c1_i32_5, %c256_i32 : i32
    %26 = vector.broadcast %25 : i32 to vector<1x2594xi32>
    %27 = arith.remsi %23, %26 : vector<1x2594xi32>
    %c0_i32_6 = arith.constant 0 : i32
    %28 = vector.broadcast %c0_i32_6 : i32 to vector<1x2594xi32>
    %29 = arith.cmpi ne, %27, %28 : vector<1x2594xi32>
    %c0_i32_7 = arith.constant 0 : i32
    %30 = vector.broadcast %c0_i32_7 : i32 to vector<1x2594xi32>
    %31 = arith.cmpi slt, %27, %30 : vector<1x2594xi32>
    %c0_i32_8 = arith.constant 0 : i32
    %32 = arith.cmpi slt, %25, %c0_i32_8 : i32
    %33 = vector.broadcast %32 : i1 to vector<1x2594xi1>
    %34 = vector.broadcast %33 : vector<1x2594xi1> to vector<1x2594xi1>
    %35 = arith.xori %31, %34 : vector<1x2594xi1>
    %36 = arith.andi %35, %29 : vector<1x2594xi1>
    %37 = vector.broadcast %25 : i32 to vector<1x2594xi32>
    %38 = arith.addi %27, %37 : vector<1x2594xi32>
    %39 = arith.select %36, %38, %27 : vector<1x2594xi1>, vector<1x2594xi32>
    %c240_i32 = arith.constant 240 : i32
    %40 = vector.broadcast %c240_i32 : i32 to vector<1x2594xi32>
    %41 = arith.cmpi sge, %39, %40 : vector<1x2594xi32>
    %c16_i32_9 = arith.constant 16 : i32
    %42 = vector.broadcast %c16_i32_9 : i32 to vector<1x2594xi32>
    %43 = arith.cmpi slt, %39, %42 : vector<1x2594xi32>
    %c0 = arith.constant 0 : index
    %c0_10 = arith.constant 0 : index
    %c0_11 = arith.constant 0 : index
    %44 = vector.load %arg2[%c0, %c0_10, %c0_11] : memref<1x4x2048xf32, #tpu.memory_space<vmem>>, vector<1x4x2048xf32>
    %45 = vector.shape_cast %44 : vector<1x4x2048xf32> to vector<4x2048xf32>
    %c0_12 = arith.constant 0 : index
    %c0_13 = arith.constant 0 : index
    %46 = vector.load %arg6[%c0_12, %c0_13] : memref<4x1xf32, #tpu.memory_space<vmem>>, vector<4x1xf32>
    %47 = vector.broadcast %46 : vector<4x1xf32> to vector<4x2048xf32>
    %48 = arith.mulf %45, %47 : vector<4x2048xf32>
    %c0_14 = arith.constant 0 : index
    %c0_15 = arith.constant 0 : index
    %49 = vector.load %arg7[%c0_14, %c0_15] : memref<4x1xf32, #tpu.memory_space<vmem>>, vector<4x1xf32>
    %50 = vector.broadcast %49 : vector<4x1xf32> to vector<4x2048xf32>
    %51 = arith.addf %48, %50 : vector<4x2048xf32>
    %cst = arith.constant 0.000000e+00 : f32
    %52 = vector.broadcast %cst : f32 to vector<4x2048xf32>
    %53 = arith.maximumf %51, %52 : vector<4x2048xf32>
    %c0_i32_16 = arith.constant 0 : i32
    %54 = arith.cmpi sgt, %arg1, %c0_i32_16 : i32
    %c0_17 = arith.constant 0 : index
    %c0_18 = arith.constant 0 : index
    %c0_19 = arith.constant 0 : index
    %55 = vector.load %arg3[%c0_17, %c0_18, %c0_19] : memref<1x4x256xf32, #tpu.memory_space<vmem>>, vector<1x4x256xf32>
    %56 = vector.shape_cast %55 : vector<1x4x256xf32> to vector<4x256xf32>
    %c0_20 = arith.constant 0 : index
    %c0_21 = arith.constant 0 : index
    %57 = vector.load %arg6[%c0_20, %c0_21] : memref<4x1xf32, #tpu.memory_space<vmem>>, vector<4x1xf32>
    %58 = vector.broadcast %57 : vector<4x1xf32> to vector<4x256xf32>
    %59 = arith.mulf %56, %58 : vector<4x256xf32>
    %c0_22 = arith.constant 0 : index
    %c0_23 = arith.constant 0 : index
    %60 = vector.load %arg7[%c0_22, %c0_23] : memref<4x1xf32, #tpu.memory_space<vmem>>, vector<4x1xf32>
    %61 = vector.broadcast %60 : vector<4x1xf32> to vector<4x256xf32>
    %62 = arith.addf %59, %61 : vector<4x256xf32>
    %cst_24 = arith.constant 0.000000e+00 : f32
    %63 = vector.broadcast %cst_24 : f32 to vector<4x256xf32>
    %64 = arith.maximumf %62, %63 : vector<4x256xf32>
    %cst_25 = arith.constant 0.000000e+00 : f32
    %65 = vector.broadcast %cst_25 : f32 to vector<4x256xf32>
    %66 = arith.select %54, %64, %65 : vector<4x256xf32>
    %c1_i32_26 = arith.constant 1 : i32
    %67 = arith.cmpi slt, %arg1, %c1_i32_26 : i32
    %c0_27 = arith.constant 0 : index
    %c0_28 = arith.constant 0 : index
    %c0_29 = arith.constant 0 : index
    %68 = vector.load %arg4[%c0_27, %c0_28, %c0_29] : memref<1x4x256xf32, #tpu.memory_space<vmem>>, vector<1x4x256xf32>
    %69 = vector.shape_cast %68 : vector<1x4x256xf32> to vector<4x256xf32>
    %c0_30 = arith.constant 0 : index
    %c0_31 = arith.constant 0 : index
    %70 = vector.load %arg6[%c0_30, %c0_31] : memref<4x1xf32, #tpu.memory_space<vmem>>, vector<4x1xf32>
    %71 = vector.broadcast %70 : vector<4x1xf32> to vector<4x256xf32>
    %72 = arith.mulf %69, %71 : vector<4x256xf32>
    %c0_32 = arith.constant 0 : index
    %c0_33 = arith.constant 0 : index
    %73 = vector.load %arg7[%c0_32, %c0_33] : memref<4x1xf32, #tpu.memory_space<vmem>>, vector<4x1xf32>
    %74 = vector.broadcast %73 : vector<4x1xf32> to vector<4x256xf32>
    %75 = arith.addf %72, %74 : vector<4x256xf32>
    %cst_34 = arith.constant 0.000000e+00 : f32
    %76 = vector.broadcast %cst_34 : f32 to vector<4x256xf32>
    %77 = arith.maximumf %75, %76 : vector<4x256xf32>
    %cst_35 = arith.constant 0.000000e+00 : f32
    %78 = vector.broadcast %cst_35 : f32 to vector<4x256xf32>
    %79 = arith.select %67, %77, %78 : vector<4x256xf32>
    %cst_36 = arith.constant 0.000000e+00 : f32
    %80 = vector.broadcast %cst_36 : f32 to vector<4x17xf32>
    %81 = tpu.concatenate %80, %66, %53, %79, %80 in 1 : vector<4x17xf32>, vector<4x256xf32>, vector<4x2048xf32>, vector<4x256xf32>, vector<4x17xf32> -> vector<4x2594xf32>
    %cst_37 = arith.constant 0.000000e+00 : f32
    %82 = vector.shape_cast %41 : vector<1x2594xi1> to vector<1x2594xi1>
    %83 = vector.broadcast %82 : vector<1x2594xi1> to vector<4x2594xi1>
    %84 = vector.broadcast %cst_37 : f32 to vector<4x2594xf32>
    %85 = arith.select %83, %84, %81 : vector<4x2594xi1>, vector<4x2594xf32>
    %cst_38 = arith.constant 0.000000e+00 : f32
    %86 = vector.shape_cast %43 : vector<1x2594xi1> to vector<1x2594xi1>
    %87 = vector.broadcast %86 : vector<1x2594xi1> to vector<4x2594xi1>
    %88 = vector.broadcast %cst_38 : f32 to vector<4x2594xf32>
    %89 = arith.select %87, %88, %81 : vector<4x2594xi1>, vector<4x2594xf32>
    %90 = vector.extract_strided_slice %85 {offsets = [0, 0], sizes = [4, 2050], strides = [1, 1]} : vector<4x2594xf32> to vector<4x2050xf32>
    %91 = vector.extract_strided_slice %81 {offsets = [0, 16], sizes = [4, 2050], strides = [1, 1]} : vector<4x2594xf32> to vector<4x2050xf32>
    %92 = vector.extract_strided_slice %89 {offsets = [0, 32], sizes = [4, 2050], strides = [1, 1]} : vector<4x2594xf32> to vector<4x2050xf32>
    %93 = vector.extract_strided_slice %85 {offsets = [0, 256], sizes = [4, 2050], strides = [1, 1]} : vector<4x2594xf32> to vector<4x2050xf32>
    %94 = vector.extract_strided_slice %81 {offsets = [0, 272], sizes = [4, 2050], strides = [1, 1]} : vector<4x2594xf32> to vector<4x2050xf32>
    %95 = vector.extract_strided_slice %89 {offsets = [0, 288], sizes = [4, 2050], strides = [1, 1]} : vector<4x2594xf32> to vector<4x2050xf32>
    %96 = vector.extract_strided_slice %85 {offsets = [0, 512], sizes = [4, 2050], strides = [1, 1]} : vector<4x2594xf32> to vector<4x2050xf32>
    %97 = vector.extract_strided_slice %81 {offsets = [0, 528], sizes = [4, 2050], strides = [1, 1]} : vector<4x2594xf32> to vector<4x2050xf32>
    %98 = vector.extract_strided_slice %89 {offsets = [0, 544], sizes = [4, 2050], strides = [1, 1]} : vector<4x2594xf32> to vector<4x2050xf32>
    %99 = tpu.concatenate %90, %91, %92, %93, %94, %95, %96, %97, %98 in 0 : vector<4x2050xf32>, vector<4x2050xf32>, vector<4x2050xf32>, vector<4x2050xf32>, vector<4x2050xf32>, vector<4x2050xf32>, vector<4x2050xf32>, vector<4x2050xf32>, vector<4x2050xf32> -> vector<36x2050xf32>
    %c1 = arith.constant 1 : index
    %c0_39 = arith.constant 0 : index
    %c0_40 = arith.constant 0 : index
    %100 = vector.load %arg5[%c1, %c0_39, %c0_40] : memref<3x2x36xf32, #tpu.memory_space<vmem>>, vector<1x2x36xf32>
    %101 = vector.shape_cast %100 : vector<1x2x36xf32> to vector<2x36xf32>
    %102 = vector.extract_strided_slice %99 {offsets = [0, 1], sizes = [36, 2048], strides = [1, 1]} : vector<36x2050xf32> to vector<36x2048xf32>
    %cst_41 = arith.constant dense<0.000000e+00> : vector<2x2048xf32>
    %103 = tpu.matmul %101, %102, %cst_41 {dimension_numbers = #tpu.dot_dimension_numbers<[1], [0], [0], [1], [0, 0, 1, 1], [], []>} : vector<2x36xf32>, vector<36x2048xf32>, vector<2x2048xf32> -> vector<2x2048xf32>
    %c0_42 = arith.constant 0 : index
    %c0_43 = arith.constant 0 : index
    %c0_44 = arith.constant 0 : index
    %104 = vector.load %arg5[%c0_42, %c0_43, %c0_44] : memref<3x2x36xf32, #tpu.memory_space<vmem>>, vector<1x2x36xf32>
    %105 = vector.shape_cast %104 : vector<1x2x36xf32> to vector<2x36xf32>
    %106 = vector.extract_strided_slice %99 {offsets = [0, 0], sizes = [36, 2048], strides = [1, 1]} : vector<36x2050xf32> to vector<36x2048xf32>
    %cst_45 = arith.constant dense<0.000000e+00> : vector<2x2048xf32>
    %107 = tpu.matmul %105, %106, %cst_45 {dimension_numbers = #tpu.dot_dimension_numbers<[1], [0], [0], [1], [0, 0, 1, 1], [], []>} : vector<2x36xf32>, vector<36x2048xf32>, vector<2x2048xf32> -> vector<2x2048xf32>
    %cst_46 = arith.constant 0.000000e+00 : f32
    %108 = vector.shape_cast %18 : vector<1x2048xi1> to vector<1x2048xi1>
    %109 = vector.broadcast %108 : vector<1x2048xi1> to vector<2x2048xi1>
    %110 = vector.broadcast %cst_46 : f32 to vector<2x2048xf32>
    %111 = arith.select %109, %107, %110 : vector<2x2048xi1>, vector<2x2048xf32>
    %112 = arith.addf %103, %111 : vector<2x2048xf32>
    %c2 = arith.constant 2 : index
    %c0_47 = arith.constant 0 : index
    %c0_48 = arith.constant 0 : index
    %113 = vector.load %arg5[%c2, %c0_47, %c0_48] : memref<3x2x36xf32, #tpu.memory_space<vmem>>, vector<1x2x36xf32>
    %114 = vector.shape_cast %113 : vector<1x2x36xf32> to vector<2x36xf32>
    %115 = vector.extract_strided_slice %99 {offsets = [0, 2], sizes = [36, 2048], strides = [1, 1]} : vector<36x2050xf32> to vector<36x2048xf32>
    %cst_49 = arith.constant dense<0.000000e+00> : vector<2x2048xf32>
    %116 = tpu.matmul %114, %115, %cst_49 {dimension_numbers = #tpu.dot_dimension_numbers<[1], [0], [0], [1], [0, 0, 1, 1], [], []>} : vector<2x36xf32>, vector<36x2048xf32>, vector<2x2048xf32> -> vector<2x2048xf32>
    %cst_50 = arith.constant 0.000000e+00 : f32
    %117 = vector.shape_cast %20 : vector<1x2048xi1> to vector<1x2048xi1>
    %118 = vector.broadcast %117 : vector<1x2048xi1> to vector<2x2048xi1>
    %119 = vector.broadcast %cst_50 : f32 to vector<2x2048xf32>
    %120 = arith.select %118, %116, %119 : vector<2x2048xi1>, vector<2x2048xf32>
    %121 = arith.addf %112, %120 : vector<2x2048xf32>
    %c0_i32_51 = arith.constant 0 : i32
    %122 = arith.cmpi eq, %arg1, %c0_i32_51 : i32
    %123 = arith.extui %122 : i1 to i32
    %c0_i32_52 = arith.constant 0 : i32
    %124 = arith.cmpi ne, %123, %c0_i32_52 : i32
    scf.if %124 {
      %cst_74 = arith.constant 0.000000e+00 : f32
      %145 = vector.broadcast %cst_74 : f32 to vector<1x2x2x1xf32>
      %c0_75 = arith.constant 0 : index
      %c0_76 = arith.constant 0 : index
      %c0_77 = arith.constant 0 : index
      %c0_78 = arith.constant 0 : index
      %146 = vector.load %arg9[%c0_75, %c0_76, %c0_77, %c0_78] : memref<1x2x2x1xf32, #tpu.memory_space<vmem>>, vector<1x2x2x1xf32>
      tpu.vector_store %arg9[%c0_75, %c0_76, %c0_77, %c0_78], %145 {strides = array<i32>} : memref<1x2x2x1xf32, #tpu.memory_space<vmem>>, vector<1x2x2x1xf32>,
    } else {
    }
    %c0_53 = arith.constant 0 : index
    %c0_54 = arith.constant 0 : index
    %c0_55 = arith.constant 0 : index
    %c0_56 = arith.constant 0 : index
    %125 = vector.load %arg9[%c0_53, %c0_54, %c0_55, %c0_56] : memref<1x2x2x1xf32, #tpu.memory_space<vmem>>, vector<1x1x2x1xf32>
    %126 = vector.shape_cast %125 : vector<1x1x2x1xf32> to vector<2x1xf32>
    %cst_57 = arith.constant dense<0.000000e+00> : vector<2xf32>
    %127 = vector.multi_reduction <add>, %121, %cst_57 [1] : vector<2x2048xf32> to vector<2xf32>
    %128 = vector.shape_cast %127 : vector<2xf32> to vector<2x1xf32>
    %129 = arith.addf %126, %128 : vector<2x1xf32>
    %c0_58 = arith.constant 0 : index
    %c0_59 = arith.constant 0 : index
    %c0_60 = arith.constant 0 : index
    %c0_61 = arith.constant 0 : index
    %130 = vector.load %arg9[%c0_58, %c0_59, %c0_60, %c0_61] : memref<1x2x2x1xf32, #tpu.memory_space<vmem>>, vector<1x1x2x1xf32>
    %131 = vector.shape_cast %130 : vector<1x1x2x1xf32> to vector<2x1xf32>
    %132 = vector.shape_cast %129 : vector<2x1xf32> to vector<1x1x2x1xf32>
    tpu.vector_store %arg9[%c0_58, %c0_59, %c0_60, %c0_61], %132 {strides = array<i32>} : memref<1x2x2x1xf32, #tpu.memory_space<vmem>>, vector<1x1x2x1xf32>,
    %c0_62 = arith.constant 0 : index
    %c1_63 = arith.constant 1 : index
    %c0_64 = arith.constant 0 : index
    %c0_65 = arith.constant 0 : index
    %133 = vector.load %arg9[%c0_62, %c1_63, %c0_64, %c0_65] : memref<1x2x2x1xf32, #tpu.memory_space<vmem>>, vector<1x1x2x1xf32>
    %134 = vector.shape_cast %133 : vector<1x1x2x1xf32> to vector<2x1xf32>
    %135 = arith.mulf %121, %121 : vector<2x2048xf32>
    %cst_66 = arith.constant dense<0.000000e+00> : vector<2xf32>
    %136 = vector.multi_reduction <add>, %135, %cst_66 [1] : vector<2x2048xf32> to vector<2xf32>
    %137 = vector.shape_cast %136 : vector<2xf32> to vector<2x1xf32>
    %138 = arith.addf %134, %137 : vector<2x1xf32>
    %c0_67 = arith.constant 0 : index
    %c1_68 = arith.constant 1 : index
    %c0_69 = arith.constant 0 : index
    %c0_70 = arith.constant 0 : index
    %139 = vector.load %arg9[%c0_67, %c1_68, %c0_69, %c0_70] : memref<1x2x2x1xf32, #tpu.memory_space<vmem>>, vector<1x1x2x1xf32>
    %140 = vector.shape_cast %139 : vector<1x1x2x1xf32> to vector<2x1xf32>
    %141 = vector.shape_cast %138 : vector<2x1xf32> to vector<1x1x2x1xf32>
    tpu.vector_store %arg9[%c0_67, %c1_68, %c0_69, %c0_70], %141 {strides = array<i32>} : memref<1x2x2x1xf32, #tpu.memory_space<vmem>>, vector<1x1x2x1xf32>,
    %c0_71 = arith.constant 0 : index
    %c0_72 = arith.constant 0 : index
    %c0_73 = arith.constant 0 : index
    %142 = vector.load %arg8[%c0_71, %c0_72, %c0_73] : memref<1x2x2048xf32, #tpu.memory_space<vmem>>, vector<1x2x2048xf32>
    %143 = vector.shape_cast %142 : vector<1x2x2048xf32> to vector<2x2048xf32>
    %144 = vector.shape_cast %121 : vector<2x2048xf32> to vector<1x2x2048xf32>
    tpu.vector_store %arg8[%c0_71, %c0_72, %c0_73], %144 {strides = array<i32>} : memref<1x2x2048xf32, #tpu.memory_space<vmem>>, vector<1x2x2048xf32>,
    return
  }
  func.func @transform_0(%arg0: i32, %arg1: i32) -> (i32, i32, i32) {
    %c0_i32 = arith.constant 0 : i32
    %c0_i32_0 = arith.constant 0 : i32
    return %arg0, %c0_i32, %arg1 : i32, i32, i32
  }
  func.func @transform_1(%arg0: i32, %arg1: i32) -> (i32, i32, i32) {
    %c8_i32 = arith.constant 8 : i32
    %0 = arith.muli %arg1, %c8_i32 : i32
    %c1_i32 = arith.constant 1 : i32
    %1 = arith.subi %0, %c1_i32 : i32
    %c0_i32 = arith.constant 0 : i32
    %2 = arith.maxsi %1, %c0_i32 : i32
    %c0_i32_0 = arith.constant 0 : i32
    %c0_i32_1 = arith.constant 0 : i32
    return %arg0, %c0_i32_0, %2 : i32, i32, i32
  }
  func.func @transform_2(%arg0: i32, %arg1: i32) -> (i32, i32, i32) {
    %c8_i32 = arith.constant 8 : i32
    %0 = arith.muli %arg1, %c8_i32 : i32
    %c8_i32_0 = arith.constant 8 : i32
    %1 = arith.addi %0, %c8_i32_0 : i32
    %c15_i32 = arith.constant 15 : i32
    %2 = arith.minsi %1, %c15_i32 : i32
    %c0_i32 = arith.constant 0 : i32
    %c0_i32_1 = arith.constant 0 : i32
    return %arg0, %c0_i32, %2 : i32, i32, i32
  }
  func.func @transform_3(%arg0: i32, %arg1: i32) -> (i32, i32, i32) {
    %c0_i32 = arith.constant 0 : i32
    %c0_i32_0 = arith.constant 0 : i32
    %c0_i32_1 = arith.constant 0 : i32
    %c0_i32_2 = arith.constant 0 : i32
    return %c0_i32, %c0_i32_0, %c0_i32_1 : i32, i32, i32
  }
  func.func @transform_4(%arg0: i32, %arg1: i32) -> (i32, i32) {
    %c0_i32 = arith.constant 0 : i32
    %c0_i32_0 = arith.constant 0 : i32
    %c0_i32_1 = arith.constant 0 : i32
    return %c0_i32, %c0_i32_0 : i32, i32
  }
  func.func @transform_5(%arg0: i32, %arg1: i32) -> (i32, i32) {
    %c0_i32 = arith.constant 0 : i32
    %c0_i32_0 = arith.constant 0 : i32
    %c0_i32_1 = arith.constant 0 : i32
    return %c0_i32, %c0_i32_0 : i32, i32
  }
  func.func @transform_6(%arg0: i32, %arg1: i32) -> (i32, i32, i32) {
    %c0_i32 = arith.constant 0 : i32
    %c0_i32_0 = arith.constant 0 : i32
    return %arg0, %c0_i32, %arg1 : i32, i32, i32
  }
  func.func @transform_7(%arg0: i32, %arg1: i32) -> (i32, i32, i32, i32) {
    %c0_i32 = arith.constant 0 : i32
    %c0_i32_0 = arith.constant 0 : i32
    %c0_i32_1 = arith.constant 0 : i32
    %c0_i32_2 = arith.constant 0 : i32
    return %arg0, %c0_i32, %c0_i32_0, %c0_i32_1 : i32, i32, i32, i32
  }
}

module attributes {stable_mosaic.version = 11 : i64} {
  func.func @kernel(%arg0: i32, %arg1: i32, %arg2: memref<1x2x2048xf32, #tpu.memory_space<vmem>>, %arg3: memref<1x2x256xf32, #tpu.memory_space<vmem>>, %arg4: memref<1x2x256xf32, #tpu.memory_space<vmem>>, %arg5: memref<3x2x18xf32, #tpu.memory_space<vmem>>, %arg6: memref<2x1xf32, #tpu.memory_space<vmem>>, %arg7: memref<2x1xf32, #tpu.memory_space<vmem>>, %arg8: memref<2x1xf32, #tpu.memory_space<vmem>>, %arg9: memref<1x2x2048xf32, #tpu.memory_space<vmem>>) attributes {dimension_semantics = [#tpu.dimension_semantics<parallel>, #tpu.dimension_semantics<parallel>], iteration_bounds = array<i64: 2, 2>, scalar_prefetch = 0 : i64, scratch_operands = 0 : i64, tpu.core_type = #tpu.core_type<tc>, window_params = [{transform_indices = @transform_0, window_bounds = array<i64: 1, 2, 2048>}, {transform_indices = @transform_1, window_bounds = array<i64: 1, 2, 256>}, {transform_indices = @transform_2, window_bounds = array<i64: 1, 2, 256>}, {pipeline_mode = #tpu.pipeline_mode<synchronous>, transform_indices = @transform_3, window_bounds = array<i64: 3, 2, 18>}, {pipeline_mode = #tpu.pipeline_mode<synchronous>, transform_indices = @transform_4, window_bounds = array<i64: 2, 1>}, {pipeline_mode = #tpu.pipeline_mode<synchronous>, transform_indices = @transform_5, window_bounds = array<i64: 2, 1>}, {pipeline_mode = #tpu.pipeline_mode<synchronous>, transform_indices = @transform_6, window_bounds = array<i64: 2, 1>}, {transform_indices = @transform_7, window_bounds = array<i64: 1, 2, 2048>}]} {
    %0 = tpu.iota {dimensions = array<i32: 1>} : vector<1x2048xi32>
    %c16_i32 = arith.constant 16 : i32
    %c0_i32 = arith.constant 0 : i32
    %1 = arith.cmpi eq, %c16_i32, %c0_i32 : i32
    %c1_i32 = arith.constant 1 : i32
    %2 = arith.select %1, %c1_i32, %c16_i32 : i32
    %3 = vector.broadcast %2 : i32 to vector<1x2048xi32>
    %4 = arith.remsi %0, %3 : vector<1x2048xi32>
    %c0_i32_0 = arith.constant 0 : i32
    %5 = vector.broadcast %c0_i32_0 : i32 to vector<1x2048xi32>
    %6 = arith.cmpi ne, %4, %5 : vector<1x2048xi32>
    %c0_i32_1 = arith.constant 0 : i32
    %7 = vector.broadcast %c0_i32_1 : i32 to vector<1x2048xi32>
    %8 = arith.cmpi slt, %4, %7 : vector<1x2048xi32>
    %c0_i32_2 = arith.constant 0 : i32
    %9 = arith.cmpi slt, %2, %c0_i32_2 : i32
    %10 = vector.broadcast %9 : i1 to vector<1x2048xi1>
    %11 = vector.broadcast %10 : vector<1x2048xi1> to vector<1x2048xi1>
    %12 = arith.xori %8, %11 : vector<1x2048xi1>
    %13 = arith.andi %12, %6 : vector<1x2048xi1>
    %14 = vector.broadcast %2 : i32 to vector<1x2048xi32>
    %15 = arith.addi %4, %14 : vector<1x2048xi32>
    %16 = arith.select %13, %15, %4 : vector<1x2048xi1>, vector<1x2048xi32>
    %c1_i32_3 = arith.constant 1 : i32
    %17 = vector.broadcast %c1_i32_3 : i32 to vector<1x2048xi32>
    %18 = arith.cmpi sge, %16, %17 : vector<1x2048xi32>
    %c14_i32 = arith.constant 14 : i32
    %19 = vector.broadcast %c14_i32 : i32 to vector<1x2048xi32>
    %20 = arith.cmpi sle, %16, %19 : vector<1x2048xi32>
    %21 = tpu.iota {dimensions = array<i32: 1>} : vector<1x2594xi32>
    %c17_i32 = arith.constant 17 : i32
    %22 = vector.broadcast %c17_i32 : i32 to vector<1x2594xi32>
    %23 = arith.subi %21, %22 : vector<1x2594xi32>
    %c256_i32 = arith.constant 256 : i32
    %c0_i32_4 = arith.constant 0 : i32
    %24 = arith.cmpi eq, %c256_i32, %c0_i32_4 : i32
    %c1_i32_5 = arith.constant 1 : i32
    %25 = arith.select %24, %c1_i32_5, %c256_i32 : i32
    %26 = vector.broadcast %25 : i32 to vector<1x2594xi32>
    %27 = arith.remsi %23, %26 : vector<1x2594xi32>
    %c0_i32_6 = arith.constant 0 : i32
    %28 = vector.broadcast %c0_i32_6 : i32 to vector<1x2594xi32>
    %29 = arith.cmpi ne, %27, %28 : vector<1x2594xi32>
    %c0_i32_7 = arith.constant 0 : i32
    %30 = vector.broadcast %c0_i32_7 : i32 to vector<1x2594xi32>
    %31 = arith.cmpi slt, %27, %30 : vector<1x2594xi32>
    %c0_i32_8 = arith.constant 0 : i32
    %32 = arith.cmpi slt, %25, %c0_i32_8 : i32
    %33 = vector.broadcast %32 : i1 to vector<1x2594xi1>
    %34 = vector.broadcast %33 : vector<1x2594xi1> to vector<1x2594xi1>
    %35 = arith.xori %31, %34 : vector<1x2594xi1>
    %36 = arith.andi %35, %29 : vector<1x2594xi1>
    %37 = vector.broadcast %25 : i32 to vector<1x2594xi32>
    %38 = arith.addi %27, %37 : vector<1x2594xi32>
    %39 = arith.select %36, %38, %27 : vector<1x2594xi1>, vector<1x2594xi32>
    %c240_i32 = arith.constant 240 : i32
    %40 = vector.broadcast %c240_i32 : i32 to vector<1x2594xi32>
    %41 = arith.cmpi sge, %39, %40 : vector<1x2594xi32>
    %c16_i32_9 = arith.constant 16 : i32
    %42 = vector.broadcast %c16_i32_9 : i32 to vector<1x2594xi32>
    %43 = arith.cmpi slt, %39, %42 : vector<1x2594xi32>
    %c0 = arith.constant 0 : index
    %c0_10 = arith.constant 0 : index
    %c0_11 = arith.constant 0 : index
    %44 = vector.load %arg2[%c0, %c0_10, %c0_11] : memref<1x2x2048xf32, #tpu.memory_space<vmem>>, vector<1x2x2048xf32>
    %45 = vector.shape_cast %44 : vector<1x2x2048xf32> to vector<2x2048xf32>
    %c0_12 = arith.constant 0 : index
    %c0_13 = arith.constant 0 : index
    %46 = vector.load %arg6[%c0_12, %c0_13] : memref<2x1xf32, #tpu.memory_space<vmem>>, vector<2x1xf32>
    %47 = vector.broadcast %46 : vector<2x1xf32> to vector<2x2048xf32>
    %48 = arith.mulf %45, %47 : vector<2x2048xf32>
    %c0_14 = arith.constant 0 : index
    %c0_15 = arith.constant 0 : index
    %49 = vector.load %arg7[%c0_14, %c0_15] : memref<2x1xf32, #tpu.memory_space<vmem>>, vector<2x1xf32>
    %50 = vector.broadcast %49 : vector<2x1xf32> to vector<2x2048xf32>
    %51 = arith.addf %48, %50 : vector<2x2048xf32>
    %cst = arith.constant 0.000000e+00 : f32
    %52 = vector.broadcast %cst : f32 to vector<2x2048xf32>
    %53 = arith.maximumf %51, %52 : vector<2x2048xf32>
    %c0_i32_16 = arith.constant 0 : i32
    %54 = arith.cmpi sgt, %arg1, %c0_i32_16 : i32
    %c0_17 = arith.constant 0 : index
    %c0_18 = arith.constant 0 : index
    %c0_19 = arith.constant 0 : index
    %55 = vector.load %arg3[%c0_17, %c0_18, %c0_19] : memref<1x2x256xf32, #tpu.memory_space<vmem>>, vector<1x2x256xf32>
    %56 = vector.shape_cast %55 : vector<1x2x256xf32> to vector<2x256xf32>
    %c0_20 = arith.constant 0 : index
    %c0_21 = arith.constant 0 : index
    %57 = vector.load %arg6[%c0_20, %c0_21] : memref<2x1xf32, #tpu.memory_space<vmem>>, vector<2x1xf32>
    %58 = vector.broadcast %57 : vector<2x1xf32> to vector<2x256xf32>
    %59 = arith.mulf %56, %58 : vector<2x256xf32>
    %c0_22 = arith.constant 0 : index
    %c0_23 = arith.constant 0 : index
    %60 = vector.load %arg7[%c0_22, %c0_23] : memref<2x1xf32, #tpu.memory_space<vmem>>, vector<2x1xf32>
    %61 = vector.broadcast %60 : vector<2x1xf32> to vector<2x256xf32>
    %62 = arith.addf %59, %61 : vector<2x256xf32>
    %cst_24 = arith.constant 0.000000e+00 : f32
    %63 = vector.broadcast %cst_24 : f32 to vector<2x256xf32>
    %64 = arith.maximumf %62, %63 : vector<2x256xf32>
    %cst_25 = arith.constant 0.000000e+00 : f32
    %65 = vector.broadcast %cst_25 : f32 to vector<2x256xf32>
    %66 = arith.select %54, %64, %65 : vector<2x256xf32>
    %c1_i32_26 = arith.constant 1 : i32
    %67 = arith.cmpi slt, %arg1, %c1_i32_26 : i32
    %c0_27 = arith.constant 0 : index
    %c0_28 = arith.constant 0 : index
    %c0_29 = arith.constant 0 : index
    %68 = vector.load %arg4[%c0_27, %c0_28, %c0_29] : memref<1x2x256xf32, #tpu.memory_space<vmem>>, vector<1x2x256xf32>
    %69 = vector.shape_cast %68 : vector<1x2x256xf32> to vector<2x256xf32>
    %c0_30 = arith.constant 0 : index
    %c0_31 = arith.constant 0 : index
    %70 = vector.load %arg6[%c0_30, %c0_31] : memref<2x1xf32, #tpu.memory_space<vmem>>, vector<2x1xf32>
    %71 = vector.broadcast %70 : vector<2x1xf32> to vector<2x256xf32>
    %72 = arith.mulf %69, %71 : vector<2x256xf32>
    %c0_32 = arith.constant 0 : index
    %c0_33 = arith.constant 0 : index
    %73 = vector.load %arg7[%c0_32, %c0_33] : memref<2x1xf32, #tpu.memory_space<vmem>>, vector<2x1xf32>
    %74 = vector.broadcast %73 : vector<2x1xf32> to vector<2x256xf32>
    %75 = arith.addf %72, %74 : vector<2x256xf32>
    %cst_34 = arith.constant 0.000000e+00 : f32
    %76 = vector.broadcast %cst_34 : f32 to vector<2x256xf32>
    %77 = arith.maximumf %75, %76 : vector<2x256xf32>
    %cst_35 = arith.constant 0.000000e+00 : f32
    %78 = vector.broadcast %cst_35 : f32 to vector<2x256xf32>
    %79 = arith.select %67, %77, %78 : vector<2x256xf32>
    %cst_36 = arith.constant 0.000000e+00 : f32
    %80 = vector.broadcast %cst_36 : f32 to vector<2x17xf32>
    %81 = tpu.concatenate %80, %66, %53, %79, %80 in 1 : vector<2x17xf32>, vector<2x256xf32>, vector<2x2048xf32>, vector<2x256xf32>, vector<2x17xf32> -> vector<2x2594xf32>
    %cst_37 = arith.constant 0.000000e+00 : f32
    %82 = vector.shape_cast %41 : vector<1x2594xi1> to vector<1x2594xi1>
    %83 = vector.broadcast %82 : vector<1x2594xi1> to vector<2x2594xi1>
    %84 = vector.broadcast %cst_37 : f32 to vector<2x2594xf32>
    %85 = arith.select %83, %84, %81 : vector<2x2594xi1>, vector<2x2594xf32>
    %cst_38 = arith.constant 0.000000e+00 : f32
    %86 = vector.shape_cast %43 : vector<1x2594xi1> to vector<1x2594xi1>
    %87 = vector.broadcast %86 : vector<1x2594xi1> to vector<2x2594xi1>
    %88 = vector.broadcast %cst_38 : f32 to vector<2x2594xf32>
    %89 = arith.select %87, %88, %81 : vector<2x2594xi1>, vector<2x2594xf32>
    %90 = vector.extract_strided_slice %85 {offsets = [0, 0], sizes = [2, 2050], strides = [1, 1]} : vector<2x2594xf32> to vector<2x2050xf32>
    %91 = vector.extract_strided_slice %81 {offsets = [0, 16], sizes = [2, 2050], strides = [1, 1]} : vector<2x2594xf32> to vector<2x2050xf32>
    %92 = vector.extract_strided_slice %89 {offsets = [0, 32], sizes = [2, 2050], strides = [1, 1]} : vector<2x2594xf32> to vector<2x2050xf32>
    %93 = vector.extract_strided_slice %85 {offsets = [0, 256], sizes = [2, 2050], strides = [1, 1]} : vector<2x2594xf32> to vector<2x2050xf32>
    %94 = vector.extract_strided_slice %81 {offsets = [0, 272], sizes = [2, 2050], strides = [1, 1]} : vector<2x2594xf32> to vector<2x2050xf32>
    %95 = vector.extract_strided_slice %89 {offsets = [0, 288], sizes = [2, 2050], strides = [1, 1]} : vector<2x2594xf32> to vector<2x2050xf32>
    %96 = vector.extract_strided_slice %85 {offsets = [0, 512], sizes = [2, 2050], strides = [1, 1]} : vector<2x2594xf32> to vector<2x2050xf32>
    %97 = vector.extract_strided_slice %81 {offsets = [0, 528], sizes = [2, 2050], strides = [1, 1]} : vector<2x2594xf32> to vector<2x2050xf32>
    %98 = vector.extract_strided_slice %89 {offsets = [0, 544], sizes = [2, 2050], strides = [1, 1]} : vector<2x2594xf32> to vector<2x2050xf32>
    %99 = tpu.concatenate %90, %91, %92, %93, %94, %95, %96, %97, %98 in 0 : vector<2x2050xf32>, vector<2x2050xf32>, vector<2x2050xf32>, vector<2x2050xf32>, vector<2x2050xf32>, vector<2x2050xf32>, vector<2x2050xf32>, vector<2x2050xf32>, vector<2x2050xf32> -> vector<18x2050xf32>
    %c1 = arith.constant 1 : index
    %c0_39 = arith.constant 0 : index
    %c0_40 = arith.constant 0 : index
    %100 = vector.load %arg5[%c1, %c0_39, %c0_40] : memref<3x2x18xf32, #tpu.memory_space<vmem>>, vector<1x2x18xf32>
    %101 = vector.shape_cast %100 : vector<1x2x18xf32> to vector<2x18xf32>
    %102 = vector.extract_strided_slice %99 {offsets = [0, 1], sizes = [18, 2048], strides = [1, 1]} : vector<18x2050xf32> to vector<18x2048xf32>
    %cst_41 = arith.constant dense<0.000000e+00> : vector<2x2048xf32>
    %103 = tpu.matmul %101, %102, %cst_41 {dimension_numbers = #tpu.dot_dimension_numbers<[1], [0], [0], [1], [0, 0, 1, 1], [], []>} : vector<2x18xf32>, vector<18x2048xf32>, vector<2x2048xf32> -> vector<2x2048xf32>
    %c0_42 = arith.constant 0 : index
    %c0_43 = arith.constant 0 : index
    %c0_44 = arith.constant 0 : index
    %104 = vector.load %arg5[%c0_42, %c0_43, %c0_44] : memref<3x2x18xf32, #tpu.memory_space<vmem>>, vector<1x2x18xf32>
    %105 = vector.shape_cast %104 : vector<1x2x18xf32> to vector<2x18xf32>
    %106 = vector.extract_strided_slice %99 {offsets = [0, 0], sizes = [18, 2048], strides = [1, 1]} : vector<18x2050xf32> to vector<18x2048xf32>
    %cst_45 = arith.constant dense<0.000000e+00> : vector<2x2048xf32>
    %107 = tpu.matmul %105, %106, %cst_45 {dimension_numbers = #tpu.dot_dimension_numbers<[1], [0], [0], [1], [0, 0, 1, 1], [], []>} : vector<2x18xf32>, vector<18x2048xf32>, vector<2x2048xf32> -> vector<2x2048xf32>
    %cst_46 = arith.constant 0.000000e+00 : f32
    %108 = vector.shape_cast %18 : vector<1x2048xi1> to vector<1x2048xi1>
    %109 = vector.broadcast %108 : vector<1x2048xi1> to vector<2x2048xi1>
    %110 = vector.broadcast %cst_46 : f32 to vector<2x2048xf32>
    %111 = arith.select %109, %107, %110 : vector<2x2048xi1>, vector<2x2048xf32>
    %112 = arith.addf %103, %111 : vector<2x2048xf32>
    %c2 = arith.constant 2 : index
    %c0_47 = arith.constant 0 : index
    %c0_48 = arith.constant 0 : index
    %113 = vector.load %arg5[%c2, %c0_47, %c0_48] : memref<3x2x18xf32, #tpu.memory_space<vmem>>, vector<1x2x18xf32>
    %114 = vector.shape_cast %113 : vector<1x2x18xf32> to vector<2x18xf32>
    %115 = vector.extract_strided_slice %99 {offsets = [0, 2], sizes = [18, 2048], strides = [1, 1]} : vector<18x2050xf32> to vector<18x2048xf32>
    %cst_49 = arith.constant dense<0.000000e+00> : vector<2x2048xf32>
    %116 = tpu.matmul %114, %115, %cst_49 {dimension_numbers = #tpu.dot_dimension_numbers<[1], [0], [0], [1], [0, 0, 1, 1], [], []>} : vector<2x18xf32>, vector<18x2048xf32>, vector<2x2048xf32> -> vector<2x2048xf32>
    %cst_50 = arith.constant 0.000000e+00 : f32
    %117 = vector.shape_cast %20 : vector<1x2048xi1> to vector<1x2048xi1>
    %118 = vector.broadcast %117 : vector<1x2048xi1> to vector<2x2048xi1>
    %119 = vector.broadcast %cst_50 : f32 to vector<2x2048xf32>
    %120 = arith.select %118, %116, %119 : vector<2x2048xi1>, vector<2x2048xf32>
    %121 = arith.addf %112, %120 : vector<2x2048xf32>
    %c0_51 = arith.constant 0 : index
    %c0_52 = arith.constant 0 : index
    %122 = vector.load %arg8[%c0_51, %c0_52] : memref<2x1xf32, #tpu.memory_space<vmem>>, vector<2x1xf32>
    %123 = vector.broadcast %122 : vector<2x1xf32> to vector<2x2048xf32>
    %124 = arith.addf %121, %123 : vector<2x2048xf32>
    %cst_53 = arith.constant 0.000000e+00 : f32
    %125 = vector.broadcast %cst_53 : f32 to vector<2x2048xf32>
    %126 = arith.maximumf %124, %125 : vector<2x2048xf32>
    %c0_54 = arith.constant 0 : index
    %c0_55 = arith.constant 0 : index
    %c0_56 = arith.constant 0 : index
    %127 = vector.load %arg9[%c0_54, %c0_55, %c0_56] : memref<1x2x2048xf32, #tpu.memory_space<vmem>>, vector<1x2x2048xf32>
    %128 = vector.shape_cast %127 : vector<1x2x2048xf32> to vector<2x2048xf32>
    %129 = vector.shape_cast %126 : vector<2x2048xf32> to vector<1x2x2048xf32>
    tpu.vector_store %arg9[%c0_54, %c0_55, %c0_56], %129 {strides = array<i32>} : memref<1x2x2048xf32, #tpu.memory_space<vmem>>, vector<1x2x2048xf32>,
    return
  }
  func.func @transform_0(%arg0: i32, %arg1: i32) -> (i32, i32, i32) {
    %c0_i32 = arith.constant 0 : i32
    %c0_i32_0 = arith.constant 0 : i32
    return %arg0, %c0_i32, %arg1 : i32, i32, i32
  }
  func.func @transform_1(%arg0: i32, %arg1: i32) -> (i32, i32, i32) {
    %c8_i32 = arith.constant 8 : i32
    %0 = arith.muli %arg1, %c8_i32 : i32
    %c1_i32 = arith.constant 1 : i32
    %1 = arith.subi %0, %c1_i32 : i32
    %c0_i32 = arith.constant 0 : i32
    %2 = arith.maxsi %1, %c0_i32 : i32
    %c0_i32_0 = arith.constant 0 : i32
    %c0_i32_1 = arith.constant 0 : i32
    return %arg0, %c0_i32_0, %2 : i32, i32, i32
  }
  func.func @transform_2(%arg0: i32, %arg1: i32) -> (i32, i32, i32) {
    %c8_i32 = arith.constant 8 : i32
    %0 = arith.muli %arg1, %c8_i32 : i32
    %c8_i32_0 = arith.constant 8 : i32
    %1 = arith.addi %0, %c8_i32_0 : i32
    %c15_i32 = arith.constant 15 : i32
    %2 = arith.minsi %1, %c15_i32 : i32
    %c0_i32 = arith.constant 0 : i32
    %c0_i32_1 = arith.constant 0 : i32
    return %arg0, %c0_i32, %2 : i32, i32, i32
  }
  func.func @transform_3(%arg0: i32, %arg1: i32) -> (i32, i32, i32) {
    %c0_i32 = arith.constant 0 : i32
    %c0_i32_0 = arith.constant 0 : i32
    %c0_i32_1 = arith.constant 0 : i32
    %c0_i32_2 = arith.constant 0 : i32
    return %c0_i32, %c0_i32_0, %c0_i32_1 : i32, i32, i32
  }
  func.func @transform_4(%arg0: i32, %arg1: i32) -> (i32, i32) {
    %c0_i32 = arith.constant 0 : i32
    %c0_i32_0 = arith.constant 0 : i32
    %c0_i32_1 = arith.constant 0 : i32
    return %c0_i32, %c0_i32_0 : i32, i32
  }
  func.func @transform_5(%arg0: i32, %arg1: i32) -> (i32, i32) {
    %c0_i32 = arith.constant 0 : i32
    %c0_i32_0 = arith.constant 0 : i32
    %c0_i32_1 = arith.constant 0 : i32
    return %c0_i32, %c0_i32_0 : i32, i32
  }
  func.func @transform_6(%arg0: i32, %arg1: i32) -> (i32, i32) {
    %c0_i32 = arith.constant 0 : i32
    %c0_i32_0 = arith.constant 0 : i32
    %c0_i32_1 = arith.constant 0 : i32
    return %c0_i32, %c0_i32_0 : i32, i32
  }
  func.func @transform_7(%arg0: i32, %arg1: i32) -> (i32, i32, i32) {
    %c0_i32 = arith.constant 0 : i32
    %c0_i32_0 = arith.constant 0 : i32
    return %arg0, %c0_i32, %arg1 : i32, i32, i32
  }
}

</mosaic_0001>

<bundles_post_ra>
// kernel: outconv_forward.4
= control target key start
LH: loop header
LB: loop body
LE: loop exit
PB: predicated region body
PF: predicated region fallthrough
CT: control target
= control target key end

     0   :  { %s5560_s24 = smov 0   ;;  %s5562_s25 = smov 0   ;;  %s8046_s0 = inlined_call_operand.vmem [shape: f32[2,4,4096], index: 0, kind: input, shape index: {}, may-alias: {0,1,2}]   ;;  %s8047_s1 = inlined_call_operand.vmem [shape: f32[2,4,4096], index: 1, kind: input, shape index: {}, may-alias: {0,1,2}]   ;;  %s8048_s2 = inlined_call_operand.vmem [shape: f32[2,4,4096], index: 2, kind: input, shape index: {}, may-alias: {0,1,2}]   ;;  %s8049_s3 = inlined_call_operand.vmem [shape: f32[3,2,36], index: 3, kind: input, shape index: {}]   ;;  %s8050_s4 = inlined_call_operand.vmem [shape: f32[4,1], index: 4, kind: input, shape index: {}]   ;;  %s8051_s5 = inlined_call_operand.vmem [shape: f32[4,1], index: 5, kind: input, shape index: {}]   ;;  %s8052_s6 = inlined_call_operand.vmem [shape: f32[2,2,4096], index: 6, kind: output, shape index: {0}]   ;;  %s8053_s7 = inlined_call_operand.vmem [shape: f32[2,2,2,1], index: 7, kind: output, shape index: {1}]  }
   0x1   :  { %s5564_s26 = smov 0   ;;  %s5566_s27 = smov 0  }
   0x2   :  { %s5568_s28 = smov 0  }
   0x3 LB: > { %s27_s29 = sadd.s32 1, %s5500_s26  ;;  %s30_s30 = sadd.s32 1, %s5504_s27  ;;  %s5508_s28 = sphi %s5568_s28, %s18_s28   ;;  %s5504_s27 = sphi %s5566_s27, %s8343_s27   ;;  %s5500_s26 = sphi %s5564_s26, %s8342_s26   ;;  %s5496_s25 = sphi %s5562_s25, %s8341_s25   ;;  %s5492_s24 = sphi %s5560_s24, %s8340_s24  }
   0x4   : > { %p28_p0 = scmp.ge.s32.totalorder %s27_s29, 2  ;;  %p4677_p1 = scmp.ge.s32.totalorder %s5508_s28, 1 }
   0x5   : > { %p327_p2 = scmp.lt.s32.totalorder %s5508_s28, 5 }
   0x6   : > { %s8345_s29 = smov (%p28_p0, %s27_s29), 0  ;;  %s8347_s30 = smov (!%p28_p0, %s30_s30), %s5504_s27 }
   0x7   : > { %p328_p3 = pnand %p4677_p1, %p327_p2  ;;  %p32_p4 = scmp.ge.s32.totalorder %s8347_s30, 2 }
   0x9   : > { %s8349_s30 = smov (%p32_p4, %s8347_s30), 0  ;;  %331 = sbr.rel (%p328_p3) target bundleno = 1156 (0x484), region = 44 }
  0x10   : > { %v1028_v0 = vld [vmem:[%s8050_s4] sm:$0xf]  ;;  %s4678_s10 = sshll.u32 %s5492_s24, 4  ;;  %v5510_v1 = vmov 0   ;;  %p399_p5 = scmp.lt.s32.totalorder %s5496_s25, 1  ;;  %v459_v5 = vlaneseq  ;;  %vm1102_vm3 = vcmask 138240  }
  0x11   : > { %5039 = vset.pattern.permute.xlu0 %v5510_v1  ;;  %p401_p6 = scmp.lt.s32.totalorder %s4678_s10, 31  ;;  %v1049_v2 = vld [vmem:[%s8051_s5] sm:$0xf]  ;;  %v5511_v3 = vmov 839922192   ;;  %s4681_s23 = sshll.u32 %s5492_s24, 3 }
  0x12   : > { %1031 = vperm.xlu0 %5039, %v1028_v0   ;;  %s8351_s25 = smov (!%p399_p5, %s5496_s25), 1  ;;  %v1034_v4 = vunpack.c.l.s4 %v5511_v3  ;;  %v5614_v7 = vshrl.u32 %v459_v5, 7  ;;  %s427_s9 = sadd.s32 8, %s4681_s23 }
  0x13   : > { %s8353_s10 = smov (!%p401_p6, %s4678_s10), 31  ;;  %s5599_s13 = sshll.u32 %s8351_s25, 5 }
  0x14   : > { %s404_s14 = sadd.s32 %s5599_s13, %s8353_s10  ;;  %s4796_s15 = sshll.u32 %s8351_s25, 2  ;;  %v1035_v6 = vunpack.c.0.s8 %v1034_v4  ;;  %8154 = vst [vmem:[#allocation2_spill] sm:$0xff] %v5614_v7  ;;  %v5684_v4 = vand.u32 127, %v459_v5 }
  0x15   : > { %s4692_s16 = sshll.u32 %s404_s14, 1  ;;  %s5610_s22 = scalar_lea.vmem %s8053_s7, %s4796_s15 }
  0x16   : > { %1052 = vperm.xlu0 %5039, %v1049_v2   ;;  %s5605_s19 = scalar_lea.vmem %s8052_s6, %s4692_s16  ;;  %s4682_s25 = sadd.s32 4294967295, %s4681_s23  ;;  %v1038_v8 = vsub.s32 %v1035_v6, %v5614_v7  ;;  %8155 = vst [vmem:[#allocation3_spill] sm:$0xff] %v5684_v4  ;;  %v5687_v6 = vadd.s32 512, %v5684_v4 }
  0x17   : > { %s4680_s8 = sshll.u32 %s404_s14, 2  ;;  %p410_p7 = scmp.gt.s32.totalorder %s4682_s25, 0 }
  0x18   : > { %s5620_s12 = scalar_lea.vmem %s8046_s0, %s4680_s8  ;;  %p428_p8 = scmp.lt.s32.totalorder %s427_s9, 15  ;;  %8156 = vst [vmem:[#allocation4_spill] sm:$0xff] %v5687_v6 }
  0x19   : > { %s8355_s25 = smov (!%p410_p7, %s4682_s25), 0  ;;  %v1020_v11 = vld [vmem:[%s5620_s12] sm:$0xff]  ;;  %v1021_v12 = vld [vmem:[%s5620_s12 + $0x8] sm:$0xff]  ;;  %v1022_v17 = vld [vmem:[%s5620_s12 + $0x10] sm:$0xff]  ;;  %s5512_s16 = smov 17  }
  0x1a   : > { %s8357_s9 = smov (!%p428_p8, %s427_s9), 15  ;;  %s4683_s14 = sshll.u32 %s8355_s25, 1  ;;  %v1023_v22 = vld [vmem:[%s5620_s12 + $0x18] sm:$0xff]  ;;  %v1024_v27 = vld [vmem:[%s5620_s12 + $0x20] sm:$0xff]  ;;  %v1025_v32 = vld [vmem:[%s5620_s12 + $0x28] sm:$0xff] }
  0x1b   : > { %s4687_s15 = sshll.u32 %s8357_s9, 1  ;;  %p415_p9 = scmp.lt.s32.totalorder %s4683_s14, 31  ;;  %v1026_v37 = vld [vmem:[%s5620_s12 + $0x30] sm:$0xff]  ;;  %v1027_v43 = vld [vmem:[%s5620_s12 + $0x38] sm:$0xff] }
  0x1c   : > { %p433_p10 = scmp.lt.s32.totalorder %s4687_s15, 31  ;;  %p1078_p11 = scmp.gt.s32.totalorder %s5492_s24, 0 }
  0x1d   : > { %s8359_s14 = smov (!%p415_p9, %s4683_s14), 31  ;;  %p1087_p12 = scmp.lt.s32.totalorder %s5492_s24, 1 }
  0x1e   : > { %s8361_s15 = smov (!%p433_p10, %s4687_s15), 31  ;;  %s418_s17 = sadd.s32 %s5599_s13, %s8359_s14 }
  0x1f   : > { %s436_s18 = sadd.s32 %s5599_s13, %s8361_s15  ;;  %s4685_s20 = sshll.u32 %s418_s17, 2 }
  0x20   : > { %s4689_s21 = sshll.u32 %s436_s18, 2  ;;  %s420_s13 = scalar_lea.vmem %s8047_s1, %s4685_s20 }
  0x21   : > { %s438_s10 = scalar_lea.vmem %s8048_s2, %s4689_s21  ;;  %v1079_v42 = vld [vmem:[%s420_s13] sm:$0xff]  ;;  %s5513_s12 = smov 112  }
  0x22   : > { %v1088_v47 = vld [vmem:[%s438_s10] sm:$0xff]  ;;  %s1083_s11 = scalar_select %p1078_p11, 1, 0 }
  0x23   : > { %s1092_s14 = scalar_select %p1087_p12, 1, 0 }
  0x24   : > { %v1084_v56 = vstv %s1083_s11  ;;  %s5514_s15 = smov 96   ;;  %s5517_s17 = smov 126  }
  0x25   : > { %v1093_v57 = vstv %s1092_s14  ;;  %vm1085_vm0 = vcmp.eq.s32.totalorder %v1084_v56, 1  ;;  %v704_v56 = vadd.s32 2560, %v5684_v4  ;;  %p4791_p13 = scmp.ne.s32.totalorder %s5492_s24, 0 }
  0x26   : > { %vm1094_vm1 = vcmp.eq.s32.totalorder %v1093_v57, 1 }
  0x91   : > { %v1032_v9 = vpop.permute.xlu0 %1031 }
  0x92   : > { %v5622_v10 = vrot.slane %v1032_v9, %v1038_v8  ;;  %v5693_v9 = vadd.s32 768, %v5684_v4 }
  0x94   : > { %v1041_v15 = vmul.f32 %v5622_v10, %v1020_v11  ;;  %v1042_v16 = vmul.f32 %v5622_v10, %v1021_v12  ;;  %v1043_v21 = vmul.f32 %v5622_v10, %v1022_v17  ;;  %v1044_v26 = vmul.f32 %v5622_v10, %v1023_v22  ;;  %8157 = vst [vmem:[#allocation5_spill] sm:$0xff] %v5693_v9 }
  0x95   : > { %v1053_v13 = vpop.permute.xlu0 %1052  ;;  %v1045_v31 = vmul.f32 %v5622_v10, %v1024_v27  ;;  %v1046_v36 = vmul.f32 %v5622_v10, %v1025_v32  ;;  %v1047_v41 = vmul.f32 %v5622_v10, %v1026_v37  ;;  %v1080_v48 = vmul.f32 %v1079_v42, %v5622_v10 }
  0x96   : > { %v5626_v14 = vrot.slane %v1053_v13, %v1038_v8  ;;  %v1048_v49 = vmul.f32 %v5622_v10, %v1027_v43  ;;  %v1089_v50 = vmul.f32 %v1088_v47, %v5622_v10  ;;  %v5690_v8 = vadd.s32 4294967279, %v5687_v6 }
  0x97   : > { %v5697_v11 = vadd.s32 4294967279, %v5693_v9  ;;  %v5700_v12 = vadd.s32 1024, %v5684_v4  ;;  %v700_v42 = vadd.s32 2048, %v5684_v4 }
  0x98   : > { %v1062_v18 = vadd.f32 %v5626_v14, %v1041_v15  ;;  %v1063_v19 = vadd.f32 %v5626_v14, %v1042_v16  ;;  %v1064_v25 = vadd.f32 %v5626_v14, %v1043_v21  ;;  %v1065_v30 = vadd.f32 %v5626_v14, %v1044_v26 }
  0x99   : > { %v1066_v35 = vadd.f32 %v5626_v14, %v1045_v31  ;;  %v1067_v40 = vadd.f32 %v5626_v14, %v1046_v36  ;;  %v1068_v46 = vadd.f32 %v5626_v14, %v1047_v41  ;;  %v1081_v51 = vadd.f32 %v1080_v48, %v5626_v14  ;;  %8158 = vst [vmem:[#allocation6_spill] sm:$0xff] %v5700_v12 }
  0x9a   : > { %v1070_v20 = vmax.f32 %v1062_v18, 0.0  ;;  %v1071_v24 = vmax.f32 %v1063_v19, 0.0  ;;  %v1072_v29 = vmax.f32 %v1064_v25, 0.0  ;;  %v1073_v34 = vmax.f32 %v1065_v30, 0.0 }
  0x9b   : > { %v1074_v39 = vmax.f32 %v1066_v35, 0.0  ;;  %v1075_v45 = vmax.f32 %v1067_v40, 0.0  ;;  %v1076_v53 = vmax.f32 %v1068_v46, 0.0  ;;  %v1069_v54 = vadd.f32 %v5626_v14, %v1048_v49 }
  0x9c   : > { %1123 = vrot.lane.b32.xlu1 %v1070_v20, %s5512_s16  ;;  %v1115_v23 = vcombine.high %v1070_v20, %v1070_v20  ;;  %v1116_v28 = vcombine.high %v1071_v24, %v1071_v24  ;;  %v1117_v33 = vcombine.high %v1072_v29, %v1072_v29  ;;  %v1118_v38 = vcombine.high %v1073_v34, %v1073_v34 }
  0x9d   : > { %v1119_v44 = vcombine.high %v1074_v39, %v1074_v39  ;;  %v1120_v52 = vcombine.high %v1075_v45, %v1075_v45  ;;  %v1090_v55 = vadd.f32 %v1089_v50, %v5626_v14  ;;  %v1082_v58 = vmax.f32 %v1081_v51, 0.0 }
  0x9e   : > { %1125 = vrot.lane.b32.xlu0 %v1115_v23, %s5512_s16  ;;  %v1121_v59 = vcombine.high %v1076_v53, %v1076_v53  ;;  %v1077_v60 = vmax.f32 %v1069_v54, 0.0  ;;  %v758_v10 = vand.u32 255, %v5690_v8  ;;  %v5707_v14 = vadd.s32 1280, %v5684_v4 }
  0x9f   : > { %v1091_v61 = vmax.f32 %v1090_v55, 0.0  ;;  %v1086_v62 = vsel %vm1085_vm0, %v1082_v58, 0.0  ;;  %v772_v15 = vand.u32 255, %v5697_v11  ;;  %v5713_v16 = vadd.s32 4294967279, %v5700_v12 }
  0xa0   : > { %1127 = vrot.lane.b32.xlu1 %v1071_v24, %s5512_s16  ;;  %v1122_v63 = vcombine.high %v1077_v60, %v1077_v60  ;;  %v1097_v1 = vcombine.high %v1086_v62, %v1086_v62  ;;  %8159 = vst [vmem:[#allocation7_spill] sm:$0xff] %v5707_v14  ;;  %vm982_vm2 = vcmp.ge.s32.totalorder %v758_v10, 240  ;;  %v4695_v19 = vadd.s32 4294967279, %v5684_v4 }
  0xa1   : > { %v1095_v0 = vsel %vm1094_vm1, %v1091_v61, 0.0  ;;  %v5724_v22 = vadd.s32 4294967279, %v5707_v14  ;;  %vm984_vm4 = vcmp.ge.s32.totalorder %v772_v15, 240  ;;  %v786_v24 = vand.u32 255, %v5713_v16 }
  0xa2   : > { %1129 = vrot.lane.b32.xlu0 %v1116_v28, %s5512_s16  ;;  %v1188_v2 = vcombine.high %v1095_v0, %v1095_v0  ;;  %v5040_v3 = vpack.i.bf16 %v1097_v1, %v1086_v62  ;;  %v5733_v25 = vadd.s32 1536, %v5684_v4  ;;  %v702_v50 = vadd.s32 2304, %v5684_v4 }
  0xa3   : > { %vm986_vm5 = vcmp.ge.s32.totalorder %v786_v24, 240  ;;  %v800_v32 = vand.u32 255, %v5724_v22  ;;  %vm726_vm8 = vcmp.lt.s32.totalorder %v4695_v19, 0  ;;  %vm1003_vm15 = vcmp.lt.s32.totalorder %v758_v10, 16 }
  0xa4   : > { %1131 = vrot.lane.b32.xlu1 %v1072_v29, %s5512_s16  ;;  %8160 = vst [vmem:[#allocation8_spill] sm:$0xff] %v5733_v25  ;;  %v727_v29 = vsub.s32 0, %v4695_v19  ;;  %vm1005_vm1 = vcmp.lt.s32.totalorder %v772_v15, 16 }
  0xa5   : > { %vm988_vm6 = vcmp.ge.s32.totalorder %v800_v32, 240 }
  0xa6   : > { %1133 = vrot.lane.b32.xlu0 %v1117_v33, %s5512_s16  ;;  %v5753_v33 = vadd.s32 4294967279, %v5733_v25  ;;  %v4716_v37 = vmin.u32 %v4695_v19, %v727_v29 }
  0xa8   : > { %1135 = vrot.lane.b32.xlu1 %v1073_v34, %s5512_s16  ;;  %v5756_v34 = vadd.s32 1792, %v5684_v4  ;;  %v814_v40 = vand.u32 255, %v5753_v33  ;;  %v730_v46 = vand.u32 255, %v4716_v37 }
  0xaa   : > { %1137 = vrot.lane.b32.xlu0 %v1118_v38, %s5512_s16  ;;  %8161 = vst [vmem:[#allocation9_spill] sm:$0xff] %v5756_v34  ;;  %v5769_v41 = vadd.s32 4294967279, %v5756_v34  ;;  %vm990_vm7 = vcmp.ge.s32.totalorder %v814_v40, 240  ;;  %v731_v55 = vsub.s32 0, %v730_v46 }
  0xac   : > { %1139 = vrot.lane.b32.xlu1 %v1074_v39, %s5512_s16  ;;  %v828_v51 = vand.u32 255, %v5769_v41 }
  0xae   : > { %1141 = vrot.lane.b32.xlu0 %v1119_v44, %s5512_s16  ;;  %vm992_vm9 = vcmp.ge.s32.totalorder %v828_v51, 240 }
  0xb0   : > { %1143 = vrot.lane.b32.xlu1 %v1075_v45, %s5512_s16 }
  0xb2   : > { %1145 = vrot.lane.b32.xlu0 %v1120_v52, %s5512_s16  ;;  %v5792_v52 = vadd.s32 4294967279, %v700_v42 }
  0xb4   : > { %1147 = vrot.lane.b32.xlu1 %v1076_v53, %s5512_s16 }
  0xb6   : > { %1149 = vrot.lane.b32.xlu0 %v1121_v59, %s5512_s16  ;;  %v5808_v59 = vadd.s32 4294967279, %v702_v50 }
  0xb8   : > { %1151 = vrot.lane.b32.xlu1 %v1077_v60, %s5512_s16  ;;  %v8055_v60 = vand.u32 255, %v5792_v52  ;;  %v856_v19 = vand.u32 255, %v5808_v59 }
  0xba   : > { %1153 = vrot.lane.b32.xlu0 %v1122_v63, %s5512_s16  ;;  %v732_v63 = vsel %vm726_vm8, %v731_v55, %v730_v46  ;;  %vm994_vm10 = vcmp.ge.s32.totalorder %v8055_v60, 240  ;;  %vm996_vm14 = vcmp.ge.s32.totalorder %v856_v19, 240  ;;  %v8165_v55 = vmov 0 }
  0xbb   : > { %vm873_vm11 = vcmp.ne.s32.totalorder %v732_v63, 0  ;;  %vm894_vm12 = vcmp.lt.s32.totalorder %v732_v63, 0  ;;  %v936_v37 = vadd.s32 256, %v732_v63  ;;  %vm1011_vm8 = vcmp.lt.s32.totalorder %v814_v40, 16 }
  0xbc   : > { %1189 = vrot.lane.b32.xlu1 %v1095_v0, %s5512_s16  ;;  %v5817_v0 = vadd.s32 4294967279, %v704_v56  ;;  %vm915_vm13 = vmand %vm894_vm12, %vm873_vm11  ;;  %vm1013_vm11 = vcmp.lt.s32.totalorder %v828_v51, 16 }
  0xbd   : > { %v957_v59 = vsel %vm915_vm13, %v936_v37, %v732_v63 }
  0xbe   : > { %1191 = vrot.lane.b32.xlu0 %v1188_v2, %s5512_s16  ;;  %v5820_v2 = vadd.s32 256, %v5684_v4  ;;  %v8054_v29 = vand.u32 255, %v5817_v0 }
  0xc0   : > { %5041 = vrot.lane.b32.xlu1 %v5040_v3, %s5512_s16  ;;  %8162 = vst [vmem:[#allocation10_spill] sm:$0xff] %v5820_v2  ;;  %vm5858_vm0 = vcmp.ge.s32.totalorder %v8054_v29, 240  ;;  %s5516_s16 = smov 127  }
  0xc1   : > { %v8166_v55 = vsel %vm5858_vm0, 4294967295, %v8165_v55 }
  0xc2   : > { %8167 = vst [vmem:[#allocation13_spill] sm:$0xff] %v8166_v55 }
 0x10e   : > { %v5702_v13 = vpop.permute.xlu1 %1123 }
 0x110   : > { %v5704_v5 = vpop.permute.xlu0 %1125 }
 0x111   : > { %v5895_v11 = vsel %vm1102_vm3, %v5702_v13, %v5704_v5 }
 0x112   : > { %v1128_v17 = vpop.permute.xlu1 %1127 }
 0x113   : > { %v5717_v18 = vsel %vm1102_vm3, %v5704_v5, %v1128_v17 }
 0x114   : > { %v1130_v20 = vpop.permute.xlu0 %1129  ;;  %v5721_v21 = vsel %vm982_vm2, 0.0, %v5717_v18  ;;  %v5873_v10 = vsel %vm1003_vm15, 0.0, %v5717_v18  ;;  %vm999_vm2 = vcmp.lt.s32.totalorder %v957_v59, 16  ;;  %vm1380_vm15 = vcmask 916480  }
 0x115   : > { %v5727_v23 = vsel %vm1102_vm3, %v1128_v17, %v1130_v20 }
 0x116   : > { %v5735_v26 = vpop.permute.xlu1 %1131  ;;  %v5050_v27 = vpack.i.bf16 %v5727_v23, %v5717_v18 }
 0x117   : > { %v5741_v28 = vsel %vm1102_vm3, %v1130_v20, %v5735_v26 }
 0x118   : > { %5051 = vrot.lane.b32.xlu1 %v5050_v27, %s5513_s12  ;;  %v5744_v30 = vpop.permute.xlu0 %1133  ;;  %v5747_v31 = vsel %vm984_vm4, 0.0, %v5741_v28  ;;  %v5890_v60 = vsel %vm1005_vm1, 0.0, %v5741_v28  ;;  %vm1800_vm1 = vcmask 293888  }
 0x119   : > { %v5920_v5 = vsel %vm1102_vm3, %v5735_v26, %v5744_v30  ;;  %v5940_v26 = vrot.slane %v5727_v23, 4 }
 0x11a   : > { %v1136_v35 = vpop.permute.xlu1 %1135  ;;  %v5055_v22 = vpack.i.bf16 %v5920_v5, %v5741_v28 }
 0x11b   : > { %v5760_v36 = vsel %vm1102_vm3, %v5744_v30, %v1136_v35 }
 0x11c   : > { %v1138_v38 = vpop.permute.xlu0 %1137  ;;  %v5763_v39 = vsel %vm986_vm5, 0.0, %v5760_v36  ;;  %vm978_vm5 = vcmp.ge.s32.totalorder %v957_v59, 240 }
 0x11d   : > { %v5775_v44 = vsel %vm1102_vm3, %v1136_v35, %v1138_v38 }
 0x11e   : > { %v5772_v43 = vpop.permute.xlu1 %1139  ;;  %v5951_v33 = vrot.slane %v5775_v44, 4 }
 0x11f   : > { %v5779_v45 = vsel %vm1102_vm3, %v1138_v38, %v5772_v43  ;;  %v5838_v38 = vadd.s32 4294967279, %v5820_v2 }
 0x120   : > { %v5781_v47 = vpop.permute.xlu0 %1141  ;;  %v5060_v48 = vpack.i.bf16 %v5779_v45, %v5775_v44  ;;  %v5786_v49 = vsel %vm988_vm6, 0.0, %v5779_v45  ;;  %vm1007_vm6 = vcmp.lt.s32.totalorder %v786_v24, 16 }
 0x122   : > { %v5794_v53 = vpop.permute.xlu1 %1143  ;;  %5061 = vrot.lane.b32.xlu1 %v5060_v48, %s5513_s12 }
 0x123   : > { %v5800_v54 = vsel %vm1102_vm3, %v5781_v47, %v5794_v53 }
 0x124   : > { %v5803_v57 = vpop.permute.xlu0 %1145  ;;  %v5806_v58 = vsel %vm990_vm7, 0.0, %v5800_v54  ;;  %vm1009_vm7 = vcmp.lt.s32.totalorder %v800_v32, 16  ;;  %v5935_v24 = vsel %vm1011_vm8, 0.0, %v5800_v54  ;;  %v1333_v32 = vrot.slane %v5717_v18, 4 }
 0x125   : > { %v5925_v16 = vsel %vm1009_vm7, 0.0, %v5779_v45  ;;  %v5966_v18 = vsel %vm1102_vm3, %v5772_v43, %v5781_v47 }
 0x126   : > { %v1148_v61 = vpop.permute.xlu1 %1147  ;;  %v5080_v40 = vpack.i.bf16 %v5940_v26, %v1333_v32  ;;  %8170 = vst [vmem:[#allocation16_spill] sm:$0xff] %v5966_v18 }
 0x127   : > { %v5815_v62 = vsel %vm1102_vm3, %v5803_v57, %v1148_v61 }
 0x128   : > { %v1150_v1 = vpop.permute.xlu0 %1149  ;;  %v5823_v3 = vsel %vm992_vm9, 0.0, %v5815_v62  ;;  %vm1017_vm9 = vcmp.lt.s32.totalorder %v856_v19, 16  ;;  %v5959_v19 = vsel %vm1102_vm3, %v5794_v53, %v5803_v57  ;;  %v1341_v53 = vrot.slane %v5800_v54, 4 }
 0x129   : > { %v5826_v17 = vsel %vm1102_vm3, %v1148_v61, %v1150_v1  ;;  %v5065_v32 = vpack.i.bf16 %v5815_v62, %v5959_v19 }
 0x12a   : > { %8163 = vst [vmem:[#allocation11_spill] sm:$0xff] %v5826_v17  ;;  %v1152_v20 = vpop.permute.xlu1 %1151  ;;  %1461 = vrot.lane.b32.xlu1 %v5826_v17, %s5514_s15 }
 0x12b   : > { %v5834_v27 = vsel %vm1102_vm3, %v1150_v1, %v1152_v20  ;;  %v744_v1 = vand.u32 255, %v5838_v38 }
 0x12c   : > { %v1154_v35 = vpop.permute.xlu0 %1153  ;;  %v5841_v42 = vsel %vm994_vm10, 0.0, %v5834_v27 }
 0x12d   : > { %v5844_v46 = vsel %vm1102_vm3, %v1152_v20, %v1154_v35  ;;  %vm980_vm4 = vcmp.ge.s32.totalorder %v744_v1, 240  ;;  %vm1001_vm10 = vcmp.lt.s32.totalorder %v744_v1, 16  ;;  %v1345_v1 = vrot.slane %v5834_v27, 4 }
 0x12e   : > { %8164 = vst [vmem:[#allocation12_spill] sm:$0xff] %v5844_v46  ;;  %v5846_v48 = vpop.permute.xlu1 %1189  ;;  %1728 = vrot.lane.b32.xlu1 %v5844_v46, %s5514_s15  ;;  %v1530_v55 = vrot.slane %v5841_v42, 4 }
 0x12f   : > { %v5854_v50 = vsel %vm1102_vm3, %v1154_v35, %v5846_v48 }
 0x130   : > { %v5862_v56 = vpop.permute.xlu0 %1191  ;;  %v5865_v61 = vsel %vm996_vm14, 0.0, %v5854_v50  ;;  %v5945_v30 = vsel %vm1017_vm9, 0.0, %v5854_v50  ;;  %vm1740_vm14 = vcmask 1043456  }
 0x131   : > { %8168 = vst [vmem:[#allocation14_spill] sm:$0xff] %v5865_v61  ;;  %v5870_v8 = vsel %vm1102_vm3, %v5862_v56, 0.0 }
 0x132   : > { %8169 = vst [vmem:[#allocation15_spill] sm:$0xff] %v5870_v8  ;;  %v5042_v20 = vpop.permute.xlu1 %5041  ;;  %1439 = vrot.lane.b32.xlu1 %v5873_v10, %s5514_s15 }
 0x133   : > { %v5044_v35 = vunpack.i.h.bf16 %v5042_v20  ;;  %v5043_v37 = vunpack.i.l.bf16 %v5042_v20 }
 0x135   : > { %v5884_v38 = vsel %vm1102_vm3, %v5044_v35, %v5702_v13  ;;  %v5887_v29 = vsel %vm1102_vm3, 0.0, %v5043_v37  ;;  %v5911_v13 = vsel %vm1007_vm6, 0.0, %v5760_v36  ;;  %v5980_v43 = vsel %vm1102_vm3, %v5043_v37, %v5044_v35 }
 0x136   : > { %1443 = vrot.lane.b32.xlu1 %v5890_v60, %s5514_s15  ;;  %v1306_v15 = vsel %vm999_vm2, 0.0, %v5887_v29  ;;  %v5904_v63 = vsel %vm978_vm5, 0.0, %v5887_v29  ;;  %v5907_v59 = vsel %vm980_vm4, 0.0, %v5884_v38  ;;  %v5983_v47 = vsel %vm1001_vm10, 0.0, %v5884_v38 }
 0x137   : > { %v5045_v20 = vpack.i.bf16 %v1306_v15, %v5895_v11  ;;  %v1337_v15 = vrot.slane %v5760_v36, 4  ;;  %v5070_v35 = vpack.i.bf16 %v5844_v46, %v5834_v27  ;;  %v5996_v37 = vrot.slane %v5844_v46, 4 }
 0x138   : > { %v1329_v41 = vrot.slane %v5887_v29, 4  ;;  %v1330_v51 = vrot.slane %v5980_v43, 4  ;;  %v1335_v29 = vrot.slane %v5741_v28, 4  ;;  %vm3528_vm2 = vcmask 1031168  }
 0x139   : > { %5046 = vrot.lane.b32.xlu0 %v5045_v20, %s5514_s15  ;;  %v5090_v20 = vpack.i.bf16 %v5951_v33, %v1337_v15  ;;  %v5120_v15 = vpack.i.bf16 %v5800_v54, %v1345_v1  ;;  %v1320_v54 = vsel %vm1013_vm11, 0.0, %v5815_v62 }
 0x13a   : > { %1447 = vrot.lane.b32.xlu1 %v5911_v13, %s5514_s15 }
 0x13d   : > { %1441 = vrot.lane.b32.xlu0 %v5727_v23, %s5514_s15 }
 0x13e   : > { %1451 = vrot.lane.b32.xlu1 %v5925_v16, %s5514_s15 }
 0x141   : > { %5056 = vrot.lane.b32.xlu0 %v5055_v22, %s5513_s12  ;;  %v5970_v22 = vrot.slane %v5959_v19, 4 }
 0x142   : > { %1455 = vrot.lane.b32.xlu1 %v5935_v24, %s5514_s15 }
 0x143   : > { %v5100_v57 = vpack.i.bf16 %v5970_v22, %v1341_v53  ;;  %v5125_v53 = vpack.i.bf16 %v5996_v37, %v5826_v17 }
 0x145   : > { %1445 = vrot.lane.b32.xlu0 %v5920_v5, %s5514_s15 }
 0x146   : > { %1730 = vrot.lane.b32.xlu1 %v5945_v30, %s5514_s15 }
 0x149   : > { %1449 = vrot.lane.b32.xlu0 %v5775_v44, %s5514_s15 }
 0x14a   : > { %5081 = vrot.lane.b32.xlu1 %v5080_v40, %s5513_s12  ;;  %v5110_v40 = vpack.i.bf16 %v5983_v47, %v5980_v43 }
 0x14d   : > { %1453 = vrot.lane.b32.xlu0 %v5966_v18, %s5514_s15 }
 0x14e   : > { %5091 = vrot.lane.b32.xlu1 %v5090_v20, %s5513_s12  ;;  %v5075_v20 = vpack.i.bf16 %v5760_v36, %v5884_v38  ;;  %v8171_v36 = vand.u32 255, %v5792_v52  ;;  %v6025_v52 = vrot.slane %v5920_v5, 4 }
 0x150   : > { %vm1015_vm12 = vcmp.lt.s32.totalorder %v8171_v36, 16  ;;  %v1632_v36 = vrot.slane %v1320_v54, 4 }
 0x151   : > { %1457 = vrot.lane.b32.xlu0 %v5959_v19, %s5514_s15  ;;  %v1322_v1 = vsel %vm1015_vm12, 0.0, %v5834_v27  ;;  %v5135_v27 = vpack.i.bf16 %v1330_v51, %v1329_v41  ;;  %v1331_v41 = vrot.slane %v5884_v38, 4  ;;  %v1620_v51 = vrot.slane %v5983_v47, 4 }
 0x152   : > { %5101 = vrot.lane.b32.xlu1 %v5100_v57, %s5513_s12  ;;  %v1706_v57 = vrot.slane %v5854_v50, 4  ;;  %v1628_v38 = vrot.slane %v5925_v16, 4  ;;  %v1630_v47 = vrot.slane %v5935_v24, 4  ;;  %v1708_v16 = vrot.slane %v5870_v8, 4 }
 0x155   : > { %5066 = vrot.lane.b32.xlu0 %v5065_v32, %s5513_s12  ;;  %v5130_v32 = vpack.i.bf16 %v1706_v57, %v5854_v50  ;;  %v1343_v57 = vrot.slane %v5815_v62, 4 }
 0x156   : > { %5111 = vrot.lane.b32.xlu1 %v5110_v40, %s5514_s15  ;;  %v8172_v40 = vand.u32 255, %v5817_v0  ;;  %v6031_v0 = vsel %vm1102_vm3, %v5846_v48, %v5862_v56  ;;  %v1339_v56 = vrot.slane %v5779_v45, 4  ;;  %vm1465_vm3 = vcmask 785408  }
 0x157   : > { %8173 = vst [vmem:[#allocation17_spill] sm:$0xff] %v6031_v0 }
 0x158   : > { %vm1019_vm13 = vcmp.lt.s32.totalorder %v8172_v40, 16 }
 0x159   : > { %5071 = vrot.lane.b32.xlu0 %v5070_v35, %s5513_s12  ;;  %v1326_v50 = vsel %vm1019_vm13, 0.0, %v5870_v8  ;;  %v1622_v35 = vrot.slane %v5873_v10, 4  ;;  %v5085_v10 = vpack.i.bf16 %v6025_v52, %v1335_v29 }
 0x15a   : > { %5121 = vrot.lane.b32.xlu1 %v5120_v15, %s5513_s12  ;;  %v6037_v15 = vrot.slane %v5895_v11, 4 }
 0x15c   : > { %v5145_v48 = vpack.i.bf16 %v1622_v35, %v6037_v15  ;;  %v5140_v35 = vpack.i.bf16 %v6037_v15, %v1331_v41 }
 0x15d   : > { %5076 = vrot.lane.b32.xlu0 %v5075_v20, %s5513_s12  ;;  %v6041_v20 = vrot.slane %v5966_v18, 4 }
 0x15e   : > { %5126 = vrot.lane.b32.xlu1 %v5125_v53, %s5513_s12  ;;  %v1626_v53 = vrot.slane %v5911_v13, 4  ;;  %v5105_v13 = vpack.i.bf16 %v5895_v11, %v1343_v57 }
 0x15f   : > { %v5095_v28 = vpack.i.bf16 %v6041_v20, %v1339_v56  ;;  %v5160_v29 = vpack.i.bf16 %v6041_v20, %v1628_v38 }
 0x160   : > { %v5155_v40 = vpack.i.bf16 %v5951_v33, %v1626_v53  ;;  %v5165_v53 = vpack.i.bf16 %v5970_v22, %v1630_v47 }
 0x161   : > { %1459 = vrot.lane.b32.xlu0 %v1320_v54, %s5514_s15  ;;  %v1636_v54 = vrot.slane %v5945_v30, 4 }
 0x162   : > { %5131 = vrot.lane.b32.xlu1 %v5130_v32, %s5513_s12  ;;  %v6052_v32 = vrot.slane %v5826_v17, 4 }
 0x164   : > { %v5170_v45 = vpack.i.bf16 %v6052_v32, %v1632_v36  ;;  %v5115_v62 = vpack.i.bf16 %v6052_v32, %v5966_v18 }
 0x165   : > { %1463 = vrot.lane.b32.xlu0 %v1322_v1, %s5514_s15 }
 0x166   : > { %1734 = vrot.lane.b32.xlu1 %v1326_v50, %s5514_s15  ;;  %v1624_v50 = vrot.slane %v5890_v60, 4  ;;  %v1634_v60 = vrot.slane %v1322_v1, 4 }
 0x168   : > { %v5150_v30 = vpack.i.bf16 %v1624_v50, %v5940_v26  ;;  %v5175_v24 = vpack.i.bf16 %v5996_v37, %v1634_v60 }
 0x169   : > { %1732 = vrot.lane.b32.xlu0 %v6031_v0, %s5514_s15 }
 0x16a   : > { %5136 = vrot.lane.b32.xlu1 %v5135_v27, %s5513_s12  ;;  %v5185_v27 = vpack.i.bf16 %v1620_v51, %v6025_v52 }
 0x16d   : > { %5086 = vrot.lane.b32.xlu0 %v5085_v10, %s5513_s12  ;;  %v8056_v10 = vmov 0.0  }
 0x16e   : > { %5146 = vrot.lane.b32.xlu1 %v5145_v48, %s5514_s15  ;;  %1900 = vmatprep.mubr.f32.mxu0 %v8056_v10  ;;  %v1707_v48 = vrot.slane %v6031_v0, 4 }
 0x16f   : > { %1971 = vmatprep.mubr.f32.mxu1 %v8056_v10  ;;  %v1526_v10 = vrot.slane %v5806_v58, 4 }
 0x170   : > { %v5180_v56 = vpack.i.bf16 %v1708_v16, %v1707_v48 }
 0x171   : > { %5096 = vrot.lane.b32.xlu0 %v5095_v28, %s5513_s12 }
 0x172   : > { %5156 = vrot.lane.b32.xlu1 %v5155_v40, %s5514_s15 }
 0x175   : > { %5106 = vrot.lane.b32.xlu0 %v5105_v13, %s5513_s12 }
 0x176   : > { %5171 = vrot.lane.b32.xlu1 %v5170_v45, %s5514_s15 }
 0x179   : > { %5116 = vrot.lane.b32.xlu0 %v5115_v62, %s5513_s12 }
 0x17a   : > { %1669 = vrot.lane.b32.xlu1 %v1636_v54, %s5514_s15 }
 0x17d   : > { %5141 = vrot.lane.b32.xlu0 %v5140_v35, %s5513_s12 }
 0x17e   : > { %5186 = vrot.lane.b32.xlu1 %v5185_v27, %s5514_s15  ;;  %v1522_v27 = vrot.slane %v5763_v39, 4 }
 0x181   : > { %5151 = vrot.lane.b32.xlu0 %v5150_v30, %s5514_s15 }
 0x185   : > { %5161 = vrot.lane.b32.xlu0 %v5160_v29, %s5514_s15 }
 0x189   : > { %5166 = vrot.lane.b32.xlu0 %v5165_v53, %s5514_s15 }
 0x18a   : > { %v6088_v28 = vpop.permute.xlu1 %5051 }
 0x18d   : > { %5176 = vrot.lane.b32.xlu0 %v5175_v24, %s5514_s15 }
 0x191   : > { %5181 = vrot.lane.b32.xlu0 %v5180_v56, %s5513_s12 }
 0x194   : > { %v6090_v57 = vpop.permute.xlu1 %5061 }
 0x19c   : > { %v6092_v1 = vpop.permute.xlu1 %1461 }
 0x1a0   : > { %v6094_v36 = vpop.permute.xlu1 %1728 }
 0x1a4   : > { %v6096_v40 = vpop.permute.xlu1 %1439 }
 0x1a8   : > { %v1444_v13 = vpop.permute.xlu1 %1443 }
 0x1ab   : > { %v6098_v45 = vpop.permute.xlu0 %5046 }
 0x1ac   : > { %v1448_v62 = vpop.permute.xlu1 %1447 }
 0x1af   : > { %v1442_v41 = vpop.permute.xlu0 %1441 }
 0x1b0   : > { %v1452_v54 = vpop.permute.xlu1 %1451  ;;  %v6101_v51 = vsel %vm1465_vm3, %v1442_v41, %v1444_v13  ;;  %v6137_v56 = vsel %vm1465_vm3, %v6096_v40, %v1442_v41 }
 0x1b1   : > { %8174 = vst [vmem:[#allocation18_spill] sm:$0xff] %v6101_v51  ;;  %2622 = vrot.lane.b32.xlu0 %v6101_v51, %s5516_s16  ;;  %8179 = vst [vmem:[#allocation23_spill] sm:$0xff] %v6137_v56 }
 0x1b3   : > { %v6105_v50 = vpop.permute.xlu0 %5056 }
 0x1b4   : > { %v1456_v35 = vpop.permute.xlu1 %1455 }
 0x1b7   : > { %v1446_v38 = vpop.permute.xlu0 %1445 }
 0x1b8   : > { %v6108_v30 = vpop.permute.xlu1 %1730  ;;  %v6111_v47 = vsel %vm1465_vm3, %v1446_v38, %v1448_v62  ;;  %v6114_v29 = vsel %vm1465_vm3, %v1444_v13, %v1446_v38 }
 0x1b9   : > { %8175 = vst [vmem:[#allocation19_spill] sm:$0xff] %v6111_v47  ;;  %8176 = vst [vmem:[#allocation20_spill] sm:$0xff] %v6114_v29  ;;  %2626 = vrot.lane.b32.xlu0 %v6111_v47, %s5516_s16  ;;  %2624 = vrot.lane.b32.xlu1 %v6114_v29, %s5516_s16  ;;  %v6122_v60 = vsel %vm1740_vm14, %v6114_v29, %v1522_v27  ;;  %v6127_v53 = vsel %vm1740_vm14, %v6111_v47, %v5951_v33  ;;  %v1520_v27 = vrot.slane %v5747_v31, 4 }
 0x1ba   : > { %8177 = vst [vmem:[#allocation21_spill] sm:$0xff] %v6127_v53  ;;  %v6131_v16 = vpack.i.bf16 %v6127_v53, %v6122_v60  ;;  %v5048_v47 = vunpack.i.l.bf16 %v6098_v45 }
 0x1bb   : > { %v1450_v48 = vpop.permute.xlu0 %1449  ;;  %v6157_v7 = vsel %vm1740_vm14, %v6137_v56, %v1520_v27 }
 0x1bc   : > { %8178 = vst [vmem:[#allocation22_spill] sm:$0xff] %v6131_v16  ;;  %v6133_v24 = vpop.permute.xlu1 %5081  ;;  %v6140_v13 = vsel %vm1465_vm3, %v1448_v62, %v1450_v48  ;;  %8181 = vst [vmem:[#allocation25_spill] sm:$0xff] %v6157_v7  ;;  %v6162_v12 = vsel %vm1465_vm3, %v1450_v48, %v1452_v54 }
 0x1bd   : > { %8180 = vst [vmem:[#allocation24_spill] sm:$0xff] %v6140_v13  ;;  %v8067_v38 = vunpack.i.h.bf16 %v6133_v24  ;;  %v8066_v33 = vunpack.i.l.bf16 %v6133_v24  ;;  %2620 = vrot.lane.b32.xlu0 %v6137_v56, %s5516_s16  ;;  %2628 = vrot.lane.b32.xlu1 %v6140_v13, %s5516_s16 }
 0x1bf   : > { %v1385_v62 = vsel %vm1380_vm15, %v8066_v33, %v8067_v38  ;;  %v1454_v41 = vpop.permute.xlu0 %1453 }
 0x1c0   : > { %v6159_v25 = vpop.permute.xlu1 %5091  ;;  %v6165_v6 = vsel %vm1465_vm3, %v1452_v54, %v1454_v41  ;;  %v6168_v34 = vsel %vm1465_vm3, %v1454_v41, %v1456_v35  ;;  %v6172_v14 = vsel %vm1740_vm14, %v5721_v21, %v1385_v62  ;;  %v1524_v62 = vrot.slane %v5786_v49, 4 }
 0x1c1   : > { %8182 = vst [vmem:[#allocation26_spill] sm:$0xff] %v6165_v6  ;;  %8183 = vst [vmem:[#allocation27_spill] sm:$0xff] %v6168_v34  ;;  %v8073_v33 = vunpack.i.h.bf16 %v6159_v25  ;;  %v8074_v27 = vunpack.i.l.bf16 %v6159_v25  ;;  %2630 = vrot.lane.b32.xlu1 %v6162_v12, %s5516_s16  ;;  %2632 = vrot.lane.b32.xlu0 %v6165_v6, %s5516_s16  ;;  %v6182_v54 = vsel %vm1740_vm14, %v6165_v6, %v1526_v10 }
 0x1c2   : > { %8184 = vst [vmem:[#allocation28_spill] sm:$0xff] %v6182_v54  ;;  %v6187_v48 = vsel %vm1740_vm14, %v6168_v34, %v5970_v22  ;;  %v6212_v41 = vsel %vm1740_vm14, %v6140_v13, %v1524_v62 }
 0x1c3   : > { %8185 = vst [vmem:[#allocation29_spill] sm:$0xff] %v6187_v48  ;;  %v6194_v38 = vpack.i.bf16 %v6187_v48, %v6182_v54  ;;  %v1389_v10 = vsel %vm1380_vm15, %v8074_v27, %v8073_v33  ;;  %v1458_v9 = vpop.permute.xlu0 %1457  ;;  %8188 = vst [vmem:[#allocation32_spill] sm:$0xff] %v6212_v41  ;;  %v1528_v41 = vrot.slane %v5823_v3, 4 }
 0x1c4   : > { %v6201_v2 = vpop.permute.xlu1 %5101  ;;  %v6204_v22 = vsel %vm1465_vm3, %v1456_v35, %v1458_v9  ;;  %v6208_v4 = vsel %vm1740_vm14, %v5763_v39, %v1389_v10 }
 0x1c5   : > { %8186 = vst [vmem:[#allocation30_spill] sm:$0xff] %v6194_v38  ;;  %8187 = vst [vmem:[#allocation31_spill] sm:$0xff] %v6204_v22  ;;  %2634 = vrot.lane.b32.xlu1 %v6168_v34, %s5516_s16  ;;  %2636 = vrot.lane.b32.xlu0 %v6204_v22, %s5516_s16 }
 0x1c7   : > { %v6220_v27 = vpop.permute.xlu0 %5066 }
 0x1c8   : > { %8189 = vst [vmem:[#allocation33_spill] sm:$0xff] %v6220_v27  ;;  %v6222_v35 = vpop.permute.xlu1 %5111 }
 0x1cb   : > { %v6224_v6 = vpop.permute.xlu0 %5071 }
 0x1cc   : > { %v6226_v39 = vpop.permute.xlu1 %5121 }
 0x1cd   : > { %v6233_v0 = vunpack.i.l.bf16 %v6226_v39 }
 0x1cf   : > { %v6228_v10 = vpop.permute.xlu0 %5076  ;;  %8190 = vst [vmem:[#allocation34_spill] sm:$0xff] %v6233_v0  ;;  %v1757_v56 = vsel %vm1740_vm14, %v5841_v42, %v6233_v0 }
 0x1d0   : > { %v6230_v62 = vpop.permute.xlu1 %5126 }
 0x1d1   : > { %v8090_v8 = vunpack.i.h.bf16 %v6230_v62 }
 0x1d3   : > { %v1717_v33 = vsel %vm1380_vm15, %v6233_v0, %v8090_v8  ;;  %v1460_v13 = vpop.permute.xlu0 %1459 }
 0x1d4   : > { %v6241_v34 = vpop.permute.xlu1 %5131  ;;  %v6245_v48 = vsel %vm1465_vm3, %v1460_v13, %v6092_v1  ;;  %v6248_v29 = vsel %vm1465_vm3, %v1458_v9, %v1460_v13  ;;  %v6252_v17 = vsel %vm1740_vm14, %v5841_v42, %v1717_v33  ;;  %v1532_v13 = vrot.slane %v5865_v61, 4 }
 0x1d5   : > { %8191 = vst [vmem:[#allocation35_spill] sm:$0xff] %v6245_v48  ;;  %8192 = vst [vmem:[#allocation36_spill] sm:$0xff] %v6248_v29  ;;  %2640 = vrot.lane.b32.xlu0 %v6245_v48, %s5516_s16  ;;  %2638 = vrot.lane.b32.xlu1 %v6248_v29, %s5516_s16  ;;  %v6264_v8 = vsel %vm1740_vm14, %v6248_v29, %v6052_v32  ;;  %v6268_v9 = vsel %vm1740_vm14, %v6245_v48, %v1530_v55  ;;  %v5049_v61 = vunpack.i.h.bf16 %v6098_v45 }
 0x1d6   : > { %8193 = vst [vmem:[#allocation37_spill] sm:$0xff] %v6252_v17  ;;  %8194 = vst [vmem:[#allocation38_spill] sm:$0xff] %v6264_v8  ;;  %v6273_v42 = vpack.i.bf16 %v6268_v9, %v6264_v8  ;;  %v6276_v33 = vpack.i.bf16 %v1757_v56, %v6252_v17  ;;  %v5054_v8 = vunpack.i.h.bf16 %v6088_v28  ;;  %v5113_v17 = vunpack.i.l.bf16 %v6222_v35 }
 0x1d7   : > { %v1464_v0 = vpop.permute.xlu0 %1463  ;;  %v1518_v56 = vrot.slane %v5721_v21, 4  ;;  %v1516_v45 = vrot.slane %v5907_v59, 4 }
 0x1d8   : > { %8195 = vst [vmem:[#allocation39_spill] sm:$0xff] %v6273_v42  ;;  %8196 = vst [vmem:[#allocation40_spill] sm:$0xff] %v6276_v33  ;;  %v6279_v53 = vpop.permute.xlu1 %1734  ;;  %v6283_v32 = vsel %vm1465_vm3, %v1464_v0, %v6094_v36  ;;  %v6287_v55 = vsel %vm1465_vm3, %v6092_v1, %v1464_v0  ;;  %v1774_v48 = vsel %vm1740_vm14, %v1464_v0, %v1532_v13 }
 0x1d9   : > { %8197 = vst [vmem:[#allocation41_spill] sm:$0xff] %v6279_v53  ;;  %8198 = vst [vmem:[#allocation42_spill] sm:$0xff] %v6283_v32  ;;  %2644 = vrot.lane.b32.xlu0 %v6283_v32, %s5516_s16  ;;  %2642 = vrot.lane.b32.xlu1 %v6287_v55, %s5516_s16  ;;  %v6300_v29 = vsel %vm1740_vm14, %v6287_v55, %v5996_v37  ;;  %v1469_v32 = vsel %vm1465_vm3, %v5048_v47, %v6096_v40  ;;  %v8204_v40 = vunpack.i.l.bf16 %v6088_v28 }
 0x1da   : > { %8199 = vst [vmem:[#allocation43_spill] sm:$0xff] %v6287_v55  ;;  %8200 = vst [vmem:[#allocation44_spill] sm:$0xff] %v6300_v29  ;;  %v6305_v13 = vpack.i.bf16 %v1774_v48, %v6300_v29  ;;  %v6319_v0 = vsel %vm1465_vm3, %v6094_v36, %v6108_v30  ;;  %v1466_v36 = vsel %vm1465_vm3, %v5049_v61, %v5113_v17  ;;  %v8207_v55 = vunpack.i.l.bf16 %v6090_v57 }
 0x1db   : > { %v6311_v33 = vpop.permute.xlu0 %1732  ;;  %8202 = vst [vmem:[#allocation46_spill] sm:$0xff] %v6319_v0  ;;  %v6330_v48 = vsel %vm1380_vm15, %v8204_v40, %v5054_v8  ;;  %v5114_v40 = vunpack.i.h.bf16 %v6222_v35  ;;  %v6349_v1 = vsel %vm1740_vm14, %v1469_v32, %v5940_v26  ;;  %v6372_v61 = vsel %vm1740_vm14, %v1466_v36, %v1516_v45 }
 0x1dc   : > { %8201 = vst [vmem:[#allocation45_spill] sm:$0xff] %v6305_v13  ;;  %v6314_v37 = vpop.permute.xlu1 %5136  ;;  %v6324_v21 = vsel %vm1465_vm3, %v6108_v30, %v6311_v33  ;;  %8205 = vst [vmem:[#allocation48_spill] sm:$0xff] %v6330_v48  ;;  %v8206_v30 = vunpack.i.h.bf16 %v6090_v57  ;;  %v6452_v36 = vsel %vm1740_vm14, %v6204_v22, %v1528_v41  ;;  %v8223_v22 = vunpack.i.h.bf16 %v6226_v39 }
 0x1dd   : > { %8203 = vst [vmem:[#allocation47_spill] sm:$0xff] %v6324_v21  ;;  %v5138_v29 = vunpack.i.l.bf16 %v6314_v37  ;;  %2646 = vrot.lane.b32.xlu1 %v6319_v0, %s5516_s16  ;;  %2648 = vrot.lane.b32.xlu0 %v6324_v21, %s5516_s16  ;;  %v6354_v0 = vsel %vm1740_vm14, %v6101_v51, %v6025_v52  ;;  %v8210_v35 = vunpack.i.h.bf16 %v6314_v37  ;;  %v5059_v21 = vunpack.i.h.bf16 %v6105_v50 }
 0x1de   : > { %v6344_v46 = vsel %vm1380_vm15, %v8207_v55, %v8206_v30  ;;  %8209 = vst [vmem:[#allocation50_spill] sm:$0xff] %v6354_v0  ;;  %v6360_v55 = vpack.i.bf16 %v6157_v7, %v6349_v1  ;;  %v5058_v7 = vunpack.i.l.bf16 %v6105_v50  ;;  %v8212_v50 = vunpack.i.h.bf16 %v6201_v2 }
 0x1df   : > { %8208 = vst [vmem:[#allocation49_spill] sm:$0xff] %v6344_v46  ;;  %v5087_v18 = vpop.permute.xlu0 %5086  ;;  %v1381_v30 = vsel %vm1380_vm15, %v5138_v29, %v8210_v35  ;;  %v1468_v29 = vsel %vm1465_vm3, %v5114_v40, %v5048_v47  ;;  %v8213_v35 = vunpack.i.l.bf16 %v6201_v2  ;;  %v5068_v47 = vunpack.i.l.bf16 %v6220_v27 }
 0x1e0   : > { %v5089_v26 = vunpack.i.h.bf16 %v5087_v18  ;;  %v5088_v32 = vunpack.i.l.bf16 %v5087_v18  ;;  %v6365_v46 = vpop.permute.xlu1 %5146  ;;  %v6369_v52 = vsel %vm1740_vm14, %v5904_v63, %v1381_v30  ;;  %v1467_v63 = vsel %vm1465_vm3, %v5113_v17, %v5114_v40 }
 0x1e1   : > { %2652 = vrot.lane.b32.xlu0 %v6279_v53, %s5516_s16  ;;  %5191 = vrot.lane.b32.xlu1 %v6360_v55, %s5516_s16  ;;  %v6382_v18 = vpack.i.bf16 %v6372_v61, %v6369_v52  ;;  %v1393_v30 = vsel %vm1380_vm15, %v8213_v35, %v8212_v50  ;;  %v6420_v35 = vsel %vm1380_vm15, %v5054_v8, %v5058_v7  ;;  %v8215_v8 = vunpack.i.h.bf16 %v6220_v27 }
 0x1e2   : > { %v1387_v45 = vsel %vm1380_vm15, %v5088_v32, %v5089_v26  ;;  %v6423_v48 = vsel %vm1380_vm15, %v5058_v7, %v5059_v21  ;;  %v8221_v40 = vunpack.i.l.bf16 %v6159_v25  ;;  %v6489_v41 = vsel %vm1465_vm3, %v6311_v33, %v6279_v53 }
 0x1e3   : > { %8211 = vst [vmem:[#allocation51_spill] sm:$0xff] %v6382_v18  ;;  %v6394_v0 = vpop.permute.xlu0 %5096  ;;  %v6398_v18 = vsel %vm1740_vm14, %v5747_v31, %v1387_v45  ;;  %v6414_v31 = vsel %vm1740_vm14, %v1467_v63, %v6037_v15  ;;  %v6417_v45 = vsel %vm1740_vm14, %v1468_v29, %v1518_v56  ;;  %v6433_v15 = vsel %vm1740_vm14, %v6162_v12, %v6041_v20 }
 0x1e4   : > { %v6404_v51 = vpop.permute.xlu1 %5156  ;;  %v5098_v50 = vunpack.i.l.bf16 %v6394_v0  ;;  %v6437_v56 = vsel %vm1740_vm14, %v5806_v58, %v1393_v30  ;;  %v6442_v7 = vsel %vm1380_vm15, %v5068_v47, %v8215_v8  ;;  %v6448_v29 = vpack.i.bf16 %v6417_v45, %v6414_v31  ;;  %8226 = vst [vmem:[#allocation57_spill] sm:$0xff] %v6489_v41 }
 0x1e5   : > { %5196 = vrot.lane.b32.xlu0 %v6131_v16, %s5516_s16  ;;  %5201 = vrot.lane.b32.xlu1 %v6194_v38, %s5516_s16  ;;  %8214 = vst [vmem:[#allocation52_spill] sm:$0xff] %v6437_v56  ;;  %8216 = vst [vmem:[#allocation53_spill] sm:$0xff] %v6442_v7  ;;  %v8218_v20 = vunpack.i.h.bf16 %v6224_v6  ;;  %v8219_v58 = vunpack.i.l.bf16 %v6224_v6  ;;  %v5079_v8 = vunpack.i.h.bf16 %v6228_v10  ;;  %v1388_v38 = vsel %vm1380_vm15, %v5089_v26, %v8221_v40 }
 0x1e6   : > { %8217 = vst [vmem:[#allocation54_spill] sm:$0xff] %v6448_v29  ;;  %v8222_v16 = vunpack.i.h.bf16 %v6394_v0  ;;  %v6478_v26 = vsel %vm1380_vm15, %v8223_v22, %v5068_v47  ;;  %v8225_v40 = vunpack.i.h.bf16 %v6133_v24  ;;  %v6497_v22 = vsel %vm1740_vm14, %v5920_v5, %v1388_v38 }
 0x1e7   : > { %v6428_v17 = vpop.permute.xlu0 %5106  ;;  %v6459_v30 = vsel %vm1380_vm15, %v8219_v58, %v8218_v20  ;;  %v5149_v20 = vunpack.i.h.bf16 %v6365_v46  ;;  %v5148_v58 = vunpack.i.l.bf16 %v6365_v46  ;;  %8224 = vst [vmem:[#allocation56_spill] sm:$0xff] %v6478_v26  ;;  %v8227_v47 = vunpack.i.l.bf16 %v6090_v57 }
 0x1e8   : > { %v6444_v63 = vpop.permute.xlu1 %5171  ;;  %8220 = vst [vmem:[#allocation55_spill] sm:$0xff] %v6459_v30  ;;  %v1391_v27 = vsel %vm1380_vm15, %v5098_v50, %v8222_v16  ;;  %v1386_v16 = vsel %vm1380_vm15, %v8225_v40, %v5088_v32  ;;  %v5108_v46 = vunpack.i.l.bf16 %v6428_v17  ;;  %v5078_v33 = vunpack.i.l.bf16 %v6228_v10 }
 0x1e9   : > { %5211 = vrot.lane.b32.xlu0 %v6305_v13, %s5516_s16  ;;  %5206 = vrot.lane.b32.xlu1 %v6273_v42, %s5516_s16  ;;  %v5109_v13 = vunpack.i.h.bf16 %v6428_v17  ;;  %v6501_v32 = vsel %vm1740_vm14, %v5786_v49, %v1391_v27  ;;  %v6506_v40 = vsel %vm1380_vm15, %v5079_v8, %v8227_v47  ;;  %v6510_v17 = vsel %vm1380_vm15, %v5059_v21, %v5079_v8 }
 0x1ea   : > { %v8228_v49 = vunpack.i.h.bf16 %v6241_v34  ;;  %v8229_v5 = vunpack.i.h.bf16 %v6230_v62  ;;  %v1672_v27 = vsel %vm1465_vm3, %v5148_v58, %v5149_v20  ;;  %v6530_v8 = vsel %vm1740_vm14, %v5727_v23, %v1386_v16 }
 0x1eb   : > { %v6484_v56 = vpop.permute.xlu0 %5116  ;;  %v8232_v23 = vunpack.i.h.bf16 %v6201_v2  ;;  %v5158_v30 = vunpack.i.l.bf16 %v6404_v51 }
 0x1ec   : > { %v6493_v7 = vpop.permute.xlu1 %1669  ;;  %v6522_v38 = vsel %vm1380_vm15, %v8229_v5, %v8228_v49  ;;  %v8230_v10 = vunpack.i.h.bf16 %v6484_v56  ;;  %v6541_v5 = vpack.i.bf16 %v6208_v4, %v6497_v22 }
 0x1ed   : > { %5216 = vrot.lane.b32.xlu0 %v6360_v55, %s5517_s17  ;;  %2650 = vrot.lane.b32.xlu1 %v6489_v41, %s5516_s16  ;;  %v8231_v55 = vunpack.i.l.bf16 %v6088_v28  ;;  %v1394_v28 = vsel %vm1380_vm15, %v8232_v23, %v5108_v46  ;;  %v8235_v23 = vunpack.i.h.bf16 %v6314_v37 }
 0x1ee   : > { %v1395_v21 = vsel %vm1380_vm15, %v5108_v46, %v8230_v10  ;;  %v8234_v46 = vunpack.i.l.bf16 %v6133_v24  ;;  %v6579_v37 = vsel %vm1740_vm14, %v5959_v19, %v1394_v28 }
 0x1ef   : > { %v1586_v47 = vsel %vm1380_vm15, %v5109_v13, %v8231_v55  ;;  %v6537_v42 = vsel %vm1740_vm14, %v5823_v3, %v1395_v21  ;;  %v5142_v49 = vpop.permute.xlu0 %5141  ;;  %v8233_v3 = vunpack.i.h.bf16 %v6159_v25 }
 0x1f0   : > { %v5144_v16 = vunpack.i.h.bf16 %v5142_v49  ;;  %v5143_v55 = vunpack.i.l.bf16 %v5142_v49  ;;  %v6549_v41 = vpop.permute.xlu1 %5186 }
 0x1f1   : > { %v1390_v21 = vsel %vm1380_vm15, %v8233_v3, %v5098_v50  ;;  %v5189_v26 = vunpack.i.h.bf16 %v6549_v41  ;;  %5226 = vrot.lane.b32.xlu0 %v6448_v29, %s5516_s16  ;;  %v6568_v3 = vsel %vm1740_vm14, %v1586_v47, %v1672_v27  ;;  %v5188_v28 = vunpack.i.l.bf16 %v6549_v41 }
 0x1f2   : > { %v1384_v49 = vsel %vm1380_vm15, %v5144_v16, %v8234_v46  ;;  %v1382_v25 = vsel %vm1380_vm15, %v8235_v23, %v5143_v55  ;;  %v1383_v50 = vsel %vm1380_vm15, %v5143_v55, %v5144_v16  ;;  %v4801_v19 = vpack.c.bf16 %v6530_v8, %v6568_v3 }
 0x1f3   : > { %v1671_v53 = vsel %vm1465_vm3, %v5189_v26, %v5148_v58  ;;  %v5152_v54 = vpop.permute.xlu0 %5151  ;;  %v6573_v29 = vsel %vm1740_vm14, %v5980_v43, %v1382_v25  ;;  %v1744_v24 = vsel %vm1740_vm14, %v5895_v11, %v1384_v49  ;;  %v1585_v58 = vsel %vm1380_vm15, %v5078_v33, %v5109_v13 }
 0x1f4   : > { %v5154_v46 = vunpack.i.h.bf16 %v5152_v54  ;;  %v5153_v23 = vunpack.i.l.bf16 %v5152_v54  ;;  %v4797_v27 = vpack.c.bf16 %v6414_v31, %v6573_v29  ;;  %v6584_v47 = vpack.i.bf16 %v6172_v14, %v1744_v24 }
 0x1f5   : > { %5236 = vrot.lane.b32.xlu0 %v6541_v5, %s5516_s16  ;;  %v4805_v43 = vpack.c.bf16 %v6349_v1, %v1744_v24  ;;  %v6592_v11 = vsel %vm1740_vm14, %v5907_v59, %v1383_v50  ;;  %v5133_v54 = vunpack.i.l.bf16 %v6241_v34  ;;  %v6602_v13 = vsel %vm1740_vm14, %v1585_v58, %v1671_v53  ;;  %v8241_v50 = vld [vmem:[#allocation48_spill] sm:$0xff] }
 0x1f6   : > { %v1673_v31 = vsel %vm1465_vm3, %v5149_v20, %v5153_v23  ;;  %v1674_v26 = vsel %vm1465_vm3, %v5153_v23, %v5154_v46  ;;  %4798 = vmatprep.subr.bf16.mxu0 %v4797_v27  ;;  %5221 = vrot.lane.b32.xlu1 %v6584_v47, %s5516_s16  ;;  %v8236_v1 = vunpack.i.l.bf16 %v6201_v2  ;;  %v8237_v59 = vunpack.i.h.bf16 %v6394_v0  ;;  %v8244_v27 = vld [vmem:[#allocation16_spill] sm:$0xff] }
 0x1f7   : > { %4806 = vmatprep.subr.bf16.mxu1 %v4805_v43  ;;  %v6610_v16 = vpop.permute.xlu0 %5161  ;;  %v8238_v20 = vpack.c.bf16 %v6372_v61, %v6369_v52  ;;  %v4807_v55 = vpack.c.bf16 %v6417_v45, %v6592_v11  ;;  %v6619_v53 = vpack.i.bf16 %v6579_v37, %v6452_v36  ;;  %v8240_v2 = vunpack.i.h.bf16 %v6404_v51 }
 0x1f8   : > { %v1392_v33 = vsel %vm1380_vm15, %v8237_v59, %v8236_v1  ;;  %v6626_v41 = vpack.i.bf16 %v6398_v18, %v6530_v8  ;;  %v6630_v61 = vsel %vm1740_vm14, %v6420_v35, %v1674_v26  ;;  %v6634_v52 = vsel %vm1740_vm14, %v5775_v44, %v1390_v21  ;;  %v8246_v1 = vld [vmem:[#allocation12_spill] sm:$0xff] }
 0x1f9   : > { %4800 = vmatpush1.bf16.msra.mxu0 %v8238_v20  ;;  %8239 = vst [vmem:[#allocation58_spill] sm:$0xff] %v6619_v53  ;;  %v1677_v0 = vsel %vm1465_vm3, %v5158_v30, %v8240_v2  ;;  %v8134_v45 = vunpack.i.l.bf16 %v6610_v16  ;;  %4808 = vmatpush1.bf16.msra.mxu1 %v4807_v55  ;;  %v4809_v49 = vpack.c.bf16 %v6497_v22, %v6630_v61  ;;  %v8242_v24 = vunpack.i.l.bf16 %v6224_v6  ;;  %v8247_v20 = vld [vmem:[#allocation18_spill] sm:$0xff] }
 0x1fa   : > { %4802 = vmatprep.subr.bf16.mxu0 %v4801_v19  ;;  %5251 = vrot.lane.b32.xlu0 %v6619_v53, %s5516_s16  ;;  %v4803_v25 = vpack.c.bf16 %v6172_v14, %v6602_v13  ;;  %v6645_v35 = vsel %vm1740_vm14, %v8241_v50, %v1673_v31  ;;  %v8243_v44 = vunpack.i.l.bf16 %v6230_v62  ;;  %v6660_v58 = vsel %vm1740_vm14, %v8244_v27, %v1392_v33  ;;  %v8252_v50 = vld [vmem:[#allocation40_spill] sm:$0xff] }
 0x1fb   : > { %5231 = vrot.lane.b32.xlu1 %v6626_v41, %s5516_s16  ;;  %v4811_v23 = vpack.c.bf16 %v6398_v18, %v6645_v35  ;;  %v8245_v43 = vunpack.i.h.bf16 %v6224_v6  ;;  %v1676_v31 = vsel %vm1465_vm3, %v5188_v28, %v5158_v30  ;;  %4810 = vmatprep.subr.bf16.mxu1 %v4809_v49  ;;  %v6668_v26 = vpop.permute.xlu0 %5166  ;;  %v6673_v59 = vsel %vm1740_vm14, %v8246_v1, %v6522_v38  ;;  %v8248_v6 = vld [vmem:[#allocation32_spill] sm:$0xff]  ;;  %v8249_v30 = vld [vmem:[#allocation50_spill] sm:$0xff]  ;;  %v8250_v49 = vld [vmem:[#allocation21_spill] sm:$0xff] }
 0x1fc   : > { %v6652_v21 = vsel %vm1380_vm15, %v8243_v44, %v8242_v24  ;;  %v6677_v33 = vsel %vm1740_vm14, %v6506_v40, %v1677_v0  ;;  %v6683_v55 = vpack.i.bf16 %v6634_v52, %v8248_v6  ;;  %v4813_v2 = vpack.c.bf16 %v8249_v30, %v6530_v8  ;;  %v6700_v24 = vld [vmem:[%s8049_s3] sm:$0x3]  ;;  %v8255_v44 = vld [vmem:[#allocation19_spill] sm:$0xff] }
 0x1fd   : > { %v6665_v19 = vsel %vm1380_vm15, %v8245_v43, %v5133_v54  ;;  %4804 = vmatpush1.bf16.msra.mxu0 %v4803_v25  ;;  %v4821_v25 = vpack.c.bf16 %v8250_v49, %v6497_v22  ;;  %v1675_v38 = vsel %vm1465_vm3, %v5154_v46, %v5188_v28  ;;  %v8251_v40 = vunpack.i.h.bf16 %v6404_v51  ;;  %4812 = vmatpush1.bf16.msra.mxu1 %v4811_v23  ;;  %v8253_v8 = vld [vmem:[#allocation34_spill] sm:$0xff]  ;;  %v8256_v49 = vld [vmem:[#allocation23_spill] sm:$0xff] }
 0x1fe   : > { %4718 = vmatprep.subr.msk.mxu0 %vm1740_vm14, %v8247_v20  ;;  %5261 = vrot.lane.b32.xlu0 %v8252_v50, %s5516_s16  ;;  %v6704_v22 = vpack.i.bf16 %v6660_v58, %v6501_v32  ;;  %v8254_v46 = vmov %v8230_v10  ;;  %v5118_v28 = vunpack.i.l.bf16 %v6484_v56  ;;  %v6717_v23 = vsel %vm1740_vm14, %v6510_v17, %v1676_v31  ;;  %v8257_v17 = vld [vmem:[#allocation49_spill] sm:$0xff] }
 0x1ff   : > { %v1678_v0 = vsel %vm1465_vm3, %v8251_v40, %v8134_v45  ;;  %v1396_v51 = vsel %vm1380_vm15, %v8254_v46, %v8253_v8  ;;  %4721 = vmatprep.subr.msk.mxu1 %vm1740_vm14, %v8255_v44  ;;  %5241 = vrot.lane.b32.xlu1 %v6683_v55, %s5516_s16  ;;  %v6721_v27 = vsel %vm1740_vm14, %v5133_v54, %v6493_v7  ;;  %v5168_v43 = vunpack.i.l.bf16 %v6668_v26  ;;  %v5177_v1 = vpop.permute.xlu0 %5176  ;;  %v8258_v8 = vld [vmem:[#allocation11_spill] sm:$0xff]  ;;  %v8260_v50 = vld [vmem:[#allocation25_spill] sm:$0xff] }
 0x200   : > { %v4827_v56 = vpack.c.bf16 %v6501_v32, %v6677_v33  ;;  %v4829_v40 = vpack.c.bf16 %v6433_v15, %v6634_v52  ;;  %v6734_v54 = vsel %vm1740_vm14, %v8257_v17, %v1678_v0  ;;  %v6738_v31 = vsel %vm1740_vm14, %v6423_v48, %v1675_v38 }
 0x201   : > { %4719 = vmatpush1.msk.msra.mxu0 %vm1740_vm14, %v8256_v49  ;;  %v6742_v46 = vsel %vm1740_vm14, %v8258_v8, %v1396_v51  ;;  %v5164_v10 = vunpack.i.h.bf16 %v6610_v16  ;;  %v5169_v45 = vunpack.i.h.bf16 %v6668_v26  ;;  %v8261_v53 = vpack.c.bf16 %v8260_v50, %v6172_v14  ;;  %v8263_v26 = vld [vmem:[#allocation29_spill] sm:$0xff] }
 0x202   : > { %4814 = vmatprep.subr.bf16.mxu0 %v4813_v2  ;;  %4720 = vmatmul.mubr.msk.f32.vlgmr.msra.gmra.mrb[0].mxu0 %vm1800_vm1, %v6700_v24  ;;  %v8259_v2 = vld [vmem:[#allocation20_spill] sm:$0xff]  ;;  %v4817_v0 = vpack.c.bf16 %v6634_v52, %v6717_v23  ;;  %v8262_v48 = vunpack.i.h.bf16 %v6090_v57  ;;  %v5179_v51 = vunpack.i.h.bf16 %v5177_v1  ;;  %v5178_v17 = vunpack.i.l.bf16 %v5177_v1 }
 0x203   : > { %4722 = vmatpush1.msk.msra.mxu1 %vm1740_vm14, %v8259_v2  ;;  %4816 = vmatpush1.bf16.msra.mxu0 %v8261_v53  ;;  %v4837_v8 = vpack.c.bf16 %v8263_v26, %v6660_v58  ;;  %v5173_v49 = vunpack.i.l.bf16 %v6444_v63  ;;  %v1680_v14 = vsel %vm1465_vm3, %v5164_v10, %v5168_v43  ;;  %v4825_v57 = vpack.c.bf16 %v6660_v58, %v6734_v54  ;;  %v5182_v53 = vpop.permute.xlu0 %5181 }
 0x204   : > { %v1593_v38 = vsel %vm1380_vm15, %v8262_v48, %v5118_v28  ;;  %4822 = vmatprep.subr.bf16.mxu1 %v4821_v25  ;;  %5266 = vrot.lane.b32.xlu0 %v6584_v47, %s5517_s17  ;;  %v4819_v52 = vpack.c.bf16 %v6208_v4, %v6738_v31  ;;  %v8264_v47 = vunpack.i.h.bf16 %v6226_v39  ;;  %v8265_v50 = vpack.c.bf16 %v6122_v60, %v6398_v18 }
 0x205   : > { %4723 = vmatmul.mubr.msk.f32.vlgmr.msra.gmra.mrb[0].mxu1 %vm1800_vm1, %v6700_v24  ;;  %4818 = vmatprep.subr.bf16.mxu0 %v4817_v0  ;;  %v5184_v1 = vunpack.i.h.bf16 %v5182_v53  ;;  %v5183_v0 = vunpack.i.l.bf16 %v5182_v53  ;;  %v6778_v58 = vpack.i.bf16 %v6742_v46, %v6537_v42  ;;  %v5174_v48 = vunpack.i.h.bf16 %v6444_v63 }
 0x206   : > { %v1594_v25 = vsel %vm1380_vm15, %v5118_v28, %v8264_v47  ;;  %4824 = vmatpush1.bf16.msra.mxu1 %v8265_v50  ;;  %5246 = vrot.lane.b32.xlu1 %v6704_v22, %s5516_s16  ;;  %v8266_v26 = vunpack.i.l.bf16 %v6610_v16  ;;  %v6786_v28 = vpack.i.bf16 %v6592_v11, %v6573_v29  ;;  %v1681_v60 = vsel %vm1465_vm3, %v5168_v43, %v5169_v45  ;;  %v8273_v47 = vld [vmem:[#allocation53_spill] sm:$0xff] }
 0x207   : > { %4826 = vmatprep.subr.bf16.mxu1 %v4825_v57  ;;  %4820 = vmatpush1.bf16.msra.mxu0 %v4819_v52  ;;  %v1682_v18 = vsel %vm1465_vm3, %v5169_v45, %v5173_v49  ;;  %v1685_v53 = vsel %vm1465_vm3, %v5178_v17, %v5179_v51  ;;  %v1686_v29 = vsel %vm1465_vm3, %v5179_v51, %v6493_v7  ;;  %v8267_v16 = vunpack.i.h.bf16 %v6241_v34  ;;  %v8269_v57 = vld [vmem:[#allocation56_spill] sm:$0xff]  ;;  %v8270_v51 = vld [vmem:[#allocation55_spill] sm:$0xff] }
 0x208   : > { %v1679_v39 = vsel %vm1465_vm3, %v8266_v26, %v5164_v10  ;;  %5276 = vrot.lane.b32.xlu0 %v6626_v41, %s5517_s17  ;;  %4724 = vmatprep.subr.msk.mxu0 %vm1740_vm14, %v6162_v12  ;;  %v1784_v10 = vsel %vm1740_vm14, %v1594_v25, %v1680_v14  ;;  %v1684_v11 = vsel %vm1465_vm3, %v5174_v48, %v5178_v17  ;;  %v8268_v43 = vmov 0.0   ;;  %v8271_v17 = vld [vmem:[#allocation27_spill] sm:$0xff]  ;;  %v8272_v52 = vld [vmem:[#allocation24_spill] sm:$0xff] }
 0x209   : > { %v1719_v45 = vsel %vm1380_vm15, %v8267_v16, %v5183_v0  ;;  %2042 = vmatprep.mubr.f32.mxu0 %v8268_v43  ;;  %2113 = vmatprep.mubr.f32.mxu1 %v8268_v43  ;;  %v6809_v41 = vsel %vm1740_vm14, %v1593_v38, %v1679_v39  ;;  %v1785_v14 = vsel %vm1740_vm14, %v8269_v57, %v1681_v60  ;;  %v8276_v60 = vld [vmem:[#allocation15_spill] sm:$0xff]  ;;  %v8278_v16 = vld [vmem:[#allocation17_spill] sm:$0xff]  ;;  %v8279_v57 = vld [vmem:[#allocation52_spill] sm:$0xff] }
 0x20a   : > { %v1720_v7 = vsel %vm1380_vm15, %v5183_v0, %v5184_v1  ;;  %4828 = vmatpush1.bf16.msra.mxu1 %v4827_v56  ;;  %5256 = vrot.lane.b32.xlu1 %v6778_v58, %s5516_s16  ;;  %v6818_v34 = vsel %vm1740_vm14, %v8270_v51, %v1685_v53  ;;  %v4833_v38 = vpack.c.bf16 %v6579_v37, %v1784_v10  ;;  %v8274_v56 = vld [vmem:[#allocation14_spill] sm:$0xff]  ;;  %v8277_v53 = vsel %vm5858_vm0, 0.0, %v8276_v60  ;;  %v8291_v39 = vld [vmem:[#allocation35_spill] sm:$0xff] }
 0x20b   : > { %4727 = vmatprep.subr.msk.mxu1 %vm1740_vm14, %v8271_v17  ;;  %4725 = vmatpush1.msk.msra.mxu0 %vm1740_vm14, %v8272_v52  ;;  %v6827_v25 = vsel %vm1740_vm14, %v8273_v47, %v1682_v18  ;;  %v6831_v50 = vsel %vm1740_vm14, %v8274_v56, %v1719_v45  ;;  %v1788_v0 = vsel %vm1740_vm14, %v6652_v21, %v1684_v11  ;;  %v8285_v47 = vld [vmem:[#allocation51_spill] sm:$0xff]  ;;  %v8292_v60 = vunpack.i.l.bf16 %v6230_v62 }
 0x20c   : > { %5286 = vrot.lane.b32.xlu0 %v6786_v28, %s5516_s16  ;;  %4830 = vmatprep.subr.bf16.mxu0 %v4829_v40  ;;  %v1790_v26 = vsel %vm1740_vm14, %v6665_v19, %v1686_v29  ;;  %v1796_v18 = vsel %vm1740_vm14, %v8277_v53, %v5184_v1  ;;  %v1795_v45 = vsel %vm1740_vm14, %v8278_v16, %v1720_v7  ;;  %v8280_v19 = vld [vmem:[#allocation26_spill] sm:$0xff]  ;;  %v8290_v56 = vld [vmem:[#allocation31_spill] sm:$0xff]  ;;  %v8293_v53 = vld [vmem:[#allocation33_spill] sm:$0xff]  ;;  %vm2654_vm0 = vcmask 1039360  }
 0x20d   : > { %4726 = vmatmul.mubr.msk.f32.vlgmr.msra.gmra.mrb[2].mxu0 %vm1800_vm1, %v6700_v24  ;;  %v6850_v40 = vpack.i.bf16 %v6717_v23, %v8279_v57  ;;  %v6854_v21 = vpack.i.bf16 %v8249_v30, %v6602_v13  ;;  %v8281_v29 = vld [vmem:[#allocation54_spill] sm:$0xff]  ;;  %v4841_v1 = vpack.c.bf16 %v6742_v46, %v6827_v25  ;;  %v6862_v11 = vpack.i.bf16 %v1785_v14, %v1784_v10  ;;  %v8283_v10 = vld [vmem:[#allocation28_spill] sm:$0xff] }
 0x20e   : > { %4728 = vmatpush1.msk.msra.mxu1 %vm1740_vm14, %v8280_v19  ;;  %5271 = vrot.lane.b32.xlu1 %v8281_v29, %s5517_s17  ;;  %v6867_v23 = vpack.i.bf16 %v6818_v34, %v1788_v0  ;;  %v6871_v13 = vpack.i.bf16 %v6831_v50, %v6673_v59  ;;  %v6874_v30 = vpack.i.bf16 %v6721_v27, %v1790_v26 }
 0x20f   : > { %4838 = vmatprep.subr.bf16.mxu1 %v4837_v8  ;;  %4729 = vmatmul.mubr.msk.f32.vlgmr.msra.gmra.mrb[2].mxu1 %vm1800_vm1, %v6700_v24  ;;  %v8282_v7 = vpack.c.bf16 %v8248_v6, %v6208_v4  ;;  %v8284_v8 = vpack.c.bf16 %v8283_v10, %v6501_v32  ;;  %v6882_v51 = vpack.i.bf16 %v1796_v18, %v1795_v45  ;;  %v8294_v18 = vunpack.i.h.bf16 %v8293_v53 }
 0x210   : > { %5291 = vrot.lane.b32.xlu0 %v8285_v47, %s5516_s16  ;;  %v4835_v27 = vpack.c.bf16 %v8279_v57, %v6809_v41  ;;  %v4843_v4 = vpack.c.bf16 %v6537_v42, %v1785_v14  ;;  %2184 = vmatprep.mubr.f32.mxu0 %v8268_v43  ;;  %v6895_v32 = vpack.i.bf16 %v6738_v31, %v6630_v61  ;;  %v8288_v31 = vld [vmem:[#allocation38_spill] sm:$0xff] }
 0x211   : > { %4832 = vmatpush1.bf16.msra.mxu0 %v8282_v7  ;;  %4840 = vmatpush1.bf16.msra.mxu1 %v8284_v8  ;;  %v5295_v6 = vpack.i.bf16 %v6645_v35, %v6568_v3  ;;  %v1683_v61 = vsel %vm1465_vm3, %v5173_v49, %v5174_v48  ;;  %v4845_v3 = vpack.c.bf16 %v8288_v31, %v6579_v37  ;;  %v8289_v35 = vld [vmem:[#allocation44_spill] sm:$0xff] }
 0x212   : > { %4834 = vmatprep.subr.bf16.mxu0 %v4833_v38  ;;  %4842 = vmatprep.subr.bf16.mxu1 %v4841_v1  ;;  %v8286_v38 = vld [vmem:[#allocation36_spill] sm:$0xff]  ;;  %v4853_v14 = vpack.c.bf16 %v8289_v35, %v6742_v46  ;;  %v1597_v63 = vsel %vm1380_vm15, %v8294_v18, %v8292_v60  ;;  %v4847_v37 = vpack.c.bf16 %v6452_v36, %v8279_v57 }
 0x213   : > { %5281 = vrot.lane.b32.xlu1 %v6541_v5, %s5517_s17  ;;  %2255 = vmatprep.mubr.f32.mxu1 %v8268_v43  ;;  %v8287_v5 = vld [vmem:[#allocation43_spill] sm:$0xff]  ;;  %v1787_v49 = vsel %vm1740_vm14, %v1597_v63, %v1683_v61  ;;  %v4849_v46 = vpack.c.bf16 %v6673_v59, %v1788_v0  ;;  %v5310_v62 = vpack.i.bf16 %v6734_v54, %v6677_v33  ;;  %v8296_v59 = vld [vmem:[#allocation37_spill] sm:$0xff]  ;;  %v8299_v54 = vld [vmem:[#allocation42_spill] sm:$0xff] }
 0x214   : > { %5301 = vrot.lane.b32.xlu0 %v6895_v32, %s5516_s16  ;;  %v4857_v48 = vpack.c.bf16 %v1795_v45, %v1790_v26  ;;  %v8295_v36 = vpack.c.bf16 %v6268_v9, %v6537_v42  ;;  %v6941_v16 = vpack.i.bf16 %v6433_v15, %v6809_v41  ;;  %v4851_v0 = vpack.c.bf16 %v8296_v59, %v1787_v49  ;;  %v8297_v42 = vld [vmem:[#allocation46_spill] sm:$0xff]  ;;  %v8298_v15 = vld [vmem:[#allocation57_spill] sm:$0xff]  ;;  %v8300_v41 = vld [vmem:[#allocation47_spill] sm:$0xff] }
 0x215   : > { %4836 = vmatpush1.bf16.msra.mxu0 %v4835_v27  ;;  %4844 = vmatpush1.bf16.msra.mxu1 %v4843_v4  ;;  %v4859_v33 = vpack.c.bf16 %v6831_v50, %v6818_v34  ;;  %v6951_v9 = vpack.i.bf16 %v1787_v49, %v6827_v25  ;;  %v8307_v59 = vld [vmem:[#allocation40_spill] sm:$0xff] }
 0x216   : > { %4730 = vmatprep.subr.msk.mxu0 %vm1740_vm14, %v8286_v38  ;;  %4733 = vmatprep.subr.msk.mxu1 %vm1740_vm14, %v8287_v5 }
 0x217   : > { %5296 = vrot.lane.b32.xlu1 %v5295_v6, %s5516_s16 }
 0x218   : > { %5306 = vrot.lane.b32.xlu0 %v6850_v40, %s5516_s16 }
 0x219   : > { %4731 = vmatpush1.msk.msra.mxu0 %vm1740_vm14, %v8290_v56  ;;  %4734 = vmatpush1.msk.msra.mxu1 %vm1740_vm14, %v8291_v39 }
 0x21a   : > { %4846 = vmatprep.subr.bf16.mxu0 %v4845_v3  ;;  %4854 = vmatprep.subr.bf16.mxu1 %v4853_v14 }
 0x21b   : > { %4732 = vmatmul.mubr.msk.f32.vlgmr.msra.gmra.mrb[4].mxu0 %vm1800_vm1, %v6700_v24  ;;  %4735 = vmatmul.mubr.msk.f32.vlgmr.msra.gmra.mrb[4].mxu1 %vm1800_vm1, %v6700_v24 }
 0x21c   : > { %4848 = vmatpush1.bf16.msra.mxu0 %v4847_v37  ;;  %4856 = vmatpush1.bf16.msra.mxu1 %v8295_v36 }
 0x21d   : > { %4850 = vmatprep.subr.bf16.mxu0 %v4849_v46  ;;  %5311 = vrot.lane.b32.xlu1 %v5310_v62, %s5516_s16  ;;  %v8306_v46 = vld [vmem:[#allocation39_spill] sm:$0xff] }
 0x21e   : > { %4858 = vmatprep.subr.bf16.mxu1 %v4857_v48  ;;  %5316 = vrot.lane.b32.xlu0 %v6941_v16, %s5516_s16 }
 0x21f   : > { %2397 = vmatprep.mubr.f32.mxu1 %v8268_v43  ;;  %2326 = vmatprep.mubr.f32.mxu0 %v8268_v43 }
 0x220   : > { %4852 = vmatpush1.bf16.msra.mxu0 %v4851_v0  ;;  %4860 = vmatpush1.bf16.msra.mxu1 %v4859_v33 }
 0x221   : > { %4736 = vmatprep.subr.msk.mxu0 %vm1740_vm14, %v8297_v42  ;;  %5326 = vrot.lane.b32.xlu1 %v6951_v9, %s5516_s16 }
 0x222   : > { %4739 = vmatprep.subr.msk.mxu1 %vm1740_vm14, %v8298_v15  ;;  %5321 = vrot.lane.b32.xlu0 %v6862_v11, %s5516_s16 }
 0x223   : > { %v2623_v34 = vpop.permute.xlu0 %2622 }
 0x224   : > { %4737 = vmatpush1.msk.msra.mxu0 %vm1740_vm14, %v8299_v54  ;;  %4740 = vmatpush1.msk.msra.mxu1 %vm1740_vm14, %v8300_v41 }
 0x225   : > { %4738 = vmatmul.mubr.msk.f32.vlgmr.msra.gmra.mrb[6].mxu0 %vm1800_vm1, %v6700_v24  ;;  %5331 = vrot.lane.b32.xlu1 %v6867_v23, %s5516_s16 }
 0x226   : > { %4741 = vmatmul.mubr.msk.f32.vlgmr.msra.gmra.mrb[6].mxu1 %vm1800_vm1, %v6700_v24  ;;  %5336 = vrot.lane.b32.xlu0 %v6874_v30, %s5516_s16 }
 0x227   : > { %2947 = vmatprep.mubr.f32.mxu1 %v8268_v43  ;;  %2876 = vmatprep.mubr.f32.mxu0 %v8268_v43 }
 0x229   : > { %5341 = vrot.lane.b32.xlu1 %v6871_v13, %s5516_s16 }
 0x22a   : > { %5346 = vrot.lane.b32.xlu0 %v6882_v51, %s5516_s16 }
 0x22b   : > { %v2625_v25 = vpop.permute.xlu1 %2624  ;;  %v2627_v24 = vpop.permute.xlu0 %2626 }
 0x22c   : > { %v6984_v50 = vsel %vm2654_vm0, %v2623_v34, %v2625_v25  ;;  %v6987_v26 = vsel %vm2654_vm0, %v2625_v25, %v2627_v24 }
 0x22d   : > { %5351 = vrot.lane.b32.xlu1 %v6786_v28, %s5517_s17 }
 0x22e   : > { %5361 = vrot.lane.b32.xlu0 %v5295_v6, %s5517_s17 }
 0x22f   : > { %v2629_v45 = vpop.permute.xlu1 %2628  ;;  %v2621_v57 = vpop.permute.xlu0 %2620 }
 0x230   : > { %v6994_v28 = vsel %vm2654_vm0, %v2627_v24, %v2629_v45  ;;  %v6997_v29 = vsel %vm2654_vm0, %v2621_v57, %v2623_v34 }
 0x231   : > { %5356 = vrot.lane.b32.xlu1 %v8285_v47, %s5517_s17 }
 0x232   : > { %5381 = vrot.lane.b32.xlu0 %v6683_v55, %s5517_s17 }
 0x233   : > { %v2631_v1 = vpop.permute.xlu1 %2630  ;;  %v2633_v7 = vpop.permute.xlu0 %2632 }
 0x234   : > { %v7004_v10 = vsel %vm2654_vm0, %v2629_v45, %v2631_v1  ;;  %v7007_v8 = vsel %vm2654_vm0, %v2631_v1, %v2633_v7 }
 0x235   : > { %5366 = vrot.lane.b32.xlu1 %v6854_v21, %s5516_s16 }
 0x236   : > { %3498 = vrot.lane.b32.xlu0 %v8259_v2, %s5517_s17  ;;  %v8301_v2 = vld [vmem:[#allocation22_spill] sm:$0xff] }
 0x237   : > { %v2635_v55 = vpop.permute.xlu1 %2634  ;;  %v2637_v47 = vpop.permute.xlu0 %2636 }
 0x238   : > { %v7014_v27 = vsel %vm2654_vm0, %v2633_v7, %v2635_v55  ;;  %v7017_v4 = vsel %vm2654_vm0, %v2635_v55, %v2637_v47 }
 0x239   : > { %5371 = vrot.lane.b32.xlu1 %v6895_v32, %s5517_s17  ;;  %v8303_v32 = vld [vmem:[#allocation23_spill] sm:$0xff] }
 0x23a   : > { %3502 = vrot.lane.b32.xlu0 %v8272_v52, %s5517_s17  ;;  %v8302_v52 = vld [vmem:[#allocation30_spill] sm:$0xff] }
 0x23d   : > { %5376 = vrot.lane.b32.xlu1 %v8301_v2, %s5517_s17 }
 0x23e   : > { %5386 = vrot.lane.b32.xlu0 %v6704_v22, %s5517_s17 }
 0x241   : > { %3496 = vrot.lane.b32.xlu1 %v8247_v20, %s5517_s17 }
 0x242   : > { %5396 = vrot.lane.b32.xlu0 %v5310_v62, %s5517_s17 }
 0x245   : > { %3500 = vrot.lane.b32.xlu1 %v8255_v44, %s5517_s17 }
 0x246   : > { %5406 = vrot.lane.b32.xlu0 %v8302_v52, %s5517_s17 }
 0x247   : > { %v2639_v6 = vpop.permute.xlu1 %2638  ;;  %v2641_v61 = vpop.permute.xlu0 %2640 }
 0x248   : > { %v7035_v22 = vsel %vm2654_vm0, %v2637_v47, %v2639_v6  ;;  %v7038_v20 = vsel %vm2654_vm0, %v2639_v6, %v2641_v61 }
 0x249   : > { %3494 = vrot.lane.b32.xlu1 %v8303_v32, %s5517_s17 }
 0x24a   : > { %3504 = vrot.lane.b32.xlu0 %v6162_v12, %s5517_s17 }
 0x24b   : > { %v2643_v44 = vpop.permute.xlu1 %2642  ;;  %v2645_v31 = vpop.permute.xlu0 %2644 }
 0x24c   : > { %v7045_v3 = vsel %vm2654_vm0, %v2641_v61, %v2643_v44  ;;  %v7048_v35 = vsel %vm2654_vm0, %v2643_v44, %v2645_v31 }
 0x24d   : > { %5391 = vrot.lane.b32.xlu1 %v6850_v40, %s5517_s17 }
 0x24e   : > { %3508 = vrot.lane.b32.xlu0 %v8271_v17, %s5517_s17  ;;  %v8305_v17 = vld [vmem:[#allocation58_spill] sm:$0xff] }
 0x24f   : > { %v2647_v12 = vpop.permute.xlu1 %2646  ;;  %v2649_v14 = vpop.permute.xlu0 %2648 }
 0x250   : > { %v7055_v40 = vsel %vm2654_vm0, %v2645_v31, %v2647_v12  ;;  %v7058_v60 = vsel %vm2654_vm0, %v2647_v12, %v2649_v14 }
 0x251   : > { %5401 = vrot.lane.b32.xlu1 %v6941_v16, %s5517_s17  ;;  %8304 = vst [vmem:[#allocation48_spill] sm:$0xff] %v7055_v40 }
 0x252   : > { %5416 = vrot.lane.b32.xlu0 %v6854_v21, %s5517_s17 }
 0x253   : > { %v2653_v53 = vpop.permute.xlu0 %2652  ;;  %v7062_v18 = vpop.permute.xlu1 %5191 }
 0x254   : > { %v5193_v33 = vunpack.i.l.bf16 %v7062_v18 }
 0x255   : > { %5411 = vrot.lane.b32.xlu1 %v8305_v17, %s5517_s17 }
 0x256   : > { %5421 = vrot.lane.b32.xlu0 %v6778_v58, %s5517_s17 }
 0x257   : > { %v7068_v63 = vpop.permute.xlu0 %5196  ;;  %v7070_v21 = vpop.permute.xlu1 %5201 }
 0x259   : > { %3506 = vrot.lane.b32.xlu1 %v8280_v19, %s5517_s17 }
 0x25a   : > { %5431 = vrot.lane.b32.xlu0 %v6951_v9, %s5517_s17  ;;  %v8308_v9 = vld [vmem:[#allocation45_spill] sm:$0xff] }
 0x25b   : > { %v7076_v37 = vpop.permute.xlu0 %5211  ;;  %v7078_v49 = vpop.permute.xlu1 %5206 }
 0x25c   : > { %v8143_v58 = vunpack.i.l.bf16 %v7076_v37  ;;  %v5209_v19 = vunpack.i.h.bf16 %v7078_v49  ;;  %v5208_v47 = vunpack.i.l.bf16 %v7078_v49 }
 0x25d   : > { %3510 = vrot.lane.b32.xlu1 %v8290_v56, %s5517_s17 }
 0x25e   : > { %5441 = vrot.lane.b32.xlu0 %v8306_v46, %s5517_s17  ;;  %v7087_v62 = vsel %vm2654_vm0, %v5209_v19, %v8143_v58  ;;  %v7166_v31 = vsel %vm2654_vm0, %v5208_v47, %v5209_v19 }
 0x25f   : > { %v7091_v56 = vpop.permute.xlu0 %5216  ;;  %v2651_v48 = vpop.permute.xlu1 %2650 }
 0x260   : > { %v7096_v36 = vsel %vm2654_vm0, %v2649_v14, %v2651_v48  ;;  %v7099_v16 = vsel %vm2654_vm0, %v2651_v48, %v2653_v53 }
 0x261   : > { %5426 = vrot.lane.b32.xlu1 %v6862_v11, %s5517_s17  ;;  %v8139_v11 = vunpack.i.h.bf16 %v7062_v18 }
 0x262   : > { %3512 = vrot.lane.b32.xlu0 %v8286_v38, %s5517_s17 }
 0x263   : > { %v5227_v0 = vpop.permute.xlu0 %5226  ;;  %v2674_v57 = vsel %vm2654_vm0, %v5193_v33, %v8139_v11 }
 0x264   : > { %v5229_v2 = vunpack.i.h.bf16 %v5227_v0  ;;  %v5228_v52 = vunpack.i.l.bf16 %v5227_v0 }
 0x265   : > { %5436 = vrot.lane.b32.xlu1 %v8307_v59, %s5517_s17 }
 0x266   : > { %3516 = vrot.lane.b32.xlu0 %v8287_v5, %s5517_s17  ;;  %v2673_v12 = vsel %vm2654_vm0, %v5229_v2, %v5193_v33  ;;  %v2672_v53 = vsel %vm2654_vm0, %v5228_v52, %v5229_v2 }
 0x267   : > { %v7109_v38 = vpop.permute.xlu0 %5236 }
 0x268   : > { %v7113_v34 = vpop.permute.xlu1 %5221 }
 0x269   : > { %5446 = vrot.lane.b32.xlu1 %v8308_v9, %s5517_s17  ;;  %v8141_v25 = vunpack.i.h.bf16 %v7113_v34  ;;  %v5223_v24 = vunpack.i.l.bf16 %v7113_v34  ;;  %v8136_v9 = vunpack.i.h.bf16 %v7109_v38 }
 0x26a   : > { %5451 = vrot.lane.b32.xlu0 %v6867_v23, %s5517_s17 }
 0x26b   : > { %v2658_v45 = vsel %vm2654_vm0, %v5223_v24, %v8141_v25 }
 0x26c   : > { %v7119_v5 = vpop.permute.xlu0 %5251  ;;  %v4869_v1 = vpack.c.bf16 %v2674_v57, %v2658_v45 }
 0x26d   : > { %3514 = vrot.lane.b32.xlu1 %v8291_v39, %s5517_s17  ;;  %v7129_v23 = vpop.permute.xlu1 %5231 }
 0x26e   : > { %5461 = vrot.lane.b32.xlu0 %v6871_v13, %s5517_s17  ;;  %4870 = vmatprep.subr.bf16.mxu1 %v4869_v1  ;;  %v5234_v45 = vunpack.i.h.bf16 %v7129_v23  ;;  %v8142_v57 = vunpack.i.l.bf16 %v7129_v23 }
 0x270   : > { %v7133_v39 = vpop.permute.xlu0 %5261 }
 0x271   : > { %3518 = vrot.lane.b32.xlu1 %v8299_v54, %s5517_s17  ;;  %v7137_v7 = vpop.permute.xlu1 %5241 }
 0x272   : > { %3520 = vrot.lane.b32.xlu0 %v8297_v42, %s5517_s17 }
 0x275   : > { %5456 = vrot.lane.b32.xlu1 %v6874_v30, %s5517_s17 }
 0x276   : > { %3524 = vrot.lane.b32.xlu0 %v8298_v15, %s5517_s17  ;;  %v7143_v13 = vpop.permute.xlu0 %5266  ;;  %v5254_v15 = vunpack.i.h.bf16 %v7119_v5 }
 0x278   : > { %v7145_v55 = vpop.permute.xlu1 %5246 }
 0x279   : > { %5466 = vrot.lane.b32.xlu1 %v6882_v51, %s5517_s17 }
 0x27a   : > { %v7149_v54 = vpop.permute.xlu0 %5276 }
 0x27c   : > { %v7152_v42 = vpop.permute.xlu1 %5256 }
 0x27d   : > { %3522 = vrot.lane.b32.xlu1 %v8300_v41, %s5517_s17  ;;  %v8148_v30 = vunpack.i.l.bf16 %v7152_v42  ;;  %v8309_v41 = vld [vmem:[#allocation41_spill] sm:$0xff] }
 0x27e   : > { %v5287_v32 = vpop.permute.xlu0 %5286 }
 0x27f   : > { %v5289_v6 = vunpack.i.h.bf16 %v5287_v32  ;;  %v5288_v61 = vunpack.i.l.bf16 %v5287_v32  ;;  %v7163_v51 = vsel %vm2654_vm0, %v5254_v15, %v8148_v30 }
 0x280   : > { %v7158_v44 = vpop.permute.xlu1 %5271 }
 0x281   : > { %3526 = vrot.lane.b32.xlu1 %v8309_v41, %s5517_s17  ;;  %v2657_v14 = vsel %vm2654_vm0, %v5289_v6, %v5223_v24  ;;  %v2656_v17 = vsel %vm2654_vm0, %v5288_v61, %v5289_v6  ;;  %v5238_v24 = vunpack.i.l.bf16 %v7109_v38 }
 0x282   : > { %v4871_v49 = vpack.c.bf16 %v2673_v12, %v2657_v14  ;;  %v4861_v46 = vpack.c.bf16 %v2672_v53, %v2656_v17  ;;  %v5292_v59 = vpop.permute.xlu0 %5291 }
 0x283   : > { %v5294_v19 = vunpack.i.h.bf16 %v5292_v59  ;;  %v5293_v33 = vunpack.i.l.bf16 %v5292_v59  ;;  %v8138_v59 = vunpack.i.l.bf16 %v7137_v7 }
 0x284   : > { %4862 = vmatprep.subr.bf16.mxu0 %v4861_v46  ;;  %4872 = vmatpush1.bf16.msra.mxu1 %v4871_v49  ;;  %v5253_v49 = vunpack.i.l.bf16 %v7119_v5  ;;  %v2661_v46 = vsel %vm2654_vm0, %v5234_v45, %v5238_v24 }
 0x285   : > { %v7176_v0 = vpop.permute.xlu1 %5281  ;;  %v2655_v1 = vsel %vm2654_vm0, %v5293_v33, %v5288_v61  ;;  %v2671_v2 = vsel %vm2654_vm0, %v5294_v19, %v5228_v52  ;;  %v2662_v52 = vsel %vm2654_vm0, %v5238_v24, %v8136_v9  ;;  %v7200_v61 = vsel %vm2654_vm0, %v8142_v57, %v5234_v45 }
 0x286   : > { %v4863_v32 = vpack.c.bf16 %v2671_v2, %v2655_v1  ;;  %v7184_v6 = vpop.permute.xlu0 %5301  ;;  %v5199_v45 = vunpack.i.h.bf16 %v7068_v63  ;;  %v8147_v9 = vunpack.i.l.bf16 %v7068_v63 }
 0x287   : > { %v8137_v41 = vunpack.i.h.bf16 %v7184_v6  ;;  %v5303_v14 = vunpack.i.l.bf16 %v7184_v6 }
 0x288   : > { %4864 = vmatpush1.bf16.msra.mxu0 %v4863_v32 }
 0x289   : > { %v7186_v12 = vpop.permute.xlu1 %5296  ;;  %v2690_v5 = vsel %vm2654_vm0, %v5303_v14, %v8137_v41 }
 0x28a   : > { %v5299_v17 = vunpack.i.h.bf16 %v7186_v12  ;;  %v8140_v53 = vunpack.i.l.bf16 %v7186_v12  ;;  %v7210_v2 = vpop.permute.xlu0 %5306  ;;  %v4873_v24 = vpack.c.bf16 %v2662_v52, %v2690_v5  ;;  %v2677_v5 = vsel %vm2654_vm0, %v8147_v9, %v5199_v45 }
 0x28b   : > { %v5308_v48 = vunpack.i.l.bf16 %v7210_v2 }
 0x28c   : > { %v2689_v19 = vsel %vm2654_vm0, %v5299_v17, %v5303_v14  ;;  %v2688_v33 = vsel %vm2654_vm0, %v8140_v53, %v5299_v17  ;;  %4874 = vmatprep.subr.bf16.mxu1 %v4873_v24  ;;  %v7217_v14 = vsel %vm2654_vm0, %v5253_v49, %v5208_v47  ;;  %v5249_v47 = vunpack.i.h.bf16 %v7145_v55 }
 0x28d   : > { %v4875_v1 = vpack.c.bf16 %v2661_v46, %v2689_v19  ;;  %v4865_v32 = vpack.c.bf16 %v7200_v61, %v2688_v33  ;;  %v7220_v41 = vsel %vm2654_vm0, %v5308_v48, %v5254_v15  ;;  %v2678_v19 = vsel %vm2654_vm0, %v5199_v45, %v8138_v59 }
 0x28e   : > { %v8145_v59 = vunpack.i.l.bf16 %v7145_v55  ;;  %v4885_v11 = vpack.c.bf16 %v2678_v19, %v2662_v52  ;;  %v4887_v53 = vpack.c.bf16 %v2677_v5, %v2661_v46 }
 0x28f   : > { %4866 = vmatprep.subr.bf16.mxu0 %v4865_v32  ;;  %v7222_v17 = vpop.permute.xlu1 %5311  ;;  %4876 = vmatpush1.bf16.msra.mxu1 %v4875_v1  ;;  %v7240_v1 = vld [vmem:[%s8049_s3 + $0x2] sm:$0x3] }
 0x290   : > { %v5314_v33 = vunpack.i.h.bf16 %v7222_v17  ;;  %v8146_v24 = vunpack.i.l.bf16 %v7222_v17  ;;  %v7231_v32 = vpop.permute.xlu0 %5316  ;;  %4745 = vmatprep.subr.msk.mxu1 %vm1740_vm14, %v6994_v28  ;;  %v2666_v28 = vsel %vm2654_vm0, %v5249_v47, %v5308_v48 }
 0x291   : > { %v8144_v15 = vunpack.i.l.bf16 %v7231_v32 }
 0x292   : > { %v2693_v58 = vsel %vm2654_vm0, %v8146_v24, %v5314_v33 }
 0x293   : > { %v7246_v25 = vpop.permute.xlu1 %5326  ;;  %4746 = vmatpush1.msk.msra.mxu1 %vm1740_vm14, %v6987_v26  ;;  %v2694_v57 = vsel %vm2654_vm0, %v5314_v33, %v8144_v15  ;;  %v2665_v26 = vsel %vm2654_vm0, %v8145_v59, %v5249_v47  ;;  %v5204_v33 = vunpack.i.h.bf16 %v7070_v21 }
 0x294   : > { %v7257_v45 = vpop.permute.xlu0 %5321  ;;  %4747 = vmatmul.mubr.msk.f32.vlgmr.msra.gmra.mrb[8].mxu1 %vm1800_vm1, %v7240_v1  ;;  %4886 = vmatprep.subr.bf16.mxu1 %v4885_v11  ;;  %v4889_v46 = vpack.c.bf16 %v2666_v28, %v2694_v57  ;;  %v4891_v48 = vpack.c.bf16 %v2665_v26, %v2693_v58  ;;  %v8149_v52 = vunpack.i.h.bf16 %v7246_v25  ;;  %v5328_v19 = vunpack.i.l.bf16 %v7246_v25 }
 0x295   : > { %4888 = vmatpush1.bf16.msra.mxu1 %v4887_v53  ;;  %3089 = vmatprep.mubr.f32.mxu1 %v8268_v43  ;;  %v8152_v11 = vunpack.i.l.bf16 %v7070_v21  ;;  %v5259_v53 = vunpack.i.h.bf16 %v7152_v42  ;;  %v8151_v15 = vunpack.i.h.bf16 %v7257_v45  ;;  %v8150_v58 = vunpack.i.l.bf16 %v7133_v39 }
 0x296   : > { %4890 = vmatprep.subr.bf16.mxu1 %v4889_v46  ;;  %v2682_v46 = vsel %vm2654_vm0, %v5204_v33, %v5253_v49  ;;  %v2698_v59 = vsel %vm2654_vm0, %v5328_v19, %v8149_v52 }
 0x297   : > { %v7267_v5 = vpop.permute.xlu1 %5331  ;;  %v2681_v24 = vsel %vm2654_vm0, %v8152_v11, %v5204_v33  ;;  %v4901_v9 = vpack.c.bf16 %v2682_v46, %v2666_v28  ;;  %v2697_v49 = vsel %vm2654_vm0, %v8151_v15, %v5328_v19  ;;  %v5264_v19 = vunpack.i.h.bf16 %v7133_v39 }
 0x298   : > { %v5337_v57 = vpop.permute.xlu0 %5336  ;;  %v4903_v30 = vpack.c.bf16 %v2681_v24, %v2665_v26  ;;  %v8310_v24 = vunpack.i.l.bf16 %v7152_v42  ;;  %v8311_v42 = vunpack.i.l.bf16 %v7076_v37 }
 0x299   : > { %4892 = vmatpush1.bf16.msra.mxu1 %v4891_v48 }
 0x29a   : > { %4751 = vmatprep.subr.msk.mxu1 %vm1740_vm14, %v7017_v4  ;;  %v2703_v4 = vsel %vm2654_vm0, %v5259_v53, %v8150_v58  ;;  %v2669_v28 = vsel %vm2654_vm0, %v8310_v24, %v5259_v53 }
 0x29b   : > { %v7276_v47 = vpop.permute.xlu1 %5341  ;;  %v4905_v52 = vpack.c.bf16 %v2703_v4, %v2698_v59  ;;  %v4907_v46 = vpack.c.bf16 %v2669_v28, %v2697_v49  ;;  %v5339_v59 = vunpack.i.h.bf16 %v5337_v57  ;;  %v5338_v4 = vunpack.i.l.bf16 %v5337_v57 }
 0x29c   : > { %v5347_v48 = vpop.permute.xlu0 %5346  ;;  %v4919_v57 = vpack.c.bf16 %v7087_v62, %v2669_v28  ;;  %v5268_v28 = vunpack.i.l.bf16 %v7143_v13 }
 0x29d   : > { %4752 = vmatpush1.msk.msra.mxu1 %vm1740_vm14, %v7014_v27  ;;  %v5214_v27 = vunpack.i.h.bf16 %v7076_v37  ;;  %v5349_v58 = vunpack.i.h.bf16 %v5347_v48 }
 0x29e   : > { %4753 = vmatmul.mubr.msk.f32.vlgmr.msra.gmra.mrb[10].mxu1 %vm1800_vm1, %v7240_v1  ;;  %4902 = vmatprep.subr.bf16.mxu1 %v4901_v9  ;;  %v5348_v9 = vunpack.i.l.bf16 %v5347_v48  ;;  %v8153_v48 = vunpack.i.h.bf16 %v7276_v47 }
 0x29f   : > { %v7295_v33 = vpop.permute.xlu1 %5351  ;;  %4904 = vmatpush1.bf16.msra.mxu1 %v4903_v30  ;;  %3231 = vmatprep.mubr.f32.mxu1 %v8268_v43  ;;  %v2670_v30 = vsel %vm2654_vm0, %v5259_v53, %v5264_v19  ;;  %v2702_v53 = vsel %vm2654_vm0, %v5338_v4, %v5339_v59  ;;  %v5334_v19 = vunpack.i.h.bf16 %v7267_v5  ;;  %v8312_v59 = vunpack.i.l.bf16 %v7129_v23 }
 0x2a0   : > { %v7302_v26 = vpop.permute.xlu0 %5361  ;;  %4906 = vmatprep.subr.bf16.mxu1 %v4905_v52  ;;  %v2686_v52 = vsel %vm2654_vm0, %v8311_v42, %v5214_v27  ;;  %v2707_v49 = vsel %vm2654_vm0, %v5348_v9, %v5349_v58  ;;  %v5219_v58 = vunpack.i.h.bf16 %v7091_v56 }
 0x2a1   : > { %v4917_v24 = vpack.c.bf16 %v2686_v52, %v2670_v30  ;;  %v4921_v62 = vpack.c.bf16 %v2707_v49, %v2702_v53  ;;  %v8313_v30 = vunpack.i.h.bf16 %v7113_v34  ;;  %v2701_v52 = vsel %vm2654_vm0, %v5334_v19, %v5338_v4 }
 0x2a2   : > { %v8314_v49 = vunpack.i.l.bf16 %v7186_v12  ;;  %v5354_v34 = vunpack.i.h.bf16 %v7295_v33  ;;  %v8315_v12 = vunpack.i.l.bf16 %v7068_v63 }
 0x2a3   : > { %v7305_v15 = vpop.permute.xlu1 %5356  ;;  %4908 = vmatpush1.bf16.msra.mxu1 %v4907_v46  ;;  %v2659_v42 = vsel %vm2654_vm0, %v8313_v30, %v8312_v59 }
 0x2a4   : > { %v7308_v11 = vpop.permute.xlu0 %5381  ;;  %4757 = vmatprep.subr.msk.mxu1 %vm1740_vm14, %v7048_v35  ;;  %v2706_v35 = vsel %vm2654_vm0, %v8153_v48, %v5348_v9  ;;  %v5218_v9 = vunpack.i.l.bf16 %v7091_v56 }
 0x2a6   : > { %v3548_v63 = vsel %vm3528_vm2, %v5218_v9, %v5219_v58 }
 0x2a7   : > { %v5367_v40 = vpop.permute.xlu1 %5366  ;;  %4758 = vmatpush1.msk.msra.mxu1 %vm1740_vm14, %v7045_v3  ;;  %v5269_v3 = vunpack.i.h.bf16 %v7143_v13 }
 0x2a8   : > { %v5368_v37 = vunpack.i.l.bf16 %v5367_v40  ;;  %v7325_v27 = vpop.permute.xlu0 %3498  ;;  %4759 = vmatmul.mubr.msk.f32.vlgmr.msra.gmra.mrb[12].mxu1 %vm1800_vm1, %v7240_v1  ;;  %4918 = vmatprep.subr.bf16.mxu1 %v4917_v24  ;;  %v5369_v46 = vunpack.i.h.bf16 %v5367_v40  ;;  %v5309_v40 = vunpack.i.h.bf16 %v7210_v2 }
 0x2a9   : > { %4920 = vmatpush1.bf16.msra.mxu1 %v4919_v57  ;;  %3373 = vmatprep.mubr.f32.mxu1 %v8268_v43  ;;  %v4923_v57 = vpack.c.bf16 %v2706_v35, %v2701_v52  ;;  %v3532_v2 = vsel %vm3528_vm2, %v5268_v28, %v5269_v3  ;;  %v5274_v35 = vunpack.i.h.bf16 %v7158_v44  ;;  %v5244_v52 = vunpack.i.h.bf16 %v7137_v7 }
 0x2aa   : > { %v2687_v24 = vsel %vm2654_vm0, %v5368_v37, %v8314_v49  ;;  %4922 = vmatprep.subr.bf16.mxu1 %v4921_v62  ;;  %v2676_v37 = vsel %vm2654_vm0, %v5369_v46, %v8315_v12  ;;  %v8316_v62 = vunpack.i.h.bf16 %v7062_v18  ;;  %v5284_v49 = vunpack.i.h.bf16 %v7176_v0 }
 0x2ab   : > { %v4867_v53 = vpack.c.bf16 %v2659_v42, %v2687_v24  ;;  %v7346_v48 = vpop.permute.xlu1 %5371  ;;  %v5283_v24 = vunpack.i.l.bf16 %v7176_v0  ;;  %v8317_v18 = vunpack.i.l.bf16 %v7222_v17  ;;  %v4933_v12 = vpack.c.bf16 %v3548_v63, %v3532_v2 }
 0x2ac   : > { %v7349_v23 = vpop.permute.xlu0 %3502  ;;  %v5374_v59 = vunpack.i.h.bf16 %v7346_v48  ;;  %v5373_v4 = vunpack.i.l.bf16 %v7346_v48  ;;  %v2675_v30 = vsel %vm2654_vm0, %v8316_v62, %v5369_v46  ;;  %v8318_v17 = vunpack.i.l.bf16 %v7145_v55 }
 0x2ad   : > { %4868 = vmatpush1.bf16.msra.mxu0 %v4867_v53  ;;  %4924 = vmatpush1.bf16.msra.mxu1 %v4923_v57  ;;  %v2692_v46 = vsel %vm2654_vm0, %v5309_v40, %v8317_v18  ;;  %v4877_v53 = vpack.c.bf16 %v2676_v37, %v7200_v61  ;;  %v4879_v62 = vpack.c.bf16 %v2675_v30, %v2659_v42  ;;  %v8319_v42 = vunpack.i.h.bf16 %v7184_v6 }
 0x2ae   : > { %4742 = vmatprep.subr.msk.mxu0 %vm1740_vm14, %v6984_v50  ;;  %4763 = vmatprep.subr.msk.mxu1 %vm1740_vm14, %v7099_v16  ;;  %v3531_v50 = vsel %vm3528_vm2, %v5354_v34, %v5268_v28  ;;  %v2664_v18 = vsel %vm2654_vm0, %v5244_v52, %v8318_v17  ;;  %v3564_v28 = vsel %vm3528_vm2, %v5373_v4, %v5374_v59  ;;  %v5319_v55 = vunpack.i.h.bf16 %v7231_v32 }
 0x2af   : > { %v7373_v57 = vpop.permute.xlu1 %5376  ;;  %v3547_v61 = vsel %vm3528_vm2, %v5274_v35, %v5218_v9  ;;  %v2691_v37 = vsel %vm2654_vm0, %v8319_v42, %v5309_v40  ;;  %v3536_v6 = vsel %vm3528_vm2, %v5283_v24, %v5284_v49  ;;  %v8320_v9 = vunpack.i.h.bf16 %v7109_v38 }
 0x2b0   : > { %v7381_v16 = vpop.permute.xlu0 %5386  ;;  %v4935_v2 = vpack.c.bf16 %v3547_v61, %v3531_v50  ;;  %v5279_v63 = vunpack.i.h.bf16 %v7149_v54  ;;  %v5323_v17 = vunpack.i.l.bf16 %v7257_v45 }
 0x2b1   : > { %4743 = vmatpush1.msk.msra.mxu0 %vm1740_vm14, %v6997_v29  ;;  %4764 = vmatpush1.msk.msra.mxu1 %vm1740_vm14, %v7096_v36  ;;  %v5364_v29 = vunpack.i.h.bf16 %v7302_v26  ;;  %v4881_v36 = vpack.c.bf16 %v2664_v18, %v2692_v46  ;;  %v2663_v40 = vsel %vm2654_vm0, %v8320_v9, %v5244_v52  ;;  %v5379_v52 = vunpack.i.h.bf16 %v7373_v57 }
 0x2b2   : > { %4744 = vmatmul.mubr.msk.f32.vlgmr.msra.gmra.mrb[8].mxu0 %vm1800_vm1, %v7240_v1  ;;  %4878 = vmatprep.subr.bf16.mxu0 %v4877_v53  ;;  %v4937_v53 = vpack.c.bf16 %v3536_v6, %v3564_v28  ;;  %v3535_v38 = vsel %vm3528_vm2, %v5279_v63, %v5283_v24  ;;  %v8321_v28 = vunpack.i.l.bf16 %v7070_v21  ;;  %v5383_v24 = vunpack.i.l.bf16 %v7308_v11 }
 0x2b3   : > { %v7404_v30 = vpop.permute.xlu1 %3496  ;;  %4880 = vmatpush1.bf16.msra.mxu0 %v4879_v62  ;;  %4765 = vmatmul.mubr.msk.f32.vlgmr.msra.gmra.mrb[14].mxu1 %vm1800_vm1, %v7240_v1  ;;  %v3563_v46 = vsel %vm3528_vm2, %v5364_v29, %v5373_v4  ;;  %v4883_v62 = vpack.c.bf16 %v2663_v40, %v2691_v37  ;;  %v8322_v37 = vunpack.i.l.bf16 %v7137_v7 }
 0x2b4   : > { %4882 = vmatprep.subr.bf16.mxu0 %v4881_v36  ;;  %4934 = vmatprep.subr.bf16.mxu1 %v4933_v12  ;;  %v7418_v50 = vpop.permute.xlu0 %5396  ;;  %v4939_v4 = vpack.c.bf16 %v3535_v38, %v3563_v46  ;;  %v5378_v12 = vunpack.i.l.bf16 %v7373_v57  ;;  %v2680_v42 = vsel %vm2654_vm0, %v5319_v55, %v8321_v28  ;;  %v8323_v46 = vunpack.i.h.bf16 %v7257_v45  ;;  %v7458_v45 = vld [vmem:[%s8049_s3 + $0x4] sm:$0x3] }
 0x2b5   : > { %4936 = vmatpush1.bf16.msra.mxu1 %v4935_v2  ;;  %3018 = vmatprep.mubr.f32.mxu0 %v8268_v43  ;;  %v2679_v36 = vsel %vm2654_vm0, %v8322_v37, %v5319_v55  ;;  %v4893_v7 = vpack.c.bf16 %v2680_v42, %v2664_v18  ;;  %v3552_v55 = vsel %vm3528_vm2, %v5379_v52, %v5383_v24  ;;  %v8324_v18 = vunpack.i.l.bf16 %v7231_v32 }
 0x2b6   : > { %4938 = vmatprep.subr.bf16.mxu1 %v4937_v53  ;;  %3821 = vmatprep.mubr.f32.mxu1 %v8268_v43  ;;  %v2696_v21 = vsel %vm2654_vm0, %v5323_v17, %v8323_v46  ;;  %v4895_v53 = vpack.c.bf16 %v2679_v36, %v2663_v40  ;;  %v4949_v28 = vpack.c.bf16 %v3552_v55, %v3536_v6  ;;  %v5278_v37 = vunpack.i.l.bf16 %v7149_v54 }
 0x2b7   : > { %v3501_v61 = vpop.permute.xlu1 %3500  ;;  %4884 = vmatpush1.bf16.msra.mxu0 %v4883_v62  ;;  %v3551_v62 = vsel %vm3528_vm2, %v5378_v12, %v5379_v52  ;;  %v5333_v36 = vunpack.i.l.bf16 %v7267_v5  ;;  %v5353_v5 = vunpack.i.l.bf16 %v7295_v33 }
 0x2b8   : > { %v3585_v2 = vsel %vm3528_vm2, %v3501_v61, %v7349_v23  ;;  %4748 = vmatprep.subr.msk.mxu0 %vm1740_vm14, %v7007_v8  ;;  %v7439_v9 = vpop.permute.xlu0 %5406  ;;  %v3584_v40 = vsel %vm3528_vm2, %v7325_v27, %v3501_v61  ;;  %v4951_v42 = vpack.c.bf16 %v3551_v62, %v3535_v38  ;;  %v5399_v38 = vunpack.i.h.bf16 %v7418_v50 }
 0x2b9   : > { %4940 = vmatpush1.bf16.msra.mxu1 %v4939_v4  ;;  %v2695_v4 = vsel %vm2654_vm0, %v8324_v18, %v5323_v17  ;;  %v5343_v17 = vunpack.i.l.bf16 %v7276_v47  ;;  %v7500_v18 = vsel %vm3528_vm2, %v5269_v3, %v5278_v37 }
 0x2ba   : > { %4770 = vmatprep.subr.msk.mxu1 %vm1740_vm14, %v3585_v2  ;;  %v4899_v32 = vpack.c.bf16 %v7220_v41, %v2695_v4  ;;  %v5398_v2 = vunpack.i.l.bf16 %v7418_v50  ;;  %v8326_v4 = vunpack.i.h.bf16 %v7246_v25  ;;  %v2700_v25 = vsel %vm2654_vm0, %v5333_v36, %v5334_v19 }
 0x2bb   : > { %v7451_v8 = vpop.permute.xlu1 %3494  ;;  %4749 = vmatpush1.msk.msra.mxu0 %vm1740_vm14, %v7004_v10  ;;  %v4897_v10 = vpack.c.bf16 %v7163_v51, %v2696_v21  ;;  %v5389_v21 = vunpack.i.h.bf16 %v7381_v16 }
 0x2bc   : > { %4750 = vmatmul.mubr.msk.f32.vlgmr.msra.gmra.mrb[10].mxu0 %vm1800_vm1, %v7240_v1  ;;  %4894 = vmatprep.subr.bf16.mxu0 %v4893_v7  ;;  %v7467_v52 = vpop.permute.xlu0 %3504  ;;  %v5388_v7 = vunpack.i.l.bf16 %v7381_v16 }
 0x2bd   : > { %4896 = vmatpush1.bf16.msra.mxu0 %v4895_v53  ;;  %4771 = vmatpush1.msk.msra.mxu1 %vm1740_vm14, %v3584_v40  ;;  %v8325_v53 = vunpack.i.h.bf16 %v7276_v47 }
 0x2be   : > { %4898 = vmatprep.subr.bf16.mxu0 %v4897_v10  ;;  %4772 = vmatmul.mubr.msk.f32.vlgmr.msra.gmra.mrb[16].mxu1 %vm1800_vm1, %v7458_v45  ;;  %v3539_v19 = vsel %vm3528_vm2, %v5388_v7, %v5389_v21 }
 0x2bf   : > { %4950 = vmatprep.subr.bf16.mxu1 %v4949_v28  ;;  %v7475_v61 = vpop.permute.xlu1 %5391  ;;  %3160 = vmatprep.mubr.f32.mxu0 %v8268_v43  ;;  %v2705_v62 = vsel %vm2654_vm0, %v5343_v17, %v8325_v53  ;;  %v8327_v28 = vunpack.i.l.bf16 %v7133_v39  ;;  %v8328_v39 = vpack.c.bf16 %v7166_v31, %v7163_v51  ;;  %v5358_v53 = vunpack.i.l.bf16 %v7305_v15 }
 0x2c0   : > { %4952 = vmatpush1.bf16.msra.mxu1 %v4951_v42  ;;  %v7480_v6 = vpop.permute.xlu0 %3508  ;;  %3963 = vmatprep.mubr.f32.mxu1 %v8268_v43  ;;  %v5393_v46 = vunpack.i.l.bf16 %v7475_v61  ;;  %v3567_v42 = vsel %vm3528_vm2, %v5398_v2, %v5399_v38  ;;  %v4913_v3 = vpack.c.bf16 %v2705_v62, %v2700_v25  ;;  %v3530_v25 = vsel %vm3528_vm2, %v5353_v5, %v5354_v34 }
 0x2c1   : > { %4900 = vmatpush1.bf16.msra.mxu0 %v4899_v32  ;;  %v2704_v47 = vsel %vm2654_vm0, %v8327_v28, %v5343_v17  ;;  %v8329_v17 = vpack.c.bf16 %v7217_v14, %v7220_v41  ;;  %v4955_v62 = vpack.c.bf16 %v3539_v19, %v3567_v42  ;;  %v5363_v41 = vunpack.i.l.bf16 %v7302_v26 }
 0x2c2   : > { %4754 = vmatprep.subr.msk.mxu0 %vm1740_vm14, %v7038_v20  ;;  %v2699_v20 = vsel %vm2654_vm0, %v8326_v4, %v5333_v36  ;;  %v3540_v32 = vsel %vm3528_vm2, %v5389_v21, %v5393_v46  ;;  %v5408_v28 = vunpack.i.l.bf16 %v7439_v9 }
 0x2c3   : > { %v7490_v55 = vpop.permute.xlu1 %5401  ;;  %v4915_v4 = vpack.c.bf16 %v2704_v47, %v2699_v20  ;;  %v3562_v33 = vsel %vm3528_vm2, %v5363_v41, %v5364_v29 }
 0x2c4   : > { %v5403_v40 = vunpack.i.l.bf16 %v7490_v55  ;;  %v7506_v10 = vpop.permute.xlu0 %5416  ;;  %v5404_v16 = vunpack.i.h.bf16 %v7490_v55 }
 0x2c5   : > { %4755 = vmatpush1.msk.msra.mxu0 %vm1740_vm14, %v7035_v22  ;;  %v5419_v13 = vunpack.i.h.bf16 %v7506_v10  ;;  %v5418_v47 = vunpack.i.l.bf16 %v7506_v10 }
 0x2c6   : > { %4756 = vmatmul.mubr.msk.f32.vlgmr.msra.gmra.mrb[12].mxu0 %vm1800_vm1, %v7240_v1  ;;  %4910 = vmatprep.subr.bf16.mxu0 %v8328_v39  ;;  %v3568_v22 = vsel %vm3528_vm2, %v5399_v38, %v5403_v40  ;;  %v5359_v38 = vunpack.i.h.bf16 %v7305_v15  ;;  %v5409_v15 = vunpack.i.h.bf16 %v7439_v9  ;;  %v3529_v39 = vsel %vm3528_vm2, %v5358_v53, %v5353_v5 }
 0x2c7   : > { %v7540_v51 = vsel %vm3528_vm2, %v5219_v58, %v5419_v13  ;;  %v7542_v31 = vpop.permute.xlu1 %5411  ;;  %4912 = vmatpush1.bf16.msra.mxu0 %v8329_v17  ;;  %v4953_v36 = vpack.c.bf16 %v3540_v32, %v3568_v22  ;;  %3302 = vmatprep.mubr.f32.mxu0 %v8268_v43  ;;  %v5273_v58 = vunpack.i.l.bf16 %v7158_v44  ;;  %v3534_v44 = vsel %vm3528_vm2, %v5278_v37, %v5279_v63 }
 0x2c8   : > { %v4943_v21 = vpack.c.bf16 %v7540_v51, %v7500_v18  ;;  %4914 = vmatprep.subr.bf16.mxu0 %v4913_v3  ;;  %v7551_v56 = vpop.permute.xlu0 %5421  ;;  %v5413_v14 = vunpack.i.l.bf16 %v7542_v31  ;;  %v3561_v26 = vsel %vm3528_vm2, %v5418_v47, %v5363_v41  ;;  %v4929_v53 = vpack.c.bf16 %v3534_v44, %v3562_v33 }
 0x2c9   : > { %4954 = vmatprep.subr.bf16.mxu1 %v4953_v36  ;;  %v3545_v20 = vsel %vm3528_vm2, %v5359_v38, %v5273_v58  ;;  %v3546_v22 = vsel %vm3528_vm2, %v5273_v58, %v5274_v35  ;;  %v8330_v38 = vld [vmem:[#allocation48_spill] sm:$0xff]  ;;  %v5394_v37 = vunpack.i.h.bf16 %v7475_v61  ;;  %v7633_v57 = vunpack.i.h.bf16 %v7551_v56 }
 0x2ca   : > { %4956 = vmatpush1.bf16.msra.mxu1 %v4955_v62  ;;  %v4925_v34 = vpack.c.bf16 %v3546_v22, %v3530_v25  ;;  %v3556_v5 = vsel %vm3528_vm2, %v5409_v15, %v5413_v14  ;;  %v4927_v17 = vpack.c.bf16 %v3545_v20, %v3529_v39  ;;  %v5384_v39 = vunpack.i.h.bf16 %v7308_v11 }
 0x2cb   : > { %v7559_v42 = vpop.permute.xlu1 %3506  ;;  %4916 = vmatpush1.bf16.msra.mxu0 %v4915_v4  ;;  %v4965_v54 = vpack.c.bf16 %v3556_v5, %v3540_v32  ;;  %v3583_v32 = vsel %vm3528_vm2, %v7404_v30, %v7325_v27  ;;  %v3550_v4 = vsel %vm3528_vm2, %v5419_v13, %v5378_v12  ;;  %v5423_v10 = vunpack.i.l.bf16 %v7551_v56 }
 0x2cc   : > { %4760 = vmatprep.subr.msk.mxu0 %vm1740_vm14, %v7058_v60  ;;  %v7569_v3 = vpop.permute.xlu0 %5431  ;;  %v3555_v60 = vsel %vm3528_vm2, %v5408_v28, %v5409_v15  ;;  %v3588_v62 = vsel %vm3528_vm2, %v7559_v42, %v7480_v6  ;;  %v3566_v13 = vsel %vm3528_vm2, %v5394_v37, %v5398_v2  ;;  %v3582_v20 = vsel %vm3528_vm2, %v7451_v8, %v7404_v30 }
 0x2cd   : > { %v4967_v63 = vpack.c.bf16 %v3555_v60, %v3539_v19  ;;  %v5434_v15 = vunpack.i.h.bf16 %v7569_v3  ;;  %v5433_v25 = vunpack.i.l.bf16 %v7569_v3  ;;  %v4941_v33 = vpack.c.bf16 %v3550_v4, %v3534_v44 }
 0x2ce   : > { %v3565_v56 = vsel %vm3528_vm2, %v5374_v59, %v5394_v37  ;;  %v3538_v50 = vsel %vm3528_vm2, %v5384_v39, %v5388_v7  ;;  %v3543_v8 = vsel %vm3528_vm2, %v5423_v10, %v7633_v57  ;;  %v3537_v60 = vsel %vm3528_vm2, %v5284_v49, %v5384_v39 }
 0x2cf   : > { %v7583_v36 = vpop.permute.xlu1 %3510  ;;  %4761 = vmatpush1.msk.msra.mxu0 %vm1740_vm14, %v8330_v38  ;;  %v4945_v30 = vpack.c.bf16 %v3538_v50, %v3566_v13  ;;  %v3572_v48 = vsel %vm3528_vm2, %v5433_v25, %v5434_v15  ;;  %v3554_v0 = vsel %vm3528_vm2, %v5404_v16, %v5408_v28  ;;  %v3553_v49 = vsel %vm3528_vm2, %v5383_v24, %v5404_v16 }
 0x2d0   : > { %v3589_v35 = vsel %vm3528_vm2, %v7480_v6, %v7583_v36  ;;  %4762 = vmatmul.mubr.msk.f32.vlgmr.msra.gmra.mrb[14].mxu0 %vm1800_vm1, %v7240_v1  ;;  %4926 = vmatprep.subr.bf16.mxu0 %v4925_v34  ;;  %v7598_v29 = vpop.permute.xlu0 %5441  ;;  %v4931_v1 = vpack.c.bf16 %v7500_v18, %v3561_v26  ;;  %v4947_v26 = vpack.c.bf16 %v3537_v60, %v3565_v56 }
 0x2d1   : > { %4928 = vmatpush1.bf16.msra.mxu0 %v4927_v17  ;;  %4776 = vmatprep.subr.msk.mxu1 %vm1740_vm14, %v3589_v35  ;;  %v3587_v18 = vsel %vm3528_vm2, %v7467_v52, %v7559_v42  ;;  %v5444_v42 = vunpack.i.h.bf16 %v7598_v29  ;;  %v3586_v11 = vsel %vm3528_vm2, %v7349_v23, %v7467_v52  ;;  %v4957_v24 = vpack.c.bf16 %v3554_v0, %v3538_v50 }
 0x2d2   : > { %4930 = vmatprep.subr.bf16.mxu0 %v4929_v53  ;;  %4777 = vmatpush1.msk.msra.mxu1 %vm1740_vm14, %v3588_v62  ;;  %v5443_v52 = vunpack.i.l.bf16 %v7598_v29 }
 0x2d3   : > { %v7607_v58 = vpop.permute.xlu1 %5426  ;;  %4778 = vmatmul.mubr.msk.f32.vlgmr.msra.gmra.mrb[18].mxu1 %vm1800_vm1, %v7458_v45  ;;  %4966 = vmatprep.subr.bf16.mxu1 %v4965_v54 }
 0x2d4   : > { %4968 = vmatpush1.bf16.msra.mxu1 %v4967_v63  ;;  %v7611_v6 = vpop.permute.xlu0 %3512  ;;  %3750 = vmatprep.mubr.f32.mxu0 %v8268_v43  ;;  %v5429_v19 = vunpack.i.h.bf16 %v7607_v58  ;;  %v5428_v35 = vunpack.i.l.bf16 %v7607_v58  ;;  %v5414_v63 = vunpack.i.h.bf16 %v7542_v31  ;;  %v3558_v61 = vsel %vm3528_vm2, %v5443_v52, %v5444_v42 }
 0x2d5   : > { %4932 = vmatpush1.bf16.msra.mxu0 %v4931_v1  ;;  %4105 = vmatprep.mubr.f32.mxu1 %v8268_v43  ;;  %v7624_v41 = vpop.f32.mrb[0].mxu0 }
 0x2d6   : > { %4767 = vmatprep.subr.msk.mxu0 %vm1740_vm14, %v3583_v32  ;;  %v7629_v27 = vpop.f32.mrb[1].mxu0  ;;  %v3571_v5 = vsel %vm3528_vm2, %v5429_v19, %v5433_v25  ;;  %v3570_v37 = vsel %vm3528_vm2, %v5428_v35, %v5429_v19  ;;  %v4959_v32 = vpack.c.bf16 %v3553_v49, %v3537_v60  ;;  %v3569_v4 = vsel %vm3528_vm2, %v5403_v40, %v5428_v35 }
 0x2d7   : > { %v7636_v12 = vpop.permute.xlu1 %5436  ;;  %v4971_v38 = vpack.c.bf16 %v3543_v8, %v3571_v5  ;;  %v3542_v39 = vsel %vm3528_vm2, %v5414_v63, %v5423_v10  ;;  %v3541_v29 = vsel %vm3528_vm2, %v5393_v46, %v5414_v63  ;;  %v3590_v60 = vsel %vm3528_vm2, %v7583_v36, %v7611_v6 }
 0x2d8   : > { %v5438_v47 = vunpack.i.l.bf16 %v7636_v12  ;;  %v3517_v22 = vpop.permute.xlu0 %3516  ;;  %v7645_v34 = vpop.f32.mrb[0].mxu1  ;;  %v4961_v55 = vpack.c.bf16 %v3542_v39, %v3570_v37  ;;  %v4963_v50 = vpack.c.bf16 %v3541_v29, %v3569_v4 }
 0x2d9   : > { %4768 = vmatpush1.msk.msra.mxu0 %vm1740_vm14, %v3582_v20  ;;  %v7655_v2 = vpop.f32.mrb[1].mxu1 }
 0x2da   : > { %4769 = vmatmul.mubr.msk.f32.vlgmr.msra.gmra.mrb[16].mxu0 %vm1800_vm1, %v7458_v45  ;;  %4942 = vmatprep.subr.bf16.mxu0 %v4941_v33  ;;  %v3577_v59 = vsel %vm3528_vm2, %v7633_v57, %v5438_v47 }
 0x2db   : > { %v5447_v7 = vpop.permute.xlu1 %5446  ;;  %4944 = vmatpush1.bf16.msra.mxu0 %v4943_v21  ;;  %v4969_v17 = vpack.c.bf16 %v3577_v59, %v3572_v48  ;;  %3892 = vmatprep.mubr.f32.mxu0 %v8268_v43  ;;  %v5439_v21 = vunpack.i.h.bf16 %v7636_v12  ;;  %v3557_v59 = vsel %vm3528_vm2, %v5413_v14, %v5443_v52 }
 0x2dc   : > { %4946 = vmatprep.subr.bf16.mxu0 %v4945_v30  ;;  %v7676_v44 = vpop.permute.xlu0 %5451  ;;  %v5449_v53 = vunpack.i.h.bf16 %v5447_v7  ;;  %v5448_v62 = vunpack.i.l.bf16 %v5447_v7  ;;  %v4975_v35 = vpack.c.bf16 %v3557_v59, %v3541_v29  ;;  %v8334_v59 = vld [vmem:[#allocation7_spill] sm:$0xff] }
 0x2dd   : > { %4970 = vmatprep.subr.bf16.mxu1 %v4969_v17  ;;  %v3544_v40 = vsel %vm3528_vm2, %v7633_v57, %v5439_v21  ;;  %v5454_v57 = vunpack.i.h.bf16 %v7676_v44  ;;  %v4973_v17 = vpack.c.bf16 %v3558_v61, %v3542_v39  ;;  %v8331_v39 = vld [vmem:[#allocation3_spill] sm:$0xff] }
 0x2de   : > { %4972 = vmatpush1.bf16.msra.mxu1 %v4971_v38  ;;  %v3560_v28 = vsel %vm3528_vm2, %v5448_v62, %v5449_v53  ;;  %v3559_v25 = vsel %vm3528_vm2, %v5444_v42, %v5448_v62  ;;  %v7782_v52 = vadd.s32 384, %v8331_v39 }
 0x2df   : > { %v3515_v51 = vpop.permute.xlu1 %3514  ;;  %4948 = vmatpush1.bf16.msra.mxu0 %v4947_v26  ;;  %v4981_v10 = vpack.c.bf16 %v3560_v28, %v3544_v40  ;;  %v4983_v33 = vpack.c.bf16 %v3559_v25, %v3543_v8 }
 0x2e0   : > { %4773 = vmatprep.subr.msk.mxu0 %vm1740_vm14, %v3587_v18  ;;  %v7690_v54 = vpop.f32.mrb[2].mxu0  ;;  %v5462_v9 = vpop.permute.xlu0 %5461  ;;  %v3592_v20 = vsel %vm3528_vm2, %v3515_v51, %v3517_v22  ;;  %v3591_v46 = vsel %vm3528_vm2, %v7611_v6, %v3515_v51 }
 0x2e1   : > { %v7695_v1 = vpop.f32.mrb[3].mxu0  ;;  %v5464_v56 = vunpack.i.h.bf16 %v5462_v9  ;;  %v5463_v5 = vunpack.i.l.bf16 %v5462_v9 }
 0x2e2   : > { %v7701_v58 = vpop.f32.mrb[2].mxu1 }
 0x2e3   : > { %v7707_v19 = vpop.permute.xlu1 %3518  ;;  %4774 = vmatpush1.msk.msra.mxu0 %vm1740_vm14, %v3586_v11  ;;  %v7711_v23 = vpop.f32.mrb[3].mxu1  ;;  %v3579_v8 = vsel %vm3528_vm2, %v5463_v5, %v5464_v56  ;;  %v3578_v31 = vsel %vm3528_vm2, %v5438_v47, %v5463_v5  ;;  %v8333_v5 = vld [vmem:[#allocation5_spill] sm:$0xff] }
 0x2e4   : > { %v3593_v13 = vsel %vm3528_vm2, %v3517_v22, %v7707_v19  ;;  %4775 = vmatmul.mubr.msk.f32.vlgmr.msra.gmra.mrb[18].mxu0 %vm1800_vm1, %v7458_v45  ;;  %4958 = vmatprep.subr.bf16.mxu0 %v4957_v24  ;;  %v5453_v22 = vunpack.i.l.bf16 %v7676_v44  ;;  %v3521_v14 = vpop.permute.xlu0 %3520 }
 0x2e5   : > { %4960 = vmatpush1.bf16.msra.mxu0 %v4959_v32  ;;  %4782 = vmatprep.subr.msk.mxu1 %vm1740_vm14, %v3593_v13  ;;  %v3594_v3 = vsel %vm3528_vm2, %v7707_v19, %v3521_v14  ;;  %v8332_v19 = vld [vmem:[#allocation10_spill] sm:$0xff] }
 0x2e6   : > { %4962 = vmatprep.subr.bf16.mxu0 %v4961_v55  ;;  %4783 = vmatpush1.msk.msra.mxu1 %vm1740_vm14, %v3592_v20  ;;  %v3574_v26 = vsel %vm3528_vm2, %v5453_v22, %v5454_v57  ;;  %v3573_v42 = vsel %vm3528_vm2, %v5434_v15, %v5453_v22  ;;  %v494_v13 = vand.u32 15, %v8332_v19  ;;  %v501_v55 = vand.u32 15, %v7782_v52 }
 0x2e7   : > { %v5457_v30 = vpop.permute.xlu1 %5456  ;;  %4784 = vmatmul.mubr.msk.f32.vlgmr.msra.gmra.mrb[20].mxu1 %vm1800_vm1, %v7458_v45  ;;  %4982 = vmatprep.subr.bf16.mxu1 %v4981_v10  ;;  %v4977_v62 = vpack.c.bf16 %v3579_v8, %v3574_v26  ;;  %v4979_v37 = vpack.c.bf16 %v3578_v31, %v3573_v42  ;;  %v7790_v20 = vadd.s32 896, %v8331_v39  ;;  %v473_v52 = vadd.s32 1664, %v8331_v39 }
 0x2e8   : > { %4984 = vmatpush1.bf16.msra.mxu1 %v4983_v33  ;;  %4034 = vmatprep.mubr.f32.mxu0 %v8268_v43  ;;  %v5458_v48 = vunpack.i.l.bf16 %v5457_v30  ;;  %v5459_v16 = vunpack.i.h.bf16 %v5457_v30  ;;  %v3525_v11 = vpop.permute.xlu0 %3524  ;;  %vm670_vm4 = vcmp.ge.s32.totalorder %v494_v13, 1  ;;  %vm671_vm5 = vcmp.ge.s32.totalorder %v501_v55, 1 }
 0x2e9   : > { %4964 = vmatpush1.bf16.msra.mxu0 %v4963_v50  ;;  %4247 = vmatprep.mubr.f32.mxu1 %v8268_v43  ;;  %v2438_v40 = vsel %vm670_vm4, %v7645_v34, 0.0  ;;  %v2439_v10 = vsel %vm671_vm5, %v7655_v2, 0.0  ;;  %v522_v50 = vand.u32 15, %v8333_v5  ;;  %v529_v30 = vand.u32 15, %v7790_v20 }
 0x2ea   : > { %4779 = vmatprep.subr.msk.mxu0 %vm1740_vm14, %v3591_v46  ;;  %v3575_v53 = vsel %vm3528_vm2, %v5454_v57, %v5458_v48  ;;  %v3576_v36 = vsel %vm3528_vm2, %v5458_v48, %v5459_v16  ;;  %v7805_v57 = vadd.s32 1408, %v8331_v39  ;;  %v550_v16 = vand.u32 15, %v8334_v59 }
 0x2eb   : > { %v5467_v7 = vpop.permute.xlu1 %5466  ;;  %vm674_vm6 = vcmp.ge.s32.totalorder %v522_v50, 1  ;;  %vm675_vm7 = vcmp.ge.s32.totalorder %v529_v30, 1  ;;  %vm686_vm15 = vcmp.le.s32.totalorder %v494_v13, 14 }
 0x2ec   : > { %v5469_v38 = vunpack.i.h.bf16 %v5467_v7  ;;  %v5468_v44 = vunpack.i.l.bf16 %v5467_v7  ;;  %v2442_v34 = vsel %vm674_vm6, %v7701_v58, 0.0  ;;  %v2443_v22 = vsel %vm675_vm7, %v7711_v23, 0.0 }
 0x2ed   : > { %4780 = vmatpush1.msk.msra.mxu0 %vm1740_vm14, %v3590_v60  ;;  %v557_v8 = vand.u32 15, %v7805_v57  ;;  %vm678_vm8 = vcmp.ge.s32.totalorder %v550_v16, 1  ;;  %v7819_v58 = vadd.s32 128, %v8331_v39  ;;  %v7823_v60 = vadd.s32 1920, %v8331_v39 }
 0x2ee   : > { %v7749_v18 = vpop.f32.mrb[4].mxu0  ;;  %v3580_v51 = vsel %vm3528_vm2, %v5464_v56, %v5468_v44  ;;  %4781 = vmatmul.mubr.msk.f32.vlgmr.msra.gmra.mrb[20].mxu0 %vm1800_vm1, %v7458_v45  ;;  %4974 = vmatprep.subr.bf16.mxu0 %v4973_v17  ;;  %v3581_v6 = vsel %vm3528_vm2, %v5468_v44, %v5469_v38  ;;  %v7756_v12 = vpop.f32.mrb[4].mxu1  ;;  %vm690_vm6 = vcmp.le.s32.totalorder %v522_v50, 14  ;;  %vm691_vm7 = vcmp.le.s32.totalorder %v529_v30, 14 }
 0x2ef   : > { %v7758_v47 = vpop.f32.mrb[5].mxu0  ;;  %v4987_v0 = vpack.c.bf16 %v3580_v51, %v3575_v53  ;;  %v3523_v49 = vpop.permute.xlu1 %3522  ;;  %4976 = vmatpush1.bf16.msra.mxu0 %v4975_v35  ;;  %v4985_v21 = vpack.c.bf16 %v3581_v6, %v3576_v36  ;;  %4176 = vmatprep.mubr.f32.mxu0 %v8268_v43  ;;  %vm679_vm9 = vcmp.ge.s32.totalorder %v557_v8, 1  ;;  %v2446_v23 = vsel %vm678_vm8, %v7756_v12, 0.0 }
 0x2f0   : > { %v2259_v63 = vpop.f32.mrb[5].mxu1  ;;  %4978 = vmatprep.subr.bf16.mxu0 %v4977_v62  ;;  %v3595_v9 = vsel %vm3528_vm2, %v3521_v14, %v3523_v49  ;;  %v3596_v43 = vsel %vm3528_vm2, %v3523_v49, %v3525_v11  ;;  %v480_v35 = vand.u32 15, %v8331_v39  ;;  %v487_v31 = vand.u32 15, %v7819_v58  ;;  %v8335_v14 = vld [vmem:[#allocation9_spill] sm:$0xff] }
 0x2f1   : > { %4986 = vmatprep.subr.bf16.mxu1 %v4985_v21  ;;  %v2447_v17 = vsel %vm679_vm9, %v2259_v63, 0.0  ;;  %v578_v53 = vand.u32 15, %v8335_v14  ;;  %v585_v62 = vand.u32 15, %v7823_v60  ;;  %v7843_v36 = vadd.s32 640, %v8331_v39 }
 0x2f2   : > { %4988 = vmatpush1.bf16.msra.mxu1 %v4987_v0  ;;  %vm668_vm10 = vcmp.ge.s32.totalorder %v480_v35, 1  ;;  %vm669_vm11 = vcmp.ge.s32.totalorder %v487_v31, 1  ;;  %vm684_vm8 = vcmp.le.s32.totalorder %v480_v35, 14  ;;  %vm685_vm9 = vcmp.le.s32.totalorder %v487_v31, 14 }
 0x2f3   : > { %v3527_v24 = vpop.permute.xlu1 %3526  ;;  %4980 = vmatpush1.bf16.msra.mxu0 %v4979_v37  ;;  %vm682_vm12 = vcmp.ge.s32.totalorder %v578_v53, 1  ;;  %vm683_vm13 = vcmp.ge.s32.totalorder %v585_v62, 1  ;;  %v2436_v51 = vsel %vm668_vm10, %v7624_v41, 0.0  ;;  %v2437_v12 = vsel %vm669_vm11, %v7629_v27, 0.0 }
 0x2f4   : > { %v3597_v28 = vsel %vm3528_vm2, %v3525_v11, %v3527_v24  ;;  %4785 = vmatprep.subr.msk.mxu0 %vm1740_vm14, %v3595_v9  ;;  %v8336_v24 = vld [vmem:[#allocation4_spill] sm:$0xff]  ;;  %v515_v41 = vand.u32 15, %v7843_v36  ;;  %v7854_v27 = vadd.s32 1152, %v8331_v39  ;;  %v5518_v60 = vmov (!%p4791_p13), 0.0  }
 0x2f5   : > { %4788 = vmatprep.subr.msk.mxu1 %vm1740_vm14, %v3597_v28  ;;  %v508_v28 = vand.u32 15, %v8336_v24  ;;  %v8338_v36 = vld [vmem:[#allocation8_spill] sm:$0xff] }
 0x2f6   : > { %4789 = vmatpush1.msk.msra.mxu1 %vm1740_vm14, %v3596_v43  ;;  %vm689_vm11 = vcmp.le.s32.totalorder %v515_v41, 14 }
 0x2f7   : > { %4786 = vmatpush1.msk.msra.mxu0 %vm1740_vm14, %v3594_v3  ;;  %4790 = vmatmul.mubr.msk.f32.vlgmr.msra.gmra.mrb[22].mxu1 %vm1800_vm1, %v7458_v45  ;;  %vm672_vm3 = vcmp.ge.s32.totalorder %v508_v28, 1  ;;  %vm673_vm14 = vcmp.ge.s32.totalorder %v515_v41, 1  ;;  %vm688_vm10 = vcmp.le.s32.totalorder %v508_v28, 14 }
 0x2f8   : > { %v7775_v15 = vpop.f32.mrb[6].mxu0  ;;  %4787 = vmatmul.mubr.msk.f32.vlgmr.msra.gmra.mrb[22].mxu0 %vm1800_vm1, %v7458_v45  ;;  %v2440_v3 = vsel %vm672_vm3, %v7690_v54, 0.0  ;;  %vm687_vm1 = vcmp.le.s32.totalorder %v501_v55, 14  ;;  %v543_v54 = vand.u32 15, %v7854_v27 }
 0x2f9   : > { %v2399_v32 = vpop.f32.mrb[6].mxu1  ;;  %v7779_v4 = vpop.f32.mrb[7].mxu0 }
 0x2fa   : > { %v2401_v25 = vpop.f32.mrb[7].mxu1  ;;  %v2450_v0 = vsel %vm682_vm12, %v2399_v32, 0.0  ;;  %vm677_vm2 = vcmp.ge.s32.totalorder %v543_v54, 1  ;;  %vm694_vm12 = vcmp.le.s32.totalorder %v550_v16, 14 }
 0x2fb   : > { %v2451_v42 = vsel %vm683_vm13, %v2401_v25, 0.0  ;;  %v2441_v25 = vsel %vm673_vm14, %v7695_v1, 0.0  ;;  %vm695_vm13 = vcmp.le.s32.totalorder %v557_v8, 14  ;;  %vm693_vm14 = vcmp.le.s32.totalorder %v543_v54, 14 }
 0x367   : > { %v2949_v45 = vpop.f32.mrb[8].mxu1 }
 0x368   : > { %v7793_v29 = vadd.f32 %v2949_v45, %v2438_v40  ;;  %v2951_v33 = vpop.f32.mrb[9].mxu1 }
 0x369   : > { %v7795_v56 = vadd.f32 %v2951_v33, %v2439_v10  ;;  %v8337_v33 = vld [vmem:[#allocation6_spill] sm:$0xff] }
 0x371   : > { %v3091_v2 = vpop.f32.mrb[10].mxu1 }
 0x372   : > { %v7808_v61 = vadd.f32 %v3091_v2, %v2442_v34  ;;  %v3093_v46 = vpop.f32.mrb[11].mxu1  ;;  %v536_v34 = vand.u32 15, %v8337_v33 }
 0x373   : > { %v7810_v48 = vadd.f32 %v3093_v46, %v2443_v22 }
 0x374   : > { %vm676_vm0 = vcmp.ge.s32.totalorder %v536_v34, 1  ;;  %vm692_vm3 = vcmp.le.s32.totalorder %v536_v34, 14 }
 0x375   : > { %v2444_v1 = vsel %vm676_vm0, %v7749_v18, 0.0  ;;  %vm699_vm0 = vcmp.le.s32.totalorder %v585_v62, 14 }
 0x37b   : > { %v3233_v7 = vpop.f32.mrb[12].mxu1 }
 0x37c   : > { %v7825_v38 = vadd.f32 %v3233_v7, %v2446_v23  ;;  %v3235_v44 = vpop.f32.mrb[13].mxu1  ;;  %v2445_v7 = vsel %vm677_vm2, %v7758_v47, 0.0 }
 0x37d   : > { %v7827_v26 = vadd.f32 %v3235_v44, %v2447_v17 }
 0x385   : > { %v2878_v6 = vpop.f32.mrb[8].mxu0 }
 0x386   : > { %v2879_v49 = vadd.f32 %v2878_v6, %v2436_v51  ;;  %v2880_v21 = vpop.f32.mrb[9].mxu0  ;;  %v3375_v63 = vpop.f32.mrb[14].mxu1  ;;  %v564_v6 = vand.u32 15, %v8338_v36 }
 0x387   : > { %v2881_v37 = vadd.f32 %v2880_v21, %v2437_v12  ;;  %v7846_v11 = vadd.f32 %v3375_v63, %v2450_v0  ;;  %v3377_v9 = vpop.f32.mrb[15].mxu1 }
 0x388   : > { %v7849_v43 = vadd.f32 %v3377_v9, %v2451_v42  ;;  %vm680_vm4 = vcmp.ge.s32.totalorder %v564_v6, 1 }
 0x38f   : > { %v3020_v32 = vpop.f32.mrb[10].mxu0 }
 0x390   : > { %v3021_v19 = vadd.f32 %v3020_v32, %v2440_v3  ;;  %v3022_v40 = vpop.f32.mrb[11].mxu0 }
 0x391   : > { %v3023_v45 = vadd.f32 %v3022_v40, %v2441_v25  ;;  %v3823_v10 = vpop.f32.mrb[16].mxu1 }
 0x392   : > { %v4288_v2 = vsel %vm686_vm15, %v3823_v10, 0.0  ;;  %v3825_v22 = vpop.f32.mrb[17].mxu1  ;;  %vm698_vm15 = vcmp.le.s32.totalorder %v578_v53, 14 }
 0x393   : > { %v7862_v46 = vadd.f32 %v4288_v2, %v7793_v29  ;;  %v4289_v23 = vsel %vm687_vm1, %v3825_v22, 0.0  ;;  %v571_v29 = vand.u32 15, %v473_v52  ;;  %vm696_vm1 = vcmp.le.s32.totalorder %v564_v6, 14 }
 0x394   : > { %v7865_v13 = vadd.f32 %v4289_v23, %v7795_v56  ;;  %v2448_v56 = vsel %vm680_vm4, %v7775_v15, 0.0  ;;  %vm4322_vm4 = vcmask (!%p4791_p13), 1024  }
 0x395   : > { %vm681_vm5 = vcmp.ge.s32.totalorder %v571_v29, 1  ;;  %vm697_vm2 = vcmp.le.s32.totalorder %v571_v29, 14  ;;  %4323 = vst.msk [vmem:[%s5610_s22] sm:$0x3] (!%p4791_p13), %vm4322_vm4, %v5518_v60  ;;  %4324 = vst.msk [vmem:[%s5610_s22 + $0x2] sm:$0x3] (!%p4791_p13), %vm4322_vm4, %v5518_v60 }
 0x396   : > { %v2449_v0 = vsel %vm681_vm5, %v7779_v4, 0.0 }
 0x399   : > { %v3162_v55 = vpop.f32.mrb[12].mxu0 }
 0x39a   : > { %v3163_v17 = vadd.f32 %v3162_v55, %v2444_v1  ;;  %v3164_v44 = vpop.f32.mrb[13].mxu0 }
 0x39b   : > { %v3165_v51 = vadd.f32 %v3164_v44, %v2445_v7 }
 0x3a3   : > { %v3304_v12 = vpop.f32.mrb[14].mxu0 }
 0x3a4   : > { %v3305_v21 = vadd.f32 %v3304_v12, %v2448_v56  ;;  %v3306_v18 = vpop.f32.mrb[15].mxu0 }
 0x3a5   : > { %v3307_v63 = vadd.f32 %v3306_v18, %v2449_v0 }
 0x3a6   : > { %v3965_v47 = vpop.f32.mrb[18].mxu1 }
 0x3a7   : > { %v4292_v42 = vsel %vm690_vm6, %v3965_v47, 0.0  ;;  %v3967_v9 = vpop.f32.mrb[19].mxu1 }
 0x3a8   : > { %v7878_v24 = vadd.f32 %v4292_v42, %v7808_v61  ;;  %v4293_v3 = vsel %vm691_vm7, %v3967_v9, 0.0 }
 0x3a9   : > { %v7881_v15 = vadd.f32 %v4293_v3, %v7810_v48 }
 0x3ad   : > { %v3752_v4 = vpop.f32.mrb[16].mxu0 }
 0x3ae   : > { %v4286_v5 = vsel %vm684_vm8, %v3752_v4, 0.0  ;;  %v3754_v20 = vpop.f32.mrb[17].mxu0 }
 0x3af   : > { %v7887_v50 = vadd.f32 %v4286_v5, %v2879_v49  ;;  %v4287_v30 = vsel %vm685_vm9, %v3754_v20, 0.0 }
 0x3b0   : > { %v7889_v27 = vadd.f32 %v4287_v30, %v2881_v37 }
 0x3b7   : > { %v3894_v61 = vpop.f32.mrb[18].mxu0 }
 0x3b8   : > { %v4290_v32 = vsel %vm688_vm10, %v3894_v61, 0.0  ;;  %v3896_v48 = vpop.f32.mrb[19].mxu0 }
 0x3b9   : > { %v7893_v39 = vadd.f32 %v4290_v32, %v3021_v19  ;;  %v4291_v58 = vsel %vm689_vm11, %v3896_v48, 0.0 }
 0x3ba   : > { %v7897_v35 = vadd.f32 %v4291_v58, %v3023_v45  ;;  %v4107_v31 = vpop.f32.mrb[20].mxu1 }
 0x3bb   : > { %v4296_v49 = vsel %vm694_vm12, %v4107_v31, 0.0  ;;  %v4109_v37 = vpop.f32.mrb[21].mxu1 }
 0x3bc   : > { %v7900_v28 = vadd.f32 %v4296_v49, %v7825_v38  ;;  %v4297_v41 = vsel %vm695_vm13, %v4109_v37, 0.0 }
 0x3bd   : > { %v7903_v25 = vadd.f32 %v4297_v41, %v7827_v26 }
 0x3c1   : > { %v4036_v59 = vpop.f32.mrb[20].mxu0 }
 0x3c2   : > { %v4294_v16 = vsel %vm692_vm3, %v4036_v59, 0.0  ;;  %v4038_v19 = vpop.f32.mrb[21].mxu0 }
 0x3c3   : > { %v7905_v40 = vadd.f32 %v4294_v16, %v3163_v17  ;;  %v4295_v57 = vsel %vm693_vm14, %v4038_v19, 0.0 }
 0x3c4   : > { %v7907_v8 = vadd.f32 %v4295_v57, %v3165_v51 }
 0x3c8   : > { %4321 = sbr.rel (%p4791_p13) target bundleno = 975 (0x3cf), region = 48 }
 0x3ca   : > { %v4249_v38 = vpop.f32.mrb[22].mxu1 }
 0x3cb   : > { %v4300_v26 = vsel %vm698_vm15, %v4249_v38, 0.0  ;;  %v4178_v45 = vpop.f32.mrb[22].mxu0  ;;  %v4251_v10 = vpop.f32.mrb[23].mxu1 }
 0x3cc   : > { %v7914_v33 = vadd.f32 %v4300_v26, %v7846_v11  ;;  %v4298_v34 = vsel %vm696_vm1, %v4178_v45, 0.0  ;;  %v4301_v2 = vsel %vm699_vm0, %v4251_v10, 0.0  ;;  %v4180_v22 = vpop.f32.mrb[23].mxu0 }
 0x3cd   : > { %v7916_v54 = vadd.f32 %v4298_v34, %v3305_v21  ;;  %v7919_v14 = vadd.f32 %v4301_v2, %v7849_v43  ;;  %v4299_v53 = vsel %vm697_vm2, %v4180_v22, 0.0 }
 0x3ce   : > { %v7921_v23 = vadd.f32 %v4299_v53, %v3307_v63 }
 0x3cf PF: > { %vm4326_vm5 = vcmask 1041408   ;;  %v4365_v17 = vmul.f32 %v7887_v50, %v7887_v50  ;;  %v4366_v44 = vmul.f32 %v7889_v27, %v7889_v27  ;;  %v4367_v51 = vmul.f32 %v7862_v46, %v7862_v46 }
 0x3d0   : > { %v4327_v62 = vsel %vm4326_vm5, %v7887_v50, 0.0  ;;  %v4328_v11 = vsel %vm4326_vm5, %v7889_v27, 0.0  ;;  %v4330_v43 = vsel %vm4326_vm5, %v7862_v46, 0.0  ;;  %v4332_v52 = vsel %vm4326_vm5, %v7865_v13, 0.0 }
 0x3d1   : > { %v4329_v1 = vadd.f32 %v4328_v11, %v4327_v62  ;;  %v4334_v7 = vsel %vm4326_vm5, %v7893_v39, 0.0  ;;  %v4336_v6 = vsel %vm4326_vm5, %v7897_v35, 0.0  ;;  %v4368_v29 = vmul.f32 %v7865_v13, %v7865_v13 }
 0x3d2   : > { %v4338_v12 = vsel %vm4326_vm5, %v7878_v24, 0.0  ;;  %v4369_v0 = vmul.f32 %v7893_v39, %v7893_v39  ;;  %v4381_v21 = vsel %vm4326_vm5, %v4365_v17, 0.0  ;;  %v4382_v18 = vsel %vm4326_vm5, %v4366_v44, 0.0 }
 0x3d3   : > { %v4331_v55 = vadd.f32 %v4330_v43, %v4329_v1  ;;  %v4384_v63 = vsel %vm4326_vm5, %v4367_v51, 0.0  ;;  %v4383_v42 = vadd.f32 %v4382_v18, %v4381_v21  ;;  %v4340_v9 = vsel %vm4326_vm5, %v7881_v15, 0.0 }
 0x3d4   : > { %v4370_v3 = vmul.f32 %v7897_v35, %v7897_v35  ;;  %v4386_v4 = vsel %vm4326_vm5, %v4368_v29, 0.0  ;;  %v4342_v30 = vsel %vm4326_vm5, %v7905_v40, 0.0  ;;  %v4371_v61 = vmul.f32 %v7878_v24, %v7878_v24 }
 0x3d5   : > { %v4333_v36 = vadd.f32 %v4332_v52, %v4331_v55  ;;  %v4385_v20 = vadd.f32 %v4384_v63, %v4383_v42  ;;  %v4388_v32 = vsel %vm4326_vm5, %v4369_v0, 0.0  ;;  %v4344_v31 = vsel %vm4326_vm5, %v7907_v8, 0.0 }
 0x3d6   : > { %v4372_v49 = vmul.f32 %v7881_v15, %v7881_v15  ;;  %v4390_v37 = vsel %vm4326_vm5, %v4370_v3, 0.0  ;;  %v4346_v16 = vsel %vm4326_vm5, %v7900_v28, 0.0  ;;  %v4373_v19 = vmul.f32 %v7905_v40, %v7905_v40 }
 0x3d7   : > { %v4335_v56 = vadd.f32 %v4334_v7, %v4333_v36  ;;  %v4387_v58 = vadd.f32 %v4386_v4, %v4385_v20  ;;  %v4392_v57 = vsel %vm4326_vm5, %v4371_v61, 0.0  ;;  %v4348_v45 = vsel %vm4326_vm5, %v7903_v25, 0.0 }
 0x3d8   : > { %v4374_v10 = vmul.f32 %v7907_v8, %v7907_v8  ;;  %v4394_v34 = vsel %vm4326_vm5, %v4372_v49, 0.0  ;;  %v4350_v53 = vsel %vm4326_vm5, %v7916_v54, 0.0  ;;  %v4375_v60 = vmul.f32 %v7900_v28, %v7900_v28 }
 0x3d9   : > { %v4337_v47 = vadd.f32 %v4336_v6, %v4335_v56  ;;  %v4389_v59 = vadd.f32 %v4388_v32, %v4387_v58  ;;  %v4396_v62 = vsel %vm4326_vm5, %v4373_v19, 0.0  ;;  %v4352_v1 = vsel %vm4326_vm5, %v7921_v23, 0.0 }
 0x3da   : > { %v4376_v52 = vmul.f32 %v7903_v25, %v7903_v25  ;;  %v4398_v55 = vsel %vm4326_vm5, %v4374_v10, 0.0  ;;  %v4354_v44 = vsel %vm4326_vm5, %v7914_v33, 0.0  ;;  %v4377_v51 = vmul.f32 %v7916_v54, %v7916_v54 }
 0x3db   : > { %v4339_v5 = vadd.f32 %v4338_v12, %v4337_v47  ;;  %v4391_v26 = vadd.f32 %v4390_v37, %v4389_v59  ;;  %v4400_v36 = vsel %vm4326_vm5, %v4375_v60, 0.0  ;;  %v4356_v56 = vsel %vm4326_vm5, %v7919_v14, 0.0  ;;  %v8339_v59 = vld [vmem:[#allocation2_spill] sm:$0xff] }
 0x3dc   : > { %v4378_v12 = vmul.f32 %v7921_v23, %v7921_v23  ;;  %v4402_v0 = vsel %vm4326_vm5, %v4376_v52, 0.0  ;;  %v4379_v63 = vmul.f32 %v7914_v33, %v7914_v33  ;;  %v4404_v47 = vsel %vm4326_vm5, %v4377_v51, 0.0 }
 0x3dd   : > { %v4341_v48 = vadd.f32 %v4340_v9, %v4339_v5  ;;  %v4393_v22 = vadd.f32 %v4392_v57, %v4391_v26  ;;  %v4380_v3 = vmul.f32 %v7919_v14, %v7919_v14  ;;  %v5519_v58 = vmov 1983009808  }
 0x3de   : > { %v4406_v4 = vsel %vm4326_vm5, %v4378_v12, 0.0  ;;  %v4408_v20 = vsel %vm4326_vm5, %v4379_v63, 0.0  ;;  %v4432_v37 = vcombine.low %v7887_v50, %v7889_v27  ;;  %v4449_v19 = vcombine.low %v7893_v39, %v7897_v35 }
 0x3df   : > { %v4343_v41 = vadd.f32 %v4342_v30, %v4341_v48  ;;  %v4395_v43 = vadd.f32 %v4394_v34, %v4393_v22  ;;  %v4410_v61 = vsel %vm4326_vm5, %v4380_v3, 0.0  ;;  %v4450_v57 = vcombine.low %v7878_v24, %v7881_v15 }
 0x3e0   : > { %v4467_v26 = vcombine.low %v7900_v28, %v7903_v25  ;;  %v4483_v50 = vcombine.low %v7916_v54, %v7921_v23  ;;  %v4484_v24 = vcombine.low %v7914_v33, %v7919_v14  ;;  %vm4361_vm6 = vcmask 1024   ;;  %v4792_v14 = vld [vmem:[%s5610_s22 + $0x2] sm:$0x3] }
 0x3e1   : > { %v4345_v38 = vadd.f32 %v4344_v31, %v4343_v41  ;;  %v4397_v17 = vadd.f32 %v4396_v62, %v4395_v43  ;;  %v4435_v31 = vunpack.c.l.s4 %v5519_v58  ;;  %v4433_v41 = vcombine.low %v7862_v46, %v7865_v13 }
 0x3e3   : > { %v4347_v2 = vadd.f32 %v4346_v16, %v4345_v38  ;;  %v4399_v29 = vadd.f32 %v4398_v55, %v4397_v17  ;;  %v4436_v49 = vunpack.c.0.s8 %v4435_v31  ;;  %v4466_v38 = vcombine.low %v7905_v40, %v7907_v8 }
 0x3e5   : > { %v4349_v11 = vadd.f32 %v4348_v45, %v4347_v2  ;;  %v4401_v18 = vadd.f32 %v4400_v36, %v4399_v29  ;;  %v4439_v16 = vsub.s32 %v4436_v49, %v8339_v59  ;;  %v4325_v45 = vld [vmem:[%s5610_s22] sm:$0x3] }
 0x3e7   : > { %v4351_v7 = vadd.f32 %v4350_v53, %v4349_v11  ;;  %v4403_v9 = vadd.f32 %v4402_v0, %v4401_v18  ;;  %v4440_v46 = vrot.slane %v4432_v37, %v4439_v16  ;;  %v4447_v13 = vrot.slane %v4433_v41, %v4439_v16 }
 0x3e8   : > { %v4457_v27 = vrot.slane %v4449_v19, %v4439_v16  ;;  %v4464_v15 = vrot.slane %v4450_v57, %v4439_v16  ;;  %v4474_v39 = vrot.slane %v4466_v38, %v4439_v16  ;;  %v4481_v35 = vrot.slane %v4467_v26, %v4439_v16 }
 0x3e9   : > { %v4353_v6 = vadd.f32 %v4352_v1, %v4351_v7  ;;  %v4405_v5 = vadd.f32 %v4404_v47, %v4403_v9  ;;  %v4491_v40 = vrot.slane %v4483_v50, %v4439_v16  ;;  %v4448_v28 = vcombine.low %v4440_v46, %v4447_v13 }
 0x3ea   : > { %v4498_v25 = vrot.slane %v4484_v24, %v4439_v16  ;;  %v4465_v8 = vcombine.low %v4457_v27, %v4464_v15  ;;  %v4482_v54 = vcombine.low %v4474_v39, %v4481_v35 }
 0x3eb   : > { %v4355_v21 = vadd.f32 %v4354_v44, %v4353_v6  ;;  %v4407_v30 = vadd.f32 %v4406_v4, %v4405_v5  ;;  %4504 = vst [vmem:[%s5605_s19] sm:$0xff] %v4448_v28 }
 0x3ec   : > { %v4499_v23 = vcombine.low %v4491_v40, %v4498_v25  ;;  %4505 = vst [vmem:[%s5605_s19 + $0x8] sm:$0xff] %v4465_v8  ;;  %4506 = vst [vmem:[%s5605_s19 + $0x10] sm:$0xff] %v4482_v54 }
 0x3ed   : > { %v4357_v42 = vadd.f32 %v4356_v56, %v4355_v21  ;;  %v4409_v32 = vadd.f32 %v4408_v20, %v4407_v30 }
 0x3ee   : > { %4507 = vst [vmem:[%s5605_s19 + $0x18] sm:$0xff] %v4499_v23 }
 0x3ef   : > { %4358 = vadd.xlane.f32.xlu0 %v4357_v42  ;;  %v4411_v48 = vadd.f32 %v4410_v61, %v4409_v32 }
 0x3f3   : > { %4412 = vadd.xlane.f32.xlu0 %v4411_v48 }
 0x47c   : > { %v4359_v10 = vpop.xlane.xlu0 %4358 }
 0x47d   : > { %v4360_v33 = vadd.f32 %v4359_v10, %v4325_v45 }
 0x47f   : > { %4362 = vst.msk [vmem:[%s5610_s22] sm:$0x3] %vm4361_vm6, %v4360_v33 }
 0x480   : > { %v4413_v34 = vpop.xlane.xlu0 %4412 }
 0x481   : > { %v4414_v2 = vadd.f32 %v4792_v14, %v4413_v34 }
 0x483   : > { %4793 = vst.msk [vmem:[%s5610_s22 + $0x2] sm:$0x3] %vm4361_vm6, %v4414_v2 }
 0x484 PF: > { %s18_s28 = sadd.s32 1, %s5508_s28   ;;  %s8340_s24 = smov %s5500_s26 }
 0x485   : > { %p15_p0 = scmp.ge.s32.totalorder %s18_s28, 6   ;;  %s8341_s25 = smov %s5504_s27 }
 0x486   : > { %s8342_s26 = smov %s8345_s29  ;;  %s8343_s27 = smov %s8349_s30 }
 0x487   :  { %17 = sbr.rel (!%p15_p0) target bundleno = 3 (0x3), region = 99 }

// kernel: outconv_forward.3
= control target key start
LH: loop header
LB: loop body
LE: loop exit
PB: predicated region body
PF: predicated region fallthrough
CT: control target
= control target key end

     0   :  { %s5404_s18 = smov 0   ;;  %s5406_s19 = smov 0   ;;  %s7870_s0 = inlined_call_operand.vmem [shape: f32[2,4,4096], index: 0, kind: input, shape index: {}, may-alias: {0,1,2}]   ;;  %s7871_s1 = inlined_call_operand.vmem [shape: f32[2,4,4096], index: 1, kind: input, shape index: {}, may-alias: {0,1,2}]   ;;  %s7872_s2 = inlined_call_operand.vmem [shape: f32[2,4,4096], index: 2, kind: input, shape index: {}, may-alias: {0,1,2}]   ;;  %s7873_s3 = inlined_call_operand.vmem [shape: f32[3,4,36], index: 3, kind: input, shape index: {}]   ;;  %s7874_s4 = inlined_call_operand.vmem [shape: f32[2,4,4096], index: 4, kind: output, shape index: {0}]   ;;  %s7875_s5 = inlined_call_operand.vmem [shape: f32[2,2,4,1], index: 5, kind: output, shape index: {1}]  }
   0x1   :  { %s5408_s20 = smov 0   ;;  %s5410_s21 = smov 0  }
   0x2   :  { %s5412_s22 = smov 0  }
   0x3 LB: > { %s25_s23 = sadd.s32 1, %s5357_s20  ;;  %s28_s24 = sadd.s32 1, %s5361_s21  ;;  %s5365_s22 = sphi %s5412_s22, %s16_s22   ;;  %s5361_s21 = sphi %s5410_s21, %s8230_s21   ;;  %s5357_s20 = sphi %s5408_s20, %s8229_s20   ;;  %s5353_s19 = sphi %s5406_s19, %s8228_s19   ;;  %s5349_s18 = sphi %s5404_s18, %s8227_s18  }
   0x4   : > { %p26_p0 = scmp.ge.s32.totalorder %s25_s23, 2  ;;  %p4514_p1 = scmp.ge.s32.totalorder %s5365_s22, 1 }
   0x5   : > { %p277_p2 = scmp.lt.s32.totalorder %s5365_s22, 5 }
   0x6   : > { %s8232_s23 = smov (%p26_p0, %s25_s23), 0  ;;  %s8234_s24 = smov (!%p26_p0, %s28_s24), %s5361_s21 }
   0x7   : > { %p278_p3 = pnand %p4514_p1, %p277_p2  ;;  %p30_p4 = scmp.ge.s32.totalorder %s8234_s24, 2 }
   0x9   : > { %s8236_s24 = smov (%p30_p4, %s8234_s24), 0  ;;  %281 = sbr.rel (%p278_p3) target bundleno = 1008 (0x3f0), region = 36 }
  0x10   : > { %s4515_s25 = sshll.u32 %s5349_s18, 4  ;;  %p345_p5 = scmp.lt.s32.totalorder %s5353_s19, 1  ;;  %v405_v21 = vlaneseq  ;;  %vm992_vm0 = vcmask 138240  }
  0x11   : > { %p347_p6 = scmp.lt.s32.totalorder %s4515_s25, 31  ;;  %s4518_s8 = sshll.u32 %s5349_s18, 3 }
  0x12   : > { %s8238_s19 = smov (!%p345_p5, %s5353_s19), 1  ;;  %s4519_s15 = sadd.s32 4294967295, %s4518_s8  ;;  %v5497_v22 = vand.u32 127, %v405_v21 }
  0x13   : > { %s8240_s25 = smov (!%p347_p6, %s4515_s25), 31  ;;  %s5437_s26 = sshll.u32 %s8238_s19, 5 }
  0x14   : > { %s4633_s27 = sshll.u32 %s8238_s19, 3  ;;  %s350_s28 = sadd.s32 %s5437_s26, %s8240_s25  ;;  %8003 = vst [vmem:[#allocation2_spill] sm:$0xff] %v5497_v22  ;;  %v4532_v23 = vadd.s32 4294967279, %v5497_v22  ;;  %v5501_v24 = vadd.s32 768, %v5497_v22  ;;  %v5507_v27 = vadd.s32 512, %v5497_v22  ;;  %v5511_v30 = vadd.s32 1024, %v5497_v22 }
  0x15   : > { %s5443_s6 = scalar_lea.vmem %s7875_s5, %s4633_s27  ;;  %s4517_s7 = sshll.u32 %s350_s28, 2  ;;  %v5524_v36 = vadd.s32 1280, %v5497_v22  ;;  %v5547_v48 = vadd.s32 1536, %v5497_v22  ;;  %v5561_v54 = vadd.s32 256, %v5497_v22  ;;  %v5572_v59 = vadd.s32 1792, %v5497_v22 }
  0x16   : > { %s5449_s11 = scalar_lea.vmem %s7870_s0, %s4517_s7  ;;  %s5454_s14 = scalar_lea.vmem %s7874_s4, %s4517_s7  ;;  %8004 = vst [vmem:[#allocation3_spill] sm:$0xff] %v5501_v24  ;;  %v673_v25 = vsub.s32 0, %v4532_v23  ;;  %v5504_v26 = vadd.s32 4294967279, %v5501_v24  ;;  %8005 = vst [vmem:[#allocation4_spill] sm:$0xff] %v5507_v27  ;;  %v5516_v33 = vadd.s32 4294967279, %v5507_v27  ;;  %v5521_v35 = vadd.s32 4294967279, %v5511_v30 }
  0x17   : > { %v967_v0 = vld [vmem:[%s5449_s11 + $0x8] sm:$0xff]  ;;  %v966_v1 = vld [vmem:[%s5449_s11] sm:$0xff]  ;;  %p974_p7 = scmp.gt.s32.totalorder %s5349_s18, 0  ;;  %s5367_s16 = smov 17   ;;  %v968_v3 = vld [vmem:[%s5449_s11 + $0x10] sm:$0xff]  ;;  %8006 = vst [vmem:[#allocation5_spill] sm:$0xff] %v5511_v30 }
  0x18   : > { %1017 = vrot.lane.b32.xlu1 %v967_v0, %s5367_s16  ;;  %v1006_v2 = vcombine.high %v967_v0, %v967_v0  ;;  %1013 = vrot.lane.b32.xlu0 %v966_v1, %s5367_s16  ;;  %p356_p8 = scmp.gt.s32.totalorder %s4519_s15, 0  ;;  %s373_s17 = sadd.s32 8, %s4518_s8  ;;  %v1005_v4 = vcombine.high %v966_v1, %v966_v1  ;;  %v1007_v5 = vcombine.high %v968_v3, %v968_v3  ;;  %v969_v6 = vld [vmem:[%s5449_s11 + $0x18] sm:$0xff]  ;;  %v970_v10 = vld [vmem:[%s5449_s11 + $0x20] sm:$0xff]  ;;  %v718_v29 = vand.u32 255, %v5504_v26 }
  0x19   : > { %p374_p9 = scmp.lt.s32.totalorder %s373_s17, 15  ;;  %p980_p11 = scmp.lt.s32.totalorder %s5349_s18, 1  ;;  %v1008_v7 = vcombine.high %v969_v6, %v969_v6  ;;  %v1009_v12 = vcombine.high %v970_v10, %v970_v10  ;;  %v971_v13 = vld [vmem:[%s5449_s11 + $0x28] sm:$0xff]  ;;  %v972_v15 = vld [vmem:[%s5449_s11 + $0x30] sm:$0xff]  ;;  %v973_v17 = vld [vmem:[%s5449_s11 + $0x38] sm:$0xff]  ;;  %v4553_v28 = vmin.u32 %v4532_v23, %v673_v25  ;;  %8007 = vst [vmem:[#allocation6_spill] sm:$0xff] %v5524_v36 }
  0x1a   : > { %s8242_s15 = smov (!%p356_p8, %s4519_s15), 0  ;;  %v1010_v14 = vcombine.high %v971_v13, %v971_v13  ;;  %v1011_v16 = vcombine.high %v972_v15, %v972_v15  ;;  %v1012_v18 = vcombine.high %v973_v17, %v973_v17  ;;  %vm930_vm1 = vcmp.ge.s32.totalorder %v718_v29, 240  ;;  %8008 = vst [vmem:[#allocation7_spill] sm:$0xff] %v5547_v48  ;;  %8009 = vst [vmem:[#allocation8_spill] sm:$0xff] %v5561_v54  ;;  %s5369_s11 = smov 112  }
  0x1b   : > { %s4520_s19 = sshll.u32 %s8242_s15, 1  ;;  %s8246_s17 = smov (!%p374_p9, %s373_s17), 15  ;;  %v676_v34 = vand.u32 255, %v4553_v28  ;;  %v704_v39 = vand.u32 255, %v5516_v33  ;;  %v732_v44 = vand.u32 255, %v5521_v35  ;;  %v5540_v45 = vadd.s32 4294967279, %v5524_v36 }
  0x1c   : > { %1021 = vrot.lane.b32.xlu1 %v968_v3, %s5367_s16  ;;  %1019 = vrot.lane.b32.xlu0 %v1006_v2, %s5367_s16  ;;  %p361_p10 = scmp.lt.s32.totalorder %s4520_s19, 31  ;;  %s4524_s29 = sshll.u32 %s8246_s17, 1  ;;  %vm672_vm2 = vcmp.lt.s32.totalorder %v4532_v23, 0  ;;  %8010 = vst [vmem:[#allocation9_spill] sm:$0xff] %v5572_v59  ;;  %v5575_v60 = vadd.s32 4294967279, %v5547_v48  ;;  %v5584_v63 = vadd.s32 4294967279, %v5561_v54 }
  0x1d   : > { %s5308_s25 = scalar_select %p974_p7, 255, 0  ;;  %v677_v43 = vsub.s32 0, %v676_v34  ;;  %vm928_vm3 = vcmp.ge.s32.totalorder %v704_v39, 240  ;;  %vm932_vm4 = vcmp.ge.s32.totalorder %v732_v44, 240  ;;  %v746_v56 = vand.u32 255, %v5540_v45 }
  0x1e   : > { %s8244_s19 = smov (!%p361_p10, %s4520_s19), 31  ;;  %p379_p12 = scmp.lt.s32.totalorder %s4524_s29, 31  ;;  %v5591_v2 = vadd.s32 4294967279, %v5572_v59  ;;  %v646_v3 = vadd.s32 2048, %v5497_v22  ;;  %vm949_vm15 = vcmp.lt.s32.totalorder %v704_v39, 16 }
  0x1f   : > { %s364_s27 = sadd.s32 %s5437_s26, %s8244_s19  ;;  %v678_v53 = vsel %vm672_vm2, %v677_v43, %v676_v34  ;;  %vm934_vm7 = vcmp.ge.s32.totalorder %v746_v56, 240  ;;  %s5372_s19 = smov 126  }
  0x20   : > { %1023 = vrot.lane.b32.xlu0 %v1007_v5, %s5367_s16  ;;  %1015 = vrot.lane.b32.xlu1 %v1005_v4, %s5367_s16  ;;  %s4522_s28 = sshll.u32 %s364_s27, 2  ;;  %s8248_s29 = smov (!%p379_p12, %s4524_s29), 31  ;;  %vm819_vm5 = vcmp.ne.s32.totalorder %v678_v53, 0  ;;  %vm840_vm6 = vcmp.lt.s32.totalorder %v678_v53, 0  ;;  %v882_v0 = vadd.s32 256, %v678_v53  ;;  %v760_v4 = vand.u32 255, %v5575_v60 }
  0x21   : > { %s366_s8 = scalar_lea.vmem %s7871_s1, %s4522_s28  ;;  %s382_s9 = sadd.s32 %s5437_s26, %s8248_s29  ;;  %vm861_vm8 = vmand %vm840_vm6, %vm819_vm5  ;;  %vm953_vm5 = vcmp.lt.s32.totalorder %v732_v44, 16  ;;  %vm955_vm6 = vcmp.lt.s32.totalorder %v746_v56, 16 }
  0x22   : > { %v5309_v8 = vld [vmem:[%s366_s8] sm:%s5308_s25]  ;;  %s4526_s10 = sshll.u32 %s382_s9, 2  ;;  %s5368_s26 = smov 96   ;;  %vm936_vm9 = vcmp.ge.s32.totalorder %v760_v4, 240 }
  0x23   : > { %v987_v9 = vcombine.high %v5309_v8, %v5309_v8  ;;  %s5320_s12 = scalar_select %p980_p11, 255, 0 }
  0x24   : > { %1027 = vrot.lane.b32.xlu0 %v1008_v7, %s5367_s16  ;;  %1025 = vrot.lane.b32.xlu1 %v969_v6, %s5367_s16  ;;  %s384_s17 = scalar_lea.vmem %s7872_s2, %s4526_s10  ;;  %p4628_p13 = scmp.ne.s32.totalorder %s5349_s18, 0 }
  0x25   : > { %v4873_v11 = vpack.i.bf16 %v987_v9, %v5309_v8  ;;  %v5321_v19 = vld [vmem:[%s384_s17] sm:%s5320_s12] }
  0x26   : > { %v1078_v20 = vcombine.high %v5321_v19, %v5321_v19 }
  0x28   : > { %1029 = vrot.lane.b32.xlu1 %v970_v10, %s5367_s16  ;;  %4874 = vrot.lane.b32.xlu0 %v4873_v11, %s5367_s16  ;;  %v7879_v10 = vand.u32 255, %v5584_v63 }
  0x2a   : > { %vm926_vm10 = vcmp.ge.s32.totalorder %v7879_v10, 240 }
  0x2c   : > { %1033 = vrot.lane.b32.xlu1 %v971_v13, %s5367_s16  ;;  %1031 = vrot.lane.b32.xlu0 %v1009_v12, %s5367_s16  ;;  %v5611_v13 = vsel %vm861_vm8, %v882_v0, %v678_v53 }
  0x2d   : > { %vm924_vm11 = vcmp.ge.s32.totalorder %v5611_v13, 240  ;;  %vm945_vm8 = vcmp.lt.s32.totalorder %v5611_v13, 16 }
  0x30   : > { %1037 = vrot.lane.b32.xlu1 %v972_v15, %s5367_s16  ;;  %1035 = vrot.lane.b32.xlu0 %v1010_v14, %s5367_s16  ;;  %v774_v15 = vand.u32 255, %v5591_v2 }
  0x32   : > { %vm938_vm12 = vcmp.ge.s32.totalorder %v774_v15, 240  ;;  %vm959_vm2 = vcmp.lt.s32.totalorder %v774_v15, 16 }
  0x34   : > { %1041 = vrot.lane.b32.xlu1 %v973_v17, %s5367_s16  ;;  %1039 = vrot.lane.b32.xlu0 %v1011_v16, %s5367_s16  ;;  %v4548_v16 = vadd.s32 4294967279, %v646_v3  ;;  %v648_v17 = vadd.s32 2304, %v5497_v22 }
  0x36   : > { %v5645_v34 = vadd.s32 4294967279, %v648_v17 }
  0x38   : > { %1079 = vrot.lane.b32.xlu1 %v5321_v19, %s5367_s16  ;;  %1043 = vrot.lane.b32.xlu0 %v1012_v18, %s5367_s16 }
  0x3c   : > { %1081 = vrot.lane.b32.xlu0 %v1078_v20, %s5367_s16  ;;  %s5371_s16 = smov 127  }
  0x8a   : > { %v1018_v31 = vpop.permute.xlu1 %1017  ;;  %v5513_v32 = vpop.permute.xlu0 %1013 }
  0x8e   : > { %v1022_v37 = vpop.permute.xlu1 %1021  ;;  %v1020_v38 = vpop.permute.xlu0 %1019 }
  0x8f   : > { %v5528_v40 = vsel %vm992_vm0, %v1020_v38, %v1022_v37  ;;  %v5531_v41 = vsel %vm992_vm0, %v1018_v31, %v1020_v38 }
  0x90   : > { %1331 = vrot.lane.b32.xlu0 %v5531_v41, %s5368_s26  ;;  %v5536_v42 = vsel %vm930_vm1, 0.0, %v5528_v40 }
  0x92   : > { %v1024_v46 = vpop.permute.xlu0 %1023  ;;  %v5542_v47 = vpop.permute.xlu1 %1015 }
  0x93   : > { %v5550_v49 = vsel %vm992_vm0, %v1022_v37, %v1024_v46  ;;  %v5554_v50 = vsel %vm992_vm0, %v5542_v47, %v1018_v31  ;;  %v788_v31 = vand.u32 255, %v4548_v16  ;;  %v650_v37 = vadd.s32 2560, %v5497_v22 }
  0x94   : > { %v4883_v51 = vpack.i.bf16 %v5550_v49, %v5528_v40  ;;  %v4878_v52 = vpack.i.bf16 %v5531_v41, %v5554_v50  ;;  %v5564_v55 = vsel %vm928_vm3, 0.0, %v5554_v50  ;;  %vm951_vm3 = vcmp.lt.s32.totalorder %v718_v29, 16 }
  0x95   : > { %vm940_vm13 = vcmp.ge.s32.totalorder %v788_v31, 240  ;;  %v5666_v0 = vadd.s32 4294967279, %v650_v37  ;;  %v1225_v29 = vrot.slane %v5528_v40, 4  ;;  %v1223_v45 = vrot.slane %v5554_v50, 4 }
  0x96   : > { %4884 = vrot.lane.b32.xlu0 %v4883_v51, %s5369_s11  ;;  %v1028_v57 = vpop.permute.xlu0 %1027  ;;  %4879 = vrot.lane.b32.xlu1 %v4878_v52, %s5369_s11  ;;  %v1026_v58 = vpop.permute.xlu1 %1025  ;;  %v5762_v56 = vsel %vm992_vm0, %v5513_v32, %v5542_v47 }
  0x97   : > { %v5578_v61 = vsel %vm992_vm0, %v1024_v46, %v1026_v58  ;;  %v5601_v7 = vsel %vm992_vm0, %v1026_v58, %v1028_v57  ;;  %v802_v58 = vand.u32 255, %v5645_v34  ;;  %v7876_v17 = vand.u32 255, %v5666_v0 }
  0x98   : > { %v5581_v62 = vsel %vm932_vm4, 0.0, %v5578_v61  ;;  %vm961_vm4 = vcmp.lt.s32.totalorder %v788_v31, 16  ;;  %v1204_v39 = vsel %vm953_vm5, 0.0, %v5578_v61  ;;  %v1227_v47 = vrot.slane %v5578_v61, 4 }
  0x99   : > { %vm942_vm14 = vcmp.ge.s32.totalorder %v802_v58, 240  ;;  %vm5705_vm1 = vcmp.ge.s32.totalorder %v7876_v17, 240  ;;  %v5733_v17 = vrot.slane %v5550_v49, 4  ;;  %v8019_v34 = vand.u32 255, %v5584_v63 }
  0x9a   : > { %1335 = vrot.lane.b32.xlu0 %v5550_v49, %s5368_s26  ;;  %v1030_v1 = vpop.permute.xlu1 %1029  ;;  %v5595_v5 = vpop.permute.xlu0 %4874 }
  0x9b   : > { %v5598_v6 = vsel %vm992_vm0, %v1028_v57, %v1030_v1  ;;  %v7878_v11 = vunpack.i.h.bf16 %v5595_v5  ;;  %v7877_v12 = vunpack.i.l.bf16 %v5595_v5  ;;  %8016 = vst [vmem:[#allocation13_spill] sm:$0xff] %v5733_v17 }
  0x9c   : > { %v4888_v8 = vpack.i.bf16 %v5598_v6, %v5601_v7  ;;  %v5606_v9 = vsel %vm934_vm7, 0.0, %v5598_v6  ;;  %v1229_v35 = vrot.slane %v5598_v6, 4  ;;  %v1206_v44 = vsel %vm955_vm6, 0.0, %v5598_v6 }
  0x9d   : > { %v5629_v20 = vsel %vm992_vm0, 0.0, %v7877_v12  ;;  %v5641_v25 = vsel %vm992_vm0, %v7878_v11, %v5513_v32  ;;  %v4908_v12 = vpack.i.bf16 %v5733_v17, %v1225_v29  ;;  %vm957_vm7 = vcmp.lt.s32.totalorder %v760_v4, 16 }
  0x9e   : > { %1339 = vrot.lane.b32.xlu0 %v5601_v7, %s5368_s26  ;;  %4889 = vrot.lane.b32.xlu1 %v4888_v8, %s5369_s11  ;;  %v1034_v14 = vpop.permute.xlu1 %1033  ;;  %v1032_v18 = vpop.permute.xlu0 %1031  ;;  %v5652_v46 = vsel %vm926_vm10, 0.0, %v5641_v25  ;;  %v5655_v51 = vsel %vm924_vm11, 0.0, %v5629_v20  ;;  %v5774_v4 = vrot.slane %v5601_v7, 4  ;;  %vm947_vm10 = vcmp.lt.s32.totalorder %v8019_v34, 16 }
  0x9f   : > { %v5621_v19 = vsel %vm992_vm0, %v1032_v18, %v1034_v14  ;;  %v5632_v21 = vsel %vm992_vm0, %v1030_v1, %v1032_v18  ;;  %8011 = vst [vmem:[#allocation10_spill] sm:$0xff] %v5655_v51  ;;  %vm1355_vm11 = vcmask 785408  }
  0xa0   : > { %v5635_v23 = vsel %vm936_vm9, 0.0, %v5621_v19  ;;  %v5743_v31 = vrot.slane %v5632_v21, 4  ;;  %v1208_v6 = vsel %vm957_vm7, 0.0, %v5621_v19  ;;  %vm963_vm9 = vcmp.lt.s32.totalorder %v802_v58, 16 }
  0xa1   : > { %v1416_v22 = vrot.slane %v5635_v23, 4 }
  0xa2   : > { %1343 = vrot.lane.b32.xlu0 %v5632_v21, %s5368_s26  ;;  %v1038_v28 = vpop.permute.xlu1 %1037  ;;  %v1036_v38 = vpop.permute.xlu0 %1035 }
  0xa3   : > { %v5649_v43 = vsel %vm992_vm0, %v1036_v38, %v1038_v28  ;;  %v5658_v52 = vsel %vm992_vm0, %v1034_v14, %v1036_v38 }
  0xa4   : > { %v5661_v53 = vsel %vm938_vm12, 0.0, %v5649_v43  ;;  %v4893_v8 = vpack.i.bf16 %v5649_v43, %v5658_v52  ;;  %v5727_v15 = vsel %vm959_vm2, 0.0, %v5649_v43  ;;  %v1233_v11 = vrot.slane %v5649_v43, 4 }
  0xa5   : > { %vm1630_vm12 = vcmask 1043456  }
  0xa6   : > { %1347 = vrot.lane.b32.xlu0 %v5658_v52, %s5368_s26  ;;  %v1042_v57 = vpop.permute.xlu1 %1041  ;;  %v1040_v1 = vpop.permute.xlu0 %1039  ;;  %v4928_v60 = vpack.i.bf16 %v5762_v56, %v1233_v11  ;;  %v4913_v11 = vpack.i.bf16 %v5774_v4, %v1227_v47  ;;  %v1520_v47 = vrot.slane %v1208_v6, 4 }
  0xa7   : > { %v5669_v2 = vsel %vm992_vm0, %v1040_v1, %v1042_v57  ;;  %v5672_v3 = vsel %vm992_vm0, %v1038_v28, %v1040_v1 }
  0xa8   : > { %1351 = vrot.lane.b32.xlu1 %v5672_v3, %s5368_s26  ;;  %v5679_v14 = vsel %vm940_vm13, 0.0, %v5669_v2  ;;  %v1212_v26 = vsel %vm961_vm4, 0.0, %v5669_v2  ;;  %v5769_v29 = vrot.slane %v5672_v3, 4  ;;  %vm1270_vm13 = vcmask 916480  }
  0xaa   : > { %4894 = vrot.lane.b32.xlu0 %v4893_v8, %s5369_s11  ;;  %v5682_v16 = vpop.permute.xlu1 %1079  ;;  %v1044_v18 = vpop.permute.xlu0 %1043  ;;  %v4933_v43 = vpack.i.bf16 %v5769_v29, %v5632_v21 }
  0xab   : > { %v5689_v28 = vsel %vm992_vm0, %v1044_v18, %v5682_v16  ;;  %v5692_v37 = vsel %vm992_vm0, %v1042_v57, %v1044_v18  ;;  %v5713_v18 = vsel %vm949_vm15, 0.0, %v5554_v50  ;;  %vm2544_vm15 = vcmask 1039360  }
  0xac   : > { %8012 = vst [vmem:[#allocation11_spill] sm:$0xff] %v5692_v37  ;;  %1618 = vrot.lane.b32.xlu1 %v5692_v37, %s5368_s26  ;;  %v4898_v38 = vpack.i.bf16 %v5692_v37, %v5669_v2  ;;  %v5701_v1 = vsel %vm942_vm14, 0.0, %v5689_v28  ;;  %vm1690_vm14 = vcmask 293888  }
  0xae   : > { %4899 = vrot.lane.b32.xlu0 %v4898_v38, %s5369_s11  ;;  %v5710_v57 = vpop.permute.xlu0 %1081  ;;  %v1202_v38 = vsel %vm951_vm3, 0.0, %v5528_v40  ;;  %v4918_v40 = vpack.i.bf16 %v5743_v31, %v1229_v35  ;;  %v5783_v35 = vrot.slane %v5658_v52, 4 }
  0xaf   : > { %v5717_v33 = vsel %vm992_vm0, %v5710_v57, 0.0  ;;  %v1514_v50 = vrot.slane %v1202_v38, 4 }
  0xb0   : > { %8015 = vst [vmem:[#allocation12_spill] sm:$0xff] %v5717_v33  ;;  %1329 = vrot.lane.b32.xlu1 %v5713_v18, %s5368_s26 }
  0xb2   : > { %1349 = vrot.lane.b32.xlu0 %v5727_v15, %s5368_s26 }
  0xb4   : > { %1333 = vrot.lane.b32.xlu1 %v1202_v38, %s5368_s26 }
  0xb6   : > { %1353 = vrot.lane.b32.xlu0 %v1212_v26, %s5368_s26 }
  0xb8   : > { %1337 = vrot.lane.b32.xlu1 %v1204_v39, %s5368_s26 }
  0xba   : > { %4909 = vrot.lane.b32.xlu0 %v4908_v12, %s5369_s11  ;;  %v5766_v12 = vrot.slane %v5531_v41, 4 }
  0xbc   : > { %1341 = vrot.lane.b32.xlu1 %v1206_v44, %s5368_s26  ;;  %v4903_v32 = vpack.i.bf16 %v5766_v12, %v1223_v45  ;;  %v1231_v45 = vrot.slane %v5621_v19, 4 }
  0xbe   : > { %4919 = vrot.lane.b32.xlu0 %v4918_v40, %s5369_s11  ;;  %v4953_v40 = vpack.i.bf16 %v1514_v50, %v5766_v12  ;;  %v4923_v38 = vpack.i.bf16 %v5783_v35, %v1231_v45  ;;  %v1516_v45 = vrot.slane %v1204_v39, 4 }
  0xc0   : > { %1345 = vrot.lane.b32.xlu1 %v1208_v6, %s5368_s26 }
  0xc2   : > { %4929 = vrot.lane.b32.xlu0 %v4928_v60, %s5369_s11  ;;  %v1518_v60 = vrot.slane %v1206_v44, 4  ;;  %v4968_v44 = vpack.i.bf16 %v5783_v35, %v1520_v47  ;;  %v1214_v47 = vsel %vm963_vm9, 0.0, %v5689_v28 }
  0xc4   : > { %4904 = vrot.lane.b32.xlu1 %v4903_v32, %s5369_s11  ;;  %v1235_v32 = vrot.slane %v5669_v2, 4  ;;  %v4963_v10 = vpack.i.bf16 %v5743_v31, %v1518_v60  ;;  %v5804_v2 = vrot.slane %v5762_v56, 4  ;;  %v1522_v60 = vrot.slane %v5727_v15, 4 }
  0xc5   : > { %v1221_v15 = vrot.slane %v5641_v25, 4 }
  0xc6   : > { %4934 = vrot.lane.b32.xlu0 %v4933_v43, %s5369_s11  ;;  %v5796_v43 = vrot.slane %v5692_v37, 4  ;;  %v4938_v50 = vpack.i.bf16 %v5621_v19, %v1235_v32  ;;  %8017 = vst [vmem:[#allocation14_spill] sm:$0xff] %v5804_v2  ;;  %v1196_v19 = vsel %vm945_vm8, 0.0, %v5629_v20  ;;  %v4973_v39 = vpack.i.bf16 %v5769_v29, %v1522_v60 }
  0xc7   : > { %v5828_v32 = vsel %vm992_vm0, %v5682_v16, %v5710_v57  ;;  %v5008_v16 = vpack.i.bf16 %v5804_v2, %v1221_v15  ;;  %v8020_v57 = vunpack.i.h.bf16 %v5595_v5 }
  0xc8   : > { %4914 = vrot.lane.b32.xlu1 %v4913_v11, %s5369_s11  ;;  %v1512_v11 = vrot.slane %v5713_v18, 4  ;;  %v4943_v6 = vpack.i.bf16 %v5796_v43, %v5672_v3  ;;  %v4983_v18 = vpack.i.bf16 %v1196_v19, %v5762_v56  ;;  %8018 = vst [vmem:[#allocation15_spill] sm:$0xff] %v5828_v32  ;;  %v1526_v19 = vrot.slane %v1214_v47, 4 }
  0xca   : > { %4954 = vrot.lane.b32.xlu0 %v4953_v40, %s5368_s26  ;;  %v1524_v40 = vrot.slane %v1212_v26, 4  ;;  %v4948_v13 = vpack.i.bf16 %v1512_v11, %v5804_v2  ;;  %v4958_v26 = vpack.i.bf16 %v5774_v4, %v1516_v45  ;;  %v8021_v11 = vunpack.i.l.bf16 %v5595_v5 }
  0xcb   : > { %v8023_v5 = vand.u32 255, %v5666_v0  ;;  %v1410_v2 = vrot.slane %v5536_v42, 4 }
  0xcc   : > { %4924 = vrot.lane.b32.xlu1 %v4923_v38, %s5369_s11  ;;  %v4988_v38 = vpack.i.bf16 %v5578_v61, %v5641_v25  ;;  %v1596_v61 = vrot.slane %v5689_v28, 4 }
  0xce   : > { %4964 = vrot.lane.b32.xlu0 %v4963_v10, %s5368_s26  ;;  %v4978_v10 = vpack.i.bf16 %v5796_v43, %v1524_v40  ;;  %v4993_v58 = vpack.i.bf16 %v1596_v61, %v5689_v28  ;;  %v5851_v40 = vsel %vm992_vm0, %v8021_v11, %v8020_v57  ;;  %v7880_v28 = vmov 0.0  }
  0xcf   : > { %8022 = vst [vmem:[#allocation16_spill] sm:$0xff] %v5851_v40  ;;  %1861 = vmatprep.mubr.f32.mxu1 %v7880_v28  ;;  %1790 = vmatprep.mubr.f32.mxu0 %v7880_v28  ;;  %vm965_vm0 = vcmp.lt.s32.totalorder %v8023_v5, 16  ;;  %v1220_v45 = vrot.slane %v5851_v40, 4  ;;  %v1420_v11 = vrot.slane %v5679_v14, 4 }
  0xd0   : > { %4939 = vrot.lane.b32.xlu1 %v4938_v50, %s5369_s11  ;;  %v1598_v50 = vrot.slane %v5717_v33, 4 }
  0xd2   : > { %4969 = vrot.lane.b32.xlu0 %v4968_v44, %s5368_s26  ;;  %v1597_v44 = vrot.slane %v5828_v32, 4 }
  0xd4   : > { %4944 = vrot.lane.b32.xlu1 %v4943_v6, %s5369_s11  ;;  %v1198_v6 = vsel %vm947_vm10, 0.0, %v5641_v25  ;;  %v1219_v25 = vrot.slane %v5629_v20, 4 }
  0xd5   : > { %v4998_v63 = vpack.i.bf16 %v1198_v6, %v5851_v40 }
  0xd6   : > { %4979 = vrot.lane.b32.xlu0 %v4978_v10, %s5368_s26  ;;  %v5013_v10 = vpack.i.bf16 %v1598_v50, %v1597_v44 }
  0xd8   : > { %4949 = vrot.lane.b32.xlu1 %v4948_v13, %s5368_s26  ;;  %v1216_v13 = vsel %vm965_vm0, 0.0, %v5717_v33 }
  0xda   : > { %4984 = vrot.lane.b32.xlu0 %v4983_v18, %s5368_s26  ;;  %v5003_v18 = vpack.i.bf16 %v1220_v45, %v1219_v25  ;;  %v1422_v45 = vrot.slane %v5701_v1, 4 }
  0xdc   : > { %4959 = vrot.lane.b32.xlu1 %v4958_v26, %s5368_s26  ;;  %v1510_v26 = vrot.slane %v1198_v6, 4 }
  0xde   : > { %4989 = vrot.lane.b32.xlu0 %v4988_v38, %s5369_s11  ;;  %v5018_v60 = vpack.i.bf16 %v1510_v26, %v5733_v17 }
  0xe0   : > { %4974 = vrot.lane.b32.xlu1 %v4973_v39, %s5368_s26 }
  0xe2   : > { %1622 = vrot.lane.b32.xlu0 %v5828_v32, %s5368_s26 }
  0xe4   : > { %1620 = vrot.lane.b32.xlu1 %v1214_v47, %s5368_s26 }
  0xe6   : > { %5009 = vrot.lane.b32.xlu0 %v5008_v16, %s5369_s11 }
  0xe8   : > { %4994 = vrot.lane.b32.xlu1 %v4993_v58, %s5369_s11 }
  0xea   : > { %5014 = vrot.lane.b32.xlu0 %v5013_v10, %s5369_s11 }
  0xec   : > { %4999 = vrot.lane.b32.xlu1 %v4998_v63, %s5368_s26 }
  0xf0   : > { %1559 = vrot.lane.b32.xlu1 %v1526_v19, %s5368_s26 }
  0xf4   : > { %1624 = vrot.lane.b32.xlu1 %v1216_v13, %s5368_s26 }
  0xf8   : > { %5004 = vrot.lane.b32.xlu1 %v5003_v18, %s5369_s11 }
  0xfc   : > { %5019 = vrot.lane.b32.xlu1 %v5018_v60, %s5368_s26 }
 0x102   : > { %v1332_v38 = vpop.permute.xlu0 %1331 }
 0x108   : > { %v5870_v39 = vpop.permute.xlu0 %4884  ;;  %v5872_v20 = vpop.permute.xlu1 %4879 }
 0x109   : > { %8024 = vst [vmem:[#allocation17_spill] sm:$0xff] %v5872_v20 }
 0x10c   : > { %v1336_v0 = vpop.permute.xlu0 %1335 }
 0x110   : > { %v1340_v15 = vpop.permute.xlu0 %1339  ;;  %v5874_v47 = vpop.permute.xlu1 %4889 }
 0x111   : > { %v4892_v51 = vunpack.i.h.bf16 %v5874_v47 }
 0x114   : > { %v1344_v61 = vpop.permute.xlu0 %1343 }
 0x118   : > { %v5876_v50 = vpop.permute.xlu0 %1347 }
 0x11a   : > { %v1352_v44 = vpop.permute.xlu1 %1351 }
 0x11c   : > { %v5878_v16 = vpop.permute.xlu0 %4894 }
 0x11e   : > { %v5880_v34 = vpop.permute.xlu1 %1618 }
 0x11f   : > { %8025 = vst [vmem:[#allocation18_spill] sm:$0xff] %v5880_v34 }
 0x120   : > { %v5882_v58 = vpop.permute.xlu0 %4899 }
 0x122   : > { %v5884_v57 = vpop.permute.xlu1 %1329 }
 0x124   : > { %v1350_v6 = vpop.permute.xlu0 %1349 }
 0x125   : > { %v5889_v10 = vsel %vm1355_vm11, %v5876_v50, %v1350_v6  ;;  %v5892_v63 = vsel %vm1355_vm11, %v1350_v6, %v1352_v44  ;;  %v1412_v6 = vrot.slane %v5581_v62, 4 }
 0x126   : > { %8026 = vst [vmem:[#allocation19_spill] sm:$0xff] %v5889_v10  ;;  %8027 = vst [vmem:[#allocation20_spill] sm:$0xff] %v5892_v63  ;;  %v1334_v19 = vpop.permute.xlu1 %1333  ;;  %v5897_v5 = vsel %vm1630_vm12, %v5889_v10, %v5769_v29  ;;  %v5901_v25 = vsel %vm1630_vm12, %v5892_v63, %v1420_v11 }
 0x127   : > { %8028 = vst [vmem:[#allocation21_spill] sm:$0xff] %v5897_v5  ;;  %8029 = vst [vmem:[#allocation22_spill] sm:$0xff] %v5901_v25  ;;  %v5905_v13 = vsel %vm1355_vm11, %v1334_v19, %v1336_v0  ;;  %v5908_v18 = vsel %vm1355_vm11, %v1332_v38, %v1334_v19  ;;  %v5912_v26 = vpack.i.bf16 %v5901_v25, %v5897_v5  ;;  %v8055_v25 = vunpack.i.h.bf16 %v5882_v58 }
 0x128   : > { %8030 = vst [vmem:[#allocation23_spill] sm:$0xff] %v5905_v13  ;;  %8031 = vst [vmem:[#allocation24_spill] sm:$0xff] %v5908_v18  ;;  %v5914_v60 = vpop.permute.xlu0 %1353  ;;  %2514 = vrot.lane.b32.xlu1 %v5905_v13, %s5371_s16  ;;  %2512 = vrot.lane.b32.xlu0 %v5908_v18, %s5371_s16 }
 0x129   : > { %8032 = vst [vmem:[#allocation25_spill] sm:$0xff] %v5912_v26  ;;  %v5922_v29 = vsel %vm1355_vm11, %v1352_v44, %v5914_v60  ;;  %v1664_v11 = vsel %vm1630_vm12, %v5914_v60, %v1422_v45 }
 0x12a   : > { %8033 = vst [vmem:[#allocation26_spill] sm:$0xff] %v5922_v29  ;;  %v1338_v19 = vpop.permute.xlu1 %1337  ;;  %v5930_v28 = vsel %vm1630_vm12, %v5922_v29, %v5796_v43  ;;  %v5949_v43 = vsel %vm1630_vm12, %v5905_v13, %v1412_v6 }
 0x12b   : > { %8034 = vst [vmem:[#allocation27_spill] sm:$0xff] %v5930_v28  ;;  %v5933_v48 = vsel %vm1355_vm11, %v1338_v19, %v1340_v15  ;;  %v5936_v59 = vsel %vm1355_vm11, %v1336_v0, %v1338_v19  ;;  %v5939_v44 = vpack.i.bf16 %v1664_v11, %v5930_v28  ;;  %8038 = vst [vmem:[#allocation31_spill] sm:$0xff] %v5949_v43 }
 0x12c   : > { %8035 = vst [vmem:[#allocation28_spill] sm:$0xff] %v5933_v48  ;;  %8036 = vst [vmem:[#allocation29_spill] sm:$0xff] %v5936_v59  ;;  %v5941_v30 = vpop.permute.xlu0 %4909  ;;  %2518 = vrot.lane.b32.xlu1 %v5933_v48, %s5371_s16  ;;  %2516 = vrot.lane.b32.xlu0 %v5936_v59, %s5371_s16  ;;  %v5954_v0 = vsel %vm1630_vm12, %v5936_v59, %v5774_v4  ;;  %v5969_v4 = vsel %vm1355_vm11, %v5884_v57, %v1332_v38 }
 0x12d   : > { %8037 = vst [vmem:[#allocation30_spill] sm:$0xff] %v5939_v44  ;;  %8039 = vst [vmem:[#allocation32_spill] sm:$0xff] %v5954_v0  ;;  %v7896_v45 = vunpack.i.h.bf16 %v5941_v30  ;;  %v7897_v11 = vunpack.i.l.bf16 %v5941_v30  ;;  %v5960_v19 = vpack.i.bf16 %v5954_v0, %v5949_v43 }
 0x12e   : > { %v1342_v36 = vpop.permute.xlu1 %1341  ;;  %8041 = vst [vmem:[#allocation34_spill] sm:$0xff] %v5969_v4 }
 0x12f   : > { %8040 = vst [vmem:[#allocation33_spill] sm:$0xff] %v5960_v19  ;;  %v1277_v6 = vsel %vm1270_vm13, %v7897_v11, %v7896_v45  ;;  %v5972_v27 = vsel %vm1355_vm11, %v1340_v15, %v1342_v36  ;;  %v5987_v11 = vsel %vm1355_vm11, %v1342_v36, %v1344_v61 }
 0x130   : > { %8042 = vst [vmem:[#allocation35_spill] sm:$0xff] %v5972_v27  ;;  %v5974_v24 = vpop.permute.xlu0 %4919  ;;  %2510 = vrot.lane.b32.xlu0 %v5969_v4, %s5371_s16  ;;  %2520 = vrot.lane.b32.xlu1 %v5972_v27, %s5371_s16  ;;  %v5982_v54 = vsel %vm1630_vm12, %v5536_v42, %v1277_v6  ;;  %8043 = vst [vmem:[#allocation36_spill] sm:$0xff] %v5987_v11  ;;  %v6008_v36 = vsel %vm1630_vm12, %v5987_v11, %v1416_v22  ;;  %v1414_v42 = vrot.slane %v5606_v9, 4 }
 0x131   : > { %v7903_v45 = vunpack.i.h.bf16 %v5974_v24  ;;  %v7904_v38 = vunpack.i.l.bf16 %v5974_v24  ;;  %8045 = vst [vmem:[#allocation38_spill] sm:$0xff] %v6008_v36  ;;  %v8060_v32 = vunpack.i.l.bf16 %v5974_v24 }
 0x132   : > { %v1346_v5 = vpop.permute.xlu1 %1345 }
 0x133   : > { %v1281_v6 = vsel %vm1270_vm13, %v7904_v38, %v7903_v45  ;;  %v5998_v28 = vsel %vm1355_vm11, %v1344_v61, %v1346_v5  ;;  %v6029_v22 = vsel %vm1355_vm11, %v1346_v5, %v5876_v50 }
 0x134   : > { %8044 = vst [vmem:[#allocation37_spill] sm:$0xff] %v5998_v28  ;;  %v6000_v17 = vpop.permute.xlu0 %4929  ;;  %2522 = vrot.lane.b32.xlu0 %v5987_v11, %s5371_s16  ;;  %2524 = vrot.lane.b32.xlu1 %v5998_v28, %s5371_s16  ;;  %v6013_v15 = vsel %vm1630_vm12, %v5998_v28, %v5783_v35  ;;  %v6017_v61 = vsel %vm1630_vm12, %v5606_v9, %v1281_v6  ;;  %8048 = vst [vmem:[#allocation41_spill] sm:$0xff] %v6029_v22 }
 0x135   : > { %8046 = vst [vmem:[#allocation39_spill] sm:$0xff] %v6013_v15  ;;  %v6025_v18 = vpack.i.bf16 %v6013_v15, %v6008_v36  ;;  %v7924_v15 = vunpack.i.l.bf16 %v6000_v17 }
 0x136   : > { %v6021_v38 = vpop.permute.xlu1 %4904 }
 0x137   : > { %8047 = vst [vmem:[#allocation40_spill] sm:$0xff] %v6025_v18  ;;  %v4907_v35 = vunpack.i.h.bf16 %v6021_v38  ;;  %v7921_v6 = vunpack.i.l.bf16 %v6021_v38 }
 0x138   : > { %v6031_v11 = vpop.permute.xlu0 %4934  ;;  %2526 = vrot.lane.b32.xlu0 %v6029_v22, %s5371_s16  ;;  %2528 = vrot.lane.b32.xlu1 %v5889_v10, %s5371_s16 }
 0x139   : > { %v7923_v45 = vunpack.i.h.bf16 %v6031_v11  ;;  %v1275_v50 = vsel %vm1270_vm13, %v7921_v6, %v4907_v35  ;;  %v4936_v37 = vunpack.i.l.bf16 %v6031_v11 }
 0x13a   : > { %v4915_v36 = vpop.permute.xlu1 %4914 }
 0x13b   : > { %v1285_v5 = vsel %vm1270_vm13, %v7924_v15, %v7923_v45  ;;  %v6090_v15 = vsel %vm1630_vm12, %v5969_v4, %v1410_v2  ;;  %v4916_v13 = vunpack.i.l.bf16 %v4915_v36  ;;  %v8051_v2 = vunpack.i.l.bf16 %v5872_v20 }
 0x13c   : > { %v6041_v28 = vpop.permute.xlu0 %4954  ;;  %2530 = vrot.lane.b32.xlu0 %v5892_v63, %s5371_s16  ;;  %2532 = vrot.lane.b32.xlu1 %v5922_v29, %s5371_s16  ;;  %v6062_v63 = vsel %vm1355_vm11, %v5914_v60, %v5880_v34  ;;  %v4882_v29 = vunpack.i.h.bf16 %v5872_v20  ;;  %v6076_v60 = vsel %vm1630_vm12, %v5564_v55, %v1275_v50  ;;  %v6080_v6 = vsel %vm1630_vm12, %v5661_v53, %v1285_v5 }
 0x13d   : > { %8049 = vst [vmem:[#allocation42_spill] sm:$0xff] %v6062_v63  ;;  %v4917_v50 = vunpack.i.h.bf16 %v4915_v36  ;;  %v8052_v36 = vunpack.i.l.bf16 %v5874_v47  ;;  %v8054_v5 = vunpack.i.l.bf16 %v5878_v16 }
 0x13e   : > { %v6055_v10 = vpop.permute.xlu1 %4924  ;;  %v6106_v43 = vsel %vm1270_vm13, %v8051_v2, %v4882_v29 }
 0x13f   : > { %v6111_v4 = vsel %vm1270_vm13, %v8052_v36, %v4892_v51  ;;  %v8058_v36 = vunpack.i.l.bf16 %v5941_v30  ;;  %v1279_v33 = vsel %vm1270_vm13, %v4916_v13, %v4917_v50 }
 0x140   : > { %v6068_v45 = vpop.permute.xlu0 %4964  ;;  %2534 = vrot.lane.b32.xlu0 %v6062_v63, %s5371_s16  ;;  %v1418_v63 = vrot.slane %v5661_v53, 4  ;;  %v8050_v53 = vunpack.i.l.bf16 %v5870_v39 }
 0x141   : > { %v1276_v20 = vsel %vm1270_vm13, %v4907_v35, %v8058_v36  ;;  %v4927_v35 = vunpack.i.h.bf16 %v6055_v10 }
 0x142   : > { %v6084_v34 = vpop.permute.xlu1 %4939  ;;  %v1478_v9 = vsel %vm1270_vm13, %v4882_v29, %v8050_v53  ;;  %v8056_v53 = vunpack.i.l.bf16 %v5882_v58 }
 0x143   : > { %v4941_v29 = vunpack.i.l.bf16 %v6084_v34 }
 0x144   : > { %v6092_v0 = vpop.permute.xlu0 %4969  ;;  %5029 = vrot.lane.b32.xlu0 %v5960_v19, %s5371_s16  ;;  %v8053_v19 = vunpack.i.h.bf16 %v5878_v16  ;;  %v6125_v59 = vsel %vm1270_vm13, %v8056_v53, %v8055_v25  ;;  %v1280_v25 = vsel %vm1270_vm13, %v4917_v50, %v8060_v32  ;;  %v8061_v53 = vunpack.i.h.bf16 %v5941_v30 }
 0x145   : > { %8057 = vst [vmem:[#allocation43_spill] sm:$0xff] %v6125_v59  ;;  %v4926_v50 = vunpack.i.l.bf16 %v6055_v10  ;;  %v6180_v10 = vsel %vm1630_vm12, %v5581_v62, %v1279_v33  ;;  %v6187_v32 = vsel %vm1630_vm12, %v5601_v7, %v1280_v25  ;;  %v8071_v62 = vunpack.i.l.bf16 %v6041_v28 }
 0x146   : > { %v6118_v40 = vsel %vm1270_vm13, %v8054_v5, %v8053_v19  ;;  %v6128_v2 = vpop.permute.xlu1 %4944  ;;  %v6137_v5 = vsel %vm1630_vm12, %v5933_v48, %v1414_v42  ;;  %v1278_v59 = vsel %vm1270_vm13, %v8061_v53, %v4916_v13  ;;  %v6154_v42 = vsel %vm1630_vm12, %v5972_v27, %v5743_v31  ;;  %8065 = vst [vmem:[#allocation48_spill] sm:$0xff] %v6180_v10 }
 0x147   : > { %v7944_v19 = vunpack.i.h.bf16 %v6128_v2  ;;  %8059 = vst [vmem:[#allocation44_spill] sm:$0xff] %v6137_v5  ;;  %8062 = vst [vmem:[#allocation45_spill] sm:$0xff] %v6154_v42  ;;  %v6172_v31 = vsel %vm1630_vm12, %v5531_v41, %v1276_v20  ;;  %v6176_v30 = vsel %vm1630_vm12, %v5550_v49, %v1278_v59  ;;  %v8068_v41 = vunpack.i.l.bf16 %v6000_v17 }
 0x148   : > { %v6147_v36 = vpop.permute.xlu0 %4979  ;;  %5044 = vrot.lane.b32.xlu0 %v5939_v44, %s5371_s16  ;;  %v1647_v44 = vsel %vm1630_vm12, %v5679_v14, %v4941_v29  ;;  %8064 = vst [vmem:[#allocation47_spill] sm:$0xff] %v6172_v31  ;;  %8067 = vst [vmem:[#allocation50_spill] sm:$0xff] %v6187_v32  ;;  %v6197_v49 = vsel %vm1630_vm12, %v6029_v22, %v1418_v63  ;;  %v8070_v59 = vunpack.i.h.bf16 %v6041_v28  ;;  %v4966_v7 = vunpack.i.l.bf16 %v6068_v45 }
 0x149   : > { %v1607_v13 = vsel %vm1270_vm13, %v4941_v29, %v7944_v19  ;;  %v1284_v20 = vsel %vm1270_vm13, %v4927_v35, %v8068_v41  ;;  %8069 = vst [vmem:[#allocation51_spill] sm:$0xff] %v6197_v49  ;;  %v1283_v41 = vsel %vm1270_vm13, %v4926_v50, %v4927_v35 }
 0x14a   : > { %v6162_v53 = vpop.permute.xlu1 %4949  ;;  %v6168_v48 = vsel %vm1630_vm12, %v5679_v14, %v1607_v13  ;;  %v1483_v14 = vsel %vm1270_vm13, %v4892_v51, %v4936_v37  ;;  %v1564_v33 = vsel %vm1355_vm11, %v8071_v62, %v8070_v59  ;;  %v6207_v51 = vpack.i.bf16 %v5982_v54, %v6172_v31 }
 0x14b   : > { %8063 = vst [vmem:[#allocation46_spill] sm:$0xff] %v6168_v48  ;;  %v6183_v19 = vpack.i.bf16 %v1647_v44, %v6168_v48  ;;  %v8072_v44 = vunpack.i.h.bf16 %v5974_v24  ;;  %v6217_v48 = vpack.i.bf16 %v6180_v10, %v6176_v30  ;;  %v6221_v59 = vpack.i.bf16 %v6187_v32, %v6137_v5 }
 0x14c   : > { %v6193_v13 = vpop.permute.xlu0 %4984  ;;  %v4967_v62 = vunpack.i.h.bf16 %v6068_v45  ;;  %v6231_v35 = vsel %vm1630_vm12, %v5658_v52, %v1284_v20  ;;  %v6241_v32 = vsel %vm1630_vm12, %v1478_v9, %v1564_v33  ;;  %v4972_v52 = vunpack.i.h.bf16 %v6092_v0 }
 0x14d   : > { %8066 = vst [vmem:[#allocation49_spill] sm:$0xff] %v6183_v19  ;;  %v1282_v25 = vsel %vm1270_vm13, %v8072_v44, %v4926_v50  ;;  %v8073_v24 = vunpack.i.l.bf16 %v6193_v13  ;;  %8074 = vst [vmem:[#allocation52_spill] sm:$0xff] %v6231_v35  ;;  %v4942_v50 = vunpack.i.h.bf16 %v6084_v34  ;;  %v4971_v34 = vunpack.i.l.bf16 %v6092_v0 }
 0x14e   : > { %v6213_v63 = vpop.permute.xlu1 %4959  ;;  %v6257_v33 = vsel %vm1630_vm12, %v5635_v23, %v1283_v41  ;;  %v4946_v45 = vunpack.i.l.bf16 %v6128_v2  ;;  %v6279_v0 = vsel %vm1630_vm12, %v5632_v21, %v1282_v25 }
 0x14f   : > { %v1359_v44 = vsel %vm1355_vm11, %v8073_v24, %v5884_v57  ;;  %v8075_v57 = vunpack.i.h.bf16 %v6031_v11  ;;  %v4962_v31 = vunpack.i.h.bf16 %v6213_v63  ;;  %v1569_v11 = vsel %vm1355_vm11, %v4966_v7, %v4967_v62 }
 0x150   : > { %v6234_v22 = vpop.permute.xlu0 %4989  ;;  %v6238_v27 = vsel %vm1630_vm12, %v1359_v44, %v5766_v12  ;;  %v8077_v12 = vunpack.i.l.bf16 %v5874_v47  ;;  %v1570_v47 = vsel %vm1355_vm11, %v4967_v62, %v4971_v34  ;;  %v6297_v25 = vsel %vm1630_vm12, %v1483_v14, %v1569_v11 }
 0x151   : > { %v1286_v24 = vsel %vm1270_vm13, %v8075_v57, %v4941_v29  ;;  %v7957_v20 = vunpack.i.h.bf16 %v6234_v22  ;;  %v5048_v9 = vpack.i.bf16 %v6090_v15, %v6238_v27  ;;  %v6262_v29 = vpack.i.bf16 %v6231_v35, %v6197_v49  ;;  %8082 = vst [vmem:[#allocation56_spill] sm:$0xff] %v6297_v25 }
 0x152   : > { %v4975_v44 = vpop.permute.xlu1 %4974  ;;  %v1484_v57 = vsel %vm1270_vm13, %v4936_v37, %v4942_v50  ;;  %v8079_v37 = vunpack.i.l.bf16 %v5878_v16  ;;  %v1571_v35 = vsel %vm1355_vm11, %v4971_v34, %v4972_v52  ;;  %v4982_v14 = vunpack.i.h.bf16 %v6147_v36 }
 0x153   : > { %8076 = vst [vmem:[#allocation53_spill] sm:$0xff] %v6262_v29  ;;  %v1481_v23 = vsel %vm1270_vm13, %v7957_v20, %v8077_v12  ;;  %5049 = vrot.lane.b32.xlu0 %v5048_v9, %s5372_s19  ;;  %5024 = vrot.lane.b32.xlu1 %v5048_v9, %s5371_s16  ;;  %v6288_v12 = vsel %vm1630_vm12, %v5672_v3, %v1286_v24  ;;  %v8080_v20 = vunpack.i.l.bf16 %v6213_v63  ;;  %v4977_v3 = vunpack.i.h.bf16 %v4975_v44 }
 0x154   : > { %v6275_v41 = vpop.permute.xlu0 %1622  ;;  %v1485_v5 = vsel %vm1270_vm13, %v4942_v50, %v8079_v37  ;;  %v1568_v9 = vsel %vm1355_vm11, %v4962_v31, %v4966_v7  ;;  %v7962_v50 = vunpack.i.h.bf16 %v6162_v53  ;;  %v4976_v24 = vunpack.i.l.bf16 %v4975_v44 }
 0x155   : > { %8078 = vst [vmem:[#allocation54_spill] sm:$0xff] %v6275_v41  ;;  %v1567_v41 = vsel %vm1355_vm11, %v8080_v20, %v4962_v31  ;;  %v8083_v7 = vunpack.i.h.bf16 %v5878_v16  ;;  %v8084_v31 = vunpack.i.l.bf16 %v5882_v58  ;;  %v4981_v11 = vunpack.i.l.bf16 %v6147_v36 }
 0x156   : > { %v6294_v21 = vpop.permute.xlu1 %1620  ;;  %v6303_v34 = vsel %vm1630_vm12, %v1481_v23, %v1567_v41  ;;  %v6322_v44 = vsel %vm1630_vm12, %v6111_v4, %v1568_v9  ;;  %v6338_v62 = vpack.i.bf16 %v6154_v42, %v6297_v25  ;;  %v8086_v4 = vunpack.i.l.bf16 %v6041_v28 }
 0x157   : > { %8081 = vst [vmem:[#allocation55_spill] sm:$0xff] %v6294_v21  ;;  %v1487_v37 = vsel %vm1270_vm13, %v8083_v7, %v4946_v45  ;;  %v1488_v20 = vsel %vm1270_vm13, %v4946_v45, %v8084_v31  ;;  %5034 = vrot.lane.b32.xlu1 %v6025_v18, %s5371_s16  ;;  %5064 = vrot.lane.b32.xlu0 %v6217_v48, %s5371_s16  ;;  %v8087_v41 = vunpack.i.l.bf16 %v6021_v38 }
 0x158   : > { %v6317_v23 = vpop.permute.xlu0 %5009  ;;  %v6325_v45 = vsel %vm1630_vm12, %v1485_v5, %v1571_v35  ;;  %v6330_v7 = vpack.i.bf16 %v6279_v0, %v6017_v61  ;;  %v6334_v31 = vpack.i.bf16 %v6322_v44, %v6303_v34  ;;  %v1563_v5 = vsel %vm1355_vm11, %v7962_v50, %v8086_v4 }
 0x159   : > { %v5012_v16 = vunpack.i.h.bf16 %v6317_v23  ;;  %v1574_v35 = vsel %vm1355_vm11, %v4977_v3, %v4981_v11  ;;  %v1572_v9 = vsel %vm1355_vm11, %v4972_v52, %v4976_v24  ;;  %v1573_v49 = vsel %vm1355_vm11, %v4976_v24, %v4977_v3 }
 0x15a   : > { %v4995_v36 = vpop.permute.xlu1 %4994  ;;  %8085 = vst [vmem:[#allocation57_spill] sm:$0xff] %v6330_v7  ;;  %v1408_v50 = vrot.slane %v5564_v55, 4  ;;  %v6369_v55 = vsel %vm1630_vm12, %v6106_v43, %v1563_v5  ;;  %v6387_v43 = vsel %vm1630_vm12, %v1487_v37, %v1573_v49  ;;  %v4932_v37 = vunpack.i.h.bf16 %v6000_v17 }
 0x15b   : > { %v1274_v18 = vsel %vm1270_vm13, %v5012_v16, %v8087_v41  ;;  %5039 = vrot.lane.b32.xlu1 %v5912_v26, %s5371_s16  ;;  %5079 = vrot.lane.b32.xlu0 %v6262_v29, %s5371_s16  ;;  %v4997_v21 = vunpack.i.h.bf16 %v4995_v36  ;;  %v1575_v41 = vsel %vm1355_vm11, %v4981_v11, %v4982_v14  ;;  %v4996_v3 = vunpack.i.l.bf16 %v4995_v36 }
 0x15c   : > { %v5015_v25 = vpop.permute.xlu0 %5014  ;;  %v1634_v4 = vsel %vm1630_vm12, %v5762_v56, %v1274_v18  ;;  %v8088_v29 = vunpack.i.l.bf16 %v6317_v23  ;;  %v6372_v18 = vsel %vm1630_vm12, %v1484_v57, %v1570_v47  ;;  %v4887_v11 = vunpack.i.h.bf16 %v5870_v39 }
 0x15d   : > { %v5017_v52 = vunpack.i.h.bf16 %v5015_v25  ;;  %v5016_v42 = vunpack.i.l.bf16 %v5015_v25  ;;  %v5053_v38 = vpack.i.bf16 %v6076_v60, %v1634_v4  ;;  %v4642_v26 = vpack.c.bf16 %v6238_v27, %v1634_v4 }
 0x15e   : > { %v6360_v24 = vpop.permute.xlu1 %4999  ;;  %v1273_v10 = vsel %vm1270_vm13, %v8088_v29, %v5012_v16  ;;  %v6375_v25 = vsel %vm1630_vm12, %v1488_v20, %v1574_v35  ;;  %v6384_v29 = vsel %vm1630_vm12, %v6118_v40, %v1572_v9  ;;  %v8089_v57 = vunpack.i.h.bf16 %v6128_v2 }
 0x15f   : > { %v5002_v56 = vunpack.i.h.bf16 %v6360_v24  ;;  %v1609_v27 = vsel %vm1270_vm13, %v4997_v21, %v5016_v42  ;;  %5089 = vrot.lane.b32.xlu0 %v6183_v19, %s5371_s16  ;;  %5054 = vrot.lane.b32.xlu1 %v5053_v38, %s5371_s16  ;;  %v1610_v20 = vsel %vm1270_vm13, %v5016_v42, %v5017_v52  ;;  %v8090_v16 = vunpack.i.l.bf16 %v6193_v13 }
 0x160   : > { %v1608_v47 = vsel %vm1270_vm13, %v8089_v57, %v4997_v21  ;;  %4643 = vmatprep.subr.bf16.mxu1 %v4642_v26  ;;  %v6398_v5 = vsel %vm1630_vm12, %v5652_v46, %v1273_v10  ;;  %v8091_v35 = vunpack.i.h.bf16 %v5882_v58  ;;  %v6408_v42 = vpack.i.bf16 %v6288_v12, %v6080_v6 }
 0x161   : > { %v1358_v36 = vsel %vm1355_vm11, %v5002_v56, %v8090_v16  ;;  %v6412_v26 = vsel %vm1630_vm12, %v5701_v1, %v1609_v27  ;;  %v8094_v1 = vld [vmem:[#allocation15_spill] sm:$0xff]  ;;  %v4951_v17 = vunpack.i.l.bf16 %v6162_v53 }
 0x162   : > { %v1560_v40 = vpop.permute.xlu1 %1559  ;;  %v1490_v49 = vsel %vm1270_vm13, %v8091_v35, %v4996_v3  ;;  %v6404_v2 = vsel %vm1630_vm12, %v1358_v36, %v1408_v50  ;;  %v8092_v50 = vld [vmem:[#allocation12_spill] sm:$0xff]  ;;  %v8096_v27 = vld [vmem:[#allocation11_spill] sm:$0xff]  ;;  %v6453_v36 = vpack.i.bf16 %v6325_v45, %v6372_v18  ;;  %v4648_v35 = vpack.c.bf16 %v5982_v54, %v6369_v55 }
 0x163   : > { %v1576_v21 = vsel %vm1355_vm11, %v4982_v14, %v1560_v40  ;;  %v1681_v10 = vsel %vm1630_vm12, %v4996_v3, %v1560_v40  ;;  %v4644_v58 = vpack.c.bf16 %v6404_v2, %v6398_v5  ;;  %v8093_v9 = vsel %vm5705_vm1, 0.0, %v8092_v50  ;;  %5094 = vrot.lane.b32.xlu0 %v5053_v38, %s5372_s19  ;;  %5059 = vrot.lane.b32.xlu1 %v6207_v51, %s5371_s16  ;;  %v8095_v3 = vld [vmem:[#allocation43_spill] sm:$0xff] }
 0x164   : > { %v1686_v4 = vsel %vm1630_vm12, %v8093_v9, %v5017_v52  ;;  %v6425_v57 = vsel %vm1630_vm12, %v1490_v49, %v1576_v21  ;;  %v6432_v14 = vsel %vm1630_vm12, %v8094_v1, %v1610_v20  ;;  %v6440_v52 = vsel %vm1630_vm12, %v8095_v3, %v1575_v41 }
 0x165   : > { %v6436_v8 = vpack.i.bf16 %v1681_v10, %v6425_v57  ;;  %4645 = vmatpush1.bf16.msra.mxu1 %v4644_v58  ;;  %v6444_v38 = vsel %vm1630_vm12, %v8096_v27, %v1608_v47  ;;  %v8097_v20 = vpack.c.bf16 %v6176_v30, %v6241_v32  ;;  %v6457_v40 = vpack.i.bf16 %v6387_v43, %v6384_v29 }
 0x166   : > { %v6446_v16 = vpop.permute.xlu1 %1624  ;;  %v6461_v41 = vpack.i.bf16 %v6440_v52, %v6375_v25  ;;  %v6465_v47 = vpack.i.bf16 %v6412_v26, %v6444_v38  ;;  %v6470_v49 = vpack.i.bf16 %v1686_v4, %v6432_v14  ;;  %v5001_v21 = vunpack.i.l.bf16 %v6360_v24  ;;  %v8100_v24 = vld [vmem:[#allocation17_spill] sm:$0xff] }
 0x167   : > { %4647 = vmatprep.subr.bf16.mxu1 %v8097_v20  ;;  %v1406_v10 = vrot.slane %v5652_v46, 4  ;;  %5099 = vrot.lane.b32.xlu0 %v6207_v51, %s5372_s19  ;;  %v8098_v58 = vunpack.i.l.bf16 %v5870_v39  ;;  %v8099_v9 = vunpack.i.h.bf16 %v6162_v53  ;;  %v4991_v4 = vunpack.i.l.bf16 %v6234_v22  ;;  %v8102_v20 = vld [vmem:[#allocation29_spill] sm:$0xff]  ;;  %v8103_v39 = vld [vmem:[#allocation32_spill] sm:$0xff] }
 0x168   : > { %5069 = vrot.lane.b32.xlu1 %v6221_v59, %s5371_s16  ;;  %v8101_v46 = vunpack.i.l.bf16 %v8100_v24  ;;  %v4987_v51 = vunpack.i.h.bf16 %v6193_v13  ;;  %v1357_v13 = vsel %vm1355_vm11, %v5001_v21, %v5002_v56  ;;  %v8107_v56 = vld [vmem:[#allocation16_spill] sm:$0xff]  ;;  %vm3418_vm1 = vcmask 1031168  }
 0x169   : > { %v1479_v50 = vsel %vm1270_vm13, %v8098_v58, %v4887_v11  ;;  %v1562_v1 = vsel %vm1355_vm11, %v4951_v17, %v8099_v9  ;;  %4649 = vmatpush1.bf16.msra.mxu1 %v4648_v35  ;;  %v4658_v58 = vpack.c.bf16 %v8103_v39, %v6176_v30  ;;  %v6496_v35 = vld [vmem:[%s7873_s3] sm:$0xf]  ;;  %v8104_v9 = vunpack.i.h.bf16 %v6234_v22  ;;  %v8105_v39 = vld [vmem:[#allocation23_spill] sm:$0xff] }
 0x16a   : > { %v1476_v3 = vsel %vm1270_vm13, %v4932_v37, %v8101_v46  ;;  %v5005_v27 = vpop.permute.xlu1 %5004  ;;  %4558 = vmatprep.subr.msk.mxu1 %vm1630_vm12, %v8102_v20  ;;  %v1356_v46 = vsel %vm1355_vm11, %v4987_v51, %v5001_v21  ;;  %v4662_v20 = vpack.c.bf16 %v6279_v0, %v6322_v44  ;;  %v8106_v22 = vunpack.i.l.bf16 %v6317_v23  ;;  %v8108_v21 = vld [vmem:[#allocation10_spill] sm:$0xff] }
 0x16b   : > { %v5007_v53 = vunpack.i.h.bf16 %v5005_v27  ;;  %v5006_v19 = vunpack.i.l.bf16 %v5005_v27  ;;  %v1480_v24 = vsel %vm1270_vm13, %v4887_v11, %v8104_v9  ;;  %v1666_v30 = vsel %vm1630_vm12, %v1476_v3, %v1562_v1  ;;  %v8109_v3 = vld [vmem:[#allocation31_spill] sm:$0xff]  ;;  %v8111_v51 = vld [vmem:[#allocation14_spill] sm:$0xff] }
 0x16c   : > { %5074 = vrot.lane.b32.xlu1 %v6330_v7, %s5371_s16  ;;  %v1475_v27 = vsel %vm1270_vm13, %v4991_v4, %v4932_v37  ;;  %v4664_v44 = vpack.c.bf16 %v6017_v61, %v6303_v34 }
 0x16d   : > { %4559 = vmatpush1.msk.msra.mxu1 %vm1630_vm12, %v8105_v39  ;;  %v1272_v11 = vsel %vm1270_vm13, %v5007_v53, %v8106_v22  ;;  %v1271_v9 = vsel %vm1270_vm13, %v5006_v19, %v5007_v53  ;;  %v8110_v19 = vpack.c.bf16 %v8109_v3, %v5982_v54  ;;  %v1648_v53 = vsel %vm1630_vm12, %v1356_v46, %v1406_v10 }
 0x16e   : > { %v5020_v7 = vpop.permute.xlu1 %5019  ;;  %4659 = vmatprep.subr.bf16.mxu1 %v4658_v58  ;;  %4560 = vmatmul.mubr.msk.f32.vlgmr.msra.gmra.mrb[0].mxu1 %vm1690_vm14, %v6496_v35  ;;  %v6519_v37 = vsel %vm1630_vm12, %v8107_v56, %v1272_v11  ;;  %v1631_v1 = vsel %vm1630_vm12, %v8108_v21, %v1271_v9  ;;  %v6530_v58 = vsel %vm1630_vm12, %v1357_v13, %v8111_v51  ;;  %v8112_v22 = vmov 0.0  }
 0x16f   : > { %v5022_v23 = vunpack.i.h.bf16 %v5020_v7  ;;  %v5021_v4 = vunpack.i.l.bf16 %v5020_v7  ;;  %4661 = vmatpush1.bf16.msra.mxu1 %v8110_v19  ;;  %2003 = vmatprep.mubr.f32.mxu1 %v8112_v22  ;;  %v4634_v34 = vpack.c.bf16 %v6530_v58, %v6519_v37  ;;  %v6538_v7 = vpack.i.bf16 %v1648_v53, %v1631_v1 }
 0x170   : > { %5084 = vrot.lane.b32.xlu1 %v6408_v42, %s5371_s16  ;;  %4663 = vmatprep.subr.bf16.mxu1 %v4662_v20  ;;  %v8113_v11 = vunpack.i.h.bf16 %v6041_v28  ;;  %v8114_v9 = vunpack.i.l.bf16 %v6213_v63  ;;  %v4636_v46 = vpack.c.bf16 %v1648_v53, %v1631_v1  ;;  %v8115_v20 = vld [vmem:[#allocation47_spill] sm:$0xff]  ;;  %v8119_v1 = vld [vmem:[#allocation24_spill] sm:$0xff] }
 0x171   : > { %v1561_v54 = vsel %vm1355_vm11, %v5022_v23, %v4951_v17  ;;  %4635 = vmatprep.subr.bf16.mxu0 %v4634_v34  ;;  %v4638_v21 = vpack.c.bf16 %v8115_v20, %v1666_v30  ;;  %v8116_v17 = vld [vmem:[#allocation37_spill] sm:$0xff]  ;;  %v8125_v34 = vpack.c.bf16 %v6090_v15, %v6076_v60  ;;  %v8128_v15 = vld [vmem:[#allocation27_spill] sm:$0xff] }
 0x172   : > { %v1565_v13 = vsel %vm1355_vm11, %v8113_v11, %v5021_v4  ;;  %v1566_v10 = vsel %vm1355_vm11, %v5021_v4, %v8114_v9  ;;  %v6551_v19 = vsel %vm1630_vm12, %v1475_v27, %v1561_v54  ;;  %4637 = vmatpush1.bf16.msra.mxu0 %v4636_v46  ;;  %v8118_v27 = vld [vmem:[#allocation39_spill] sm:$0xff]  ;;  %v8123_v4 = vld [vmem:[#allocation34_spill] sm:$0xff]  ;;  %v8127_v11 = vld [vmem:[#allocation48_spill] sm:$0xff] }
 0x173   : > { %v1670_v56 = vsel %vm1630_vm12, %v1480_v24, %v1566_v10  ;;  %v1669_v3 = vsel %vm1630_vm12, %v1479_v50, %v1565_v13  ;;  %4665 = vmatpush1.bf16.msra.mxu1 %v4664_v44  ;;  %v4640_v63 = vpack.c.bf16 %v6076_v60, %v6551_v19  ;;  %4639 = vmatprep.subr.bf16.mxu0 %v4638_v21  ;;  %v8121_v44 = vld [vmem:[#allocation38_spill] sm:$0xff]  ;;  %v8130_v9 = vld [vmem:[#allocation20_spill] sm:$0xff] }
 0x174   : > { %v6554_v28 = vpack.i.bf16 %v1669_v3, %v6241_v32  ;;  %5104 = vrot.lane.b32.xlu1 %v6217_v48, %s5372_s19  ;;  %4564 = vmatprep.subr.msk.mxu1 %vm1630_vm12, %v8116_v17  ;;  %v6565_v50 = vpack.i.bf16 %v1670_v56, %v6257_v33  ;;  %v6568_v24 = vpack.i.bf16 %v6369_v55, %v1666_v30  ;;  %v8117_v32 = vld [vmem:[#allocation36_spill] sm:$0xff]  ;;  %v8120_v30 = vld [vmem:[#allocation13_spill] sm:$0xff]  ;;  %v8126_v54 = vld [vmem:[#allocation26_spill] sm:$0xff] }
 0x175   : > { %v4674_v48 = vpack.c.bf16 %v8118_v27, %v6279_v0  ;;  %v4678_v55 = vpack.c.bf16 %v6288_v12, %v6384_v29  ;;  %v6587_v0 = vsel %vm1630_vm12, %v8119_v1, %v8120_v30  ;;  %v8122_v23 = vpack.c.bf16 %v8121_v44, %v6017_v61  ;;  %v8124_v29 = vld [vmem:[#allocation50_spill] sm:$0xff]  ;;  %v8134_v21 = vld [vmem:[#allocation28_spill] sm:$0xff] }
 0x176   : > { %5114 = vrot.lane.b32.xlu0 %v6554_v28, %s5371_s16  ;;  %4641 = vmatpush1.bf16.msra.mxu0 %v4640_v63  ;;  %v4650_v51 = vpack.c.bf16 %v6587_v0, %v8115_v20  ;;  %v4654_v53 = vpack.c.bf16 %v8124_v29, %v1670_v56  ;;  %v4680_v61 = vpack.c.bf16 %v6080_v6, %v6325_v45  ;;  %v8129_v45 = vld [vmem:[#allocation35_spill] sm:$0xff]  ;;  %v8131_v46 = vld [vmem:[#allocation22_spill] sm:$0xff] }
 0x177   : > { %4565 = vmatpush1.msk.msra.mxu1 %vm1630_vm12, %v8117_v32  ;;  %4555 = vmatprep.subr.msk.mxu0 %vm1630_vm12, %v8119_v1  ;;  %v4656_v13 = vpack.c.bf16 %v8127_v11, %v1669_v3  ;;  %v4690_v60 = vpack.c.bf16 %v8128_v15, %v6288_v12  ;;  %v4694_v10 = vpack.c.bf16 %v6432_v14, %v6425_v57  ;;  %v8133_v12 = vld [vmem:[#allocation45_spill] sm:$0xff]  ;;  %v8135_v3 = vld [vmem:[#allocation54_spill] sm:$0xff]  ;;  %v8136_v63 = vld [vmem:[#allocation55_spill] sm:$0xff] }
 0x178   : > { %5109 = vrot.lane.b32.xlu1 %v6568_v24, %s5371_s16  ;;  %4675 = vmatprep.subr.bf16.mxu1 %v4674_v48  ;;  %v8132_v56 = vpack.c.bf16 %v8131_v46, %v6080_v6  ;;  %v4666_v20 = vpack.c.bf16 %v8133_v12, %v8124_v29  ;;  %v6639_v27 = vsel %vm1355_vm11, %v8136_v63, %v8135_v3  ;;  %v8137_v57 = vld [vmem:[#allocation52_spill] sm:$0xff]  ;;  %v8140_v30 = vld [vmem:[#allocation18_spill] sm:$0xff]  ;;  %v8143_v29 = vld [vmem:[#allocation21_spill] sm:$0xff] }
 0x179   : > { %4566 = vmatmul.mubr.msk.f32.vlgmr.msra.gmra.mrb[2].mxu1 %vm1690_vm14, %v6496_v35  ;;  %v4696_v6 = vpack.c.bf16 %v6412_v26, %v6440_v52  ;;  %v4670_v14 = vpack.c.bf16 %v8137_v57, %v6372_v18  ;;  %v8138_v48 = vld [vmem:[#allocation44_spill] sm:$0xff]  ;;  %v6656_v44 = vsel %vm1355_vm11, %v8140_v30, %v8136_v63  ;;  %v6663_v18 = vsel %vm1355_vm11, %v8135_v3, %v6446_v16  ;;  %v8149_v3 = vld [vmem:[#allocation33_spill] sm:$0xff] }
 0x17a   : > { %5119 = vrot.lane.b32.xlu0 %v6565_v50, %s5371_s16  ;;  %4677 = vmatpush1.bf16.msra.mxu1 %v8122_v23  ;;  %v8141_v26 = vld [vmem:[#allocation56_spill] sm:$0xff]  ;;  %v5148_v23 = vpack.i.bf16 %v6404_v2, %v6530_v58  ;;  %v8144_v2 = vld [vmem:[#allocation41_spill] sm:$0xff]  ;;  %v4686_v58 = vpack.c.bf16 %v6444_v38, %v6375_v25  ;;  %v8148_v38 = vld [vmem:[#allocation42_spill] sm:$0xff]  ;;  %v5198_v46 = vpack.i.bf16 %v6587_v0, %v6551_v19 }
 0x17b   : > { %4556 = vmatpush1.msk.msra.mxu0 %vm1630_vm12, %v8123_v4  ;;  %4679 = vmatprep.subr.bf16.mxu1 %v4678_v55  ;;  %v8139_v55 = vpack.c.bf16 %v8138_v48, %v8127_v11  ;;  %v4672_v52 = vpack.c.bf16 %v6257_v33, %v8141_v26  ;;  %v5163_v11 = vpack.i.bf16 %v6398_v5, %v6519_v37  ;;  %v8155_v26 = vld [vmem:[#allocation40_spill] sm:$0xff] }
 0x17c   : > { %5124 = vrot.lane.b32.xlu1 %v6334_v31, %s5371_s16  ;;  %4651 = vmatprep.subr.bf16.mxu0 %v4650_v51  ;;  %v8142_v51 = vld [vmem:[#allocation19_spill] sm:$0xff] }
 0x17d   : > { %4557 = vmatmul.mubr.msk.f32.vlgmr.msra.gmra.mrb[0].mxu0 %vm1690_vm14, %v6496_v35  ;;  %2145 = vmatprep.mubr.f32.mxu1 %v8112_v22 }
 0x17e   : > { %4653 = vmatpush1.bf16.msra.mxu0 %v8125_v34  ;;  %5129 = vrot.lane.b32.xlu0 %v6338_v62, %s5371_s16 }
 0x17f   : > { %4655 = vmatprep.subr.bf16.mxu0 %v4654_v53  ;;  %4681 = vmatpush1.bf16.msra.mxu1 %v4680_v61  ;;  %v4682_v53 = vpack.c.bf16 %v8143_v29, %v8137_v57  ;;  %v8145_v61 = vld [vmem:[#allocation51_spill] sm:$0xff] }
 0x180   : > { %4570 = vmatprep.subr.msk.mxu1 %vm1630_vm12, %v8126_v54  ;;  %5139 = vrot.lane.b32.xlu1 %v6457_v40, %s5371_s16  ;;  %v8146_v34 = vpack.c.bf16 %v8145_v61, %v6257_v33 }
 0x181   : > { %1932 = vmatprep.mubr.f32.mxu0 %v8112_v22 }
 0x182   : > { %4657 = vmatpush1.bf16.msra.mxu0 %v4656_v13  ;;  %5134 = vrot.lane.b32.xlu0 %v6453_v36, %s5371_s16  ;;  %v8147_v13 = vld [vmem:[#allocation46_spill] sm:$0xff] }
 0x183   : > { %4561 = vmatprep.subr.msk.mxu0 %vm1630_vm12, %v8129_v45  ;;  %4571 = vmatpush1.msk.msra.mxu1 %vm1630_vm12, %v8130_v9  ;;  %v4688_v15 = vpack.c.bf16 %v8147_v13, %v6387_v43  ;;  %v8159_v13 = vld [vmem:[#allocation49_spill] sm:$0xff] }
 0x184   : > { %4691 = vmatprep.subr.bf16.mxu1 %v4690_v60  ;;  %4572 = vmatmul.mubr.msk.f32.vlgmr.msra.gmra.mrb[4].mxu1 %vm1690_vm14, %v6496_v35 }
 0x185   : > { %4693 = vmatpush1.bf16.msra.mxu1 %v8132_v56  ;;  %5144 = vrot.lane.b32.xlu1 %v6461_v41, %s5371_s16 }
 0x186   : > { %4562 = vmatpush1.msk.msra.mxu0 %vm1630_vm12, %v8134_v21  ;;  %4695 = vmatprep.subr.bf16.mxu1 %v4694_v10 }
 0x187   : > { %2538 = vrot.lane.b32.xlu0 %v6639_v27, %s5371_s16  ;;  %4667 = vmatprep.subr.bf16.mxu0 %v4666_v20 }
 0x188   : > { %4563 = vmatmul.mubr.msk.f32.vlgmr.msra.gmra.mrb[2].mxu0 %vm1690_vm14, %v6496_v35  ;;  %2287 = vmatprep.mubr.f32.mxu1 %v8112_v22 }
 0x189   : > { %4669 = vmatpush1.bf16.msra.mxu0 %v8139_v55  ;;  %4697 = vmatpush1.bf16.msra.mxu1 %v4696_v6  ;;  %v8153_v55 = vld [vmem:[#allocation29_spill] sm:$0xff] }
 0x18a   : > { %2536 = vrot.lane.b32.xlu1 %v6656_v44, %s5371_s16  ;;  %4671 = vmatprep.subr.bf16.mxu0 %v4670_v14 }
 0x18b   : > { %4576 = vmatprep.subr.msk.mxu1 %vm1630_vm12, %v6663_v18  ;;  %2542 = vrot.lane.b32.xlu0 %v6446_v16, %s5371_s16 }
 0x18c   : > { %2074 = vmatprep.mubr.f32.mxu0 %v8112_v22 }
 0x18d   : > { %4673 = vmatpush1.bf16.msra.mxu0 %v4672_v52  ;;  %4577 = vmatpush1.msk.msra.mxu1 %vm1630_vm12, %v6639_v27 }
 0x18e   : > { %2540 = vrot.lane.b32.xlu1 %v6663_v18, %s5371_s16  ;;  %4567 = vmatprep.subr.msk.mxu0 %vm1630_vm12, %v8142_v51 }
 0x18f   : > { %5149 = vrot.lane.b32.xlu0 %v5148_v23, %s5371_s16  ;;  %4578 = vmatmul.mubr.msk.f32.vlgmr.msra.gmra.mrb[6].mxu1 %vm1690_vm14, %v6496_v35 }
 0x190   : > { %2837 = vmatprep.mubr.f32.mxu1 %v8112_v22 }
 0x191   : > { %4568 = vmatpush1.msk.msra.mxu0 %vm1630_vm12, %v8144_v2 }
 0x192   : > { %5159 = vrot.lane.b32.xlu1 %v5148_v23, %s5372_s19  ;;  %4683 = vmatprep.subr.bf16.mxu0 %v4682_v53 }
 0x193   : > { %4569 = vmatmul.mubr.msk.f32.vlgmr.msra.gmra.mrb[4].mxu0 %vm1690_vm14, %v6496_v35  ;;  %5154 = vrot.lane.b32.xlu0 %v6436_v8, %s5371_s16 }
 0x194   : > { %4685 = vmatpush1.bf16.msra.mxu0 %v8146_v34  ;;  %2216 = vmatprep.mubr.f32.mxu0 %v8112_v22 }
 0x195   : > { %4687 = vmatprep.subr.bf16.mxu0 %v4686_v58 }
 0x196   : > { %5179 = vrot.lane.b32.xlu1 %v6465_v47, %s5371_s16 }
 0x197   : > { %5164 = vrot.lane.b32.xlu0 %v5163_v11, %s5371_s16 }
 0x198   : > { %4689 = vmatpush1.bf16.msra.mxu0 %v4688_v15 }
 0x199   : > { %4573 = vmatprep.subr.msk.mxu0 %vm1630_vm12, %v6656_v44 }
 0x19a   : > { %5189 = vrot.lane.b32.xlu1 %v5163_v11, %s5372_s19  ;;  %v2513_v33 = vpop.permute.xlu0 %2512  ;;  %v2515_v25 = vpop.permute.xlu1 %2514 }
 0x19b   : > { %5169 = vrot.lane.b32.xlu0 %v6538_v7, %s5371_s16  ;;  %v6712_v5 = vsel %vm2544_vm15, %v2513_v33, %v2515_v25 }
 0x19c   : > { %4574 = vmatpush1.msk.msra.mxu0 %vm1630_vm12, %v8148_v38 }
 0x19d   : > { %4575 = vmatmul.mubr.msk.f32.vlgmr.msra.gmra.mrb[6].mxu0 %vm1690_vm14, %v6496_v35 }
 0x19e   : > { %5194 = vrot.lane.b32.xlu1 %v6538_v7, %s5372_s19  ;;  %v2517_v43 = vpop.permute.xlu0 %2516  ;;  %v2519_v37 = vpop.permute.xlu1 %2518  ;;  %2766 = vmatprep.mubr.f32.mxu0 %v8112_v22 }
 0x19f   : > { %5174 = vrot.lane.b32.xlu0 %v6568_v24, %s5372_s19  ;;  %v6724_v60 = vsel %vm2544_vm15, %v2515_v25, %v2517_v43  ;;  %v6727_v10 = vsel %vm2544_vm15, %v2517_v43, %v2519_v37  ;;  %v8160_v43 = vld [vmem:[#allocation25_spill] sm:$0xff] }
 0x1a2   : > { %5199 = vrot.lane.b32.xlu1 %v5198_v46, %s5371_s16  ;;  %v2511_v35 = vpop.permute.xlu0 %2510  ;;  %v2521_v7 = vpop.permute.xlu1 %2520 }
 0x1a3   : > { %5184 = vrot.lane.b32.xlu0 %v6470_v49, %s5371_s16  ;;  %v6735_v56 = vsel %vm2544_vm15, %v2511_v35, %v2513_v33  ;;  %v6738_v24 = vsel %vm2544_vm15, %v2519_v37, %v2521_v7 }
 0x1a6   : > { %5204 = vrot.lane.b32.xlu1 %v6554_v28, %s5372_s19  ;;  %v2523_v12 = vpop.permute.xlu0 %2522  ;;  %v2525_v20 = vpop.permute.xlu1 %2524 }
 0x1a7   : > { %5214 = vrot.lane.b32.xlu0 %v6221_v59, %s5372_s19  ;;  %v6745_v19 = vsel %vm2544_vm15, %v2521_v7, %v2523_v12  ;;  %v6748_v0 = vsel %vm2544_vm15, %v2523_v12, %v2525_v20  ;;  %v8161_v12 = vld [vmem:[#allocation30_spill] sm:$0xff] }
 0x1aa   : > { %5209 = vrot.lane.b32.xlu1 %v8149_v3, %s5372_s19  ;;  %v2527_v63 = vpop.permute.xlu0 %2526  ;;  %v2529_v6 = vpop.permute.xlu1 %2528 }
 0x1ab   : > { %3388 = vrot.lane.b32.xlu0 %v8105_v39, %s5372_s19  ;;  %v6755_v28 = vsel %vm2544_vm15, %v2525_v20, %v2527_v63  ;;  %v6758_v57 = vsel %vm2544_vm15, %v2527_v63, %v2529_v6 }
 0x1ac   : > { %8150 = vst [vmem:[#allocation12_spill] sm:$0xff] %v6758_v57 }
 0x1ae   : > { %3386 = vrot.lane.b32.xlu1 %v8119_v1, %s5372_s19  ;;  %v2531_v59 = vpop.permute.xlu0 %2530  ;;  %v6762_v14 = vpop.permute.xlu1 %2532  ;;  %v8154_v1 = vld [vmem:[#allocation57_spill] sm:$0xff] }
 0x1af   : > { %3392 = vrot.lane.b32.xlu0 %v8134_v21, %s5372_s19  ;;  %v6767_v48 = vsel %vm2544_vm15, %v2529_v6, %v2531_v59  ;;  %v6771_v39 = vsel %vm2544_vm15, %v2531_v59, %v6762_v14 }
 0x1b0   : > { %8151 = vst [vmem:[#allocation15_spill] sm:$0xff] %v6767_v48  ;;  %8152 = vst [vmem:[#allocation43_spill] sm:$0xff] %v6771_v39 }
 0x1b2   : > { %3390 = vrot.lane.b32.xlu1 %v8153_v55, %s5372_s19  ;;  %v6776_v30 = vpop.permute.xlu0 %2534 }
 0x1b3   : > { %5219 = vrot.lane.b32.xlu0 %v5198_v46, %s5372_s19 }
 0x1b6   : > { %3384 = vrot.lane.b32.xlu1 %v8123_v4, %s5372_s19  ;;  %v6786_v21 = vpop.permute.xlu0 %5029  ;;  %v8156_v4 = vld [vmem:[#allocation53_spill] sm:$0xff] }
 0x1b7   : > { %5224 = vrot.lane.b32.xlu0 %v8154_v1, %s5372_s19 }
 0x1ba   : > { %5229 = vrot.lane.b32.xlu1 %v6565_v50, %s5372_s19  ;;  %v6792_v52 = vpop.permute.xlu0 %5044 }
 0x1bb   : > { %5234 = vrot.lane.b32.xlu0 %v6334_v31, %s5372_s19 }
 0x1be   : > { %5239 = vrot.lane.b32.xlu1 %v6338_v62, %s5372_s19 }
 0x1bf   : > { %5244 = vrot.lane.b32.xlu0 %v8155_v26, %s5372_s19 }
 0x1c2   : > { %5249 = vrot.lane.b32.xlu1 %v8156_v4, %s5372_s19 }
 0x1c3   : > { %3394 = vrot.lane.b32.xlu0 %v8129_v45, %s5372_s19  ;;  %v5046_v45 = vunpack.i.l.bf16 %v6792_v52 }
 0x1c5   : > { %v6800_v31 = vpop.permute.xlu0 %5049  ;;  %v6802_v50 = vpop.permute.xlu1 %5024 }
 0x1c6   : > { %3396 = vrot.lane.b32.xlu1 %v8117_v32, %s5372_s19  ;;  %v7977_v61 = vunpack.i.h.bf16 %v6802_v50  ;;  %v7974_v37 = vunpack.i.h.bf16 %v6800_v31  ;;  %v7981_v46 = vunpack.i.l.bf16 %v6800_v31 }
 0x1c7   : > { %3398 = vrot.lane.b32.xlu0 %v8116_v17, %s5372_s19 }
 0x1c8   : > { %v6878_v1 = vsel %vm3418_vm1, %v7981_v46, %v7974_v37 }
 0x1c9   : > { %v6808_v62 = vpop.permute.xlu1 %5034  ;;  %v6810_v23 = vpop.permute.xlu0 %5064  ;;  %8163 = vst [vmem:[#allocation23_spill] sm:$0xff] %v6878_v1 }
 0x1ca   : > { %3400 = vrot.lane.b32.xlu1 %v8144_v2, %s5372_s19  ;;  %v7976_v17 = vunpack.i.h.bf16 %v6808_v62 }
 0x1cb   : > { %5254 = vrot.lane.b32.xlu0 %v6408_v42, %s5372_s19  ;;  %v7983_v42 = vunpack.i.l.bf16 %v6802_v50 }
 0x1cd   : > { %v5040_v32 = vpop.permute.xlu1 %5039  ;;  %v6817_v29 = vpop.permute.xlu0 %5079  ;;  %v2564_v7 = vsel %vm2544_vm15, %v7983_v42, %v7977_v61  ;;  %v5066_v61 = vunpack.i.l.bf16 %v6810_v23  ;;  %v5032_v42 = vunpack.i.h.bf16 %v6786_v21 }
 0x1ce   : > { %5259 = vrot.lane.b32.xlu1 %v6453_v36, %s5372_s19  ;;  %v5042_v53 = vunpack.i.h.bf16 %v5040_v32  ;;  %v5041_v58 = vunpack.i.l.bf16 %v5040_v32  ;;  %v5081_v2 = vunpack.i.l.bf16 %v6817_v29 }
 0x1cf   : > { %5264 = vrot.lane.b32.xlu0 %v6457_v40, %s5372_s19 }
 0x1d0   : > { %v6826_v34 = vsel %vm2544_vm15, %v5042_v53, %v5046_v45  ;;  %v6829_v36 = vsel %vm2544_vm15, %v5081_v2, %v5041_v58  ;;  %v6834_v11 = vsel %vm2544_vm15, %v7976_v17, %v5081_v2  ;;  %v7994_v17 = vunpack.i.h.bf16 %v6810_v23 }
 0x1d1   : > { %8157 = vst [vmem:[#allocation11_spill] sm:$0xff] %v6826_v34  ;;  %8158 = vst [vmem:[#allocation17_spill] sm:$0xff] %v6829_v36  ;;  %v6838_v15 = vpop.permute.xlu0 %5089  ;;  %v6840_v40 = vpop.permute.xlu1 %5054  ;;  %v8179_v34 = vunpack.i.l.bf16 %v6800_v31 }
 0x1d2   : > { %5269 = vrot.lane.b32.xlu1 %v8159_v13, %s5372_s19  ;;  %v7979_v33 = vunpack.i.h.bf16 %v6840_v40  ;;  %v7982_v25 = vunpack.i.l.bf16 %v6840_v40  ;;  %v5047_v13 = vunpack.i.h.bf16 %v6792_v52  ;;  %v7002_v1 = vsel %vm2544_vm15, %v5066_v61, %v7994_v17 }
 0x1d3   : > { %5274 = vrot.lane.b32.xlu0 %v8160_v43, %s5372_s19 }
 0x1d4   : > { %v2548_v35 = vsel %vm2544_vm15, %v7982_v25, %v7979_v33  ;;  %v6925_v52 = vsel %vm2544_vm15, %v5046_v45, %v5047_v13 }
 0x1d5   : > { %v6860_v20 = vpop.permute.xlu0 %5094  ;;  %v6862_v3 = vpop.permute.xlu1 %5059  ;;  %v4706_v63 = vpack.c.bf16 %v2564_v7, %v2548_v35  ;;  %v5092_v35 = vunpack.i.h.bf16 %v6838_v15  ;;  %8166 = vst [vmem:[#allocation31_spill] sm:$0xff] %v6925_v52 }
 0x1d6   : > { %5279 = vrot.lane.b32.xlu1 %v8161_v12, %s5372_s19  ;;  %v5097_v6 = vunpack.i.h.bf16 %v6860_v20  ;;  %v7980_v59 = vunpack.i.l.bf16 %v6860_v20 }
 0x1d7   : > { %3402 = vrot.lane.b32.xlu0 %v8142_v51, %s5372_s19  ;;  %4707 = vmatprep.subr.bf16.mxu1 %v4706_v63 }
 0x1d8   : > { %v6871_v55 = vsel %vm3418_vm1, %v7980_v59, %v5097_v6 }
 0x1d9   : > { %8162 = vst [vmem:[#allocation32_spill] sm:$0xff] %v6871_v55  ;;  %v6882_v26 = vpop.permute.xlu0 %5099 }
 0x1da   : > { %3404 = vrot.lane.b32.xlu1 %v8130_v9, %s5372_s19  ;;  %8164 = vst [vmem:[#allocation16_spill] sm:$0xff] %v6882_v26  ;;  %v6884_v4 = vpop.permute.xlu1 %5069  ;;  %v7971_v32 = vunpack.i.l.bf16 %v6882_v26 }
 0x1db   : > { %3406 = vrot.lane.b32.xlu0 %v8126_v54, %s5372_s19  ;;  %v5082_v54 = vunpack.i.h.bf16 %v6817_v29  ;;  %v6928_v29 = vsel %vm2544_vm15, %v5041_v58, %v5042_v53 }
 0x1dc   : > { %v6894_v2 = vsel %vm3418_vm1, %v5097_v6, %v7971_v32  ;;  %8167 = vst [vmem:[#allocation14_spill] sm:$0xff] %v6928_v29  ;;  %v7972_v6 = vunpack.i.h.bf16 %v6882_v26 }
 0x1de   : > { %3408 = vrot.lane.b32.xlu1 %v8148_v38, %s5372_s19  ;;  %v6898_v9 = vpop.permute.xlu1 %5074 }
 0x1df   : > { %5284 = vrot.lane.b32.xlu0 %v6461_v41, %s5372_s19 }
 0x1e2   : > { %5289 = vrot.lane.b32.xlu1 %v6436_v8, %s5372_s19  ;;  %v6905_v43 = vpop.permute.xlu1 %5084 }
 0x1e3   : > { %v6910_v7 = vunpack.i.h.bf16 %v6905_v43  ;;  %v7975_v38 = vunpack.i.l.bf16 %v6905_v43  ;;  %5294 = vrot.lane.b32.xlu0 %v6465_v47, %s5372_s19 }
 0x1e5   : > { %v6918_v41 = vsel %vm2544_vm15, %v5082_v54, %v7975_v38  ;;  %v6922_v8 = vsel %vm2544_vm15, %v6910_v7, %v5092_v35 }
 0x1e6   : > { %8165 = vst [vmem:[#allocation10_spill] sm:$0xff] %v6922_v8  ;;  %5299 = vrot.lane.b32.xlu1 %v6470_v49, %s5372_s19  ;;  %v6932_v12 = vpop.permute.xlu1 %5104 }
 0x1e7   : > { %8168 = vst [vmem:[#allocation47_spill] sm:$0xff] %v6932_v12  ;;  %v7973_v35 = vunpack.i.l.bf16 %v6932_v12  ;;  %3410 = vrot.lane.b32.xlu0 %v6656_v44, %s5372_s19 }
 0x1e8   : > { %v6942_v45 = vpop.permute.xlu0 %5114 }
 0x1e9   : > { %v6949_v49 = vsel %vm3418_vm1, %v7972_v6, %v7973_v35  ;;  %v5116_v33 = vunpack.i.l.bf16 %v6942_v45  ;;  %v8176_v29 = vunpack.i.h.bf16 %v6942_v45 }
 0x1ea   : > { %8169 = vst [vmem:[#allocation37_spill] sm:$0xff] %v6949_v49  ;;  %3412 = vrot.lane.b32.xlu1 %v6639_v27, %s5372_s19  ;;  %v6953_v53 = vpop.permute.xlu1 %5109 }
 0x1eb   : > { %3414 = vrot.lane.b32.xlu0 %v6663_v18, %s5372_s19  ;;  %v5112_v49 = vunpack.i.h.bf16 %v6953_v53  ;;  %v5111_v36 = vunpack.i.l.bf16 %v6953_v53  ;;  %v2580_v57 = vsel %vm2544_vm15, %v5116_v33, %v8176_v29 }
 0x1ec   : > { %v6957_v58 = vpop.permute.xlu0 %5119 }
 0x1ed   : > { %v7978_v44 = vunpack.i.l.bf16 %v6957_v58 }
 0x1ee   : > { %3416 = vrot.lane.b32.xlu1 %v6446_v16, %s5372_s19  ;;  %v6967_v32 = vpop.permute.xlu1 %5124 }
 0x1ef   : > { %v6963_v13 = vsel %vm2544_vm15, %v7978_v44, %v5082_v54  ;;  %v5062_v44 = vunpack.i.h.bf16 %v6862_v3 }
 0x1f0   : > { %8170 = vst [vmem:[#allocation36_spill] sm:$0xff] %v6963_v13  ;;  %v6971_v6 = vpop.permute.xlu0 %5129  ;;  %v4710_v13 = vpack.c.bf16 %v7002_v1, %v2580_v57  ;;  %v2578_v57 = vsel %vm2544_vm15, %v5111_v36, %v5112_v49 }
 0x1f2   : > { %v6973_v18 = vpop.permute.xlu1 %5139 }
 0x1f4   : > { %v6975_v51 = vpop.permute.xlu0 %5134 }
 0x1f7   : > { %v6977_v35 = vpop.permute.xlu1 %5144 }
 0x1f8   : > { %8171 = vst [vmem:[#allocation39_spill] sm:$0xff] %v6977_v35  ;;  %v2579_v35 = vsel %vm2544_vm15, %v5112_v49, %v5116_v33  ;;  %v2551_v33 = vsel %vm2544_vm15, %v5062_v44, %v5066_v61  ;;  %v5031_v61 = vunpack.i.l.bf16 %v6786_v21 }
 0x1f9   : > { %v6979_v63 = vpop.permute.xlu0 %2538 }
 0x1fa   : > { %8172 = vst [vmem:[#allocation24_spill] sm:$0xff] %v6979_v63  ;;  %v8177_v63 = vunpack.i.l.bf16 %v6802_v50 }
 0x1fc   : > { %v6981_v54 = vpop.permute.xlu1 %2536 }
 0x1fd   : > { %8173 = vst [vmem:[#allocation13_spill] sm:$0xff] %v6981_v54  ;;  %v6983_v47 = vpop.permute.xlu0 %2542 }
 0x1fe   : > { %8174 = vst [vmem:[#allocation38_spill] sm:$0xff] %v6983_v47 }
 0x200   : > { %v6985_v16 = vpop.permute.xlu1 %2540 }
 0x201   : > { %8175 = vst [vmem:[#allocation34_spill] sm:$0xff] %v6985_v16  ;;  %v5150_v37 = vpop.permute.xlu0 %5149 }
 0x202   : > { %v5152_v59 = vunpack.i.h.bf16 %v5150_v37  ;;  %v5151_v46 = vunpack.i.l.bf16 %v5150_v37  ;;  %v5061_v37 = vunpack.i.l.bf16 %v6862_v3  ;;  %v8181_v3 = vunpack.i.l.bf16 %v6860_v20 }
 0x203   : > { %v4712_v20 = vpack.c.bf16 %v2551_v33, %v2579_v35  ;;  %v5077_v35 = vunpack.i.h.bf16 %v6898_v9 }
 0x204   : > { %v6987_v38 = vpop.permute.xlu1 %5159  ;;  %v2563_v16 = vsel %vm2544_vm15, %v5152_v59, %v8177_v63  ;;  %v2562_v53 = vsel %vm2544_vm15, %v5151_v46, %v5152_v59 }
 0x205   : > { %v6989_v27 = vpop.permute.xlu0 %5154 }
 0x208   : > { %v6995_v25 = vpop.permute.xlu1 %5179 }
 0x209   : > { %v5165_v26 = vpop.permute.xlu0 %5164 }
 0x20a   : > { %v5167_v54 = vunpack.i.h.bf16 %v5165_v26  ;;  %v5166_v55 = vunpack.i.l.bf16 %v5165_v26  ;;  %v8178_v26 = vunpack.i.l.bf16 %v6840_v40 }
 0x20c   : > { %v2547_v47 = vsel %vm2544_vm15, %v5167_v54, %v8178_v26  ;;  %v7016_v17 = vpop.permute.xlu1 %5189  ;;  %v2546_v12 = vsel %vm2544_vm15, %v5166_v55, %v5167_v54  ;;  %v5071_v26 = vunpack.i.l.bf16 %v6884_v4  ;;  %v8180_v54 = vunpack.i.h.bf16 %v6987_v38 }
 0x20d   : > { %v4708_v48 = vpack.c.bf16 %v2563_v16, %v2547_v47  ;;  %v8002_v8 = vunpack.i.h.bf16 %v7016_v17  ;;  %v5170_v29 = vpop.permute.xlu0 %5169  ;;  %v4698_v52 = vpack.c.bf16 %v2562_v53, %v2546_v12 }
 0x20e   : > { %v5172_v63 = vunpack.i.h.bf16 %v5170_v29  ;;  %v5171_v39 = vunpack.i.l.bf16 %v5170_v29  ;;  %v7030_v59 = vsel %vm3418_vm1, %v8180_v54, %v8179_v34  ;;  %v5131_v29 = vunpack.i.l.bf16 %v6971_v6 }
 0x20f   : > { %v7037_v12 = vsel %vm3418_vm1, %v8002_v8, %v8181_v3  ;;  %4709 = vmatpush1.bf16.msra.mxu1 %v4708_v48  ;;  %4699 = vmatprep.subr.bf16.mxu0 %v4698_v52  ;;  %v2550_v52 = vsel %vm2544_vm15, %v5061_v37, %v5062_v44  ;;  %v5127_v3 = vunpack.i.h.bf16 %v6967_v32  ;;  %v8183_v8 = vunpack.i.l.bf16 %v6957_v58 }
 0x210   : > { %v2545_v16 = vsel %vm2544_vm15, %v5171_v39, %v5166_v55  ;;  %v2561_v34 = vsel %vm2544_vm15, %v5172_v63, %v5151_v46  ;;  %v7045_v53 = vpop.permute.xlu1 %5194  ;;  %4711 = vmatprep.subr.bf16.mxu1 %v4710_v13  ;;  %v4702_v49 = vpack.c.bf16 %v2550_v52, %v2578_v57  ;;  %v2568_v39 = vsel %vm2544_vm15, %v5032_v42, %v5071_v26  ;;  %v7065_v13 = vld [vmem:[%s7873_s3 + $0x4] sm:$0xf] }
 0x211   : > { %v4700_v54 = vpack.c.bf16 %v2561_v34, %v2545_v16  ;;  %v7048_v48 = vpop.permute.xlu0 %5174  ;;  %v5126_v46 = vunpack.i.l.bf16 %v6967_v32  ;;  %v2584_v63 = vsel %vm2544_vm15, %v5127_v3, %v5131_v29  ;;  %v2567_v32 = vsel %vm2544_vm15, %v5031_v61, %v5032_v42 }
 0x212   : > { %v5076_v57 = vunpack.i.l.bf16 %v6898_v9  ;;  %v4724_v34 = vpack.c.bf16 %v2567_v32, %v2551_v33  ;;  %v2556_v47 = vsel %vm2544_vm15, %v5077_v35, %v8183_v8  ;;  %v5142_v33 = vunpack.i.h.bf16 %v6973_v18 }
 0x213   : > { %4701 = vmatpush1.bf16.msra.mxu0 %v4700_v54  ;;  %4713 = vmatpush1.bf16.msra.mxu1 %v4712_v20  ;;  %v8182_v20 = vunpack.i.h.bf16 %v6840_v40  ;;  %v2583_v42 = vsel %vm2544_vm15, %v5126_v46, %v5127_v3  ;;  %v4726_v40 = vpack.c.bf16 %v2556_v47, %v2584_v63  ;;  %v5141_v3 = vunpack.i.l.bf16 %v6973_v18  ;;  %v8208_v18 = vld [vmem:[#allocation23_spill] sm:$0xff] }
 0x214   : > { %v5200_v55 = vpop.permute.xlu1 %5199  ;;  %4703 = vmatprep.subr.bf16.mxu0 %v4702_v49  ;;  %4582 = vmatprep.subr.msk.mxu1 %vm1630_vm12, %v6727_v10  ;;  %v4722_v10 = vpack.c.bf16 %v2568_v39, %v7002_v1  ;;  %v8184_v39 = vunpack.i.h.bf16 %v6802_v50 }
 0x215   : > { %v5201_v44 = vunpack.i.l.bf16 %v5200_v55  ;;  %v7060_v21 = vpop.permute.xlu0 %5184  ;;  %v5202_v16 = vunpack.i.h.bf16 %v5200_v55  ;;  %v2549_v54 = vsel %vm2544_vm15, %v8182_v20, %v5061_v37  ;;  %v8185_v20 = vunpack.i.h.bf16 %v6942_v45 }
 0x216   : > { %v4738_v45 = vpack.c.bf16 %v6834_v11, %v2556_v47  ;;  %v5136_v11 = vunpack.i.l.bf16 %v6975_v51 }
 0x217   : > { %v2577_v49 = vsel %vm2544_vm15, %v5201_v44, %v5111_v36  ;;  %4583 = vmatpush1.msk.msra.mxu1 %vm1630_vm12, %v6724_v60  ;;  %v2555_v60 = vsel %vm2544_vm15, %v5076_v57, %v5077_v35  ;;  %v5122_v36 = vunpack.i.h.bf16 %v6957_v58  ;;  %v2566_v8 = vsel %vm2544_vm15, %v5202_v16, %v5031_v61 }
 0x218   : > { %v4704_v9 = vpack.c.bf16 %v2549_v54, %v2577_v49  ;;  %v7083_v55 = vpop.permute.xlu1 %5204  ;;  %4584 = vmatmul.mubr.msk.f32.vlgmr.msra.gmra.mrb[8].mxu1 %vm1690_vm14, %v7065_v13  ;;  %4723 = vmatprep.subr.bf16.mxu1 %v4722_v10  ;;  %v4728_v37 = vpack.c.bf16 %v2555_v60, %v2583_v42  ;;  %v2565_v44 = vsel %vm2544_vm15, %v8184_v39, %v5202_v16  ;;  %v5036_v35 = vunpack.i.l.bf16 %v6808_v62 }
 0x219   : > { %v7087_v1 = vpop.permute.xlu0 %5214  ;;  %4725 = vmatpush1.bf16.msra.mxu1 %v4724_v34  ;;  %2979 = vmatprep.mubr.f32.mxu1 %v8112_v22  ;;  %v5072_v58 = vunpack.i.h.bf16 %v6884_v4  ;;  %v2582_v61 = vsel %vm2544_vm15, %v5122_v36, %v5126_v46  ;;  %v4714_v10 = vpack.c.bf16 %v2566_v8, %v2550_v52  ;;  %v5137_v34 = vunpack.i.h.bf16 %v6975_v51 }
 0x21a   : > { %4705 = vmatpush1.bf16.msra.mxu0 %v4704_v9  ;;  %4727 = vmatprep.subr.bf16.mxu1 %v4726_v40  ;;  %v4716_v50 = vpack.c.bf16 %v2565_v44, %v2549_v54  ;;  %v5091_v16 = vunpack.i.l.bf16 %v6838_v15  ;;  %v2581_v46 = vsel %vm2544_vm15, %v8185_v20, %v5122_v36  ;;  %v8186_v54 = vunpack.i.h.bf16 %v6808_v62 }
 0x21b   : > { %4579 = vmatprep.subr.msk.mxu0 %vm1630_vm12, %v6712_v5  ;;  %v2554_v5 = vsel %vm2544_vm15, %v5072_v58, %v5076_v57  ;;  %v5132_v57 = vunpack.i.h.bf16 %v6971_v6  ;;  %v8187_v42 = vunpack.i.h.bf16 %v6810_v23  ;;  %v2587_v47 = vsel %vm2544_vm15, %v5137_v34, %v5141_v3 }
 0x21c   : > { %v7102_v63 = vpop.permute.xlu1 %5209  ;;  %v4718_v52 = vpack.c.bf16 %v2554_v5, %v2582_v61  ;;  %v2593_v62 = vsel %vm2544_vm15, %v6910_v7, %v5091_v16  ;;  %v5187_v44 = vunpack.i.h.bf16 %v7060_v21  ;;  %v2586_v61 = vsel %vm2544_vm15, %v5136_v11, %v5137_v34 }
 0x21d   : > { %v7105_v32 = vpop.permute.xlu0 %3388  ;;  %4729 = vmatpush1.bf16.msra.mxu1 %v4728_v37  ;;  %v2553_v9 = vsel %vm2544_vm15, %v8187_v42, %v5072_v58  ;;  %v2570_v51 = vsel %vm2544_vm15, %v5132_v57, %v5036_v35  ;;  %v5186_v58 = vunpack.i.l.bf16 %v7060_v21  ;;  %v2609_v4 = vsel %vm2544_vm15, %v6762_v14, %v6776_v30 }
 0x21e   : > { %4580 = vmatpush1.msk.msra.mxu0 %vm1630_vm12, %v6735_v56  ;;  %4588 = vmatprep.subr.msk.mxu1 %vm1630_vm12, %v6755_v28  ;;  %v2588_v56 = vsel %vm2544_vm15, %v5141_v3, %v5142_v33  ;;  %v2571_v28 = vsel %vm2544_vm15, %v5036_v35, %v8186_v54  ;;  %v4720_v8 = vpack.c.bf16 %v2553_v9, %v2581_v46  ;;  %v5156_v35 = vunpack.i.l.bf16 %v6989_v27  ;;  %v8191_v46 = vld [vmem:[#allocation36_spill] sm:$0xff] }
 0x21f   : > { %4581 = vmatmul.mubr.msk.f32.vlgmr.msra.gmra.mrb[8].mxu0 %vm1690_vm14, %v7065_v13  ;;  %4715 = vmatprep.subr.bf16.mxu0 %v4714_v10  ;;  %v4740_v40 = vpack.c.bf16 %v2571_v28, %v2555_v60  ;;  %v4742_v23 = vpack.c.bf16 %v2593_v62, %v2588_v56  ;;  %v2569_v3 = vsel %vm2544_vm15, %v5071_v26, %v5132_v57  ;;  %v5157_v26 = vunpack.i.h.bf16 %v6989_v27  ;;  %v8192_v56 = vld [vmem:[#allocation43_spill] sm:$0xff]  ;;  %v8195_v62 = vld [vmem:[#allocation10_spill] sm:$0xff] }
 0x220   : > { %v7126_v49 = vpop.permute.xlu1 %3386  ;;  %4717 = vmatpush1.bf16.msra.mxu0 %v4716_v50  ;;  %2908 = vmatprep.mubr.f32.mxu0 %v8112_v22  ;;  %v4730_v10 = vpack.c.bf16 %v2570_v51, %v2554_v5  ;;  %v4732_v21 = vpack.c.bf16 %v2569_v3, %v2553_v9  ;;  %v8189_v50 = vunpack.i.h.bf16 %v6800_v31  ;;  %v4734_v31 = vpack.c.bf16 %v6918_v41, %v2586_v61  ;;  %v8193_v28 = vld [vmem:[#allocation39_spill] sm:$0xff] }
 0x221   : > { %4719 = vmatprep.subr.bf16.mxu0 %v4718_v52  ;;  %v7133_v36 = vpop.permute.xlu0 %3392  ;;  %4589 = vmatpush1.msk.msra.mxu1 %vm1630_vm12, %v6748_v0  ;;  %v8188_v0 = vunpack.i.l.bf16 %v6905_v43  ;;  %v2597_v27 = vsel %vm2544_vm15, %v5186_v58, %v5187_v44  ;;  %v2592_v54 = vsel %vm2544_vm15, %v5156_v35, %v5157_v26  ;;  %v5147_v57 = vunpack.i.h.bf16 %v8193_v28  ;;  %v8197_v3 = vld [vmem:[#allocation15_spill] sm:$0xff]  ;;  %v8200_v26 = vld [vmem:[#allocation34_spill] sm:$0xff] }
 0x222   : > { %4590 = vmatmul.mubr.msk.f32.vlgmr.msra.gmra.mrb[10].mxu1 %vm1690_vm14, %v7065_v13  ;;  %4739 = vmatprep.subr.bf16.mxu1 %v4738_v45  ;;  %v5181_v45 = vunpack.i.l.bf16 %v6995_v25  ;;  %v5206_v51 = vunpack.i.l.bf16 %v7083_v55  ;;  %v5197_v15 = vunpack.i.h.bf16 %v7045_v53 }
 0x223   : > { %4741 = vmatpush1.bf16.msra.mxu1 %v4740_v40  ;;  %3121 = vmatprep.mubr.f32.mxu1 %v8112_v22  ;;  %v2559_v60 = vsel %vm2544_vm15, %v8188_v0, %v6910_v7  ;;  %v8194_v40 = vld [vmem:[#allocation31_spill] sm:$0xff] }
 0x224   : > { %v7150_v37 = vpop.permute.xlu1 %3390  ;;  %4721 = vmatpush1.bf16.msra.mxu0 %v4720_v8  ;;  %4743 = vmatprep.subr.bf16.mxu1 %v4742_v23  ;;  %v4744_v39 = vpack.c.bf16 %v2559_v60, %v2587_v47  ;;  %v8196_v8 = vpack.c.bf16 %v8194_v40, %v8195_v62  ;;  %v5146_v23 = vunpack.i.l.bf16 %v8193_v28  ;;  %v5177_v28 = vunpack.i.h.bf16 %v7048_v48 }
 0x225   : > { %4585 = vmatprep.subr.msk.mxu0 %vm1630_vm12, %v6745_v19  ;;  %v7160_v43 = vpop.permute.xlu0 %5219  ;;  %v2585_v19 = vsel %vm2544_vm15, %v5131_v29, %v5136_v11  ;;  %v5182_v29 = vunpack.i.h.bf16 %v6995_v25  ;;  %v4758_v11 = vpack.c.bf16 %v2597_v27, %v2592_v54  ;;  %v2591_v25 = vsel %vm2544_vm15, %v5147_v57, %v5156_v35 }
 0x226   : > { %v5222_v7 = vunpack.i.h.bf16 %v7160_v43  ;;  %v4736_v52 = vpack.c.bf16 %v8191_v46, %v2585_v19  ;;  %v2594_v27 = vsel %vm2544_vm15, %v5091_v16, %v5181_v45  ;;  %v5161_v54 = vunpack.i.l.bf16 %v6987_v38 }
 0x227   : > { %4745 = vmatpush1.bf16.msra.mxu1 %v4744_v39  ;;  %v2596_v42 = vsel %vm2544_vm15, %v5182_v29, %v5186_v58  ;;  %v2595_v44 = vsel %vm2544_vm15, %v5181_v45, %v5182_v29  ;;  %v8198_v58 = vld [vmem:[#allocation47_spill] sm:$0xff]  ;;  %v5191_v29 = vunpack.i.l.bf16 %v7016_v17  ;;  %v5196_v16 = vunpack.i.l.bf16 %v7045_v53  ;;  %v8205_v45 = vld [vmem:[#allocation17_spill] sm:$0xff] }
 0x228   : > { %v7177_v34 = vsel %vm3418_vm1, %v8189_v50, %v5222_v7  ;;  %v7179_v20 = vpop.permute.xlu1 %3384  ;;  %4586 = vmatpush1.msk.msra.mxu0 %vm1630_vm12, %v6738_v24  ;;  %4594 = vmatprep.subr.msk.mxu1 %vm1630_vm12, %v2609_v4  ;;  %v8190_v24 = vld [vmem:[#allocation11_spill] sm:$0xff]  ;;  %v4760_v0 = vpack.c.bf16 %v2596_v42, %v2591_v25  ;;  %v5107_v61 = vunpack.i.h.bf16 %v8198_v58  ;;  %v8199_v4 = vld [vmem:[#allocation38_spill] sm:$0xff]  ;;  %v8202_v50 = vld [vmem:[#allocation12_spill] sm:$0xff]  ;;  %v8206_v42 = vpack.c.bf16 %v8205_v45, %v8191_v46 }
 0x229   : > { %v4780_v14 = vpack.c.bf16 %v7177_v34, %v6894_v2  ;;  %4587 = vmatmul.mubr.msk.f32.vlgmr.msra.gmra.mrb[10].mxu0 %vm1690_vm14, %v7065_v13  ;;  %4731 = vmatprep.subr.bf16.mxu0 %v4730_v10  ;;  %v7188_v6 = vpop.permute.xlu0 %5224  ;;  %v4756_v5 = vpack.c.bf16 %v8190_v24, %v2559_v60  ;;  %v5207_v60 = vunpack.i.h.bf16 %v7083_v55  ;;  %v2613_v35 = vsel %vm2544_vm15, %v8200_v26, %v8199_v4  ;;  %v8203_v24 = vld [vmem:[#allocation14_spill] sm:$0xff] }
 0x22a   : > { %4733 = vmatpush1.bf16.msra.mxu0 %v4732_v21  ;;  %3050 = vmatprep.mubr.f32.mxu0 %v8112_v22  ;;  %v8201_v21 = vld [vmem:[#allocation24_spill] sm:$0xff]  ;;  %v8207_v53 = vunpack.i.l.bf16 %v8198_v58  ;;  %v5176_v46 = vunpack.i.l.bf16 %v7048_v48  ;;  %v8212_v4 = vpack.c.bf16 %v7030_v59, %v7037_v12  ;;  %v8213_v48 = vunpack.i.h.bf16 %v7016_v17  ;;  %v8215_v12 = vld [vmem:[#allocation37_spill] sm:$0xff] }
 0x22b   : > { %4735 = vmatprep.subr.bf16.mxu0 %v4734_v31  ;;  %4595 = vmatpush1.msk.msra.mxu1 %vm1630_vm12, %v8192_v56  ;;  %v2612_v19 = vsel %vm2544_vm15, %v8201_v21, %v8200_v26  ;;  %v2590_v31 = vsel %vm2544_vm15, %v5146_v23, %v5147_v57  ;;  %v3454_v56 = vsel %vm3418_vm1, %v5206_v51, %v5207_v60 }
 0x22c   : > { %v7202_v9 = vpop.permute.xlu1 %5229  ;;  %4596 = vmatmul.mubr.msk.f32.vlgmr.msra.gmra.mrb[12].mxu1 %vm1690_vm14, %v7065_v13  ;;  %4755 = vmatprep.subr.bf16.mxu1 %v8196_v8  ;;  %v3426_v62 = vsel %vm3418_vm1, %v8207_v53, %v5107_v61  ;;  %v3419_v26 = vsel %vm3418_vm1, %v5196_v16, %v5191_v29 }
 0x22d   : > { %v7209_v47 = vpop.permute.xlu0 %5234  ;;  %4757 = vmatpush1.bf16.msra.mxu1 %v4756_v5  ;;  %3263 = vmatprep.mubr.f32.mxu1 %v8112_v22  ;;  %v8204_v5 = vpack.c.bf16 %v8203_v24, %v6918_v41  ;;  %v2589_v41 = vsel %vm2544_vm15, %v5142_v33, %v5146_v23  ;;  %v8209_v33 = vld [vmem:[#allocation32_spill] sm:$0xff]  ;;  %v4774_v25 = vpack.c.bf16 %v3426_v62, %v3454_v56  ;;  %v5231_v56 = vunpack.i.l.bf16 %v7202_v9 }
 0x22e   : > { %4737 = vmatpush1.bf16.msra.mxu0 %v4736_v52  ;;  %4759 = vmatprep.subr.bf16.mxu1 %v4758_v11  ;;  %v4750_v52 = vpack.c.bf16 %v2595_v44, %v2590_v31  ;;  %v4752_v8 = vpack.c.bf16 %v2594_v27, %v2589_v41  ;;  %v3453_v11 = vsel %vm3418_vm1, %v5177_v28, %v5206_v51  ;;  %v5212_v44 = vunpack.i.h.bf16 %v7102_v63 }
 0x22f   : > { %4591 = vmatprep.subr.msk.mxu0 %vm1630_vm12, %v8197_v3  ;;  %v8210_v23 = vpack.c.bf16 %v8208_v18, %v8209_v33  ;;  %v3420_v51 = vsel %vm3418_vm1, %v5191_v29, %v8213_v48  ;;  %v4776_v17 = vpack.c.bf16 %v8215_v12, %v3453_v11  ;;  %v5216_v31 = vunpack.i.l.bf16 %v7087_v1 }
 0x230   : > { %v7218_v39 = vpop.permute.xlu1 %5239  ;;  %v5221_v27 = vunpack.i.l.bf16 %v7160_v43  ;;  %v5227_v18 = vunpack.i.h.bf16 %v7188_v6  ;;  %v5217_v43 = vunpack.i.h.bf16 %v7087_v1 }
 0x231   : > { %v7225_v10 = vpop.permute.xlu0 %5244  ;;  %4761 = vmatpush1.bf16.msra.mxu1 %v4760_v0  ;;  %v8211_v0 = vld [vmem:[#allocation13_spill] sm:$0xff]  ;;  %v5241_v29 = vunpack.i.l.bf16 %v7218_v39 }
 0x232   : > { %4592 = vmatpush1.msk.msra.mxu0 %vm1630_vm12, %v8202_v50  ;;  %4600 = vmatprep.subr.msk.mxu1 %vm1630_vm12, %v2613_v35  ;;  %v2611_v3 = vsel %vm2544_vm15, %v8211_v0, %v8201_v21  ;;  %v3435_v35 = vsel %vm3418_vm1, %v5197_v15, %v5161_v54  ;;  %v8214_v21 = vunpack.i.h.bf16 %v6987_v38  ;;  %v3452_v38 = vsel %vm3418_vm1, %v5176_v46, %v5177_v28  ;;  %v8216_v28 = vld [vmem:[#allocation16_spill] sm:$0xff] }
 0x233   : > { %4593 = vmatmul.mubr.msk.f32.vlgmr.msra.gmra.mrb[12].mxu0 %vm1690_vm14, %v7065_v13  ;;  %4747 = vmatprep.subr.bf16.mxu0 %v8204_v5  ;;  %v3442_v15 = vsel %vm3418_vm1, %v5212_v44, %v5216_v31  ;;  %v4764_v16 = vpack.c.bf16 %v3435_v35, %v3419_v26  ;;  %v8217_v41 = vunpack.i.h.bf16 %v8216_v28  ;;  %v8218_v53 = vunpack.i.l.bf16 %v8216_v28 }
 0x234   : > { %v7250_v57 = vpop.permute.xlu1 %5249  ;;  %4749 = vmatpush1.bf16.msra.mxu0 %v8206_v42  ;;  %3192 = vmatprep.mubr.f32.mxu0 %v8112_v22  ;;  %v3436_v59 = vsel %vm3418_vm1, %v5161_v54, %v8214_v21  ;;  %v5237_v54 = vunpack.i.h.bf16 %v7209_v47  ;;  %v3451_v11 = vsel %vm3418_vm1, %v5221_v27, %v5176_v46  ;;  %v3474_v46 = vsel %vm3418_vm1, %v7105_v32, %v7150_v37 }
 0x235   : > { %4751 = vmatprep.subr.bf16.mxu0 %v4750_v52  ;;  %v7259_v40 = vpop.permute.xlu0 %3394  ;;  %4601 = vmatpush1.msk.msra.mxu1 %vm1630_vm12, %v2612_v19  ;;  %v5211_v19 = vunpack.i.l.bf16 %v7102_v63  ;;  %v2610_v63 = vsel %vm2544_vm15, %v6776_v30, %v8211_v0  ;;  %v4762_v5 = vpack.c.bf16 %v3436_v59, %v3420_v51  ;;  %v3475_v52 = vsel %vm3418_vm1, %v7150_v37, %v7133_v36 }
 0x236   : > { %4602 = vmatmul.mubr.msk.f32.vlgmr.msra.gmra.mrb[14].mxu1 %vm1690_vm14, %v7065_v13  ;;  %4771 = vmatprep.subr.bf16.mxu1 %v8210_v23  ;;  %v5236_v30 = vunpack.i.l.bf16 %v7209_v47  ;;  %v7332_v23 = vld [vmem:[%s7873_s3 + $0x8] sm:$0xf]  ;;  %v5226_v0 = vunpack.i.l.bf16 %v7188_v6  ;;  %v5251_v6 = vunpack.i.l.bf16 %v7250_v57  ;;  %v3473_v51 = vsel %vm3418_vm1, %v7126_v49, %v7105_v32 }
 0x237   : > { %4773 = vmatpush1.bf16.msra.mxu1 %v8212_v4  ;;  %3711 = vmatprep.mubr.f32.mxu1 %v8112_v22  ;;  %v3441_v45 = vsel %vm3418_vm1, %v5211_v19, %v5212_v44  ;;  %v7347_v44 = vsel %vm3418_vm1, %v5227_v18, %v5231_v56  ;;  %v4768_v4 = vpack.c.bf16 %v6894_v2, %v3451_v11  ;;  %v5246_v27 = vunpack.i.l.bf16 %v7225_v10 }
 0x238   : > { %v7288_v50 = vpop.permute.xlu1 %3396  ;;  %4753 = vmatpush1.bf16.msra.mxu0 %v4752_v8  ;;  %4775 = vmatprep.subr.bf16.mxu1 %v4774_v25  ;;  %v3424_v8 = vsel %vm3418_vm1, %v8218_v53, %v8217_v41  ;;  %v3458_v25 = vsel %vm3418_vm1, %v5237_v54, %v5241_v29  ;;  %v3457_v37 = vsel %vm3418_vm1, %v5236_v30, %v5237_v54 }
 0x239   : > { %4597 = vmatprep.subr.msk.mxu0 %vm1630_vm12, %v2611_v3  ;;  %v7298_v24 = vpop.permute.xlu0 %3398  ;;  %v4766_v33 = vpack.c.bf16 %v3424_v8, %v3452_v38  ;;  %v4788_v3 = vpack.c.bf16 %v3441_v45, %v8215_v12  ;;  %v3440_v35 = vsel %vm3418_vm1, %v5222_v7, %v5211_v19  ;;  %v3429_v59 = vsel %vm3418_vm1, %v5226_v0, %v5227_v18 }
 0x23a   : > { %v5232_v12 = vunpack.i.h.bf16 %v7202_v9  ;;  %v3472_v7 = vsel %vm3418_vm1, %v7179_v20, %v7126_v49  ;;  %v4792_v19 = vpack.c.bf16 %v3429_v59, %v3457_v37  ;;  %v3476_v1 = vsel %vm3418_vm1, %v7133_v36, %v7259_v40 }
 0x23b   : > { %4777 = vmatpush1.bf16.msra.mxu1 %v4776_v17  ;;  %v5247_v17 = vunpack.i.h.bf16 %v7225_v10  ;;  %v4778_v10 = vpack.c.bf16 %v3440_v35, %v3424_v8  ;;  %v3478_v8 = vsel %vm3418_vm1, %v7288_v50, %v7298_v24 }
 0x23c   : > { %v7314_v42 = vpop.permute.xlu1 %3400  ;;  %4598 = vmatpush1.msk.msra.mxu0 %vm1630_vm12, %v2610_v63  ;;  %4607 = vmatprep.subr.msk.mxu1 %vm1630_vm12, %v3475_v52  ;;  %v3456_v38 = vsel %vm3418_vm1, %v5232_v12, %v5236_v30  ;;  %v3428_v30 = vsel %vm3418_vm1, %v5217_v43, %v5226_v0  ;;  %v3455_v28 = vsel %vm3418_vm1, %v5207_v60, %v5232_v12 }
 0x23d   : > { %4599 = vmatmul.mubr.msk.f32.vlgmr.msra.gmra.mrb[14].mxu0 %vm1690_vm14, %v7065_v13  ;;  %4763 = vmatprep.subr.bf16.mxu0 %v4762_v5  ;;  %v7327_v47 = vpop.permute.xlu0 %5254  ;;  %v4786_v13 = vpack.c.bf16 %v3442_v15, %v3426_v62  ;;  %v4790_v62 = vpack.c.bf16 %v7347_v44, %v3458_v25  ;;  %v3479_v63 = vsel %vm3418_vm1, %v7298_v24, %v7314_v42  ;;  %v5242_v25 = vunpack.i.h.bf16 %v7218_v39 }
 0x23e   : > { %4765 = vmatpush1.bf16.msra.mxu0 %v4764_v16  ;;  %3640 = vmatprep.mubr.f32.mxu0 %v8112_v22  ;;  %v3446_v52 = vsel %vm3418_vm1, %v5247_v17, %v5251_v6  ;;  %v7389_v54 = vunpack.i.h.bf16 %v7327_v47  ;;  %v3445_v45 = vsel %vm3418_vm1, %v5246_v27, %v5247_v17  ;;  %v4782_v41 = vpack.c.bf16 %v3428_v30, %v3456_v38 }
 0x23f   : > { %4767 = vmatprep.subr.bf16.mxu0 %v4766_v33  ;;  %4608 = vmatpush1.msk.msra.mxu1 %vm1630_vm12, %v3474_v46  ;;  %v5256_v11 = vunpack.i.l.bf16 %v7327_v47  ;;  %v4802_v60 = vpack.c.bf16 %v3446_v52, %v7347_v44  ;;  %v3427_v33 = vsel %vm3418_vm1, %v5107_v61, %v5217_v43  ;;  %v4804_v24 = vpack.c.bf16 %v3445_v45, %v3429_v59 }
 0x240   : > { %v7352_v48 = vpop.permute.xlu1 %5259  ;;  %4609 = vmatmul.mubr.msk.f32.vlgmr.msra.gmra.mrb[16].mxu1 %vm1690_vm14, %v7332_v23  ;;  %4787 = vmatprep.subr.bf16.mxu1 %v4786_v13  ;;  %v4784_v34 = vpack.c.bf16 %v3427_v33, %v3455_v28  ;;  %v3477_v13 = vsel %vm3418_vm1, %v7259_v40, %v7288_v50  ;;  %v3443_v37 = vsel %vm3418_vm1, %v5216_v31, %v5242_v25  ;;  %v5252_v50 = vunpack.i.h.bf16 %v7250_v57 }
 0x241   : > { %v7360_v26 = vpop.permute.xlu0 %5264  ;;  %4789 = vmatpush1.bf16.msra.mxu1 %v4788_v3  ;;  %3853 = vmatprep.mubr.f32.mxu1 %v8112_v22  ;;  %v7366_v21 = vpop.f32.mrb[0].mxu1  ;;  %v5262_v55 = vunpack.i.h.bf16 %v7352_v48  ;;  %v3433_v3 = vsel %vm3418_vm1, %v5256_v11, %v7389_v54  ;;  %v4796_v43 = vpack.c.bf16 %v3443_v37, %v3427_v33 }
 0x242   : > { %4769 = vmatpush1.bf16.msra.mxu0 %v4768_v4  ;;  %4791 = vmatprep.subr.bf16.mxu1 %v4790_v62  ;;  %v7372_v32 = vpop.f32.mrb[1].mxu1  ;;  %v5267_v49 = vunpack.i.h.bf16 %v7360_v26  ;;  %v5266_v20 = vunpack.i.l.bf16 %v7360_v26  ;;  %v3444_v4 = vsel %vm3418_vm1, %v5242_v25, %v5246_v27 }
 0x243   : > { %4604 = vmatprep.subr.msk.mxu0 %vm1630_vm12, %v3473_v51  ;;  %v4794_v31 = vpack.c.bf16 %v3444_v4, %v3428_v30  ;;  %v3431_v30 = vsel %vm3418_vm1, %v5231_v56, %v5252_v50 }
 0x244   : > { %v7382_v5 = vpop.permute.xlu1 %5269  ;;  %v3462_v2 = vsel %vm3418_vm1, %v5266_v20, %v5267_v49  ;;  %v3461_v46 = vsel %vm3418_vm1, %v5262_v55, %v5266_v20 }
 0x245   : > { %v5271_v15 = vunpack.i.l.bf16 %v7382_v5  ;;  %v7394_v16 = vpop.permute.xlu0 %5274  ;;  %4793 = vmatpush1.bf16.msra.mxu1 %v4792_v19  ;;  %v5272_v62 = vunpack.i.h.bf16 %v7382_v5 }
 0x246   : > { %4605 = vmatpush1.msk.msra.mxu0 %vm1630_vm12, %v3472_v7  ;;  %4613 = vmatprep.subr.msk.mxu1 %vm1630_vm12, %v3479_v63  ;;  %v5277_v59 = vunpack.i.h.bf16 %v7394_v16  ;;  %v5276_v36 = vunpack.i.l.bf16 %v7394_v16 }
 0x247   : > { %4606 = vmatmul.mubr.msk.f32.vlgmr.msra.gmra.mrb[16].mxu0 %vm1690_vm14, %v7332_v23  ;;  %4779 = vmatprep.subr.bf16.mxu0 %v4778_v10  ;;  %v3467_v53 = vsel %vm3418_vm1, %v7389_v54, %v5271_v15  ;;  %v3432_v10 = vsel %vm3418_vm1, %v5252_v50, %v5256_v11  ;;  %v3434_v52 = vsel %vm3418_vm1, %v7389_v54, %v5272_v62 }
 0x248   : > { %v5280_v18 = vpop.permute.xlu1 %5279  ;;  %4781 = vmatpush1.bf16.msra.mxu0 %v4780_v14  ;;  %3782 = vmatprep.mubr.f32.mxu0 %v8112_v22  ;;  %v5261_v14 = vunpack.i.l.bf16 %v7352_v48  ;;  %v4806_v58 = vpack.c.bf16 %v3467_v53, %v3462_v2  ;;  %v4808_v48 = vpack.c.bf16 %v3433_v3, %v3461_v46  ;;  %v3448_v9 = vsel %vm3418_vm1, %v5276_v36, %v5277_v59 }
 0x249   : > { %4783 = vmatprep.subr.bf16.mxu0 %v4782_v41  ;;  %v7423_v47 = vpop.permute.xlu0 %3402  ;;  %4614 = vmatpush1.msk.msra.mxu1 %vm1630_vm12, %v3478_v8  ;;  %v5282_v61 = vunpack.i.h.bf16 %v5280_v18  ;;  %v5281_v0 = vunpack.i.l.bf16 %v5280_v18  ;;  %v3447_v25 = vsel %vm3418_vm1, %v5251_v6, %v5276_v36 }
 0x24a   : > { %4615 = vmatmul.mubr.msk.f32.vlgmr.msra.gmra.mrb[18].mxu1 %vm1690_vm14, %v7332_v23  ;;  %4803 = vmatprep.subr.bf16.mxu1 %v4802_v60  ;;  %v3460_v12 = vsel %vm3418_vm1, %v5261_v14, %v5262_v55  ;;  %v3459_v7 = vsel %vm3418_vm1, %v5241_v29, %v5261_v14 }
 0x24b   : > { %4805 = vmatpush1.bf16.msra.mxu1 %v4804_v24  ;;  %3995 = vmatprep.mubr.f32.mxu1 %v8112_v22  ;;  %v3450_v27 = vsel %vm3418_vm1, %v5281_v0, %v5282_v61  ;;  %v3449_v19 = vsel %vm3418_vm1, %v5277_v59, %v5281_v0  ;;  %v4798_v29 = vpack.c.bf16 %v3432_v10, %v3460_v12 }
 0x24c   : > { %v3405_v44 = vpop.permute.xlu1 %3404  ;;  %4785 = vmatpush1.bf16.msra.mxu0 %v4784_v34  ;;  %4807 = vmatprep.subr.bf16.mxu1 %v4806_v58  ;;  %v7445_v35 = vpop.f32.mrb[2].mxu1  ;;  %v4818_v16 = vpack.c.bf16 %v3450_v27, %v3434_v52  ;;  %v4820_v28 = vpack.c.bf16 %v3449_v19, %v3433_v3  ;;  %v4800_v41 = vpack.c.bf16 %v3431_v30, %v3459_v7 }
 0x24d   : > { %4610 = vmatprep.subr.msk.mxu0 %vm1630_vm12, %v3477_v13  ;;  %v3407_v51 = vpop.permute.xlu0 %3406  ;;  %v7450_v17 = vpop.f32.mrb[3].mxu1  ;;  %v3481_v11 = vsel %vm3418_vm1, %v7423_v47, %v3405_v44  ;;  %v4810_v34 = vpack.c.bf16 %v3448_v9, %v3432_v10  ;;  %v3480_v61 = vsel %vm3418_vm1, %v7314_v42, %v7423_v47  ;;  %v4812_v3 = vpack.c.bf16 %v3447_v25, %v3431_v30 }
 0x24e   : > { %v3482_v45 = vsel %vm3418_vm1, %v3405_v44, %v3407_v51 }
 0x24f   : > { %4809 = vmatpush1.bf16.msra.mxu1 %v4808_v48 }
 0x250   : > { %v7460_v63 = vpop.permute.xlu1 %3408  ;;  %4611 = vmatpush1.msk.msra.mxu0 %vm1630_vm12, %v3476_v1  ;;  %v7464_v38 = vpop.f32.mrb[0].mxu0 }
 0x251   : > { %v3483_v40 = vsel %vm3418_vm1, %v3407_v51, %v7460_v63  ;;  %4612 = vmatmul.mubr.msk.f32.vlgmr.msra.gmra.mrb[18].mxu0 %vm1690_vm14, %v7332_v23  ;;  %4795 = vmatprep.subr.bf16.mxu0 %v4794_v31  ;;  %v5285_v39 = vpop.permute.xlu0 %5284  ;;  %v7473_v20 = vpop.f32.mrb[1].mxu0 }
 0x252   : > { %4797 = vmatpush1.bf16.msra.mxu0 %v4796_v43  ;;  %4619 = vmatprep.subr.msk.mxu1 %vm1630_vm12, %v3483_v40  ;;  %v5287_v53 = vunpack.i.h.bf16 %v5285_v39  ;;  %v5286_v8 = vunpack.i.l.bf16 %v5285_v39  ;;  %v8220_v39 = vld [vmem:[#allocation8_spill] sm:$0xff] }
 0x253   : > { %4799 = vmatprep.subr.bf16.mxu0 %v4798_v29  ;;  %4620 = vmatpush1.msk.msra.mxu1 %vm1630_vm12, %v3482_v45  ;;  %v440_v29 = vand.u32 15, %v8220_v39 }
 0x254   : > { %v5290_v54 = vpop.permute.xlu1 %5289  ;;  %4621 = vmatmul.mubr.msk.f32.vlgmr.msra.gmra.mrb[20].mxu1 %vm1690_vm14, %v7332_v23  ;;  %4819 = vmatprep.subr.bf16.mxu1 %v4818_v16  ;;  %v3464_v14 = vsel %vm3418_vm1, %v5286_v8, %v5287_v53  ;;  %v3463_v5 = vsel %vm3418_vm1, %v5267_v49, %v5286_v8 }
 0x255   : > { %v5295_v55 = vpop.permute.xlu0 %5294  ;;  %4821 = vmatpush1.bf16.msra.mxu1 %v4820_v28  ;;  %3924 = vmatprep.mubr.f32.mxu0 %v8112_v22  ;;  %v5292_v56 = vunpack.i.h.bf16 %v5290_v54  ;;  %v5291_v18 = vunpack.i.l.bf16 %v5290_v54  ;;  %vm616_vm2 = vcmp.ge.s32.totalorder %v440_v29, 1 }
 0x256   : > { %v5297_v60 = vunpack.i.h.bf16 %v5295_v55  ;;  %v5296_v33 = vunpack.i.l.bf16 %v5295_v55  ;;  %4801 = vmatpush1.bf16.msra.mxu0 %v4800_v41  ;;  %4137 = vmatprep.mubr.f32.mxu1 %v8112_v22  ;;  %v2328_v16 = vsel %vm616_vm2, %v7366_v21, 0.0  ;;  %v8221_v55 = vld [vmem:[#allocation3_spill] sm:$0xff] }
 0x257   : > { %4616 = vmatprep.subr.msk.mxu0 %vm1630_vm12, %v3481_v11  ;;  %v7492_v24 = vpop.f32.mrb[4].mxu1  ;;  %v3465_v44 = vsel %vm3418_vm1, %v5287_v53, %v5291_v18  ;;  %v3466_v4 = vsel %vm3418_vm1, %v5291_v18, %v5292_v56  ;;  %v468_v9 = vand.u32 15, %v8221_v55 }
 0x258   : > { %v5300_v2 = vpop.permute.xlu1 %5299  ;;  %v3469_v46 = vsel %vm3418_vm1, %v5296_v33, %v5297_v60  ;;  %v7496_v58 = vpop.f32.mrb[5].mxu1  ;;  %v3468_v37 = vsel %vm3418_vm1, %v5271_v15, %v5296_v33 }
 0x259   : > { %v5302_v0 = vunpack.i.h.bf16 %v5300_v2  ;;  %v5301_v57 = vunpack.i.l.bf16 %v5300_v2  ;;  %v3411_v13 = vpop.permute.xlu0 %3410  ;;  %v4814_v6 = vpack.c.bf16 %v3469_v46, %v3464_v14  ;;  %v4816_v15 = vpack.c.bf16 %v3468_v37, %v3463_v5 }
 0x25a   : > { %4617 = vmatpush1.msk.msra.mxu0 %vm1630_vm12, %v3480_v61  ;;  %v3484_v49 = vsel %vm3418_vm1, %v7460_v63, %v3411_v13  ;;  %v8219_v63 = vld [vmem:[#allocation2_spill] sm:$0xff]  ;;  %vm620_vm6 = vcmp.ge.s32.totalorder %v468_v9, 1 }
 0x25b   : > { %v3470_v48 = vsel %vm3418_vm1, %v5297_v60, %v5301_v57  ;;  %4618 = vmatmul.mubr.msk.f32.vlgmr.msra.gmra.mrb[20].mxu0 %vm1690_vm14, %v7332_v23  ;;  %4811 = vmatprep.subr.bf16.mxu0 %v4810_v34  ;;  %v3471_v42 = vsel %vm3418_vm1, %v5301_v57, %v5302_v0  ;;  %v7511_v47 = vpop.f32.mrb[2].mxu0  ;;  %v7545_v40 = vadd.s32 384, %v8219_v63  ;;  %v426_v45 = vand.u32 15, %v8219_v63  ;;  %v8222_v34 = vld [vmem:[#allocation4_spill] sm:$0xff] }
 0x25c   : > { %v4824_v62 = vpack.c.bf16 %v3470_v48, %v3465_v44  ;;  %v3413_v51 = vpop.permute.xlu1 %3412  ;;  %4813 = vmatpush1.bf16.msra.mxu0 %v4812_v3  ;;  %v4822_v50 = vpack.c.bf16 %v3471_v42, %v3466_v4  ;;  %4066 = vmatprep.mubr.f32.mxu0 %v8112_v22  ;;  %v7514_v59 = vpop.f32.mrb[3].mxu0  ;;  %v7559_v30 = vadd.s32 896, %v8219_v63  ;;  %v454_v14 = vand.u32 15, %v8222_v34  ;;  %v8223_v3 = vld [vmem:[#allocation6_spill] sm:$0xff] }
 0x25d   : > { %4815 = vmatprep.subr.bf16.mxu0 %v4814_v6  ;;  %v3415_v12 = vpop.permute.xlu0 %3414  ;;  %v3485_v1 = vsel %vm3418_vm1, %v3411_v13, %v3413_v51  ;;  %v447_v52 = vand.u32 15, %v7545_v40  ;;  %vm614_vm4 = vcmp.ge.s32.totalorder %v426_v45, 1  ;;  %v7589_v46 = vadd.s32 1408, %v8219_v63 }
 0x25e   : > { %4823 = vmatprep.subr.bf16.mxu1 %v4822_v50  ;;  %v3486_v22 = vsel %vm3418_vm1, %v3413_v51, %v3415_v12  ;;  %v475_v21 = vand.u32 15, %v7559_v30  ;;  %v2326_v56 = vsel %vm614_vm4, %v7464_v38, 0.0  ;;  %v2332_v38 = vsel %vm620_vm6, %v7445_v35, 0.0  ;;  %v8224_v50 = vld [vmem:[#allocation5_spill] sm:$0xff] }
 0x25f   : > { %4825 = vmatpush1.bf16.msra.mxu1 %v4824_v62  ;;  %vm617_vm3 = vcmp.ge.s32.totalorder %v447_v52, 1  ;;  %v496_v44 = vand.u32 15, %v8223_v3  ;;  %vm618_vm8 = vcmp.ge.s32.totalorder %v454_v14, 1  ;;  %v503_v35 = vand.u32 15, %v7589_v46 }
 0x260   : > { %v3417_v31 = vpop.permute.xlu1 %3416  ;;  %4817 = vmatpush1.bf16.msra.mxu0 %v4816_v15  ;;  %v2329_v53 = vsel %vm617_vm3, %v7372_v32, 0.0  ;;  %v7577_v32 = vadd.s32 640, %v8219_v63  ;;  %vm621_vm7 = vcmp.ge.s32.totalorder %v475_v21, 1  ;;  %v2330_v4 = vsel %vm618_vm8, %v7511_v47, 0.0 }
 0x261   : > { %v3487_v27 = vsel %vm3418_vm1, %v3415_v12, %v3417_v31  ;;  %4622 = vmatprep.subr.msk.mxu0 %vm1630_vm12, %v3485_v1  ;;  %vm624_vm10 = vcmp.ge.s32.totalorder %v496_v44, 1  ;;  %vm625_vm0 = vcmp.ge.s32.totalorder %v503_v35, 1  ;;  %v482_v5 = vand.u32 15, %v8224_v50 }
 0x262   : > { %4625 = vmatprep.subr.msk.mxu1 %vm1630_vm12, %v3487_v27  ;;  %v7524_v26 = vpop.f32.mrb[6].mxu1  ;;  %v461_v0 = vand.u32 15, %v7577_v32  ;;  %v2336_v47 = vsel %vm624_vm10, %v7492_v24, 0.0  ;;  %v7619_v15 = vadd.s32 1920, %v8219_v63  ;;  %vm632_vm3 = vcmp.le.s32.totalorder %v440_v29, 14 }
 0x263   : > { %4626 = vmatpush1.msk.msra.mxu1 %vm1630_vm12, %v3486_v22  ;;  %v7529_v43 = vpop.f32.mrb[7].mxu1  ;;  %vm622_vm11 = vcmp.ge.s32.totalorder %v482_v5, 1  ;;  %vm633_vm4 = vcmp.le.s32.totalorder %v447_v52, 14  ;;  %vm637_vm8 = vcmp.le.s32.totalorder %v475_v21, 14 }
 0x264   : > { %4623 = vmatpush1.msk.msra.mxu0 %vm1630_vm12, %v3484_v49  ;;  %4627 = vmatmul.mubr.msk.f32.vlgmr.msra.gmra.mrb[22].mxu1 %vm1690_vm14, %v7332_v23  ;;  %vm619_vm9 = vcmp.ge.s32.totalorder %v461_v0, 1  ;;  %v8225_v49 = vld [vmem:[#allocation9_spill] sm:$0xff]  ;;  %v531_v24 = vand.u32 15, %v7619_v15  ;;  %vm635_vm10 = vcmp.le.s32.totalorder %v461_v0, 14 }
 0x265   : > { %4624 = vmatmul.mubr.msk.f32.vlgmr.msra.gmra.mrb[22].mxu0 %vm1690_vm14, %v7332_v23  ;;  %v7552_v23 = vadd.s32 128, %v8219_v63  ;;  %v2331_v48 = vsel %vm619_vm9, %v7514_v59, 0.0  ;;  %v2337_v59 = vsel %vm625_vm0, %v7496_v58, 0.0  ;;  %v7637_v58 = vadd.s32 1664, %v8219_v63 }
 0x266   : > { %v7536_v7 = vpop.f32.mrb[4].mxu0  ;;  %vm629_vm15 = vcmp.ge.s32.totalorder %v531_v24, 1  ;;  %vm634_vm9 = vcmp.le.s32.totalorder %v454_v14, 14  ;;  %vm640_vm0 = vcmp.le.s32.totalorder %v496_v44, 14 }
 0x267   : > { %v7538_v19 = vpop.f32.mrb[5].mxu0  ;;  %v433_v41 = vand.u32 15, %v7552_v23 }
 0x269   : > { %vm615_vm5 = vcmp.ge.s32.totalorder %v433_v41, 1  ;;  %vm631_vm6 = vcmp.le.s32.totalorder %v433_v41, 14 }
 0x26a   : > { %v2327_v60 = vsel %vm615_vm5, %v7473_v20, 0.0  ;;  %v2333_v20 = vsel %vm621_vm7, %v7450_v17, 0.0  ;;  %v7607_v17 = vadd.s32 1152, %v8219_v63  ;;  %vm630_vm5 = vcmp.le.s32.totalorder %v426_v45, 14 }
 0x26b   : > { %vm636_vm7 = vcmp.le.s32.totalorder %v468_v9, 14 }
 0x26c   : > { %v489_v1 = vand.u32 15, %v7607_v17 }
 0x26e   : > { %vm623_vm13 = vcmp.ge.s32.totalorder %v489_v1, 1 }
 0x270   : > { %v7540_v10 = vpop.f32.mrb[6].mxu0 }
 0x271   : > { %v7542_v36 = vpop.f32.mrb[7].mxu0 }
 0x2eb   : > { %v2839_v28 = vpop.f32.mrb[8].mxu1 }
 0x2ec   : > { %v7563_v8 = vadd.f32 %v2839_v28, %v2328_v16  ;;  %v2841_v54 = vpop.f32.mrb[9].mxu1  ;;  %v524_v16 = vand.u32 15, %v8225_v49  ;;  %v2334_v28 = vsel %vm622_vm11, %v7536_v7, 0.0  ;;  %vm641_vm11 = vcmp.le.s32.totalorder %v503_v35, 14 }
 0x2ed   : > { %v7565_v11 = vadd.f32 %v2841_v54, %v2329_v53  ;;  %v2335_v54 = vsel %vm623_vm13, %v7538_v19, 0.0  ;;  %vm638_vm13 = vcmp.le.s32.totalorder %v482_v5, 14 }
 0x2ee   : > { %vm628_vm14 = vcmp.ge.s32.totalorder %v524_v16, 1 }
 0x2ef   : > { %v2340_v7 = vsel %vm628_vm14, %v7524_v26, 0.0  ;;  %vm639_vm14 = vcmp.le.s32.totalorder %v489_v1, 14 }
 0x2f2   : > { %v2768_v18 = vpop.f32.mrb[8].mxu0 }
 0x2f3   : > { %v7582_v33 = vadd.f32 %v2768_v18, %v2326_v56  ;;  %v2770_v25 = vpop.f32.mrb[9].mxu0 }
 0x2f4   : > { %v7584_v2 = vadd.f32 %v2770_v25, %v2327_v60  ;;  %v8226_v25 = vld [vmem:[#allocation7_spill] sm:$0xff] }
 0x2f5   : > { %v2981_v61 = vpop.f32.mrb[10].mxu1 }
 0x2f6   : > { %v7593_v57 = vadd.f32 %v2981_v61, %v2332_v38  ;;  %v2983_v13 = vpop.f32.mrb[11].mxu1  ;;  %v510_v38 = vand.u32 15, %v8226_v25 }
 0x2f7   : > { %v7595_v6 = vadd.f32 %v2983_v13, %v2333_v20  ;;  %v517_v20 = vand.u32 15, %v7637_v58  ;;  %v2341_v13 = vsel %vm629_vm15, %v7529_v43, 0.0  ;;  %vm644_vm15 = vcmp.le.s32.totalorder %v524_v16, 14 }
 0x2f8   : > { %vm626_vm1 = vcmp.ge.s32.totalorder %v510_v38, 1  ;;  %v5373_v58 = vmov (!%p4628_p13), 0.0  }
 0x2f9   : > { %vm627_vm2 = vcmp.ge.s32.totalorder %v517_v20, 1 }
 0x2fa   : > { %v2339_v26 = vsel %vm627_vm2, %v7542_v36, 0.0  ;;  %vm645_vm2 = vcmp.le.s32.totalorder %v531_v24, 14 }
 0x2fc   : > { %v2910_v37 = vpop.f32.mrb[10].mxu0 }
 0x2fd   : > { %v7612_v42 = vadd.f32 %v2910_v37, %v2330_v4  ;;  %v2912_v62 = vpop.f32.mrb[11].mxu0 }
 0x2fe   : > { %v7614_v51 = vadd.f32 %v2912_v62, %v2331_v48  ;;  %v2338_v48 = vsel %vm626_vm1, %v7540_v10, 0.0  ;;  %vm642_vm1 = vcmp.le.s32.totalorder %v510_v38, 14 }
 0x2ff   : > { %v3123_v12 = vpop.f32.mrb[12].mxu1 }
 0x300   : > { %v7623_v31 = vadd.f32 %v3123_v12, %v2336_v47  ;;  %v3125_v27 = vpop.f32.mrb[13].mxu1 }
 0x301   : > { %v7625_v22 = vadd.f32 %v3125_v27, %v2337_v59 }
 0x306   : > { %v3052_v53 = vpop.f32.mrb[12].mxu0 }
 0x307   : > { %v7642_v56 = vadd.f32 %v3052_v53, %v2334_v28  ;;  %v3054_v18 = vpop.f32.mrb[13].mxu0 }
 0x308   : > { %v7644_v60 = vadd.f32 %v3054_v18, %v2335_v54 }
 0x309   : > { %v3265_v61 = vpop.f32.mrb[14].mxu1 }
 0x30a   : > { %v7650_v4 = vadd.f32 %v3265_v61, %v2340_v7  ;;  %v3267_v19 = vpop.f32.mrb[15].mxu1 }
 0x30b   : > { %v7652_v37 = vadd.f32 %v3267_v19, %v2341_v13 }
 0x310   : > { %v3194_v62 = vpop.f32.mrb[14].mxu0 }
 0x311   : > { %v7660_v47 = vadd.f32 %v3194_v62, %v2338_v48  ;;  %v3196_v12 = vpop.f32.mrb[15].mxu0 }
 0x312   : > { %v7664_v43 = vadd.f32 %v3196_v12, %v2339_v26 }
 0x313   : > { %v3713_v59 = vpop.f32.mrb[16].mxu1 }
 0x314   : > { %v4178_v27 = vsel %vm632_vm3, %v3713_v59, 0.0  ;;  %v3715_v28 = vpop.f32.mrb[17].mxu1  ;;  %vm643_vm3 = vcmp.le.s32.totalorder %v517_v20, 14 }
 0x315   : > { %v7669_v53 = vadd.f32 %v4178_v27, %v7563_v8  ;;  %v4179_v10 = vsel %vm633_vm4, %v3715_v28, 0.0  ;;  %vm4212_vm4 = vcmask (!%p4628_p13), 3072  }
 0x316   : > { %v7672_v36 = vadd.f32 %v4179_v10, %v7565_v11  ;;  %4213 = vst.msk [vmem:[%s5443_s6] sm:$0xf] (!%p4628_p13), %vm4212_vm4, %v5373_v58  ;;  %4214 = vst.msk [vmem:[%s5443_s6 + $0x4] sm:$0xf] (!%p4628_p13), %vm4212_vm4, %v5373_v58 }
 0x31a   : > { %v3642_v39 = vpop.f32.mrb[16].mxu0 }
 0x31b   : > { %v4176_v29 = vsel %vm630_vm5, %v3642_v39, 0.0  ;;  %v3644_v40 = vpop.f32.mrb[17].mxu0 }
 0x31c   : > { %v7681_v52 = vadd.f32 %v4176_v29, %v7582_v33  ;;  %v4177_v8 = vsel %vm631_vm6, %v3644_v40, 0.0 }
 0x31d   : > { %v7686_v11 = vadd.f32 %v4177_v8, %v7584_v2  ;;  %v3855_v63 = vpop.f32.mrb[18].mxu1 }
 0x31e   : > { %v4182_v45 = vsel %vm636_vm7, %v3855_v63, 0.0  ;;  %v3857_v23 = vpop.f32.mrb[19].mxu1 }
 0x31f   : > { %v7689_v41 = vadd.f32 %v4182_v45, %v7593_v57  ;;  %v4183_v54 = vsel %vm637_vm8, %v3857_v23, 0.0 }
 0x320   : > { %v7692_v55 = vadd.f32 %v4183_v54, %v7595_v6 }
 0x324   : > { %v3784_v30 = vpop.f32.mrb[18].mxu0 }
 0x325   : > { %v4180_v9 = vsel %vm634_vm9, %v3784_v30, 0.0  ;;  %v3786_v21 = vpop.f32.mrb[19].mxu0 }
 0x326   : > { %v7701_v33 = vadd.f32 %v4180_v9, %v7612_v42  ;;  %v4181_v2 = vsel %vm635_vm10, %v3786_v21, 0.0 }
 0x327   : > { %v7706_v57 = vadd.f32 %v4181_v2, %v7614_v51  ;;  %v3997_v34 = vpop.f32.mrb[20].mxu1 }
 0x328   : > { %v4186_v14 = vsel %vm640_vm0, %v3997_v34, 0.0  ;;  %v3999_v32 = vpop.f32.mrb[21].mxu1 }
 0x329   : > { %v7709_v0 = vadd.f32 %v4186_v14, %v7623_v31  ;;  %v4187_v6 = vsel %vm641_vm11, %v3999_v32, 0.0 }
 0x32a   : > { %v7712_v3 = vadd.f32 %v4187_v6, %v7625_v22 }
 0x32e   : > { %v3926_v46 = vpop.f32.mrb[20].mxu0 }
 0x32f   : > { %v4184_v44 = vsel %vm638_vm13, %v3926_v46, 0.0  ;;  %v3928_v35 = vpop.f32.mrb[21].mxu0 }
 0x330   : > { %v7719_v42 = vadd.f32 %v4184_v44, %v7642_v56  ;;  %v4185_v51 = vsel %vm639_vm14, %v3928_v35, 0.0 }
 0x331   : > { %v7722_v31 = vadd.f32 %v4185_v51, %v7644_v60 }
 0x335   : > { %4211 = sbr.rel (%p4628_p13) target bundleno = 828 (0x33c), region = 40 }
 0x337   : > { %v4139_v17 = vpop.f32.mrb[22].mxu1 }
 0x338   : > { %v4190_v50 = vsel %vm644_vm15, %v4139_v17, 0.0  ;;  %v4068_v5 = vpop.f32.mrb[22].mxu0  ;;  %v4141_v1 = vpop.f32.mrb[23].mxu1 }
 0x339   : > { %v7733_v22 = vadd.f32 %v4190_v50, %v7650_v4  ;;  %v4188_v56 = vsel %vm642_vm1, %v4068_v5, 0.0  ;;  %v4191_v18 = vsel %vm645_vm2, %v4141_v1, 0.0  ;;  %v4070_v49 = vpop.f32.mrb[23].mxu0 }
 0x33a   : > { %v7736_v16 = vadd.f32 %v4188_v56, %v7660_v47  ;;  %v7739_v60 = vadd.f32 %v4191_v18, %v7652_v37  ;;  %v4189_v15 = vsel %vm643_vm3, %v4070_v49, 0.0 }
 0x33b   : > { %v7742_v24 = vadd.f32 %v4189_v15, %v7664_v43 }
 0x33c PF: > { %v4216_v25 = vsel %vm1630_vm12, %v7681_v52, 0.0  ;;  %v4217_v38 = vsel %vm1630_vm12, %v7686_v11, 0.0  ;;  %v4219_v7 = vsel %vm1630_vm12, %v7669_v53, 0.0  ;;  %v4221_v20 = vsel %vm1630_vm12, %v7672_v36, 0.0 }
 0x33d   : > { %v4218_v61 = vadd.f32 %v4217_v38, %v4216_v25  ;;  %v4223_v4 = vsel %vm1630_vm12, %v7701_v33, 0.0  ;;  %v4254_v37 = vmul.f32 %v7681_v52, %v7681_v52  ;;  %v4255_v48 = vmul.f32 %v7686_v11, %v7686_v11 }
 0x33e   : > { %v4256_v62 = vmul.f32 %v7669_v53, %v7669_v53  ;;  %v4225_v26 = vsel %vm1630_vm12, %v7706_v57, 0.0  ;;  %v4257_v12 = vmul.f32 %v7672_v36, %v7672_v36  ;;  %v4227_v43 = vsel %vm1630_vm12, %v7689_v41, 0.0 }
 0x33f   : > { %v4220_v13 = vadd.f32 %v4219_v7, %v4218_v61  ;;  %v4258_v59 = vmul.f32 %v7701_v33, %v7701_v33  ;;  %v4270_v28 = vsel %vm1630_vm12, %v4254_v37, 0.0  ;;  %v4271_v10 = vsel %vm1630_vm12, %v4255_v48, 0.0 }
 0x340   : > { %v4273_v39 = vsel %vm1630_vm12, %v4256_v62, 0.0  ;;  %v4229_v29 = vsel %vm1630_vm12, %v7692_v55, 0.0  ;;  %v4272_v40 = vadd.f32 %v4271_v10, %v4270_v28  ;;  %v4259_v63 = vmul.f32 %v7706_v57, %v7706_v57 }
 0x341   : > { %v4222_v19 = vadd.f32 %v4221_v20, %v4220_v13  ;;  %v4275_v45 = vsel %vm1630_vm12, %v4257_v12, 0.0  ;;  %v4231_v23 = vsel %vm1630_vm12, %v7719_v42, 0.0  ;;  %v4260_v9 = vmul.f32 %v7689_v41, %v7689_v41 }
 0x342   : > { %v4274_v54 = vadd.f32 %v4273_v39, %v4272_v40  ;;  %v4277_v21 = vsel %vm1630_vm12, %v4258_v59, 0.0  ;;  %v4233_v2 = vsel %vm1630_vm12, %v7722_v31, 0.0  ;;  %v4261_v32 = vmul.f32 %v7692_v55, %v7692_v55 }
 0x343   : > { %v4224_v47 = vadd.f32 %v4223_v4, %v4222_v19  ;;  %v4279_v6 = vsel %vm1630_vm12, %v4259_v63, 0.0  ;;  %v4235_v46 = vsel %vm1630_vm12, %v7709_v0, 0.0  ;;  %v4262_v51 = vmul.f32 %v7719_v42, %v7719_v42 }
 0x344   : > { %v4276_v34 = vadd.f32 %v4275_v45, %v4274_v54  ;;  %v4281_v17 = vsel %vm1630_vm12, %v4260_v9, 0.0  ;;  %v4237_v50 = vsel %vm1630_vm12, %v7712_v3, 0.0  ;;  %v4263_v56 = vmul.f32 %v7722_v31, %v7722_v31 }
 0x345   : > { %v4226_v27 = vadd.f32 %v4225_v26, %v4224_v47  ;;  %v4283_v18 = vsel %vm1630_vm12, %v4261_v32, 0.0  ;;  %v4239_v49 = vsel %vm1630_vm12, %v7736_v16, 0.0  ;;  %v4264_v25 = vmul.f32 %v7709_v0, %v7709_v0 }
 0x346   : > { %v4278_v44 = vadd.f32 %v4277_v21, %v4276_v34  ;;  %v4285_v38 = vsel %vm1630_vm12, %v4262_v51, 0.0  ;;  %v4241_v7 = vsel %vm1630_vm12, %v7742_v24, 0.0  ;;  %v4265_v13 = vmul.f32 %v7712_v3, %v7712_v3 }
 0x347   : > { %v4228_v8 = vadd.f32 %v4227_v43, %v4226_v27  ;;  %v4287_v4 = vsel %vm1630_vm12, %v4263_v56, 0.0  ;;  %v4243_v19 = vsel %vm1630_vm12, %v7733_v22, 0.0  ;;  %v4266_v62 = vmul.f32 %v7736_v16, %v7736_v16 }
 0x348   : > { %v4280_v5 = vadd.f32 %v4279_v6, %v4278_v44  ;;  %v4289_v26 = vsel %vm1630_vm12, %v4264_v25, 0.0  ;;  %v4245_v47 = vsel %vm1630_vm12, %v7739_v60, 0.0  ;;  %v4267_v59 = vmul.f32 %v7742_v24, %v7742_v24 }
 0x349   : > { %v4230_v30 = vadd.f32 %v4229_v29, %v4228_v8  ;;  %v4291_v27 = vsel %vm1630_vm12, %v4265_v13, 0.0  ;;  %v4268_v39 = vmul.f32 %v7733_v22, %v7733_v22  ;;  %v4293_v29 = vsel %vm1630_vm12, %v4266_v62, 0.0 }
 0x34a   : > { %v4282_v15 = vadd.f32 %v4281_v17, %v4280_v5  ;;  %v4269_v8 = vmul.f32 %v7739_v60, %v7739_v60  ;;  %v4295_v63 = vsel %vm1630_vm12, %v4267_v59, 0.0  ;;  %v4322_v34 = vcombine.low %v7669_v53, %v7672_v36  ;;  %v4215_v36 = vld [vmem:[%s5443_s6] sm:$0xf] }
 0x34b   : > { %v4232_v14 = vadd.f32 %v4231_v23, %v4230_v30  ;;  %v4297_v23 = vsel %vm1630_vm12, %v4268_v39, 0.0  ;;  %v4324_v32 = vcombine.low %v7689_v41, %v7692_v55  ;;  %v4325_v6 = vcombine.low %v7719_v42, %v7722_v31  ;;  %v4629_v55 = vld [vmem:[%s5443_s6 + $0x4] sm:$0xf] }
 0x34c   : > { %v4284_v61 = vadd.f32 %v4283_v18, %v4282_v15  ;;  %v4299_v30 = vsel %vm1630_vm12, %v4269_v8, 0.0  ;;  %v4328_v53 = vcombine.low %v7733_v22, %v7739_v60  ;;  %4338 = vst [vmem:[%s5454_s14 + $0x8] sm:$0xff] %v4322_v34  ;;  %vm4250_vm12 = vcmask 3072  }
 0x34d   : > { %v4234_v35 = vadd.f32 %v4233_v2, %v4232_v14  ;;  %v4321_v2 = vcombine.low %v7681_v52, %v7686_v11  ;;  %v4323_v14 = vcombine.low %v7701_v33, %v7706_v57  ;;  %v4327_v52 = vcombine.low %v7736_v16, %v7742_v24  ;;  %4340 = vst [vmem:[%s5454_s14 + $0x18] sm:$0xff] %v4324_v32 }
 0x34e   : > { %v4286_v37 = vadd.f32 %v4285_v38, %v4284_v61  ;;  %4341 = vst [vmem:[%s5454_s14 + $0x20] sm:$0xff] %v4325_v6  ;;  %4344 = vst [vmem:[%s5454_s14 + $0x38] sm:$0xff] %v4328_v53 }
 0x34f   : > { %v4236_v1 = vadd.f32 %v4235_v46, %v4234_v35  ;;  %v4326_v46 = vcombine.low %v7709_v0, %v7712_v3  ;;  %4337 = vst [vmem:[%s5454_s14] sm:$0xff] %v4321_v2  ;;  %4339 = vst [vmem:[%s5454_s14 + $0x10] sm:$0xff] %v4323_v14 }
 0x350   : > { %v4288_v12 = vadd.f32 %v4287_v4, %v4286_v37  ;;  %4343 = vst [vmem:[%s5454_s14 + $0x30] sm:$0xff] %v4327_v52 }
 0x351   : > { %v4238_v58 = vadd.f32 %v4237_v50, %v4236_v1  ;;  %4342 = vst [vmem:[%s5454_s14 + $0x28] sm:$0xff] %v4326_v46 }
 0x352   : > { %v4290_v28 = vadd.f32 %v4289_v26, %v4288_v12 }
 0x353   : > { %v4240_v20 = vadd.f32 %v4239_v49, %v4238_v58 }
 0x354   : > { %v4292_v40 = vadd.f32 %v4291_v27, %v4290_v28 }
 0x355   : > { %v4242_v48 = vadd.f32 %v4241_v7, %v4240_v20 }
 0x356   : > { %v4294_v45 = vadd.f32 %v4293_v29, %v4292_v40 }
 0x357   : > { %v4244_v43 = vadd.f32 %v4243_v19, %v4242_v48 }
 0x358   : > { %v4296_v54 = vadd.f32 %v4295_v63, %v4294_v45 }
 0x359   : > { %v4246_v10 = vadd.f32 %v4245_v47, %v4244_v43 }
 0x35a   : > { %v4298_v9 = vadd.f32 %v4297_v23, %v4296_v54 }
 0x35b   : > { %4247 = vadd.xlane.f32.xlu0 %v4246_v10 }
 0x35c   : > { %v4300_v21 = vadd.f32 %v4299_v30, %v4298_v9 }
 0x35f   : > { %4301 = vadd.xlane.f32.xlu0 %v4300_v21 }
 0x3e8   : > { %v4248_v11 = vpop.xlane.xlu0 %4247 }
 0x3e9   : > { %v4249_v41 = vadd.f32 %v4248_v11, %v4215_v36 }
 0x3eb   : > { %4251 = vst.msk [vmem:[%s5443_s6] sm:$0xf] %vm4250_vm12, %v4249_v41 }
 0x3ec   : > { %v4302_v33 = vpop.xlane.xlu0 %4301 }
 0x3ed   : > { %v4303_v57 = vadd.f32 %v4629_v55, %v4302_v33 }
 0x3ef   : > { %4630 = vst.msk [vmem:[%s5443_s6 + $0x4] sm:$0xf] %vm4250_vm12, %v4303_v57 }
 0x3f0 PF: > { %s16_s22 = sadd.s32 1, %s5365_s22   ;;  %s8227_s18 = smov %s5357_s20 }
 0x3f1   : > { %p13_p0 = scmp.ge.s32.totalorder %s16_s22, 6   ;;  %s8228_s19 = smov %s5361_s21 }
 0x3f2   : > { %s8229_s20 = smov %s8232_s23  ;;  %s8230_s21 = smov %s8236_s24 }
 0x3f3   :  { %15 = sbr.rel (!%p13_p0) target bundleno = 3 (0x3), region = 91 }

// kernel: outconv_forward.5
= control target key start
LH: loop header
LB: loop body
LE: loop exit
PB: predicated region body
PF: predicated region fallthrough
CT: control target
= control target key end

     0   :  { %s5368_s24 = smov 0   ;;  %s5370_s25 = smov 0   ;;  %s7619_s0 = inlined_call_operand.vmem [shape: f32[2,2,4096], index: 0, kind: input, shape index: {}, may-alias: {0,1,2}]   ;;  %s7620_s1 = inlined_call_operand.vmem [shape: f32[2,2,4096], index: 1, kind: input, shape index: {}, may-alias: {0,1,2}]   ;;  %s7621_s2 = inlined_call_operand.vmem [shape: f32[2,2,4096], index: 2, kind: input, shape index: {}, may-alias: {0,1,2}]   ;;  %s7622_s3 = inlined_call_operand.vmem [shape: f32[3,2,18], index: 3, kind: input, shape index: {}]   ;;  %s7623_s4 = inlined_call_operand.vmem [shape: f32[2,1], index: 4, kind: input, shape index: {}]   ;;  %s7624_s5 = inlined_call_operand.vmem [shape: f32[2,1], index: 5, kind: input, shape index: {}]   ;;  %s7625_s6 = inlined_call_operand.vmem [shape: f32[2,1], index: 6, kind: input, shape index: {}]   ;;  %s7626_s7 = inlined_call_operand.vmem [shape: f32[2,2,4096], index: 7, kind: output, shape index: {}]  }
   0x1   :  { %s5372_s26 = smov 0   ;;  %s5374_s27 = smov 0  }
   0x2   :  { %s5376_s28 = smov 0  }
   0x3 LB: > { %s26_s29 = sadd.s32 1, %s5309_s26  ;;  %s29_s30 = sadd.s32 1, %s5313_s27  ;;  %s5317_s28 = sphi %s5376_s28, %s17_s28   ;;  %s5313_s27 = sphi %s5374_s27, %s7931_s27   ;;  %s5309_s26 = sphi %s5372_s26, %s7930_s26   ;;  %s5305_s25 = sphi %s5370_s25, %s7929_s25   ;;  %s5301_s24 = sphi %s5368_s24, %s7928_s24  }
   0x4   : > { %p27_p0 = scmp.ge.s32.totalorder %s26_s29, 2  ;;  %p4633_p1 = scmp.ge.s32.totalorder %s5317_s28, 1 }
   0x5   : > { %p324_p2 = scmp.lt.s32.totalorder %s5317_s28, 5 }
   0x6   : > { %s7933_s29 = smov (%p27_p0, %s26_s29), 0  ;;  %s7935_s30 = smov (!%p27_p0, %s29_s30), %s5313_s27 }
   0x7   : > { %p325_p3 = pnand %p4633_p1, %p324_p2  ;;  %p31_p4 = scmp.ge.s32.totalorder %s7935_s30, 2 }
   0x9   : > { %s7937_s30 = smov (%p31_p4, %s7935_s30), 0  ;;  %328 = sbr.rel (%p325_p3) target bundleno = 987 (0x3db), region = 48 }
  0x10   : > { %v1011_v0 = vld [vmem:[%s7623_s4] sm:$0x3]  ;;  %v5319_v1 = vmov 0   ;;  %s4637_s12 = sshll.u32 %s5301_s24, 3  ;;  %s4634_s15 = sshll.u32 %s5301_s24, 4  ;;  %v446_v5 = vlaneseq  ;;  %vm1080_vm2 = vcmask 138240  }
  0x11   : > { %4892 = vset.pattern.permute.xlu0 %v5319_v1  ;;  %5278 = vset.pattern.permute.xlu1 %v5319_v1  ;;  %v1028_v2 = vld [vmem:[%s7624_s5] sm:$0x3]  ;;  %s4638_s13 = sadd.s32 4294967295, %s4637_s12  ;;  %s419_s14 = sadd.s32 8, %s4637_s12  ;;  %v5320_v3 = vmov 269488144  }
  0x12   : > { %1014 = vperm.xlu0 %4892, %v1011_v0   ;;  %p402_p5 = scmp.gt.s32.totalorder %s4638_s13, 0  ;;  %p391_p6 = scmp.lt.s32.totalorder %s5305_s25, 1  ;;  %v1017_v4 = vunpack.c.l.s4 %v5320_v3  ;;  %v1020_v7 = vshrl.u32 %v446_v5, 7  ;;  %v5321_v9 = vmov 1983009808  }
  0x13   : > { %p420_p7 = scmp.lt.s32.totalorder %s419_s14, 15  ;;  %p393_p8 = scmp.lt.s32.totalorder %s4634_s15, 31  ;;  %v1069_v10 = vunpack.c.l.s4 %v5321_v9 }
  0x14   : > { %s7939_s13 = smov (!%p402_p5, %s4638_s13), 0  ;;  %s7941_s25 = smov (!%p391_p6, %s5305_s25), 1  ;;  %v1018_v6 = vunpack.c.0.s8 %v1017_v4 }
  0x15   : > { %s4639_s16 = sshll.u32 %s7939_s13, 1  ;;  %s7943_s14 = smov (!%p420_p7, %s419_s14), 15  ;;  %v1070_v13 = vunpack.c.0.s8 %v1069_v10 }
  0x16   : > { %1031 = vperm.xlu0 %4892, %v1028_v2   ;;  %p407_p9 = scmp.lt.s32.totalorder %s4639_s16, 31  ;;  %s7945_s15 = smov (!%p393_p8, %s4634_s15), 31  ;;  %v1021_v8 = vsub.s32 %v1018_v6, %v1020_v7 }
  0x17   : > { %s4635_s17 = sshll.u32 %s7941_s25, 5  ;;  %s4643_s18 = sshll.u32 %s7943_s14, 1  ;;  %v5423_v24 = vsub.s32 %v1070_v13, %v1020_v7  ;;  %v5459_v7 = vand.u32 127, %v446_v5 }
  0x18   : > { %s7947_s16 = smov (!%p407_p9, %s4639_s16), 31  ;;  %s396_s19 = sadd.s32 %s4635_s17, %s7945_s15 }
  0x19   : > { %p425_p10 = scmp.lt.s32.totalorder %s4643_s18, 31  ;;  %s410_s20 = sadd.s32 %s4635_s17, %s7947_s16  ;;  %7717 = vst [vmem:[#allocation2_spill] sm:$0xff] %v5423_v24  ;;  %7718 = vst [vmem:[#allocation3_spill] sm:$0xff] %v5459_v7  ;;  %v691_v5 = vadd.s32 2560, %v5459_v7 }
  0x1a   : > { %s5413_s21 = sshll.u32 %s396_s19, 1  ;;  %s4641_s22 = sshll.u32 %s410_s20, 1 }
  0x1b   : > { %s7949_s18 = smov (!%p425_p10, %s4643_s18), 31  ;;  %s398_s25 = scalar_lea.vmem %s7619_s0, %s5413_s21 }
  0x1c   : > { %p1049_p11 = scmp.gt.s32.totalorder %s5301_s24, 0  ;;  %s412_s11 = scalar_lea.vmem %s7620_s1, %s4641_s22  ;;  %v1008_v14 = vld [vmem:[%s398_s25 + $0x8] sm:$0xff]  ;;  %v1007_v15 = vld [vmem:[%s398_s25] sm:$0xff]  ;;  %v1009_v16 = vld [vmem:[%s398_s25 + $0x10] sm:$0xff] }
  0x1d   : > { %s428_s12 = sadd.s32 %s4635_s17, %s7949_s18  ;;  %v1050_v17 = vld [vmem:[%s412_s11] sm:$0xf]  ;;  %v1010_v19 = vld [vmem:[%s398_s25 + $0x18] sm:$0xff]  ;;  %p1058_p12 = scmp.lt.s32.totalorder %s5301_s24, 1 }
  0x1e   : > { %s4645_s13 = sshll.u32 %s428_s12, 1  ;;  %s5322_s19 = smov 17  }
  0x1f   : > { %s1054_s14 = scalar_select %p1049_p11, 1, 0 }
  0x20   : > { %s430_s17 = scalar_lea.vmem %s7621_s2, %s4645_s13  ;;  %s5323_s24 = smov 96  }
  0x21   : > { %v1055_v31 = vstv %s1054_s14  ;;  %v1059_v35 = vld [vmem:[%s430_s17] sm:$0xf]  ;;  %s1063_s18 = scalar_select %p1058_p12, 1, 0 }
  0x22   : > { %vm1056_vm0 = vcmp.eq.s32.totalorder %v1055_v31, 1  ;;  %s5324_s20 = smov 112   ;;  %s5326_s22 = smov 127  }
  0x23   : > { %v1064_v46 = vstv %s1063_s18  ;;  %s5327_s23 = smov 126   ;;  %s7550_s17 = scalar_lea.vmem %s7626_s7, %s5413_s21 }
  0x24   : > { %vm1065_vm1 = vcmp.eq.s32.totalorder %v1064_v46, 1 }
  0x91   : > { %v1015_v11 = vpop.permute.xlu0 %1014 }
  0x92   : > { %v1022_v12 = vrot.slane %v1015_v11, %v1021_v8 }
  0x94   : > { %v1025_v21 = vmul.f32 %v1022_v12, %v1008_v14  ;;  %v1024_v22 = vmul.f32 %v1022_v12, %v1007_v15  ;;  %v1026_v23 = vmul.f32 %v1022_v12, %v1009_v16  ;;  %v1051_v25 = vmul.f32 %v1050_v17, %v1022_v12 }
  0x95   : > { %v1032_v18 = vpop.permute.xlu0 %1031  ;;  %v1027_v29 = vmul.f32 %v1022_v12, %v1010_v19  ;;  %v1060_v39 = vmul.f32 %v1059_v35, %v1022_v12 }
  0x96   : > { %v1039_v20 = vrot.slane %v1032_v18, %v1021_v8  ;;  %v4649_v8 = vadd.s32 4294967279, %v5459_v7 }
  0x98   : > { %v1042_v26 = vadd.f32 %v1039_v20, %v1025_v21  ;;  %v1041_v27 = vadd.f32 %v1039_v20, %v1024_v22  ;;  %v1043_v28 = vadd.f32 %v1039_v20, %v1026_v23  ;;  %v1052_v30 = vadd.f32 %v1051_v25, %v1039_v20 }
  0x99   : > { %v1044_v34 = vadd.f32 %v1039_v20, %v1027_v29  ;;  %v1061_v44 = vadd.f32 %v1060_v39, %v1039_v20  ;;  %v714_v9 = vsub.s32 0, %v4649_v8  ;;  %vm713_vm3 = vcmp.lt.s32.totalorder %v4649_v8, 0 }
  0x9a   : > { %v1046_v32 = vmax.f32 %v1042_v26, 0.0  ;;  %v1047_v33 = vmax.f32 %v1043_v28, 0.0  ;;  %v1053_v36 = vmax.f32 %v1052_v30, 0.0  ;;  %v1045_v38 = vmax.f32 %v1041_v27, 0.0 }
  0x9b   : > { %v1048_v42 = vmax.f32 %v1044_v34, 0.0  ;;  %v1062_v50 = vmax.f32 %v1061_v44, 0.0  ;;  %v4670_v10 = vmin.u32 %v4649_v8, %v714_v9  ;;  %v5477_v21 = vadd.s32 4294967279, %v691_v5 }
  0x9c   : > { %v1113_v37 = vrot.slane %v1046_v32, %v5423_v24  ;;  %v1130_v41 = vrot.slane %v1047_v33, %v5423_v24  ;;  %v1057_v43 = vsel %vm1056_vm0, %v1053_v36, 0.0  ;;  %v1096_v45 = vrot.slane %v1045_v38, %v5423_v24 }
  0x9d   : > { %v1147_v48 = vrot.slane %v1048_v42, %v5423_v24  ;;  %v1074_v49 = vrot.slane %v1057_v43, %v5423_v24  ;;  %v1066_v53 = vsel %vm1065_vm1, %v1062_v50, 0.0  ;;  %v1089_v56 = vcombine.high %v1045_v38, %v1045_v38 }
  0x9e   : > { %1165 = vrot.lane.b32.xlu1 %v1113_v37, %s5322_s19  ;;  %v1121_v40 = vcombine.high %v1113_v37, %v1113_v37  ;;  %v1138_v47 = vcombine.high %v1130_v41, %v1130_v41  ;;  %v1228_v55 = vrot.slane %v1066_v53, %v5423_v24  ;;  %v1106_v57 = vcombine.high %v1046_v32, %v1046_v32 }
  0x9f   : > { %v1155_v51 = vcombine.high %v1147_v48, %v1147_v48  ;;  %v1075_v52 = vcombine.high %v1074_v49, %v1074_v49  ;;  %v1103_v59 = vrot.slane %v1089_v56, %v5423_v24  ;;  %v1104_v60 = vcombine.high %v1096_v45, %v1096_v45 }
  0xa0   : > { %1167 = vrot.lane.b32.xlu0 %v1121_v40, %s5322_s19  ;;  %v1229_v58 = vcombine.high %v1228_v55, %v1228_v55  ;;  %v1120_v62 = vrot.slane %v1106_v57, %v5423_v24  ;;  %v1123_v63 = vcombine.high %v1047_v33, %v1047_v33  ;;  %v1140_v2 = vcombine.high %v1048_v42, %v1048_v42 }
  0xa1   : > { %v4893_v54 = vpack.i.bf16 %v1075_v52, %v1074_v49  ;;  %v1105_v61 = vcombine.high %v1103_v59, %v1103_v59  ;;  %v717_v11 = vand.u32 255, %v4670_v10  ;;  %v5480_v22 = vadd.s32 768, %v5459_v7 }
  0xa2   : > { %1157 = vrot.lane.b32.xlu1 %v1096_v45, %s5322_s19  ;;  %v1122_v0 = vcombine.high %v1120_v62, %v1120_v62  ;;  %v1137_v1 = vrot.slane %v1123_v63, %v5423_v24  ;;  %v1154_v4 = vrot.slane %v1140_v2, %v5423_v24  ;;  %v5485_v25 = vadd.s32 512, %v5459_v7 }
  0xa3   : > { %v718_v12 = vsub.s32 0, %v717_v11  ;;  %7719 = vst [vmem:[#allocation4_spill] sm:$0xff] %v5480_v22  ;;  %v5492_v28 = vadd.s32 1280, %v5459_v7  ;;  %v7634_v29 = vand.u32 255, %v5477_v21  ;;  %v5496_v30 = vadd.s32 4294967279, %v5480_v22 }
  0xa4   : > { %1175 = vrot.lane.b32.xlu0 %v1138_v47, %s5322_s19  ;;  %v1139_v3 = vcombine.high %v1137_v1, %v1137_v1  ;;  %v1156_v6 = vcombine.high %v1154_v4, %v1154_v4  ;;  %7720 = vst [vmem:[#allocation5_spill] sm:$0xff] %v5485_v25  ;;  %v5503_v33 = vadd.s32 1024, %v5459_v7  ;;  %v5506_v34 = vadd.s32 4294967279, %v5485_v25 }
  0xa5   : > { %v719_v16 = vsel %vm713_vm3, %v718_v12, %v717_v11  ;;  %7721 = vst [vmem:[#allocation6_spill] sm:$0xff] %v5492_v28  ;;  %v5511_v36 = vadd.s32 4294967279, %v5492_v28  ;;  %vm5520_vm8 = vcmp.ge.s32.totalorder %v7634_v29, 240  ;;  %v7723_v38 = vmov 0 }
  0xa6   : > { %1173 = vrot.lane.b32.xlu1 %v1130_v41, %s5322_s19  ;;  %vm860_vm4 = vcmp.ne.s32.totalorder %v719_v16, 0  ;;  %vm881_vm5 = vcmp.lt.s32.totalorder %v719_v16, 0  ;;  %v923_v20 = vadd.s32 256, %v719_v16  ;;  %7722 = vst [vmem:[#allocation7_spill] sm:$0xff] %v5503_v33  ;;  %v7724_v38 = vsel %vm5520_vm8, 4294967295, %v7723_v38 }
  0xa7   : > { %vm902_vm6 = vmand %vm881_vm5, %vm860_vm4  ;;  %7725 = vst [vmem:[#allocation8_spill] sm:$0xff] %v7724_v38  ;;  %v7629_v39 = vand.u32 255, %v5496_v30  ;;  %v5531_v42 = vadd.s32 1536, %v5459_v7  ;;  %v5538_v44 = vadd.s32 4294967279, %v5503_v33  ;;  %v745_v45 = vand.u32 255, %v5506_v34 }
  0xa8   : > { %1183 = vrot.lane.b32.xlu0 %v1155_v51, %s5322_s19  ;;  %v5489_v27 = vsel %vm902_vm6, %v923_v20, %v719_v16  ;;  %v5548_v49 = vadd.s32 1792, %v5459_v7  ;;  %v687_v53 = vadd.s32 2048, %v5459_v7 }
  0xa9   : > { %vm965_vm7 = vcmp.ge.s32.totalorder %v5489_v27, 240  ;;  %7726 = vst [vmem:[#allocation9_spill] sm:$0xff] %v5531_v42  ;;  %vm971_vm9 = vcmp.ge.s32.totalorder %v7629_v39, 240  ;;  %v4661_v51 = vadd.s32 4294967279, %v5531_v42  ;;  %vm969_vm10 = vcmp.ge.s32.totalorder %v745_v45, 240 }
  0xaa   : > { %1181 = vrot.lane.b32.xlu1 %v1147_v48, %s5322_s19  ;;  %v7630_v48 = vand.u32 255, %v5511_v36  ;;  %7728 = vst [vmem:[#allocation11_spill] sm:$0xff] %v5548_v49  ;;  %vm990_vm5 = vcmp.lt.s32.totalorder %v745_v45, 16 }
  0xac   : > { %4894 = vrot.lane.b32.xlu0 %v4893_v54, %s5322_s19  ;;  %v773_v54 = vand.u32 255, %v5538_v44  ;;  %vm5560_vm11 = vcmp.ge.s32.totalorder %v7630_v48, 240 }
  0xae   : > { %1230 = vrot.lane.b32.xlu1 %v1228_v55, %s5322_s19  ;;  %vm973_vm12 = vcmp.ge.s32.totalorder %v773_v54, 240  ;;  %vm994_vm4 = vcmp.lt.s32.totalorder %v773_v54, 16 }
  0xb0   : > { %1232 = vrot.lane.b32.xlu0 %v1229_v58, %s5322_s19 }
  0xb2   : > { %1159 = vrot.lane.b32.xlu1 %v1104_v60, %s5322_s19  ;;  %v5575_v60 = vadd.s32 4294967279, %v5548_v49 }
  0xb4   : > { %1163 = vrot.lane.b32.xlu0 %v1105_v61, %s5322_s19  ;;  %v689_v61 = vadd.s32 2304, %v5459_v7  ;;  %v7628_v9 = vand.u32 255, %v5575_v60 }
  0xb6   : > { %1161 = vrot.lane.b32.xlu1 %v1103_v59, %s5322_s19  ;;  %v5598_v10 = vadd.s32 4294967279, %v689_v61  ;;  %vm979_vm15 = vcmp.ge.s32.totalorder %v7628_v9, 240 }
  0xb8   : > { %1171 = vrot.lane.b32.xlu0 %v1122_v0, %s5322_s19  ;;  %v801_v0 = vand.u32 255, %v4661_v51 }
  0xba   : > { %1169 = vrot.lane.b32.xlu1 %v1120_v62, %s5322_s19  ;;  %vm977_vm13 = vcmp.ge.s32.totalorder %v801_v0, 240  ;;  %vm998_vm14 = vcmp.lt.s32.totalorder %v801_v0, 16 }
  0xbc   : > { %1179 = vrot.lane.b32.xlu0 %v1139_v3, %s5322_s19  ;;  %v4665_v3 = vadd.s32 4294967279, %v687_v53 }
  0xbe   : > { %1177 = vrot.lane.b32.xlu1 %v1137_v1, %s5322_s19  ;;  %v829_v5 = vand.u32 255, %v4665_v3 }
  0xc0   : > { %1187 = vrot.lane.b32.xlu0 %v1156_v6, %s5322_s19  ;;  %vm981_vm0 = vcmp.ge.s32.totalorder %v829_v5, 240  ;;  %vm1002_vm1 = vcmp.lt.s32.totalorder %v829_v5, 16 }
  0xc2   : > { %1185 = vrot.lane.b32.xlu1 %v1154_v4, %s5322_s19 }
 0x110   : > { %v1166_v13 = vpop.permute.xlu1 %1165 }
 0x112   : > { %v5462_v14 = vpop.permute.xlu0 %1167 }
 0x113   : > { %v5466_v15 = vsel %vm1080_vm2, %v1166_v13, %v5462_v14 }
 0x114   : > { %v5468_v17 = vpop.permute.xlu1 %1157  ;;  %1891 = vrot.lane.b32.xlu0 %v5466_v15, %s5323_s24 }
 0x116   : > { %v5473_v18 = vpop.permute.xlu0 %1175 }
 0x118   : > { %v5475_v19 = vpop.permute.xlu1 %1173 }
 0x11a   : > { %v5482_v23 = vpop.permute.xlu0 %1183 }
 0x11c   : > { %v5487_v26 = vpop.permute.xlu1 %1181 }
 0x11d   : > { %v5631_v56 = vsel %vm1080_vm2, %v5487_v26, %v5482_v23 }
 0x11e   : > { %v5498_v31 = vpop.permute.xlu0 %4894 }
 0x11f   : > { %v7631_v32 = vunpack.i.l.bf16 %v5498_v31  ;;  %v7633_v16 = vunpack.i.h.bf16 %v5498_v31 }
 0x120   : > { %v5508_v35 = vpop.permute.xlu1 %1230 }
 0x121   : > { %v5516_v37 = vsel %vm1080_vm2, 0.0, %v7631_v32 }
 0x122   : > { %v5526_v40 = vsel %vm965_vm7, 0.0, %v5516_v37  ;;  %v5528_v41 = vpop.permute.xlu0 %1232  ;;  %v1370_v24 = vrot.slane %v5516_v37, 6 }
 0x123   : > { %v5535_v43 = vsel %vm1080_vm2, %v5528_v41, 0.0  ;;  %v5707_v34 = vsel %vm1080_vm2, %v5508_v35, %v5528_v41 }
 0x124   : > { %7727 = vst [vmem:[#allocation10_spill] sm:$0xff] %v5535_v43  ;;  %v1160_v46 = vpop.permute.xlu1 %1159  ;;  %7733 = vst [vmem:[#allocation14_spill] sm:$0xff] %v5707_v34 }
 0x125   : > { %v5569_v58 = vsel %vm1080_vm2, %v5468_v17, %v1160_v46 }
 0x126   : > { %v1164_v50 = vpop.permute.xlu0 %1163 }
 0x127   : > { %v5552_v52 = vsel %vm1080_vm2, %v1164_v50, %v1166_v13  ;;  %v5606_v13 = vsel %vm1080_vm2, %v5475_v19, %v5473_v18 }
 0x128   : > { %v1162_v55 = vpop.permute.xlu1 %1161  ;;  %v5565_v57 = vsel %vm971_vm9, 0.0, %v5552_v52 }
 0x129   : > { %v5572_v59 = vsel %vm1080_vm2, %v1160_v46, %v1162_v55 }
 0x12a   : > { %v1172_v62 = vpop.permute.xlu0 %1171  ;;  %v4898_v63 = vpack.i.bf16 %v5572_v59, %v5569_v58  ;;  %v5581_v1 = vsel %vm969_vm10, 0.0, %v5572_v59  ;;  %v5696_v54 = vsel %vm990_vm5, 0.0, %v5572_v59  ;;  %vm3619_vm5 = vcmask 1031168  }
 0x12b   : > { %v5585_v2 = vsel %vm1080_vm2, %v1172_v62, %v5475_v19  ;;  %v7627_v19 = vand.u32 255, %v5598_v10 }
 0x12c   : > { %4899 = vrot.lane.b32.xlu1 %v4898_v63, %s5324_s20  ;;  %v1170_v4 = vpop.permute.xlu1 %1169  ;;  %v5591_v6 = vsel %vm5560_vm11, 0.0, %v5585_v2 }
 0x12d   : > { %v5595_v8 = vsel %vm1080_vm2, %v5462_v14, %v1170_v4  ;;  %vm983_vm3 = vcmp.ge.s32.totalorder %v7627_v19, 240  ;;  %v5679_v19 = vsel %vm1080_vm2, %v1170_v4, %v1172_v62 }
 0x12e   : > { %v1180_v11 = vpop.permute.xlu0 %1179  ;;  %v5601_v12 = vsel %vm973_vm12, 0.0, %v5595_v8  ;;  %v5683_v9 = vsel %vm994_vm4, 0.0, %v5595_v8  ;;  %vm2043_vm4 = vcmask 146432  }
 0x12f   : > { %v5613_v20 = vsel %vm1080_vm2, %v1180_v11, %v5487_v26 }
 0x130   : > { %1899 = vrot.lane.b32.xlu1 %v5606_v13, %s5323_s24  ;;  %v1178_v14 = vpop.permute.xlu1 %1177  ;;  %v5644_v63 = vsel %vm979_vm15, 0.0, %v5613_v20  ;;  %vm1421_vm15 = vcmask 916480  }
 0x131   : > { %v5617_v44 = vsel %vm1080_vm2, %v5473_v18, %v1178_v14  ;;  %v5639_v18 = vsel %vm1080_vm2, %v7633_v16, %v5468_v17  ;;  %v5657_v17 = vsel %vm1080_vm2, %v1162_v55, %v1164_v50 }
 0x132   : > { %v1188_v46 = vpop.permute.xlu0 %1187  ;;  %v5623_v51 = vsel %vm977_vm13, 0.0, %v5617_v44  ;;  %v5626_v53 = vsel %vm998_vm14, 0.0, %v5617_v44  ;;  %v4903_v47 = vpack.i.bf16 %v5639_v18, %v5466_v15  ;;  %v4908_v55 = vpack.i.bf16 %v5552_v52, %v5657_v17 }
 0x133   : > { %1901 = vrot.lane.b32.xlu0 %v5626_v53, %s5323_s24  ;;  %v5648_v26 = vsel %vm1080_vm2, %v1188_v46, %v5508_v35  ;;  %vm986_vm13 = vcmp.lt.s32.totalorder %v5489_v27, 16  ;;  %vm1523_vm14 = vcmask 785408  }
 0x134   : > { %1907 = vrot.lane.b32.xlu1 %v5631_v56, %s5323_s24  ;;  %v1186_v61 = vpop.permute.xlu1 %1185  ;;  %v5674_v50 = vsel %vm983_vm3, 0.0, %v5648_v26  ;;  %v1813_v41 = vrot.slane %v5648_v26, 2  ;;  %vm1953_vm3 = vcmask 1043456  }
 0x135   : > { %v5652_v0 = vsel %vm1080_vm2, %v5482_v23, %v1186_v61  ;;  %v5670_v23 = vadd.s32 256, %v5459_v7  ;;  %v5702_v4 = vsel %vm1080_vm2, %v1186_v61, %v1188_v46  ;;  %v7635_v46 = vrot.slane %v5466_v15, 2 }
 0x136   : > { %v5660_v3 = vsel %vm981_vm0, 0.0, %v5652_v0  ;;  %v5663_v5 = vsel %vm1002_vm1, 0.0, %v5652_v0  ;;  %v1693_v35 = vrot.slane %v5702_v4, 6  ;;  %v5722_v61 = vsel %vm1080_vm2, %v1178_v14, %v1180_v11 }
 0x137   : > { %7731 = vst [vmem:[#allocation12_spill] sm:$0xff] %v5660_v3  ;;  %1909 = vrot.lane.b32.xlu0 %v5663_v5, %s5323_s24  ;;  %7732 = vst [vmem:[#allocation13_spill] sm:$0xff] %v5670_v23  ;;  %v5686_v39 = vadd.s32 4294967279, %v5670_v23  ;;  %v1692_v45 = vrot.slane %v5663_v5, 6  ;;  %v4928_v29 = vpack.i.bf16 %v5722_v61, %v5617_v44  ;;  %v4923_v11 = vpack.i.bf16 %v5606_v13, %v5585_v2 }
 0x138   : > { %4904 = vrot.lane.b32.xlu1 %v4903_v47, %s5324_s20  ;;  %v4918_v47 = vpack.i.bf16 %v5679_v19, %v5595_v8  ;;  %v4943_v14 = vpack.i.bf16 %v5648_v26, %v5702_v4  ;;  %vm1935_vm0 = vcmask 1041408   ;;  %vm1971_vm1 = vcmask 1045504  }
 0x139   : > { %v7632_v62 = vand.u32 255, %v5686_v39  ;;  %v5726_v32 = vpack.i.bf16 %v1693_v35, %v1692_v45  ;;  %v4933_v45 = vpack.i.bf16 %v5631_v56, %v5613_v20  ;;  %v1372_v35 = vrot.slane %v5639_v18, 6 }
 0x13a   : > { %v1590_v7 = vrot.slane %v5674_v50, 2 }
 0x13b   : > { %4909 = vrot.lane.b32.xlu0 %v4908_v55, %s5324_s20  ;;  %v1803_v55 = vrot.slane %v5595_v8, 2  ;;  %vm967_vm6 = vcmp.ge.s32.totalorder %v7632_v62, 240 }
 0x13c   : > { %1893 = vrot.lane.b32.xlu1 %v5683_v9, %s5323_s24  ;;  %v5733_v16 = vsel %vm967_vm6, 0.0, %v5639_v18 }
 0x13d   : > { %v4913_v48 = vpack.i.bf16 %v1803_v55, %v7635_v46  ;;  %v1373_v55 = vrot.slane %v5569_v58, 6 }
 0x13f   : > { %4919 = vrot.lane.b32.xlu0 %v4918_v47, %s5324_s20  ;;  %v1814_v47 = vrot.slane %v5707_v34, 2 }
 0x140   : > { %1885 = vrot.lane.b32.xlu1 %v5696_v54, %s5323_s24 }
 0x141   : > { %v5728_v62 = vpack.i.bf16 %v1814_v47, %v1813_v41  ;;  %v1680_v41 = vrot.slane %v5696_v54, 6 }
 0x143   : > { %1887 = vrot.lane.b32.xlu0 %v5657_v17, %s5323_s24 }
 0x144   : > { %1915 = vrot.lane.b32.xlu1 %v5707_v34, %s5323_s24 }
 0x147   : > { %1895 = vrot.lane.b32.xlu0 %v5679_v19, %s5323_s24 }
 0x148   : > { %4914 = vrot.lane.b32.xlu1 %v4913_v48, %s5324_s20  ;;  %v7734_v48 = vand.u32 255, %v5477_v21  ;;  %v7735_v21 = vunpack.i.h.bf16 %v5498_v31 }
 0x14a   : > { %vm1006_vm7 = vcmp.lt.s32.totalorder %v7734_v48, 16 }
 0x14b   : > { %4929 = vrot.lane.b32.xlu0 %v4928_v29, %s5324_s20  ;;  %v1367_v47 = vsel %vm1006_vm7, 0.0, %v5535_v43  ;;  %v1386_v29 = vrot.slane %v5652_v0, 6 }
 0x14c   : > { %4924 = vrot.lane.b32.xlu1 %v4923_v11, %s5324_s20  ;;  %v4953_v11 = vpack.i.bf16 %v1373_v55, %v1372_v35 }
 0x14d   : > { %v4938_v48 = vpack.i.bf16 %v5652_v0, %v1386_v29 }
 0x14f   : > { %4944 = vrot.lane.b32.xlu0 %v4943_v14, %s5324_s20  ;;  %v7736_v14 = vunpack.i.l.bf16 %v5498_v31  ;;  %v1377_v31 = vrot.slane %v5466_v15, 6 }
 0x150   : > { %4934 = vrot.lane.b32.xlu1 %v4933_v45, %s5324_s20 }
 0x151   : > { %v5763_v45 = vsel %vm1080_vm2, %v7736_v14, %v7735_v21 }
 0x152   : > { %v1473_v46 = vrot.slane %v5763_v45, 4  ;;  %v1371_v35 = vrot.slane %v5763_v45, 6 }
 0x153   : > { %1917 = vrot.lane.b32.xlu0 %v1367_v47, %s5323_s24  ;;  %v4958_v47 = vpack.i.bf16 %v1680_v41, %v1373_v55  ;;  %v7738_v55 = vand.u32 255, %v5496_v30  ;;  %v1488_v41 = vrot.slane %v5663_v5, 4  ;;  %v7639_v30 = vrot.slane %v5631_v56, 4 }
 0x154   : > { %1903 = vrot.lane.b32.xlu1 %v5722_v61, %s5323_s24  ;;  %v4963_v21 = vpack.i.bf16 %v1473_v46, %v1377_v31  ;;  %v4948_v29 = vpack.i.bf16 %v1371_v35, %v1370_v24  ;;  %v7739_v46 = vand.u32 255, %v5575_v60  ;;  %v1376_v60 = vrot.slane %v5552_v52, 6 }
 0x155   : > { %vm992_vm9 = vcmp.lt.s32.totalorder %v7738_v55, 16  ;;  %v4968_v5 = vpack.i.bf16 %v1488_v41, %v7639_v30  ;;  %v7651_v55 = vrot.slane %v5657_v17, 4 }
 0x156   : > { %v5788_v24 = vsel %vm992_vm9, 0.0, %v5552_v52  ;;  %vm1000_vm10 = vcmp.lt.s32.totalorder %v7739_v46, 16  ;;  %v1475_v46 = vrot.slane %v5569_v58, 4 }
 0x157   : > { %4954 = vrot.lane.b32.xlu0 %v4953_v11, %s5324_s20  ;;  %v7737_v11 = vand.u32 255, %v5511_v36  ;;  %v5796_v36 = vsel %vm1000_vm10, 0.0, %v5613_v20 }
 0x158   : > { %4939 = vrot.lane.b32.xlu1 %v4938_v48, %s5324_s20  ;;  %v7740_v48 = vand.u32 255, %v5598_v10  ;;  %v1476_v10 = vrot.slane %v5696_v54, 4  ;;  %v7650_v54 = vrot.slane %v5657_v17, 2 }
 0x159   : > { %vm996_vm2 = vcmp.lt.s32.totalorder %v7737_v11, 16  ;;  %v1375_v11 = vrot.slane %v5657_v17, 6 }
 0x15a   : > { %v5783_v14 = vsel %vm996_vm2, 0.0, %v5585_v2  ;;  %vm1004_vm11 = vcmp.lt.s32.totalorder %v7740_v48, 16  ;;  %v4988_v27 = vpack.i.bf16 %v7651_v55, %v1476_v10  ;;  %v1379_v10 = vrot.slane %v5679_v19, 6 }
 0x15b   : > { %4959 = vrot.lane.b32.xlu0 %v4958_v47, %s5323_s24  ;;  %v7741_v47 = vand.u32 255, %v5686_v39  ;;  %v5809_v35 = vsel %vm1004_vm11, 0.0, %v5648_v26  ;;  %v4978_v39 = vpack.i.bf16 %v1377_v31, %v1376_v60 }
 0x15c   : > { %1911 = vrot.lane.b32.xlu1 %v5702_v4, %s5323_s24 }
 0x15d   : > { %vm988_vm12 = vcmp.lt.s32.totalorder %v7741_v47, 16  ;;  %v1801_v47 = vrot.slane %v5552_v52, 2  ;;  %v1684_v52 = vrot.slane %v5683_v9, 6 }
 0x15e   : > { %v1349_v26 = vsel %vm988_vm12, 0.0, %v5639_v18 }
 0x15f   : > { %4964 = vrot.lane.b32.xlu0 %v4963_v21, %s5323_s24  ;;  %v1815_v21 = vrot.slane %v5535_v43, 2  ;;  %v1474_v48 = vrot.slane %v1349_v26, 4  ;;  %v1678_v18 = vrot.slane %v1349_v26, 6  ;;  %v1799_v26 = vrot.slane %v5572_v59, 2 }
 0x160   : > { %4949 = vrot.lane.b32.xlu1 %v4948_v29, %s5324_s20  ;;  %v1374_v29 = vrot.slane %v5572_v59, 6 }
 0x161   : > { %v4983_v31 = vpack.i.bf16 %v1475_v46, %v1474_v48  ;;  %v1480_v46 = vrot.slane %v5683_v9, 4  ;;  %v7647_v48 = vrot.slane %v5679_v19, 4  ;;  %v7641_v9 = vrot.slane %v5606_v13, 2 }
 0x162   : > { %v4973_v41 = vpack.i.bf16 %v1375_v11, %v1374_v29 }
 0x163   : > { %1897 = vrot.lane.b32.xlu0 %v5783_v14, %s5323_s24  ;;  %v5018_v59 = vpack.i.bf16 %v7647_v48, %v1480_v46 }
 0x164   : > { %1889 = vrot.lane.b32.xlu1 %v5788_v24, %s5323_s24 }
 0x167   : > { %1905 = vrot.lane.b32.xlu0 %v5796_v36, %s5323_s24 }
 0x168   : > { %4969 = vrot.lane.b32.xlu1 %v4968_v5, %s5323_s24  ;;  %v1347_v5 = vsel %vm986_vm13, 0.0, %v5516_v37  ;;  %v4998_v37 = vpack.i.bf16 %v1801_v47, %v7650_v54  ;;  %v1380_v47 = vrot.slane %v5585_v2, 6 }
 0x169   : > { %v1472_v60 = vrot.slane %v1347_v5, 4 }
 0x16b   : > { %1913 = vrot.lane.b32.xlu0 %v5809_v35, %s5323_s24  ;;  %v4993_v29 = vpack.i.bf16 %v1472_v60, %v1678_v18  ;;  %v1807_v60 = vrot.slane %v5617_v44, 2 }
 0x16c   : > { %1848 = vrot.lane.b32.xlu1 %v1815_v21, %s5324_s20  ;;  %v7644_v21 = vrot.slane %v5679_v19, 2 }
 0x16f   : > { %4979 = vrot.lane.b32.xlu0 %v4978_v39, %s5324_s20  ;;  %v1378_v39 = vrot.slane %v5595_v8, 6  ;;  %v5013_v8 = vpack.i.bf16 %v1379_v10, %v1684_v52 }
 0x170   : > { %4974 = vrot.lane.b32.xlu1 %v4973_v41, %s5324_s20  ;;  %v5003_v41 = vpack.i.bf16 %v1799_v26, %v7644_v21  ;;  %v1688_v26 = vrot.slane %v5626_v53, 6 }
 0x171   : > { %v5008_v5 = vpack.i.bf16 %v1379_v10, %v1378_v39  ;;  %v1383_v39 = vrot.slane %v5722_v61, 6  ;;  %v1381_v10 = vrot.slane %v5606_v13, 6 }
 0x173   : > { %4989 = vrot.lane.b32.xlu0 %v4988_v27, %s5323_s24  ;;  %v1805_v27 = vrot.slane %v5585_v2, 2  ;;  %v5033_v52 = vpack.i.bf16 %v1381_v10, %v1380_v47  ;;  %v7642_v2 = vrot.slane %v5722_v61, 4 }
 0x174   : > { %4984 = vrot.lane.b32.xlu1 %v4983_v31, %s5323_s24  ;;  %v7640_v31 = vrot.slane %v5722_v61, 2 }
 0x175   : > { %v5023_v18 = vpack.i.bf16 %v7641_v9, %v1805_v27  ;;  %v7646_v27 = vrot.slane %v5702_v4, 2 }
 0x177   : > { %4999 = vrot.lane.b32.xlu0 %v4998_v37, %s5324_s20  ;;  %v5028_v37 = vpack.i.bf16 %v7640_v31, %v1807_v60 }
 0x178   : > { %4994 = vrot.lane.b32.xlu1 %v4993_v29, %s5323_s24  ;;  %v1382_v29 = vrot.slane %v5617_v44, 6  ;;  %v5043_v44 = vpack.i.bf16 %v1383_v39, %v1688_v26 }
 0x17a   : > { %v5038_v46 = vpack.i.bf16 %v1383_v39, %v1382_v29  ;;  %v1682_v29 = vrot.slane %v5788_v24, 6  ;;  %v1478_v39 = vrot.slane %v5788_v24, 4 }
 0x17b   : > { %5004 = vrot.lane.b32.xlu0 %v5003_v41, %s5324_s20  ;;  %v1484_v41 = vrot.slane %v5626_v53, 4  ;;  %v7638_v53 = vrot.slane %v5631_v56, 2 }
 0x17c   : > { %5009 = vrot.lane.b32.xlu1 %v5008_v5, %s5324_s20  ;;  %v1809_v5 = vrot.slane %v5613_v20, 2  ;;  %v5078_v26 = vpack.i.bf16 %v1682_v29, %v1375_v11  ;;  %v7648_v11 = vmov 0.0  }
 0x17d   : > { %2143 = vmatprep.mubr.f32.mxu0 %v7648_v11  ;;  %2214 = vmatprep.mubr.f32.mxu1 %v7648_v11 }
 0x17e   : > { %v5053_v60 = vpack.i.bf16 %v7638_v53, %v1809_v5 }
 0x17f   : > { %5014 = vrot.lane.b32.xlu0 %v5013_v8, %s5323_s24  ;;  %v5048_v8 = vpack.i.bf16 %v7642_v2, %v1484_v41  ;;  %v1482_v41 = vrot.slane %v5783_v14, 4 }
 0x180   : > { %5019 = vrot.lane.b32.xlu1 %v5018_v59, %s5323_s24  ;;  %v1811_v59 = vrot.slane %v5652_v0, 2 }
 0x182   : > { %v5058_v47 = vpack.i.bf16 %v7646_v27, %v1811_v59 }
 0x183   : > { %5024 = vrot.lane.b32.xlu0 %v5023_v18, %s5324_s20  ;;  %v1384_v18 = vrot.slane %v5613_v20, 6  ;;  %v1686_v20 = vrot.slane %v5783_v14, 6 }
 0x184   : > { %5029 = vrot.lane.b32.xlu1 %v5028_v37, %s5324_s20  ;;  %v1385_v37 = vrot.slane %v5631_v56, 6 }
 0x185   : > { %v5083_v24 = vpack.i.bf16 %v1381_v10, %v1686_v20  ;;  %v1486_v10 = vrot.slane %v5796_v36, 4 }
 0x186   : > { %v5063_v0 = vpack.i.bf16 %v1385_v37, %v1384_v18  ;;  %v1892_v59 = vpop.permute.xlu0 %1891 }
 0x187   : > { %5034 = vrot.lane.b32.xlu0 %v5033_v52, %s5324_s20  ;;  %v7645_v52 = vrot.slane %v5466_v15, 4 }
 0x188   : > { %5039 = vrot.lane.b32.xlu1 %v5038_v46, %s5324_s20 }
 0x189   : > { %v5088_v46 = vpack.i.bf16 %v7645_v52, %v1478_v39 }
 0x18b   : > { %5044 = vrot.lane.b32.xlu0 %v5043_v44, %s5323_s24  ;;  %v7643_v44 = vrot.slane %v5606_v13, 4 }
 0x18c   : > { %5049 = vrot.lane.b32.xlu1 %v5048_v8, %s5323_s24 }
 0x18d   : > { %v5098_v14 = vpack.i.bf16 %v7643_v44, %v1482_v41 }
 0x18f   : > { %5054 = vrot.lane.b32.xlu0 %v5053_v60, %s5324_s20 }
 0x190   : > { %5059 = vrot.lane.b32.xlu1 %v5058_v47, %s5324_s20 }
 0x193   : > { %5064 = vrot.lane.b32.xlu0 %v5063_v0, %s5324_s20 }
 0x194   : > { %5069 = vrot.lane.b32.xlu1 %v5726_v32, %s5323_s24  ;;  %v1690_v32 = vrot.slane %v5796_v36, 6 }
 0x196   : > { %v5093_v8 = vpack.i.bf16 %v1385_v37, %v1690_v32 }
 0x197   : > { %5074 = vrot.lane.b32.xlu0 %v5728_v62, %s5324_s20  ;;  %v1694_v62 = vrot.slane %v5809_v35, 6 }
 0x198   : > { %5079 = vrot.lane.b32.xlu1 %v5078_v26, %s5323_s24 }
 0x199   : > { %v5103_v60 = vpack.i.bf16 %v1486_v10, %v1694_v62 }
 0x19b   : > { %5089 = vrot.lane.b32.xlu0 %v5088_v46, %s5323_s24 }
 0x19c   : > { %5084 = vrot.lane.b32.xlu1 %v5083_v24, %s5323_s24 }
 0x19e   : > { %v5911_v5 = vpop.permute.xlu1 %4899 }
 0x19f   : > { %5099 = vrot.lane.b32.xlu0 %v5098_v14, %s5323_s24  ;;  %v4902_v42 = vunpack.i.h.bf16 %v5911_v5  ;;  %v4901_v22 = vunpack.i.l.bf16 %v5911_v5 }
 0x1a0   : > { %5094 = vrot.lane.b32.xlu1 %v5093_v8, %s5323_s24 }
 0x1a2   : > { %v5916_v18 = vpop.permute.xlu1 %1899 }
 0x1a3   : > { %5104 = vrot.lane.b32.xlu0 %v5103_v60, %s5323_s24 }
 0x1a5   : > { %v1902_v35 = vpop.permute.xlu0 %1901 }
 0x1a6   : > { %v5919_v47 = vpop.permute.xlu1 %1907  ;;  %v5923_v0 = vsel %vm1523_vm14, %v5916_v18, %v1902_v35 }
 0x1a7   : > { %7742 = vst [vmem:[#allocation15_spill] sm:$0xff] %v5923_v0  ;;  %2811 = vrot.lane.b32.xlu1 %v5923_v0, %s5326_s22 }
 0x1a9   : > { %v1910_v36 = vpop.permute.xlu0 %1909 }
 0x1aa   : > { %v5927_v37 = vpop.permute.xlu1 %4904  ;;  %v5931_v29 = vsel %vm1523_vm14, %v5919_v47, %v1910_v36 }
 0x1ab   : > { %7743 = vst [vmem:[#allocation16_spill] sm:$0xff] %v5931_v29  ;;  %2819 = vrot.lane.b32.xlu1 %v5931_v29, %s5326_s22  ;;  %v4907_v29 = vunpack.i.h.bf16 %v5927_v37 }
 0x1ad   : > { %v5935_v39 = vpop.permute.xlu0 %4909 }
 0x1ae   : > { %v1894_v20 = vpop.permute.xlu1 %1893 }
 0x1af   : > { %v5938_v26 = vsel %vm1523_vm14, %v1892_v59, %v1894_v20 }
 0x1b0   : > { %7744 = vst [vmem:[#allocation17_spill] sm:$0xff] %v5938_v26  ;;  %2803 = vrot.lane.b32.xlu0 %v5938_v26, %s5326_s22 }
 0x1b1   : > { %v5942_v41 = vpop.permute.xlu0 %4919 }
 0x1b2   : > { %v1886_v46 = vpop.permute.xlu1 %1885 }
 0x1b5   : > { %v5944_v32 = vpop.permute.xlu0 %1887 }
 0x1b6   : > { %v5946_v24 = vpop.permute.xlu1 %1915  ;;  %v5988_v52 = vsel %vm1523_vm14, %v1886_v46, %v5944_v32 }
 0x1b9   : > { %v1896_v62 = vpop.permute.xlu0 %1895 }
 0x1ba   : > { %v5948_v14 = vpop.permute.xlu1 %4914  ;;  %v5951_v8 = vsel %vm1523_vm14, %v1894_v20, %v1896_v62 }
 0x1bb   : > { %7745 = vst [vmem:[#allocation18_spill] sm:$0xff] %v5951_v8  ;;  %2805 = vrot.lane.b32.xlu1 %v5951_v8, %s5326_s22 }
 0x1bd   : > { %v5955_v10 = vpop.permute.xlu0 %4929 }
 0x1be   : > { %v5957_v60 = vpop.permute.xlu1 %4924 }
 0x1c1   : > { %v5959_v53 = vpop.permute.xlu0 %4944 }
 0x1c2   : > { %7746 = vst [vmem:[#allocation19_spill] sm:$0xff] %v5959_v53  ;;  %v5961_v30 = vpop.permute.xlu1 %4934 }
 0x1c5   : > { %v5963_v31 = vpop.permute.xlu0 %1917 }
 0x1c6   : > { %7747 = vst [vmem:[#allocation20_spill] sm:$0xff] %v5963_v31  ;;  %v5965_v9 = vpop.permute.xlu1 %1903  ;;  %2829 = vrot.lane.b32.xlu0 %v5963_v31, %s5326_s22  ;;  %v5972_v20 = vsel %vm1523_vm14, %v5946_v24, %v5963_v31 }
 0x1c7   : > { %7748 = vst [vmem:[#allocation21_spill] sm:$0xff] %v5972_v20  ;;  %2827 = vrot.lane.b32.xlu1 %v5972_v20, %s5326_s22  ;;  %v5998_v11 = vsel %vm1523_vm14, %v1902_v35, %v5965_v9  ;;  %v1644_v35 = vsel %vm1421_vm15, %v4901_v22, %v4902_v42 }
 0x1c8   : > { %7749 = vst [vmem:[#allocation22_spill] sm:$0xff] %v5998_v11 }
 0x1c9   : > { %v5976_v2 = vpop.permute.xlu0 %4954 }
 0x1ca   : > { %v5978_v44 = vpop.permute.xlu1 %4939  ;;  %3591 = vrot.lane.b32.xlu0 %v5938_v26, %s5327_s23  ;;  %v4956_v0 = vunpack.i.l.bf16 %v5976_v2 }
 0x1cb   : > { %3593 = vrot.lane.b32.xlu1 %v5951_v8, %s5327_s23 }
 0x1cd   : > { %v5984_v21 = vpop.permute.xlu0 %4959 }
 0x1ce   : > { %v5990_v27 = vpop.permute.xlu1 %1911  ;;  %2797 = vrot.lane.b32.xlu0 %v5988_v52, %s5326_s22 }
 0x1cf   : > { %v6006_v46 = vsel %vm1523_vm14, %v1910_v36, %v5990_v27  ;;  %v7754_v36 = vunpack.i.l.bf16 %v5978_v44 }
 0x1d0   : > { %7750 = vst [vmem:[#allocation23_spill] sm:$0xff] %v6006_v46 }
 0x1d1   : > { %v5994_v48 = vpop.permute.xlu0 %4964  ;;  %v1952_v49 = vsel %vm1935_vm0, %v5660_v3, %v7754_v36  ;;  %v4912_v36 = vunpack.i.h.bf16 %v5935_v39 }
 0x1d2   : > { %v6000_v54 = vpop.permute.xlu1 %4949  ;;  %2813 = vrot.lane.b32.xlu0 %v5998_v11, %s5326_s22  ;;  %v4911_v11 = vunpack.i.l.bf16 %v5935_v39 }
 0x1d4   : > { %v6095_v39 = vsel %vm1421_vm15, %v4902_v42, %v4911_v11  ;;  %v7759_v42 = vunpack.i.h.bf16 %v5942_v41 }
 0x1d5   : > { %v1898_v55 = vpop.permute.xlu0 %1897 }
 0x1d6   : > { %v1890_v28 = vpop.permute.xlu1 %1889  ;;  %2821 = vrot.lane.b32.xlu0 %v6006_v46, %s5326_s22  ;;  %v6037_v5 = vsel %vm1523_vm14, %v1896_v62, %v1898_v55 }
 0x1d7   : > { %v6015_v33 = vsel %vm1523_vm14, %v1890_v28, %v1892_v59  ;;  %7753 = vst [vmem:[#allocation26_spill] sm:$0xff] %v6037_v5  ;;  %v6053_v46 = vsel %vm1523_vm14, %v5944_v32, %v1890_v28  ;;  %v4921_v32 = vunpack.i.l.bf16 %v5942_v41 }
 0x1d8   : > { %7751 = vst [vmem:[#allocation24_spill] sm:$0xff] %v6015_v33  ;;  %2801 = vrot.lane.b32.xlu1 %v6015_v33, %s5326_s22 }
 0x1d9   : > { %v1906_v59 = vpop.permute.xlu0 %1905 }
 0x1da   : > { %v6030_v25 = vpop.permute.xlu1 %4969  ;;  %3585 = vrot.lane.b32.xlu0 %v5988_v52, %s5327_s23  ;;  %v6071_v23 = vsel %vm1523_vm14, %v5965_v9, %v1906_v59  ;;  %v6086_v9 = vsel %vm1523_vm14, %v1898_v55, %v5916_v18  ;;  %v7761_v18 = vunpack.i.l.bf16 %v5948_v14  ;;  %v6142_v34 = vsel %vm1523_vm14, %v1906_v59, %v5919_v47 }
 0x1db   : > { %7752 = vst [vmem:[#allocation25_spill] sm:$0xff] %v6030_v25  ;;  %v7678_v31 = vunpack.i.h.bf16 %v6030_v25  ;;  %7756 = vst [vmem:[#allocation28_spill] sm:$0xff] %v6071_v23  ;;  %v4967_v47 = vunpack.i.h.bf16 %v5994_v48 }
 0x1dc   : > { %2807 = vrot.lane.b32.xlu1 %v6037_v5, %s5326_s22  ;;  %7757 = vst [vmem:[#allocation29_spill] sm:$0xff] %v6086_v9  ;;  %7766 = vst [vmem:[#allocation32_spill] sm:$0xff] %v6142_v34 }
 0x1dd   : > { %v1970_v62 = vsel %vm1953_vm3, %v1952_v49, %v7678_v31  ;;  %v1914_v20 = vpop.permute.xlu0 %1913  ;;  %v4906_v31 = vunpack.i.l.bf16 %v5927_v37 }
 0x1de   : > { %v6059_v43 = vpop.permute.xlu1 %1848  ;;  %2799 = vrot.lane.b32.xlu0 %v6053_v46, %s5326_s22  ;;  %v6064_v49 = vsel %vm1971_vm1, %v1970_v62, %v1590_v7  ;;  %v4952_v62 = vunpack.i.h.bf16 %v6000_v54  ;;  %v6098_v7 = vsel %vm1421_vm15, %v4911_v11, %v4912_v36  ;;  %v6116_v11 = vsel %vm1421_vm15, %v4921_v32, %v7759_v42 }
 0x1df   : > { %7755 = vst [vmem:[#allocation27_spill] sm:$0xff] %v6059_v43  ;;  %v6089_v43 = vsel %vm1421_vm15, %v4907_v29, %v4901_v22  ;;  %v6092_v38 = vsel %vm1421_vm15, %v4912_v36, %v4906_v31  ;;  %v6105_v55 = vsel %vm1421_vm15, %v4906_v31, %v4921_v32  ;;  %v6111_v29 = vsel %vm1523_vm14, %v5990_v27, %v1914_v20 }
 0x1e0   : > { %2815 = vrot.lane.b32.xlu1 %v6071_v23, %s5326_s22  ;;  %7758 = vst [vmem:[#allocation30_spill] sm:$0xff] %v6111_v29  ;;  %v7760_v31 = vunpack.i.h.bf16 %v5948_v14  ;;  %v7763_v27 = vunpack.i.h.bf16 %v5976_v2  ;;  %v7764_v32 = vunpack.i.h.bf16 %v5984_v21  ;;  %v7765_v42 = vunpack.i.l.bf16 %v5984_v21 }
 0x1e1   : > { %v6082_v28 = vpop.permute.xlu0 %4979  ;;  %v1423_v36 = vsel %vm1421_vm15, %v4952_v62, %v4956_v0 }
 0x1e2   : > { %v6100_v37 = vpop.permute.xlu1 %4974  ;;  %2809 = vrot.lane.b32.xlu0 %v6086_v9, %s5326_s22  ;;  %v6127_v22 = vsel %vm1421_vm15, %v7761_v18, %v7760_v31  ;;  %v1424_v9 = vsel %vm1421_vm15, %v4956_v0, %v7763_v27  ;;  %v1730_v23 = vsel %vm1523_vm14, %v7765_v42, %v7764_v32  ;;  %v4951_v31 = vunpack.i.l.bf16 %v6000_v54 }
 0x1e3   : > { %7762 = vst [vmem:[#allocation31_spill] sm:$0xff] %v6127_v22  ;;  %v7767_v27 = vunpack.i.h.bf16 %v6100_v37  ;;  %v7768_v8 = vunpack.i.l.bf16 %v6100_v37  ;;  %v1938_v18 = vsel %vm1935_vm0, %v5733_v16, %v1424_v9  ;;  %v1990_v32 = vsel %vm1935_vm0, %v1644_v35, %v1730_v23 }
 0x1e4   : > { %2823 = vrot.lane.b32.xlu1 %v6111_v29, %s5326_s22 }
 0x1e5   : > { %v6138_v29 = vpop.permute.xlu0 %4989  ;;  %v1426_v5 = vsel %vm1421_vm15, %v7768_v8, %v7767_v27  ;;  %v1937_v8 = vsel %vm1935_vm0, %v5763_v45, %v1423_v36  ;;  %v6166_v27 = vsel %vm1523_vm14, %v1914_v20, %v5946_v24 }
 0x1e6   : > { %v6152_v42 = vpop.permute.xlu1 %4984  ;;  %2817 = vrot.lane.b32.xlu0 %v6142_v34, %s5326_s22  ;;  %7769 = vst [vmem:[#allocation33_spill] sm:$0xff] %v6166_v27  ;;  %v1940_v59 = vsel %vm1935_vm0, %v5581_v1, %v1426_v5  ;;  %v7770_v0 = vunpack.i.h.bf16 %v6138_v29  ;;  %v7771_v34 = vunpack.i.l.bf16 %v6138_v29 }
 0x1e7   : > { %v4986_v54 = vunpack.i.l.bf16 %v6152_v42  ;;  %v7772_v36 = vunpack.i.h.bf16 %v6152_v42 }
 0x1e8   : > { %3589 = vrot.lane.b32.xlu1 %v6015_v33, %s5327_s23  ;;  %v1528_v9 = vsel %vm1523_vm14, %v7771_v34, %v7770_v0  ;;  %v1422_v33 = vsel %vm1421_vm15, %v4951_v31, %v4952_v62  ;;  %v7773_v62 = vrot.slane %v5569_v58, 2 }
 0x1e9   : > { %v1525_v45 = vsel %vm1523_vm14, %v4967_v47, %v4986_v54  ;;  %v1526_v24 = vsel %vm1523_vm14, %v4986_v54, %v7772_v36  ;;  %v6182_v20 = vpop.permute.xlu0 %4999  ;;  %v1958_v23 = vsel %vm1953_vm3, %v1940_v59, %v1528_v9  ;;  %v4926_v36 = vunpack.i.l.bf16 %v5957_v60 }
 0x1ea   : > { %v1955_v35 = vsel %vm1953_vm3, %v1937_v8, %v1525_v45  ;;  %v1956_v5 = vsel %vm1953_vm3, %v1938_v18, %v1526_v24  ;;  %v4995_v26 = vpop.permute.xlu1 %4994  ;;  %2825 = vrot.lane.b32.xlu0 %v6166_v27, %s5326_s22  ;;  %v5001_v0 = vunpack.i.l.bf16 %v6182_v20  ;;  %v7774_v59 = vrot.slane %v5581_v1, 2 }
 0x1eb   : > { %v4997_v3 = vunpack.i.h.bf16 %v4995_v26  ;;  %v4996_v54 = vunpack.i.l.bf16 %v4995_v26  ;;  %v1973_v31 = vsel %vm1971_vm1, %v1955_v35, %v7773_v62  ;;  %v7776_v8 = vrot.slane %v5565_v57, 2 }
 0x1ec   : > { %v6199_v18 = vsel %vm1971_vm1, %v1956_v5, %v7774_v59  ;;  %v7778_v45 = vunpack.i.h.bf16 %v5955_v10  ;;  %v7779_v26 = vunpack.i.l.bf16 %v5955_v10  ;;  %v7780_v5 = vrot.slane %v5657_v17, 4 }
 0x1ed   : > { %7775 = vst [vmem:[#allocation34_spill] sm:$0xff] %v6199_v18  ;;  %v6204_v9 = vsel %vm1971_vm1, %v1958_v23, %v7776_v8  ;;  %v1524_v34 = vsel %vm1523_vm14, %v4997_v3, %v4967_v47  ;;  %v6214_v35 = vpop.permute.xlu0 %5004  ;;  %v5113_v62 = vpack.i.bf16 %v6199_v18, %v1973_v31  ;;  %v7781_v23 = vunpack.i.l.bf16 %v5984_v21 }
 0x1ee   : > { %7777 = vst [vmem:[#allocation35_spill] sm:$0xff] %v6204_v9  ;;  %v6211_v24 = vsel %vm1421_vm15, %v7779_v26, %v7778_v45  ;;  %v2007_v59 = vsel %vm1953_vm3, %v1990_v32, %v7780_v5  ;;  %v5007_v27 = vunpack.i.h.bf16 %v6214_v35  ;;  %v6224_v22 = vpop.permute.xlu1 %5009  ;;  %3587 = vrot.lane.b32.xlu0 %v6053_v46, %s5327_s23  ;;  %v7782_v3 = vunpack.i.h.bf16 %v6182_v20 }
 0x1ef   : > { %v1729_v8 = vsel %vm1523_vm14, %v4996_v54, %v7781_v23  ;;  %v1936_v45 = vsel %vm1935_vm0, %v5526_v40, %v1422_v33  ;;  %5114 = vrot.lane.b32.xlu1 %v5113_v62, %s5326_s22  ;;  %v7784_v23 = vunpack.i.h.bf16 %v5942_v41  ;;  %v7786_v26 = vrot.slane %v5733_v16, 2 }
 0x1f0   : > { %v1851_v47 = vsel %vm1421_vm15, %v5001_v0, %v7782_v3  ;;  %v1954_v5 = vsel %vm1953_vm3, %v1936_v45, %v1524_v34  ;;  %v7785_v3 = vunpack.i.h.bf16 %v5957_v60  ;;  %v1850_v41 = vsel %vm1421_vm15, %v5007_v27, %v5001_v0 }
 0x1f1   : > { %v6237_v54 = vsel %vm1971_vm1, %v2007_v59, %v1851_v47  ;;  %v6243_v18 = vsel %vm1421_vm15, %v7784_v23, %v4926_v36  ;;  %v1972_v32 = vsel %vm1971_vm1, %v1954_v5, %v7786_v26  ;;  %v6255_v47 = vpop.permute.xlu0 %5014  ;;  %v1989_v34 = vsel %vm1935_vm0, %v6089_v43, %v1729_v8 }
 0x1f2   : > { %7783 = vst [vmem:[#allocation36_spill] sm:$0xff] %v6237_v54  ;;  %v6248_v33 = vsel %vm1421_vm15, %v4926_v36, %v7785_v3  ;;  %v4747_v40 = vpack.c.bf16 %v6237_v54, %v1973_v31  ;;  %v4946_v45 = vunpack.i.l.bf16 %v5959_v53  ;;  %v4937_v36 = vunpack.i.h.bf16 %v5961_v30  ;;  %v6268_v5 = vpop.permute.xlu1 %5019 }
 0x1f3   : > { %v4982_v23 = vunpack.i.h.bf16 %v6082_v28  ;;  %v7787_v31 = vunpack.i.h.bf16 %v6224_v22  ;;  %v7788_v16 = vunpack.i.l.bf16 %v6224_v22  ;;  %v4981_v27 = vunpack.i.l.bf16 %v6082_v28  ;;  %5119 = vrot.lane.b32.xlu1 %v5113_v62, %s5327_s23 }
 0x1f4   : > { %4748 = vmatprep.subr.bf16.mxu0 %v4747_v40  ;;  %v7789_v8 = vrot.slane %v5581_v1, 4  ;;  %v4936_v59 = vunpack.i.l.bf16 %v5961_v30  ;;  %v7790_v40 = vunpack.i.l.bf16 %v6100_v37  ;;  %v7792_v0 = vunpack.i.l.bf16 %v6138_v29 }
 0x1f5   : > { %v1430_v26 = vsel %vm1421_vm15, %v7788_v16, %v7787_v31  ;;  %v4942_v31 = vunpack.i.h.bf16 %v5978_v44  ;;  %v7791_v16 = vunpack.i.h.bf16 %v5976_v2  ;;  %v7793_v62 = vunpack.i.h.bf16 %v6152_v42 }
 0x1f6   : > { %v2006_v3 = vsel %vm1953_vm3, %v1989_v34, %v7789_v8  ;;  %v1944_v34 = vsel %vm1935_vm0, %v5601_v12, %v1430_v26  ;;  %v7794_v30 = vunpack.i.h.bf16 %v6268_v5  ;;  %v7795_v8 = vunpack.i.l.bf16 %v6268_v5 }
 0x1f7   : > { %v1425_v28 = vsel %vm1421_vm15, %v7791_v16, %v7790_v40  ;;  %v2023_v43 = vsel %vm1971_vm1, %v2006_v3, %v1850_v41  ;;  %v1527_v1 = vsel %vm1523_vm14, %v7793_v62, %v7792_v0  ;;  %v6299_v40 = vpop.permute.xlu0 %5024  ;;  %v6303_v16 = vpop.permute.xlu1 %5029  ;;  %v7797_v0 = vunpack.i.l.bf16 %v5955_v10 }
 0x1f8   : > { %v1532_v54 = vsel %vm1523_vm14, %v7795_v8, %v7794_v30  ;;  %v6297_v2 = vpack.i.bf16 %v2023_v43, %v1972_v32  ;;  %v4749_v42 = vpack.c.bf16 %v2023_v43, %v1972_v32  ;;  %v7798_v26 = vunpack.i.h.bf16 %v5957_v60 }
 0x1f9   : > { %v1962_v3 = vsel %vm1953_vm3, %v1944_v34, %v1532_v54  ;;  %v7799_v30 = vunpack.i.h.bf16 %v5959_v53  ;;  %v1939_v54 = vsel %vm1935_vm0, %v5569_v58, %v1425_v28  ;;  %v7705_v43 = vunpack.i.h.bf16 %v6255_v47 }
 0x1fa   : > { %7796 = vst [vmem:[#allocation37_spill] sm:$0xff] %v6297_v2  ;;  %v6310_v62 = vsel %vm1421_vm15, %v7798_v26, %v7797_v0  ;;  %v1428_v2 = vsel %vm1421_vm15, %v4981_v27, %v4982_v23  ;;  %v1957_v32 = vsel %vm1953_vm3, %v1939_v54, %v1527_v1  ;;  %v5016_v34 = vunpack.i.l.bf16 %v6255_v47  ;;  %4750 = vmatpush1.bf16.msra.mxu0 %v4749_v42 }
 0x1fb   : > { %v6315_v8 = vsel %vm1421_vm15, %v4946_v45, %v7799_v30  ;;  %v7801_v60 = vrot.slane %v5591_v6, 2  ;;  %v7803_v26 = vunpack.i.h.bf16 %v5955_v10  ;;  %v6334_v41 = vsel %vm1421_vm15, %v4936_v59, %v4937_v36  ;;  %4672 = vmatprep.subr.msk.mxu0 %vm1935_vm0, %v6053_v46  ;;  %v5035_v1 = vpop.permute.xlu0 %5034  ;;  %v6361_v46 = vld [vmem:[%s7622_s3] sm:$0x3] }
 0x1fc   : > { %7800 = vst [vmem:[#allocation38_spill] sm:$0xff] %v6315_v8  ;;  %7805 = vst [vmem:[#allocation41_spill] sm:$0xff] %v6334_v41  ;;  %v6337_v58 = vsel %vm1421_vm15, %v4937_v36, %v4942_v31  ;;  %v5006_v28 = vunpack.i.l.bf16 %v6214_v35  ;;  %v7704_v10 = vunpack.i.l.bf16 %v5994_v48  ;;  %v7807_v42 = vunpack.i.h.bf16 %v6030_v25 }
 0x1fd   : > { %v6326_v0 = vsel %vm1971_vm1, %v1962_v3, %v7801_v60  ;;  %v6331_v30 = vsel %vm1421_vm15, %v7803_v26, %v4936_v59  ;;  %7806 = vst [vmem:[#allocation42_spill] sm:$0xff] %v6337_v58  ;;  %v6343_v3 = vsel %vm1421_vm15, %v4942_v31, %v4946_v45  ;;  %v7808_v54 = vunpack.i.l.bf16 %v6030_v25  ;;  %v6356_v60 = vpop.permute.xlu1 %5039  ;;  %7810 = vst [vmem:[#allocation43_spill] sm:$0xff] %v6361_v46 }
 0x1fe   : > { %7802 = vst [vmem:[#allocation39_spill] sm:$0xff] %v6326_v0  ;;  %7804 = vst [vmem:[#allocation40_spill] sm:$0xff] %v6331_v30  ;;  %v7809_v36 = vunpack.i.h.bf16 %v6100_v37  ;;  %v6365_v45 = vsel %vm1935_vm0, %v5565_v57, %v1428_v2  ;;  %v5041_v26 = vunpack.i.l.bf16 %v6356_v60  ;;  %v5027_v2 = vunpack.i.h.bf16 %v6299_v40  ;;  %4673 = vmatpush1.msk.msra.mxu0 %vm1935_vm0, %v5988_v52 }
 0x1ff   : > { %v6351_v59 = vsel %vm1523_vm14, %v7808_v54, %v7807_v42  ;;  %v7811_v42 = vrot.slane %v5657_v17, 2  ;;  %v1735_v54 = vsel %vm1523_vm14, %v5016_v34, %v7705_v43  ;;  %v6403_v8 = vpop.permute.xlu0 %5044  ;;  %4674 = vmatmul.mubr.msk.f32.vlgmr.msra.gmra.mrb[0].mxu0 %vm2043_vm4, %v6361_v46  ;;  %v5032_v0 = vunpack.i.h.bf16 %v6303_v16 }
 0x200   : > { %v1427_v35 = vsel %vm1421_vm15, %v7809_v36, %v4981_v27  ;;  %v1734_v27 = vsel %vm1523_vm14, %v7704_v10, %v5016_v34  ;;  %v5026_v36 = vunpack.i.l.bf16 %v6299_v40  ;;  %v7815_v34 = vunpack.i.h.bf16 %v5948_v14 }
 0x201   : > { %v6372_v37 = vsel %vm1971_vm1, %v1957_v32, %v7811_v42  ;;  %v6386_v31 = vsel %vm1935_vm0, %v5657_v17, %v1427_v35  ;;  %v7813_v32 = vunpack.i.l.bf16 %v5948_v14  ;;  %v7814_v42 = vunpack.i.h.bf16 %v6182_v20 }
 0x202   : > { %7812 = vst [vmem:[#allocation44_spill] sm:$0xff] %v6386_v31  ;;  %v6398_v43 = vsel %vm1421_vm15, %v7815_v34, %v5006_v28  ;;  %v7816_v40 = vunpack.i.l.bf16 %v6224_v22  ;;  %v7817_v17 = vunpack.i.h.bf16 %v6356_v60  ;;  %v1994_v34 = vsel %vm1935_vm0, %v6105_v55, %v1734_v27 }
 0x203   : > { %v6393_v10 = vsel %vm1421_vm15, %v7814_v42, %v7813_v32  ;;  %v6412_v32 = vpop.permute.xlu1 %5049  ;;  %v6416_v42 = vpack.i.bf16 %v6204_v9, %v6372_v37  ;;  %v1855_v14 = vsel %vm1421_vm15, %v5006_v28, %v5026_v36  ;;  %v1856_v46 = vsel %vm1421_vm15, %v5026_v36, %v5027_v2  ;;  %v5055_v27 = vpop.permute.xlu0 %5054 }
 0x204   : > { %v1429_v52 = vsel %vm1421_vm15, %v4982_v23, %v7816_v40  ;;  %v1434_v20 = vsel %vm1421_vm15, %v5041_v26, %v7817_v17  ;;  %v7818_v23 = vmov 0.0   ;;  %v1995_v40 = vsel %vm1935_vm0, %v6116_v11, %v1735_v54 }
 0x205   : > { %2285 = vmatprep.mubr.f32.mxu0 %v7818_v23  ;;  %v7712_v17 = vunpack.i.h.bf16 %v6412_v32  ;;  %v7713_v35 = vunpack.i.l.bf16 %v6412_v32  ;;  %v5031_v53 = vunpack.i.l.bf16 %v6303_v16  ;;  %v5037_v25 = vunpack.i.h.bf16 %v5035_v1 }
 0x206   : > { %v5036_v23 = vunpack.i.l.bf16 %v5035_v1  ;;  %v1948_v55 = vsel %vm1935_vm0, %v5623_v51, %v1434_v20  ;;  %v7819_v28 = vunpack.i.h.bf16 %v6403_v8  ;;  %v7820_v54 = vunpack.i.l.bf16 %v6403_v8 }
 0x207   : > { %v1536_v11 = vsel %vm1523_vm14, %v7713_v35, %v7712_v17  ;;  %v5057_v58 = vunpack.i.h.bf16 %v5055_v27  ;;  %v5056_v1 = vunpack.i.l.bf16 %v5055_v27  ;;  %v5060_v30 = vpop.permute.xlu1 %5059  ;;  %v6444_v20 = vsel %vm1935_vm0, %v5466_v15, %v1429_v52 }
 0x208   : > { %v1739_v36 = vsel %vm1523_vm14, %v7820_v54, %v7819_v28  ;;  %v1966_v16 = vsel %vm1953_vm3, %v1948_v55, %v1536_v11  ;;  %v7821_v9 = vrot.slane %v5591_v6, 4  ;;  %v7822_v35 = vrot.slane %v5679_v19, 4 }
 0x209   : > { %v7823_v41 = vrot.slane %v5644_v63, 2  ;;  %v6461_v11 = vsel %vm1421_vm15, %v5027_v2, %v5031_v53  ;;  %v6464_v52 = vsel %vm1421_vm15, %v5031_v53, %v5032_v0  ;;  %v1860_v2 = vsel %vm1421_vm15, %v5056_v1, %v5057_v58 }
 0x20a   : > { %v2012_v17 = vsel %vm1953_vm3, %v1995_v40, %v7821_v9  ;;  %v2011_v31 = vsel %vm1953_vm3, %v1994_v34, %v7822_v35  ;;  %v7824_v40 = vunpack.i.h.bf16 %v6224_v22  ;;  %v1432_v34 = vsel %vm1421_vm15, %v5036_v23, %v5037_v25 }
 0x20b   : > { %v6455_v28 = vsel %vm1971_vm1, %v1966_v16, %v7823_v41  ;;  %v6458_v55 = vsel %vm1971_vm1, %v2012_v17, %v1856_v46  ;;  %v6467_v9 = vsel %vm1971_vm1, %v2011_v31, %v1855_v14  ;;  %v1433_v41 = vsel %vm1421_vm15, %v5037_v25, %v5041_v26  ;;  %v5065_v17 = vpop.permute.xlu0 %5064  ;;  %v6477_v16 = vpop.permute.xlu1 %5069 }
 0x20c   : > { %v1431_v35 = vsel %vm1421_vm15, %v7824_v40, %v5036_v23  ;;  %v1999_v46 = vsel %vm1935_vm0, %v6211_v24, %v1739_v36  ;;  %v5062_v27 = vunpack.i.h.bf16 %v5060_v30  ;;  %v5061_v53 = vunpack.i.l.bf16 %v5060_v30 }
 0x20d   : > { %v5067_v54 = vunpack.i.h.bf16 %v5065_v17  ;;  %v5066_v31 = vunpack.i.l.bf16 %v5065_v17  ;;  %v7714_v22 = vunpack.i.h.bf16 %v6477_v16  ;;  %v6483_v23 = vpack.i.bf16 %v6458_v55, %v6467_v9 }
 0x20e   : > { %v6487_v25 = vsel %vm1935_vm0, %v5679_v19, %v1431_v35  ;;  %v6491_v24 = vsel %vm1935_vm0, %v5591_v6, %v1432_v34  ;;  %v7825_v30 = vrot.slane %v5644_v63, 4  ;;  %v7826_v36 = vunpack.i.l.bf16 %v5978_v44 }
 0x20f   : > { %v6501_v17 = vsel %vm1935_vm0, %v5606_v13, %v1433_v41  ;;  %v6504_v14 = vsel %vm1421_vm15, %v5032_v0, %v5056_v1  ;;  %v6511_v34 = vpop.permute.xlu0 %5074  ;;  %v6517_v44 = vsel %vm1421_vm15, %v5061_v53, %v5062_v27  ;;  %v7828_v0 = vunpack.i.l.bf16 %v6477_v16 }
 0x210   : > { %v2016_v26 = vsel %vm1953_vm3, %v1999_v46, %v7825_v30  ;;  %v1437_v40 = vsel %vm1421_vm15, %v5067_v54, %v7826_v36  ;;  %v6514_v46 = vsel %vm1421_vm15, %v5057_v58, %v5061_v53  ;;  %7827 = vst [vmem:[#allocation45_spill] sm:$0xff] %v6517_v44  ;;  %v7829_v30 = vunpack.i.h.bf16 %v6356_v60 }
 0x211   : > { %v6507_v35 = vsel %vm1971_vm1, %v2016_v26, %v1860_v2  ;;  %v1951_v6 = vsel %vm1935_vm0, %v5631_v56, %v1437_v40  ;;  %v1743_v1 = vsel %vm1523_vm14, %v7828_v0, %v7714_v22  ;;  %v5080_v2 = vpop.permute.xlu1 %5079  ;;  %v7830_v40 = vrot.slane %v5702_v4, 2 }
 0x212   : > { %v1969_v41 = vsel %vm1953_vm3, %v1951_v6, %v6351_v59  ;;  %v1435_v26 = vsel %vm1421_vm15, %v7829_v30, %v5066_v31  ;;  %v5082_v36 = vunpack.i.h.bf16 %v5080_v2  ;;  %v5081_v58 = vunpack.i.l.bf16 %v5080_v2 }
 0x213   : > { %v6532_v53 = vsel %vm1971_vm1, %v1969_v41, %v7830_v40  ;;  %v1436_v59 = vsel %vm1421_vm15, %v5066_v31, %v5067_v54  ;;  %v5076_v44 = vunpack.i.l.bf16 %v6511_v34  ;;  %v2003_v60 = vsel %vm1935_vm0, %v6343_v3, %v1743_v1  ;;  %v5090_v31 = vpop.permute.xlu0 %5089 }
 0x214   : > { %7831 = vst [vmem:[#allocation46_spill] sm:$0xff] %v6532_v53  ;;  %v6539_v0 = vpack.i.bf16 %v6064_v49, %v6532_v53  ;;  %v7833_v2 = vunpack.i.h.bf16 %v5984_v21  ;;  %v1732_v41 = vsel %vm1523_vm14, %v5081_v58, %v5082_v36  ;;  %v7834_v40 = vunpack.i.l.bf16 %v5994_v48 }
 0x215   : > { %v6552_v22 = vsel %vm1935_vm0, %v5722_v61, %v1435_v26  ;;  %v5092_v6 = vunpack.i.h.bf16 %v5090_v31  ;;  %v5091_v3 = vunpack.i.l.bf16 %v5090_v31  ;;  %v5085_v1 = vpop.permute.xlu1 %5084  ;;  %v6560_v21 = vsel %vm1935_vm0, %v5644_v63, %v1436_v59 }
 0x216   : > { %7832 = vst [vmem:[#allocation47_spill] sm:$0xff] %v6539_v0  ;;  %v1731_v30 = vsel %vm1523_vm14, %v7833_v2, %v5081_v58  ;;  %v1733_v54 = vsel %vm1523_vm14, %v5082_v36, %v7834_v40  ;;  %5109 = vrot.lane.b32.xlu0 %v6539_v0, %s5326_s22  ;;  %v5087_v48 = vunpack.i.h.bf16 %v5085_v1  ;;  %v5086_v36 = vunpack.i.l.bf16 %v5085_v1  ;;  %v7845_v0 = vld [vmem:[#allocation31_spill] sm:$0xff] }
 0x217   : > { %v1991_v49 = vsel %vm1935_vm0, %v6095_v39, %v1731_v30  ;;  %v1992_v58 = vsel %vm1935_vm0, %v6098_v7, %v1732_v41  ;;  %v6565_v26 = vsel %vm1421_vm15, %v5062_v27, %v5076_v44  ;;  %v7835_v39 = vunpack.i.h.bf16 %v6511_v34 }
 0x218   : > { %v7836_v30 = vrot.slane %v5674_v50, 4  ;;  %v1993_v63 = vsel %vm1935_vm0, %v6092_v38, %v1733_v54  ;;  %v7837_v59 = vrot.slane %v5565_v57, 4  ;;  %v7838_v27 = vunpack.i.l.bf16 %v6268_v5 }
 0x219   : > { %v6570_v2 = vsel %vm1421_vm15, %v5076_v44, %v7835_v39  ;;  %v1737_v31 = vsel %vm1523_vm14, %v5086_v36, %v5087_v48  ;;  %v5100_v44 = vpop.permute.xlu0 %5099  ;;  %v7839_v1 = vrot.slane %v5466_v15, 4  ;;  %v7840_v39 = vunpack.i.h.bf16 %v6255_v47 }
 0x21a   : > { %v6575_v40 = vsel %vm1953_vm3, %v2003_v60, %v7836_v30  ;;  %v2008_v7 = vsel %vm1953_vm3, %v1991_v49, %v7837_v59  ;;  %v1531_v41 = vsel %vm1523_vm14, %v5092_v6, %v7838_v27  ;;  %v1530_v60 = vsel %vm1523_vm14, %v5091_v3, %v5092_v6  ;;  %v5095_v30 = vpop.permute.xlu1 %5094  ;;  %5124 = vrot.lane.b32.xlu0 %v6416_v42, %s5326_s22 }
 0x21b   : > { %v2009_v50 = vsel %vm1953_vm3, %v1992_v58, %v7839_v1  ;;  %v1736_v38 = vsel %vm1523_vm14, %v7840_v39, %v5086_v36  ;;  %v7841_v57 = vunpack.i.l.bf16 %v6403_v8  ;;  %v5102_v49 = vunpack.i.h.bf16 %v5100_v44 }
 0x21c   : > { %v1997_v59 = vsel %vm1935_vm0, %v6248_v33, %v1737_v31  ;;  %v5101_v27 = vunpack.i.l.bf16 %v5100_v44  ;;  %v5097_v58 = vunpack.i.h.bf16 %v5095_v30  ;;  %v5096_v1 = vunpack.i.l.bf16 %v5095_v30 }
 0x21d   : > { %v1738_v54 = vsel %vm1523_vm14, %v5087_v48, %v7841_v57  ;;  %v7842_v6 = vunpack.i.h.bf16 %v6138_v29  ;;  %v7843_v36 = vunpack.i.l.bf16 %v6412_v32  ;;  %v7844_v48 = vrot.slane %v5601_v12, 4 }
 0x21e   : > { %v6611_v53 = vsel %vm1971_vm1, %v2009_v50, %v7845_v0  ;;  %v1960_v33 = vsel %vm1953_vm3, %v6365_v45, %v1530_v60  ;;  %v1996_v29 = vsel %vm1935_vm0, %v6243_v18, %v1736_v38  ;;  %v2025_v31 = vsel %vm1971_vm1, %v2008_v7, %v6393_v10  ;;  %v5105_v60 = vpop.permute.xlu0 %5104 }
 0x21f   : > { %v1529_v47 = vsel %vm1523_vm14, %v7842_v6, %v5091_v3  ;;  %v1535_v39 = vsel %vm1523_vm14, %v5102_v49, %v7843_v36  ;;  %v2010_v57 = vsel %vm1953_vm3, %v1993_v63, %v7844_v48  ;;  %v1534_v3 = vsel %vm1523_vm14, %v5101_v27, %v5102_v49 }
 0x220   : > { %v1998_v44 = vsel %vm1935_vm0, %v6310_v62, %v1738_v54  ;;  %v7846_v63 = vrot.slane %v5623_v51, 4  ;;  %v7847_v0 = vunpack.i.h.bf16 %v6268_v5  ;;  %v1741_v45 = vsel %vm1523_vm14, %v5096_v1, %v5097_v58 }
 0x221   : > { %v1965_v18 = vsel %vm1953_vm3, %v6501_v17, %v1535_v39  ;;  %v7848_v38 = vunpack.i.h.bf16 %v6403_v8  ;;  %v6636_v62 = vsel %vm1971_vm1, %v2010_v57, %v6398_v43  ;;  %v4751_v7 = vpack.c.bf16 %v6611_v53, %v6372_v37  ;;  %v7851_v8 = vld [vmem:[#allocation36_spill] sm:$0xff] }
 0x222   : > { %v2014_v30 = vsel %vm1953_vm3, %v1997_v59, %v7846_v63  ;;  %v1533_v50 = vsel %vm1523_vm14, %v7847_v0, %v5101_v27  ;;  %v1964_v5 = vsel %vm1953_vm3, %v6491_v24, %v1534_v3  ;;  %v7849_v54 = vunpack.i.l.bf16 %v6477_v16  ;;  %v7850_v59 = vld [vmem:[#allocation41_spill] sm:$0xff]  ;;  %v7853_v39 = vld [vmem:[#allocation44_spill] sm:$0xff]  ;;  %v7856_v3 = vld [vmem:[#allocation35_spill] sm:$0xff] }
 0x223   : > { %v1740_v10 = vsel %vm1523_vm14, %v7848_v38, %v5096_v1  ;;  %v2001_v17 = vsel %vm1935_vm0, %v7850_v59, %v1741_v45  ;;  %v6648_v27 = vpack.i.bf16 %v2025_v31, %v7851_v8  ;;  %4752 = vmatprep.subr.bf16.mxu1 %v4751_v7  ;;  %v7852_v1 = vld [vmem:[#allocation34_spill] sm:$0xff]  ;;  %v5107_v6 = vunpack.i.h.bf16 %v5105_v60  ;;  %v7857_v0 = vld [vmem:[#allocation40_spill] sm:$0xff] }
 0x224   : > { %v1742_v49 = vsel %vm1523_vm14, %v5097_v58, %v7849_v54  ;;  %v4753_v43 = vpack.c.bf16 %v2025_v31, %v7852_v1  ;;  %v5106_v36 = vunpack.i.l.bf16 %v5105_v60  ;;  %v1959_v37 = vsel %vm1953_vm3, %v7853_v39, %v1529_v47  ;;  %v7858_v45 = vld [vmem:[#allocation42_spill] sm:$0xff]  ;;  %v7859_v38 = vld [vmem:[#allocation12_spill] sm:$0xff]  ;;  %v7862_v54 = vld [vmem:[#allocation25_spill] sm:$0xff] }
 0x225   : > { %5129 = vrot.lane.b32.xlu1 %v6648_v27, %s5326_s22  ;;  %v7854_v24 = vrot.slane %v5466_v15, 2  ;;  %v7855_v48 = vrot.slane %v5601_v12, 2  ;;  %v4757_v63 = vpack.c.bf16 %v6636_v62, %v7856_v3  ;;  %v1961_v31 = vsel %vm1953_vm3, %v6444_v20, %v1531_v41  ;;  %v7867_v39 = vld [vmem:[#allocation17_spill] sm:$0xff] }
 0x226   : > { %v2000_v47 = vsel %vm1935_vm0, %v7857_v0, %v1740_v10  ;;  %v2002_v60 = vsel %vm1935_vm0, %v7858_v45, %v1742_v49  ;;  %v7860_v15 = vrot.slane %v7859_v38, 4  ;;  %4754 = vmatpush1.bf16.msra.mxu1 %v4753_v43  ;;  %v7861_v12 = vunpack.i.h.bf16 %v6412_v32  ;;  %v7865_v10 = vld [vmem:[#allocation19_spill] sm:$0xff] }
 0x227   : > { %v1977_v58 = vsel %vm1971_vm1, %v1959_v37, %v7854_v24  ;;  %v1978_v57 = vsel %vm1971_vm1, %v1960_v33, %v7855_v48  ;;  %v7863_v59 = vunpack.i.l.bf16 %v7862_v54  ;;  %v7864_v20 = vunpack.i.h.bf16 %v6477_v16  ;;  %4675 = vmatprep.subr.msk.mxu1 %vm1935_vm0, %v7867_v39 }
 0x228   : > { %v2018_v7 = vsel %vm1953_vm3, %v2001_v17, %v7860_v15  ;;  %v1537_v33 = vsel %vm1523_vm14, %v7861_v12, %v5107_v6  ;;  %v7866_v1 = vunpack.i.h.bf16 %v7865_v10  ;;  %v4755_v32 = vpack.c.bf16 %v6467_v9, %v1977_v58  ;;  %v7878_v12 = vld [vmem:[#allocation38_spill] sm:$0xff] }
 0x229   : > { %v1538_v8 = vsel %vm1523_vm14, %v5107_v6, %v7863_v59  ;;  %v1744_v41 = vsel %vm1523_vm14, %v7864_v20, %v5106_v36  ;;  %v6689_v17 = vpack.i.bf16 %v1978_v57, %v1977_v58  ;;  %v7868_v43 = vrot.slane %v5679_v19, 2  ;;  %v7881_v20 = vld [vmem:[#allocation14_spill] sm:$0xff] }
 0x22a   : > { %v6684_v49 = vsel %vm1935_vm0, %v7866_v1, %v5106_v36  ;;  %v7869_v16 = vrot.slane %v5606_v13, 4  ;;  %v4761_v24 = vpack.c.bf16 %v6458_v55, %v1978_v57  ;;  %4756 = vmatprep.subr.bf16.mxu0 %v4755_v32  ;;  %v7870_v36 = vld [vmem:[#allocation37_spill] sm:$0xff]  ;;  %v1963_v9 = vsel %vm1953_vm3, %v6487_v25, %v1533_v50  ;;  %v7873_v25 = vld [vmem:[#allocation26_spill] sm:$0xff]  ;;  %v7874_v50 = vld [vmem:[#allocation24_spill] sm:$0xff] }
 0x22b   : > { %v1979_v6 = vsel %vm1971_vm1, %v1961_v31, %v7868_v43  ;;  %5134 = vrot.lane.b32.xlu1 %v7870_v36, %s5326_s22  ;;  %v7871_v19 = vrot.slane %v5722_v61, 4  ;;  %v1584_v3 = vrot.slane %v5623_v51, 2  ;;  %v1968_v55 = vsel %vm1953_vm3, %v6560_v21, %v1538_v8  ;;  %5139 = vrot.lane.b32.xlu0 %v6689_v17, %s5326_s22  ;;  %v7875_v21 = vld [vmem:[#allocation39_spill] sm:$0xff]  ;;  %v6747_v8 = vpop.permute.xlu1 %2811 }
 0x22c   : > { %v2013_v37 = vsel %vm1953_vm3, %v1996_v29, %v7869_v16  ;;  %4758 = vmatpush1.bf16.msra.mxu0 %v4757_v63  ;;  %4676 = vmatpush1.msk.msra.mxu1 %vm1935_vm0, %v7874_v50  ;;  %v6729_v63 = vsel %vm1971_vm1, %v2014_v30, %v6464_v52  ;;  %v7877_v0 = vrot.slane %v5722_v61, 2  ;;  %v1777_v15 = vrot.slane %v5702_v4, 4  ;;  %v7880_v61 = vld [vmem:[#allocation18_spill] sm:$0xff] }
 0x22d   : > { %v6702_v48 = vsel %vm1971_vm1, %v2013_v37, %v6461_v11  ;;  %v2015_v58 = vsel %vm1953_vm3, %v1998_v44, %v7871_v19  ;;  %v7872_v11 = vrot.slane %v5606_v13, 2  ;;  %4678 = vmatprep.subr.msk.mxu0 %vm1935_vm0, %v7873_v25  ;;  %v6725_v44 = vpack.i.bf16 %v7875_v21, %v1979_v6  ;;  %v7876_v13 = vld [vmem:[#allocation43_spill] sm:$0xff] }
 0x22e   : > { %v4759_v29 = vpack.c.bf16 %v6702_v48, %v1979_v6  ;;  %v2032_v51 = vsel %vm1971_vm1, %v2015_v58, %v6504_v14  ;;  %4677 = vmatmul.mubr.msk.f32.vlgmr.msra.gmra.mrb[0].mxu1 %vm2043_vm4, %v7876_v13  ;;  %v4765_v31 = vpack.c.bf16 %v6729_v63, %v7875_v21  ;;  %v1983_v45 = vsel %vm1971_vm1, %v1965_v18, %v7877_v0  ;;  %v7885_v6 = vld [vmem:[#allocation45_spill] sm:$0xff] }
 0x22f   : > { %v1981_v57 = vsel %vm1971_vm1, %v1963_v9, %v7872_v11  ;;  %v1982_v14 = vsel %vm1971_vm1, %v1964_v5, %v1584_v3  ;;  %v2004_v54 = vsel %vm1935_vm0, %v7878_v12, %v1744_v41  ;;  %5144 = vrot.lane.b32.xlu1 %v6725_v44, %s5326_s22  ;;  %v7879_v30 = vrot.slane %v5631_v56, 4  ;;  %5149 = vrot.lane.b32.xlu0 %v6483_v23, %s5326_s22  ;;  %v7889_v9 = vld [vmem:[#allocation29_spill] sm:$0xff]  ;;  %v7890_v3 = vld [vmem:[#allocation27_spill] sm:$0xff]  ;;  %v6808_v21 = vpop.permute.xlu1 %2819 }
 0x230   : > { %4760 = vmatprep.subr.bf16.mxu1 %v4759_v29  ;;  %v4763_v52 = vpack.c.bf16 %v2032_v51, %v1981_v57  ;;  %4679 = vmatpush1.msk.msra.mxu0 %vm1935_vm0, %v7880_v61  ;;  %v4769_v18 = vpack.c.bf16 %v6507_v35, %v1982_v14  ;;  %v1967_v5 = vsel %vm1953_vm3, %v6552_v22, %v1537_v33  ;;  %v1779_v41 = vrot.slane %v7881_v20, 4 }
 0x231   : > { %4762 = vmatpush1.bf16.msra.mxu1 %v4761_v24  ;;  %v2017_v59 = vsel %vm1953_vm3, %v2000_v47, %v7879_v30  ;;  %v7882_v47 = vld [vmem:[#allocation15_spill] sm:$0xff]  ;;  %v6764_v10 = vpack.i.bf16 %v6455_v28, %v1983_v45  ;;  %v6766_v1 = vpack.i.bf16 %v1982_v14, %v1981_v57  ;;  %v2019_v39 = vsel %vm1953_vm3, %v2002_v60, %v1777_v15  ;;  %v7887_v60 = vld [vmem:[#allocation10_spill] sm:$0xff]  ;;  %v7892_v57 = vld [vmem:[#allocation28_spill] sm:$0xff]  ;;  %v2804_v14 = vpop.permute.xlu0 %2803 }
 0x232   : > { %v6755_v4 = vsel %vm1971_vm1, %v2017_v59, %v6514_v46  ;;  %4764 = vmatprep.subr.bf16.mxu0 %v4763_v52  ;;  %4681 = vmatprep.subr.msk.mxu1 %vm1935_vm0, %v7882_v47  ;;  %v1588_v46 = vrot.slane %v7859_v38, 2  ;;  %v7883_v32 = vmov 0.0   ;;  %v7884_v33 = vrot.slane %v5631_v56, 2  ;;  %v7895_v15 = vld [vmem:[#allocation46_spill] sm:$0xff]  ;;  %v7898_v30 = vld [vmem:[#allocation23_spill] sm:$0xff]  ;;  %v7899_v59 = vld [vmem:[#allocation21_spill] sm:$0xff] }
 0x233   : > { %4680 = vmatmul.mubr.msk.f32.vlgmr.msra.gmra.mrb[2].mxu0 %vm2043_vm4, %v7876_v13  ;;  %2356 = vmatprep.mubr.f32.mxu1 %v7883_v32  ;;  %v4767_v22 = vpack.c.bf16 %v6755_v4, %v1983_v45  ;;  %v6779_v16 = vsel %vm1971_vm1, %v2018_v7, %v7885_v6  ;;  %v7888_v24 = vsel %vm5520_vm8, 0.0, %v7887_v60  ;;  %v2036_v19 = vsel %vm1971_vm1, %v2019_v39, %v6565_v26 }
 0x234   : > { %v1985_v43 = vsel %vm1971_vm1, %v1967_v5, %v7884_v33  ;;  %v1780_v38 = vrot.slane %v7888_v24, 4  ;;  %4766 = vmatpush1.bf16.msra.mxu0 %v4765_v31  ;;  %v4773_v56 = vpack.c.bf16 %v6779_v16, %v6455_v28  ;;  %v2021_v58 = vsel %vm1953_vm3, %v2004_v54, %v1779_v41  ;;  %5159 = vrot.lane.b32.xlu0 %v6764_v10, %s5326_s22  ;;  %v6831_v54 = vpop.permute.xlu1 %2805 }
 0x235   : > { %4682 = vmatpush1.msk.msra.mxu1 %vm1935_vm0, %v7889_v9  ;;  %v7891_v7 = vunpack.i.h.bf16 %v6511_v34  ;;  %v2037_v11 = vsel %vm1971_vm1, %v6575_v40, %v6570_v2  ;;  %4684 = vmatprep.subr.msk.mxu0 %vm1935_vm0, %v7892_v57  ;;  %v1986_v26 = vsel %vm1971_vm1, %v1968_v55, %v1588_v46  ;;  %v4771_v34 = vpack.c.bf16 %v2036_v19, %v1985_v43  ;;  %v7893_v55 = vld [vmem:[#allocation22_spill] sm:$0xff]  ;;  %v7901_v46 = vld [vmem:[#allocation47_spill] sm:$0xff] }
 0x236   : > { %v2022_v28 = vsel %vm1953_vm3, %v6684_v49, %v1780_v38  ;;  %5154 = vrot.lane.b32.xlu1 %v6766_v1, %s5326_s22  ;;  %4768 = vmatprep.subr.bf16.mxu1 %v4767_v22  ;;  %v4777_v50 = vpack.c.bf16 %v2037_v11, %v1986_v26  ;;  %v6814_v40 = vpack.i.bf16 %v2037_v11, %v2036_v19  ;;  %v7894_v49 = vld [vmem:[#allocation16_spill] sm:$0xff]  ;;  %vm2831_vm8 = vcmask 1039360  }
 0x237   : > { %v1865_v29 = vsel %vm1421_vm15, %v7891_v7, %v7890_v3  ;;  %4683 = vmatmul.mubr.msk.f32.vlgmr.msra.gmra.mrb[2].mxu1 %vm2043_vm4, %v7876_v13  ;;  %2427 = vmatprep.mubr.f32.mxu0 %v7883_v32  ;;  %v5163_v31 = vpack.i.bf16 %v6507_v35, %v2032_v51  ;;  %v2039_v0 = vsel %vm1971_vm1, %v2022_v28, %v7890_v3  ;;  %v7896_v35 = vld [vmem:[#allocation30_spill] sm:$0xff]  ;;  %v7897_v51 = vld [vmem:[#allocation32_spill] sm:$0xff] }
 0x238   : > { %v2038_v2 = vsel %vm1971_vm1, %v2021_v58, %v1865_v29  ;;  %4685 = vmatpush1.msk.msra.mxu0 %vm1935_vm0, %v7893_v55  ;;  %4770 = vmatpush1.bf16.msra.mxu1 %v4769_v18  ;;  %v5168_v52 = vpack.i.bf16 %v1986_v26, %v1985_v43  ;;  %v5208_v61 = vpack.i.bf16 %v6636_v62, %v6611_v53  ;;  %v7902_v7 = vld [vmem:[#allocation20_spill] sm:$0xff]  ;;  %v4367_v29 = vld [vmem:[%s7625_s6] sm:$0x3] }
 0x239   : > { %4687 = vmatprep.subr.msk.mxu1 %vm1935_vm0, %v7894_v49  ;;  %4772 = vmatprep.subr.bf16.mxu0 %v4771_v34  ;;  %v6827_v45 = vpack.i.bf16 %v2039_v0, %v2038_v2  ;;  %v4775_v12 = vpack.c.bf16 %v2038_v2, %v7895_v15  ;;  %v2828_v18 = vpop.permute.xlu1 %2827  ;;  %v5238_v41 = vpack.i.bf16 %v6779_v16, %v6755_v4 }
 0x23a   : > { %5179 = vrot.lane.b32.xlu0 %v6416_v42, %s5327_s23  ;;  %4686 = vmatmul.mubr.msk.f32.vlgmr.msra.gmra.mrb[4].mxu0 %vm2043_vm4, %v7876_v13  ;;  %v6839_v42 = vsel %vm2831_vm8, %v2804_v14, %v6831_v54 }
 0x23b   : > { %4774 = vmatpush1.bf16.msra.mxu0 %v4773_v56  ;;  %5164 = vrot.lane.b32.xlu1 %v5163_v31, %s5326_s22 }
 0x23c   : > { %4690 = vmatprep.subr.msk.mxu0 %vm1935_vm0, %v7896_v35  ;;  %4688 = vmatpush1.msk.msra.mxu1 %vm1935_vm0, %v7897_v51 }
 0x23d   : > { %2498 = vmatprep.mubr.f32.mxu1 %v7883_v32  ;;  %4776 = vmatprep.subr.bf16.mxu1 %v4775_v12 }
 0x23e   : > { %5194 = vrot.lane.b32.xlu0 %v6689_v17, %s5327_s23  ;;  %4689 = vmatmul.mubr.msk.f32.vlgmr.msra.gmra.mrb[4].mxu1 %vm2043_vm4, %v7876_v13  ;;  %v7900_v17 = vld [vmem:[#allocation33_spill] sm:$0xff] }
 0x23f   : > { %4691 = vmatpush1.msk.msra.mxu0 %vm1935_vm0, %v7898_v30  ;;  %4778 = vmatpush1.bf16.msra.mxu1 %v4777_v50 }
 0x240   : > { %5169 = vrot.lane.b32.xlu1 %v5168_v52, %s5326_s22  ;;  %4693 = vmatprep.subr.msk.mxu1 %vm1935_vm0, %v7899_v59 }
 0x241   : > { %2569 = vmatprep.mubr.f32.mxu0 %v7883_v32  ;;  %2640 = vmatprep.mubr.f32.mxu1 %v7883_v32 }
 0x242   : > { %5204 = vrot.lane.b32.xlu0 %v6483_v23, %s5327_s23  ;;  %4692 = vmatmul.mubr.msk.f32.vlgmr.msra.gmra.mrb[6].mxu0 %vm2043_vm4, %v7876_v13  ;;  %v2830_v23 = vpop.permute.xlu0 %2829 }
 0x243   : > { %4694 = vmatpush1.msk.msra.mxu1 %vm1935_vm0, %v7900_v17  ;;  %3011 = vmatprep.mubr.f32.mxu0 %v7883_v32  ;;  %v6871_v5 = vsel %vm2831_vm8, %v2828_v18, %v2830_v23 }
 0x244   : > { %5174 = vrot.lane.b32.xlu1 %v6814_v40, %s5326_s22  ;;  %4695 = vmatmul.mubr.msk.f32.vlgmr.msra.gmra.mrb[6].mxu1 %vm2043_vm4, %v7876_v13 }
 0x245   : > { %3082 = vmatprep.mubr.f32.mxu1 %v7883_v32 }
 0x246   : > { %5209 = vrot.lane.b32.xlu0 %v5208_v61, %s5326_s22  ;;  %v6875_v53 = vpop.permute.xlu0 %3591 }
 0x248   : > { %5184 = vrot.lane.b32.xlu1 %v6648_v27, %s5327_s23  ;;  %v5213_v27 = vpack.i.bf16 %v6729_v63, %v6702_v48 }
 0x24a   : > { %5224 = vrot.lane.b32.xlu0 %v6764_v10, %s5327_s23  ;;  %v6881_v62 = vpop.permute.xlu0 %2797 }
 0x24c   : > { %5189 = vrot.lane.b32.xlu1 %v7870_v36, %s5327_s23  ;;  %v6894_v36 = vpop.permute.xlu1 %3593 }
 0x24e   : > { %3597 = vrot.lane.b32.xlu0 %v7889_v9, %s5327_s23  ;;  %v2814_v13 = vpop.permute.xlu0 %2813 }
 0x24f   : > { %v6891_v20 = vsel %vm2831_vm8, %v6747_v8, %v2814_v13 }
 0x250   : > { %5199 = vrot.lane.b32.xlu1 %v6725_v44, %s5327_s23  ;;  %v6905_v48 = vpop.permute.xlu1 %2801 }
 0x251   : > { %v6909_v63 = vsel %vm2831_vm8, %v6905_v48, %v2804_v14 }
 0x252   : > { %3601 = vrot.lane.b32.xlu0 %v7893_v55, %s5327_s23  ;;  %v2822_v44 = vpop.permute.xlu0 %2821 }
 0x253   : > { %v6901_v10 = vsel %vm2831_vm8, %v6808_v21, %v2822_v44 }
 0x254   : > { %5214 = vrot.lane.b32.xlu1 %v5213_v27, %s5326_s22  ;;  %v6914_v39 = vpop.permute.xlu1 %2807 }
 0x256   : > { %5239 = vrot.lane.b32.xlu0 %v5238_v41, %s5326_s22  ;;  %v3586_v4 = vpop.permute.xlu0 %3585 }
 0x258   : > { %5219 = vrot.lane.b32.xlu1 %v6766_v1, %s5327_s23  ;;  %v2816_v1 = vpop.permute.xlu1 %2815 }
 0x259   : > { %v6923_v33 = vsel %vm2831_vm8, %v2814_v13, %v2816_v1 }
 0x25a   : > { %5244 = vrot.lane.b32.xlu0 %v6827_v45, %s5326_s22  ;;  %v6918_v22 = vpop.permute.xlu0 %2799 }
 0x25c   : > { %5229 = vrot.lane.b32.xlu1 %v5163_v31, %s5327_s23  ;;  %v2824_v16 = vpop.permute.xlu1 %2823 }
 0x25d   : > { %v6936_v37 = vsel %vm2831_vm8, %v2822_v44, %v2824_v16  ;;  %v2864_v44 = vsel %vm2831_vm8, %v6881_v62, %v6918_v22 }
 0x25e   : > { %5249 = vrot.lane.b32.xlu0 %v7901_v46, %s5327_s23  ;;  %v6926_v43 = vpop.permute.xlu0 %2809 }
 0x25f   : > { %v6931_v6 = vsel %vm2831_vm8, %v6926_v43, %v6747_v8 }
 0x260   : > { %3595 = vrot.lane.b32.xlu1 %v7873_v25, %s5327_s23  ;;  %v3590_v8 = vpop.permute.xlu1 %3589 }
 0x262   : > { %5254 = vrot.lane.b32.xlu0 %v5208_v61, %s5327_s23  ;;  %v2818_v25 = vpop.permute.xlu0 %2817  ;;  %v2865_v61 = vsel %vm2831_vm8, %v6918_v22, %v6905_v48 }
 0x263   : > { %v6941_v60 = vsel %vm2831_vm8, %v2816_v1, %v2818_v25  ;;  %v6945_v24 = vsel %vm2831_vm8, %v2818_v25, %v6808_v21 }
 0x264   : > { %3599 = vrot.lane.b32.xlu1 %v7882_v47, %s5327_s23  ;;  %v6950_v47 = vsel %vm3619_vm5, %v3590_v8, %v6875_v53  ;;  %v5115_v11 = vpop.permute.xlu1 %5114 }
 0x265   : > { %v5117_v28 = vunpack.i.h.bf16 %v5115_v11  ;;  %v5116_v34 = vunpack.i.l.bf16 %v5115_v11 }
 0x266   : > { %3605 = vrot.lane.b32.xlu0 %v7897_v51, %s5327_s23  ;;  %v2826_v38 = vpop.permute.xlu0 %2825 }
 0x267   : > { %v6955_v9 = vsel %vm2831_vm8, %v2824_v16, %v2826_v38  ;;  %v6958_v19 = vsel %vm2831_vm8, %v2826_v38, %v2828_v18  ;;  %v2833_v55 = vsel %vm2831_vm8, %v5116_v34, %v5117_v28 }
 0x268   : > { %5234 = vrot.lane.b32.xlu1 %v5168_v52, %s5327_s23  ;;  %v6989_v26 = vpop.permute.xlu1 %5119 }
 0x26a   : > { %3609 = vrot.lane.b32.xlu0 %v7898_v30, %s5327_s23  ;;  %v3588_v56 = vpop.permute.xlu0 %3587 }
 0x26b   : > { %v6963_v58 = vsel %vm3619_vm5, %v3586_v4, %v3588_v56  ;;  %v6966_v3 = vsel %vm3619_vm5, %v3588_v56, %v3590_v8 }
 0x26c   : > { %5259 = vrot.lane.b32.xlu1 %v5213_v27, %s5327_s23 }
 0x26e   : > { %5269 = vrot.lane.b32.xlu0 %v5238_v41, %s5327_s23  ;;  %v7018_v41 = vld [vmem:[%s7622_s3 + $0x2] sm:$0x3] }
 0x270   : > { %5264 = vrot.lane.b32.xlu1 %v6814_v40, %s5327_s23 }
 0x272   : > { %5274 = vrot.lane.b32.xlu0 %v6827_v45, %s5327_s23 }
 0x274   : > { %3603 = vrot.lane.b32.xlu1 %v7892_v57, %s5327_s23 }
 0x276   : > { %3613 = vrot.lane.b32.xlu0 %v7900_v17, %s5327_s23 }
 0x278   : > { %3607 = vrot.lane.b32.xlu1 %v7894_v49, %s5327_s23 }
 0x27a   : > { %3617 = vrot.lane.b32.xlu0 %v7902_v7, %s5327_s23 }
 0x27c   : > { %3611 = vrot.lane.b32.xlu1 %v7896_v35, %s5327_s23 }
 0x280   : > { %3615 = vrot.lane.b32.xlu1 %v7899_v59, %s5327_s23 }
 0x284   : > { %4370 = vperm.xlu1 %5278, %v4367_v29  }
 0x288   : > { %v6987_v57 = vpop.permute.xlu0 %5109 }
 0x28c   : > { %v5125_v50 = vpop.permute.xlu0 %5124 }
 0x28d   : > { %v5127_v8 = vunpack.i.h.bf16 %v5125_v50  ;;  %v5126_v38 = vunpack.i.l.bf16 %v5125_v50 }
 0x297   : > { %v5130_v21 = vpop.permute.xlu1 %5129 }
 0x298   : > { %v5132_v2 = vunpack.i.h.bf16 %v5130_v21  ;;  %v5131_v40 = vunpack.i.l.bf16 %v5130_v21 }
 0x29a   : > { %v2849_v49 = vsel %vm2831_vm8, %v5131_v40, %v5132_v2 }
 0x29b   : > { %v4779_v0 = vpack.c.bf16 %v2849_v49, %v2833_v55  ;;  %v2835_v49 = vsel %vm2831_vm8, %v5126_v38, %v5127_v8 }
 0x29d   : > { %v5135_v31 = vpop.permute.xlu1 %5134  ;;  %v6993_v45 = vpop.permute.xlu0 %5139  ;;  %4780 = vmatprep.subr.bf16.mxu0 %v4779_v0 }
 0x29e   : > { %v5137_v14 = vunpack.i.h.bf16 %v5135_v31  ;;  %v5136_v15 = vunpack.i.l.bf16 %v5135_v31  ;;  %v5142_v51 = vunpack.i.h.bf16 %v6993_v45  ;;  %v5141_v52 = vunpack.i.l.bf16 %v6993_v45 }
 0x2a0   : > { %v2832_v12 = vsel %vm2831_vm8, %v5136_v15, %v5116_v34  ;;  %v2848_v35 = vsel %vm2831_vm8, %v5137_v14, %v5131_v40  ;;  %v2837_v27 = vsel %vm2831_vm8, %v5141_v52, %v5142_v51  ;;  %v2834_v34 = vsel %vm2831_vm8, %v5117_v28, %v5126_v38 }
 0x2a1   : > { %v4781_v30 = vpack.c.bf16 %v2848_v35, %v2832_v12  ;;  %v6999_v59 = vpop.permute.xlu1 %5144  ;;  %v7001_v17 = vpop.permute.xlu0 %5149  ;;  %v2836_v31 = vsel %vm2831_vm8, %v5127_v8, %v5141_v52 }
 0x2a2   : > { %v5152_v23 = vunpack.i.h.bf16 %v7001_v17  ;;  %v5151_v18 = vunpack.i.l.bf16 %v7001_v17  ;;  %v5146_v8 = vunpack.i.l.bf16 %v6999_v59 }
 0x2a3   : > { %4782 = vmatpush1.bf16.msra.mxu0 %v4781_v30 }
 0x2a4   : > { %4696 = vmatprep.subr.msk.mxu0 %vm1935_vm0, %v2865_v61  ;;  %v2853_v13 = vsel %vm2831_vm8, %v5151_v18, %v5152_v23 }
 0x2a5   : > { %v4787_v4 = vpack.c.bf16 %v2853_v13, %v2837_v27  ;;  %v2869_v27 = vsel %vm2831_vm8, %v6914_v39, %v6926_v43  ;;  %v2868_v43 = vsel %vm2831_vm8, %v6831_v54, %v6914_v39 }
 0x2a6   : > { %v7023_v48 = vpop.permute.xlu0 %5159 }
 0x2a7   : > { %4697 = vmatpush1.msk.msra.mxu0 %vm1935_vm0, %v2864_v44  ;;  %v5162_v17 = vunpack.i.h.bf16 %v7023_v48 }
 0x2a8   : > { %v7025_v46 = vpop.permute.xlu1 %5154  ;;  %4788 = vmatprep.subr.bf16.mxu0 %v4787_v4  ;;  %4698 = vmatmul.mubr.msk.f32.vlgmr.msra.gmra.mrb[8].mxu0 %vm2043_vm4, %v7018_v41 }
 0x2a9   : > { %3153 = vmatprep.mubr.f32.mxu0 %v7883_v32  ;;  %v5157_v0 = vunpack.i.h.bf16 %v7025_v46  ;;  %v5156_v15 = vunpack.i.l.bf16 %v7025_v46 }
 0x2ab   : > { %v2841_v13 = vsel %vm2831_vm8, %v5156_v15, %v5157_v0 }
 0x2ac   : > { %v7031_v1 = vpop.permute.xlu0 %5179 }
 0x2ad   : > { %v7033_v16 = vpop.permute.xlu1 %5164 }
 0x2ae   : > { %v5167_v21 = vunpack.i.h.bf16 %v7033_v16  ;;  %v5166_v40 = vunpack.i.l.bf16 %v7033_v16 }
 0x2b0   : > { %v7035_v25 = vpop.permute.xlu0 %5194 }
 0x2b2   : > { %v7037_v62 = vpop.permute.xlu1 %5169 }
 0x2b3   : > { %v5171_v45 = vunpack.i.l.bf16 %v7037_v62 }
 0x2b4   : > { %v7039_v22 = vpop.permute.xlu0 %5204 }
 0x2b5   : > { %v5207_v46 = vunpack.i.h.bf16 %v7039_v22 }
 0x2b6   : > { %v7041_v56 = vpop.permute.xlu1 %5174 }
 0x2b8   : > { %v5210_v7 = vpop.permute.xlu0 %5209 }
 0x2b9   : > { %v5212_v29 = vunpack.i.h.bf16 %v5210_v7  ;;  %v5211_v11 = vunpack.i.l.bf16 %v5210_v7 }
 0x2ba   : > { %v7046_v55 = vpop.permute.xlu1 %5184 }
 0x2bb   : > { %v2852_v50 = vsel %vm2831_vm8, %v5212_v29, %v5151_v18  ;;  %v2850_v14 = vsel %vm2831_vm8, %v5132_v2, %v5211_v11  ;;  %v2851_v30 = vsel %vm2831_vm8, %v5211_v11, %v5212_v29  ;;  %v2857_v2 = vsel %vm2831_vm8, %v5166_v40, %v5167_v21 }
 0x2bc   : > { %v4789_v12 = vpack.c.bf16 %v2852_v50, %v2836_v31  ;;  %v4785_v28 = vpack.c.bf16 %v2850_v14, %v2834_v34  ;;  %v7054_v35 = vpop.permute.xlu0 %5224  ;;  %v4783_v61 = vpack.c.bf16 %v2851_v30, %v2835_v49  ;;  %v4795_v44 = vpack.c.bf16 %v2857_v2, %v2841_v13 }
 0x2bd   : > { %v2838_v29 = vsel %vm2831_vm8, %v5142_v51, %v5146_v8  ;;  %v5176_v11 = vunpack.i.l.bf16 %v7041_v56  ;;  %v5172_v14 = vunpack.i.h.bf16 %v7037_v62  ;;  %v5122_v2 = vunpack.i.h.bf16 %v6989_v26 }
 0x2be   : > { %v7060_v52 = vpop.permute.xlu1 %5189  ;;  %4790 = vmatpush1.bf16.msra.mxu0 %v4789_v12  ;;  %4784 = vmatprep.subr.bf16.mxu1 %v4783_v61  ;;  %v5161_v13 = vunpack.i.l.bf16 %v7023_v48  ;;  %v5187_v48 = vunpack.i.h.bf16 %v7046_v55  ;;  %v3655_v62 = vsel %vm3619_vm5, %v6875_v53, %v6894_v36  ;;  %v7215_v53 = vld [vmem:[%s7622_s3 + $0x4] sm:$0x3] }
 0x2bf   : > { %4702 = vmatprep.subr.msk.mxu0 %vm1935_vm0, %v2869_v27  ;;  %4786 = vmatpush1.bf16.msra.mxu1 %v4785_v28 }
 0x2c0   : > { %v7066_v18 = vpop.permute.xlu0 %3597  ;;  %4699 = vmatprep.subr.msk.mxu1 %vm1935_vm0, %v6839_v42  ;;  %v5147_v42 = vunpack.i.h.bf16 %v6999_v59  ;;  %v2843_v16 = vsel %vm2831_vm8, %v5161_v13, %v5162_v17 }
 0x2c2   : > { %v7076_v4 = vpop.permute.xlu1 %5199  ;;  %4703 = vmatpush1.msk.msra.mxu0 %vm1935_vm0, %v2868_v43  ;;  %v2840_v49 = vsel %vm2831_vm8, %v5147_v42, %v5156_v15  ;;  %v2839_v15 = vsel %vm2831_vm8, %v5146_v8, %v5147_v42  ;;  %v5112_v8 = vunpack.i.h.bf16 %v6987_v57 }
 0x2c3   : > { %4704 = vmatmul.mubr.msk.f32.vlgmr.msra.gmra.mrb[10].mxu0 %vm2043_vm4, %v7018_v41  ;;  %4796 = vmatprep.subr.bf16.mxu0 %v4795_v44  ;;  %v5121_v44 = vunpack.i.l.bf16 %v6989_v26 }
 0x2c4   : > { %4700 = vmatpush1.msk.msra.mxu1 %vm1935_vm0, %v6909_v63  ;;  %v7084_v38 = vpop.permute.xlu0 %3601  ;;  %3295 = vmatprep.mubr.f32.mxu0 %v7883_v32  ;;  %v5177_v63 = vunpack.i.h.bf16 %v7041_v56  ;;  %v5182_v56 = vunpack.i.h.bf16 %v7031_v1 }
 0x2c5   : > { %4701 = vmatmul.mubr.msk.f32.vlgmr.msra.gmra.mrb[8].mxu1 %vm2043_vm4, %v7018_v41 }
 0x2c6   : > { %v5215_v54 = vpop.permute.xlu1 %5214  ;;  %3224 = vmatprep.mubr.f32.mxu1 %v7883_v32 }
 0x2c7   : > { %v5217_v39 = vunpack.i.h.bf16 %v5215_v54  ;;  %v5216_v7 = vunpack.i.l.bf16 %v5215_v54  ;;  %v2844_v54 = vsel %vm2831_vm8, %v5162_v17, %v5171_v45  ;;  %v5181_v17 = vunpack.i.l.bf16 %v7031_v1 }
 0x2c8   : > { %v5240_v34 = vpop.permute.xlu0 %5239 }
 0x2c9   : > { %v2854_v31 = vsel %vm2831_vm8, %v5152_v23, %v5216_v7  ;;  %v2856_v50 = vsel %vm2831_vm8, %v5217_v39, %v5166_v40  ;;  %v5242_v59 = vunpack.i.h.bf16 %v5240_v34  ;;  %v2855_v28 = vsel %vm2831_vm8, %v5216_v7, %v5217_v39 }
 0x2ca   : > { %v4797_v12 = vpack.c.bf16 %v2856_v50, %v2840_v49  ;;  %v7103_v51 = vpop.permute.xlu1 %5219  ;;  %v4793_v30 = vpack.c.bf16 %v2854_v31, %v2838_v29  ;;  %v5241_v61 = vunpack.i.l.bf16 %v5240_v34  ;;  %v4791_v27 = vpack.c.bf16 %v2855_v28, %v2839_v15 }
 0x2cb   : > { %v2861_v40 = vsel %vm2831_vm8, %v5176_v11, %v5177_v63  ;;  %v2860_v43 = vsel %vm2831_vm8, %v5242_v59, %v5176_v11  ;;  %v2845_v39 = vsel %vm2831_vm8, %v5171_v45, %v5172_v14  ;;  %v5186_v7 = vunpack.i.l.bf16 %v7046_v55 }
 0x2cc   : > { %4798 = vmatpush1.bf16.msra.mxu0 %v4797_v12  ;;  %v5245_v23 = vpop.permute.xlu0 %5244  ;;  %4792 = vmatprep.subr.bf16.mxu1 %v4791_v27  ;;  %v4803_v29 = vpack.c.bf16 %v2861_v40, %v2845_v39  ;;  %v5192_v11 = vunpack.i.h.bf16 %v7060_v52  ;;  %v5191_v34 = vunpack.i.l.bf16 %v7060_v52  ;;  %v2858_v49 = vsel %vm2831_vm8, %v5167_v21, %v5241_v61 }
 0x2cd   : > { %4708 = vmatprep.subr.msk.mxu0 %vm1935_vm0, %v6941_v60  ;;  %4794 = vmatpush1.bf16.msra.mxu1 %v4793_v30  ;;  %v2859_v60 = vsel %vm2831_vm8, %v5241_v61, %v5242_v59  ;;  %v4805_v31 = vpack.c.bf16 %v2860_v43, %v2844_v54  ;;  %v5111_v45 = vunpack.i.l.bf16 %v6987_v57  ;;  %v5247_v59 = vunpack.i.h.bf16 %v5245_v23 }
 0x2ce   : > { %v7119_v42 = vpop.permute.xlu1 %5229  ;;  %4705 = vmatprep.subr.msk.mxu1 %vm1935_vm0, %v6891_v20  ;;  %v5246_v12 = vunpack.i.l.bf16 %v5245_v23  ;;  %v2842_v21 = vsel %vm2831_vm8, %v5157_v0, %v5161_v13  ;;  %v4799_v52 = vpack.c.bf16 %v2859_v60, %v2843_v16  ;;  %v3637_v57 = vsel %vm3619_vm5, %v5186_v7, %v5187_v48 }
 0x2cf   : > { %v5206_v0 = vunpack.i.l.bf16 %v7039_v22  ;;  %v3620_v28 = vsel %vm3619_vm5, %v5191_v34, %v5121_v44  ;;  %v3636_v30 = vsel %vm3619_vm5, %v5192_v11, %v5186_v7  ;;  %v2847_v61 = vsel %vm2831_vm8, %v5111_v45, %v5112_v8 }
 0x2d0   : > { %4709 = vmatpush1.msk.msra.mxu0 %vm1935_vm0, %v6923_v33  ;;  %v7136_v50 = vpop.permute.xlu0 %5249  ;;  %v4801_v33 = vpack.c.bf16 %v2858_v49, %v2842_v21  ;;  %v2863_v15 = vsel %vm2831_vm8, %v5246_v12, %v5247_v59  ;;  %v2862_v27 = vsel %vm2831_vm8, %v5177_v63, %v5246_v12  ;;  %v5197_v43 = vunpack.i.h.bf16 %v7035_v25 }
 0x2d1   : > { %4710 = vmatmul.mubr.msk.f32.vlgmr.msra.gmra.mrb[12].mxu0 %vm2043_vm4, %v7018_v41  ;;  %4804 = vmatprep.subr.bf16.mxu0 %v4803_v29  ;;  %v4813_v8 = vpack.c.bf16 %v3636_v30, %v3620_v28  ;;  %v4807_v63 = vpack.c.bf16 %v2863_v15, %v2847_v61  ;;  %v5232_v29 = vunpack.i.h.bf16 %v7119_v42  ;;  %v5231_v1 = vunpack.i.l.bf16 %v7119_v42 }
 0x2d2   : > { %v7145_v20 = vpop.permute.xlu1 %3595  ;;  %4806 = vmatpush1.bf16.msra.mxu0 %v4805_v31  ;;  %3437 = vmatprep.mubr.f32.mxu0 %v7883_v32  ;;  %v5221_v60 = vunpack.i.l.bf16 %v7103_v51  ;;  %v5222_v49 = vunpack.i.h.bf16 %v7103_v51  ;;  %v3623_v16 = vsel %vm3619_vm5, %v5181_v17, %v5182_v56 }
 0x2d3   : > { %4706 = vmatpush1.msk.msra.mxu1 %vm1935_vm0, %v6931_v6  ;;  %4714 = vmatprep.subr.msk.mxu0 %vm1935_vm0, %v6955_v9  ;;  %v3621_v9 = vsel %vm3619_vm5, %v5121_v44, %v5122_v2  ;;  %v5196_v44 = vunpack.i.l.bf16 %v7035_v25  ;;  %v5201_v25 = vunpack.i.l.bf16 %v7076_v4  ;;  %v3645_v55 = vsel %vm3619_vm5, %v5231_v1, %v5232_v29 }
 0x2d4   : > { %4707 = vmatmul.mubr.msk.f32.vlgmr.msra.gmra.mrb[10].mxu1 %vm2043_vm4, %v7018_v41  ;;  %4800 = vmatprep.subr.bf16.mxu1 %v4799_v52  ;;  %v5255_v6 = vpop.permute.xlu0 %5254  ;;  %v4811_v13 = vpack.c.bf16 %v3637_v57, %v3621_v9  ;;  %v3629_v28 = vsel %vm3619_vm5, %v5221_v60, %v5222_v49  ;;  %v3657_v9 = vsel %vm3619_vm5, %v7145_v20, %v7066_v18 }
 0x2d5   : > { %4802 = vmatpush1.bf16.msra.mxu1 %v4801_v33  ;;  %3366 = vmatprep.mubr.f32.mxu1 %v7883_v32  ;;  %v5257_v23 = vunpack.i.h.bf16 %v5255_v6  ;;  %v5256_v54 = vunpack.i.l.bf16 %v5255_v6  ;;  %v3626_v59 = vsel %vm3619_vm5, %v5197_v43, %v5201_v25  ;;  %v7239_v33 = vpop.f32.mrb[0].mxu0  ;;  %v3656_v6 = vsel %vm3619_vm5, %v6894_v36, %v7145_v20 }
 0x2d6   : > { %4711 = vmatprep.subr.msk.mxu1 %vm1935_vm0, %v6901_v10  ;;  %v7173_v40 = vpop.permute.xlu1 %3599  ;;  %4715 = vmatpush1.msk.msra.mxu0 %vm1935_vm0, %v6936_v37  ;;  %v2846_v10 = vsel %vm2831_vm8, %v5172_v14, %v5111_v45  ;;  %v3641_v37 = vsel %vm3619_vm5, %v5206_v0, %v5207_v46  ;;  %v5202_v14 = vunpack.i.h.bf16 %v7076_v4  ;;  %v3625_v4 = vsel %vm3619_vm5, %v5196_v44, %v5197_v43  ;;  %v7246_v30 = vpop.f32.mrb[1].mxu0 }
 0x2d7   : > { %4716 = vmatmul.mubr.msk.f32.vlgmr.msra.gmra.mrb[14].mxu0 %vm2043_vm4, %v7018_v41  ;;  %4812 = vmatprep.subr.bf16.mxu0 %v4811_v13  ;;  %v4809_v7 = vpack.c.bf16 %v2862_v27, %v2846_v10  ;;  %v3640_v11 = vsel %vm3619_vm5, %v5257_v23, %v5206_v0  ;;  %v3639_v31 = vsel %vm3619_vm5, %v5256_v54, %v5257_v23 }
 0x2d8   : > { %v7185_v39 = vpop.permute.xlu0 %3605  ;;  %3799 = vmatprep.mubr.f32.mxu0 %v7883_v32  ;;  %4814 = vmatpush1.bf16.msra.mxu0 %v4813_v8  ;;  %v3624_v45 = vsel %vm3619_vm5, %v5182_v56, %v5196_v44  ;;  %v3638_v26 = vsel %vm3619_vm5, %v5187_v48, %v5256_v54  ;;  %v3628_v48 = vsel %vm3619_vm5, %v5202_v14, %v5221_v60  ;;  %v5227_v54 = vunpack.i.h.bf16 %v7054_v35 }
 0x2d9   : > { %4712 = vmatpush1.msk.msra.mxu1 %vm1935_vm0, %v6945_v24  ;;  %v3622_v24 = vsel %vm3619_vm5, %v5122_v2, %v5181_v17  ;;  %4721 = vmatprep.subr.msk.mxu0 %vm1935_vm0, %v6966_v3  ;;  %v4819_v3 = vpack.c.bf16 %v3641_v37, %v3625_v4  ;;  %v4821_v12 = vpack.c.bf16 %v3640_v11, %v3624_v45  ;;  %v5226_v56 = vunpack.i.l.bf16 %v7054_v35 }
 0x2da   : > { %4713 = vmatmul.mubr.msk.f32.vlgmr.msra.gmra.mrb[12].mxu1 %vm2043_vm4, %v7018_v41  ;;  %4808 = vmatprep.subr.bf16.mxu1 %v4807_v63  ;;  %v7204_v34 = vpop.permute.xlu1 %5234  ;;  %v4815_v21 = vpack.c.bf16 %v3639_v31, %v3623_v16  ;;  %v3627_v52 = vsel %vm3619_vm5, %v5201_v25, %v5202_v14  ;;  %v4817_v57 = vpack.c.bf16 %v3638_v26, %v3622_v24 }
 0x2db   : > { %4810 = vmatpush1.bf16.msra.mxu1 %v4809_v7  ;;  %3508 = vmatprep.mubr.f32.mxu1 %v7883_v32  ;;  %v4827_v61 = vpack.c.bf16 %v3645_v55, %v3629_v28  ;;  %v5237_v15 = vunpack.i.h.bf16 %v7204_v34  ;;  %v5236_v17 = vunpack.i.l.bf16 %v7204_v34  ;;  %v3659_v10 = vsel %vm3619_vm5, %v7173_v40, %v7084_v38 }
 0x2dc   : > { %4717 = vmatprep.subr.msk.mxu1 %vm1935_vm0, %v6871_v5  ;;  %v7225_v2 = vpop.permute.xlu0 %3609  ;;  %4722 = vmatpush1.msk.msra.mxu0 %vm1935_vm0, %v6963_v58  ;;  %v3631_v31 = vsel %vm3619_vm5, %v5226_v56, %v5227_v54  ;;  %v3630_v42 = vsel %vm3619_vm5, %v5222_v49, %v5226_v56 }
 0x2dd   : > { %4723 = vmatmul.mubr.msk.f32.vlgmr.msra.gmra.mrb[16].mxu0 %vm2043_vm4, %v7215_v53  ;;  %4820 = vmatprep.subr.bf16.mxu0 %v4819_v3  ;;  %v3633_v35 = vsel %vm3619_vm5, %v5236_v17, %v5237_v15  ;;  %v3632_v14 = vsel %vm3619_vm5, %v5227_v54, %v5236_v17  ;;  %v5252_v3 = vunpack.i.h.bf16 %v7136_v50 }
 0x2de   : > { %v5260_v5 = vpop.permute.xlu1 %5259  ;;  %4822 = vmatpush1.bf16.msra.mxu0 %v4821_v12  ;;  %3941 = vmatprep.mubr.f32.mxu0 %v7883_v32 }
 0x2df   : > { %4718 = vmatpush1.msk.msra.mxu1 %vm1935_vm0, %v6958_v19  ;;  %v5262_v58 = vunpack.i.h.bf16 %v5260_v5  ;;  %v5261_v0 = vunpack.i.l.bf16 %v5260_v5  ;;  %4727 = vmatprep.subr.msk.mxu0 %vm1935_vm0, %v3657_v9 }
 0x2e0   : > { %4719 = vmatmul.mubr.msk.f32.vlgmr.msra.gmra.mrb[14].mxu1 %vm2043_vm4, %v7018_v41  ;;  %4816 = vmatprep.subr.bf16.mxu1 %v4815_v21  ;;  %v5270_v19 = vpop.permute.xlu0 %5269 }
 0x2e1   : > { %v3642_v27 = vsel %vm3619_vm5, %v5207_v46, %v5261_v0  ;;  %v3644_v36 = vsel %vm3619_vm5, %v5262_v58, %v5231_v1  ;;  %4818 = vmatpush1.bf16.msra.mxu1 %v4817_v57  ;;  %v5272_v41 = vunpack.i.h.bf16 %v5270_v19  ;;  %v5271_v23 = vunpack.i.l.bf16 %v5270_v19  ;;  %3870 = vmatprep.mubr.f32.mxu1 %v7883_v32 }
 0x2e2   : > { %v4829_v20 = vpack.c.bf16 %v3644_v36, %v3628_v48  ;;  %4724 = vmatprep.subr.msk.mxu1 %vm1935_vm0, %v3655_v62  ;;  %v5265_v13 = vpop.permute.xlu1 %5264  ;;  %v3643_v43 = vsel %vm3619_vm5, %v5261_v0, %v5262_v58  ;;  %v4825_v44 = vpack.c.bf16 %v3642_v27, %v3626_v59  ;;  %4728 = vmatpush1.msk.msra.mxu0 %vm1935_vm0, %v3656_v6  ;;  %v5251_v59 = vunpack.i.l.bf16 %v7136_v50 }
 0x2e3   : > { %v5267_v8 = vunpack.i.h.bf16 %v5265_v13  ;;  %v5266_v22 = vunpack.i.l.bf16 %v5265_v13  ;;  %v4823_v46 = vpack.c.bf16 %v3643_v43, %v3627_v52  ;;  %4729 = vmatmul.mubr.msk.f32.vlgmr.msra.gmra.mrb[18].mxu0 %vm2043_vm4, %v7215_v53  ;;  %4828 = vmatprep.subr.bf16.mxu0 %v4827_v61  ;;  %v3647_v62 = vsel %vm3619_vm5, %v5271_v23, %v5272_v41 }
 0x2e4   : > { %4830 = vmatpush1.bf16.msra.mxu0 %v4829_v20  ;;  %v5275_v37 = vpop.permute.xlu0 %5274  ;;  %v3646_v60 = vsel %vm3619_vm5, %v5232_v29, %v5271_v23  ;;  %4083 = vmatprep.mubr.f32.mxu0 %v7883_v32  ;;  %v3658_v29 = vsel %vm3619_vm5, %v7066_v18, %v7173_v40  ;;  %v4831_v26 = vpack.c.bf16 %v3647_v62, %v3631_v31  ;;  %v7903_v23 = vld [vmem:[#allocation3_spill] sm:$0xff] }
 0x2e5   : > { %4725 = vmatpush1.msk.msra.mxu1 %vm1935_vm0, %v6950_v47  ;;  %v3648_v63 = vsel %vm3619_vm5, %v5272_v41, %v5266_v22  ;;  %v3649_v7 = vsel %vm3619_vm5, %v5266_v22, %v5267_v8  ;;  %v5276_v4 = vunpack.i.l.bf16 %v5275_v37  ;;  %v4833_v12 = vpack.c.bf16 %v3646_v60, %v3630_v42 }
 0x2e6   : > { %4726 = vmatmul.mubr.msk.f32.vlgmr.msra.gmra.mrb[16].mxu1 %vm2043_vm4, %v7215_v53  ;;  %4824 = vmatprep.subr.bf16.mxu1 %v4823_v46  ;;  %v3604_v25 = vpop.permute.xlu1 %3603  ;;  %v4835_v11 = vpack.c.bf16 %v3649_v7, %v3633_v35  ;;  %v4837_v24 = vpack.c.bf16 %v3648_v63, %v3632_v14  ;;  %v3635_v48 = vsel %vm3619_vm5, %v5251_v59, %v5252_v3  ;;  %v7359_v13 = vadd.s32 128, %v7903_v23  ;;  %v7906_v3 = vld [vmem:[#allocation7_spill] sm:$0xff] }
 0x2e7   : > { %4826 = vmatpush1.bf16.msra.mxu1 %v4825_v44  ;;  %v3660_v1 = vsel %vm3619_vm5, %v7084_v38, %v3604_v25  ;;  %v3661_v47 = vsel %vm3619_vm5, %v3604_v25, %v7185_v39  ;;  %4012 = vmatprep.mubr.f32.mxu1 %v7883_v32  ;;  %v5277_v38 = vunpack.i.h.bf16 %v5275_v37  ;;  %v3650_v40 = vsel %vm3619_vm5, %v5267_v8, %v5276_v4  ;;  %v7904_v25 = vld [vmem:[#allocation5_spill] sm:$0xff] }
 0x2e8   : > { %4730 = vmatprep.subr.msk.mxu1 %vm1935_vm0, %v3659_v10  ;;  %4733 = vmatprep.subr.msk.mxu0 %vm1935_vm0, %v3661_v47  ;;  %v3614_v49 = vpop.permute.xlu0 %3613  ;;  %v3634_v5 = vsel %vm3619_vm5, %v5237_v15, %v5251_v59  ;;  %v467_v43 = vand.u32 15, %v7903_v23  ;;  %v474_v44 = vand.u32 15, %v7359_v13  ;;  %v7374_v63 = vadd.s32 640, %v7903_v23 }
 0x2e9   : > { %4734 = vmatpush1.msk.msra.mxu0 %vm1935_vm0, %v3660_v1  ;;  %v3651_v18 = vsel %vm3619_vm5, %v5276_v4, %v5277_v38  ;;  %v4841_v57 = vpack.c.bf16 %v3650_v40, %v3634_v5  ;;  %v7377_v37 = vadd.s32 384, %v7903_v23  ;;  %v495_v35 = vand.u32 15, %v7904_v25  ;;  %v7905_v1 = vld [vmem:[#allocation13_spill] sm:$0xff] }
 0x2ea   : > { %v3608_v45 = vpop.permute.xlu1 %3607  ;;  %4735 = vmatmul.mubr.msk.f32.vlgmr.msra.gmra.mrb[20].mxu0 %vm2043_vm4, %v7215_v53  ;;  %4836 = vmatprep.subr.bf16.mxu0 %v4835_v11  ;;  %v4839_v52 = vpack.c.bf16 %v3651_v18, %v3635_v48  ;;  %vm655_vm6 = vcmp.ge.s32.totalorder %v467_v43, 1  ;;  %vm656_vm7 = vcmp.ge.s32.totalorder %v474_v44, 1  ;;  %v502_v7 = vand.u32 15, %v7374_v63  ;;  %v7907_v18 = vld [vmem:[#allocation4_spill] sm:$0xff] }
 0x2eb   : > { %4731 = vmatpush1.msk.msra.mxu1 %vm1935_vm0, %v3658_v29  ;;  %v3663_v51 = vsel %vm3619_vm5, %v3608_v45, %v7225_v2  ;;  %4838 = vmatpush1.bf16.msra.mxu0 %v4837_v24  ;;  %v3662_v21 = vsel %vm3619_vm5, %v7185_v39, %v3608_v45  ;;  %v2679_v8 = vsel %vm655_vm6, %v7239_v33, 0.0  ;;  %v2680_v22 = vsel %vm656_vm7, %v7246_v30, 0.0 }
 0x2ec   : > { %4732 = vmatmul.mubr.msk.f32.vlgmr.msra.gmra.mrb[18].mxu1 %vm2043_vm4, %v7215_v53  ;;  %4832 = vmatprep.subr.bf16.mxu1 %v4831_v26  ;;  %v481_v33 = vand.u32 15, %v7905_v1  ;;  %v488_v30 = vand.u32 15, %v7377_v37  ;;  %vm659_vm2 = vcmp.ge.s32.totalorder %v495_v35, 1  ;;  %vm660_vm9 = vcmp.ge.s32.totalorder %v502_v7, 1 }
 0x2ed   : > { %4834 = vmatpush1.bf16.msra.mxu1 %v4833_v12  ;;  %4154 = vmatprep.mubr.f32.mxu1 %v7883_v32  ;;  %v7398_v45 = vadd.s32 1152, %v7903_v23  ;;  %v523_v59 = vand.u32 15, %v7906_v3  ;;  %v7404_v12 = vadd.s32 896, %v7903_v23  ;;  %v509_v40 = vand.u32 15, %v7907_v18 }
 0x2ee   : > { %4736 = vmatprep.subr.msk.mxu1 %vm1935_vm0, %v3663_v51  ;;  %v3612_v50 = vpop.permute.xlu1 %3611  ;;  %4225 = vmatprep.mubr.f32.mxu0 %v7883_v32  ;;  %vm657_vm10 = vcmp.ge.s32.totalorder %v481_v33, 1  ;;  %vm658_vm11 = vcmp.ge.s32.totalorder %v488_v30, 1  ;;  %v7418_v48 = vadd.s32 1408, %v7903_v23  ;;  %vm671_vm8 = vcmp.le.s32.totalorder %v467_v43, 14 }
 0x2ef   : > { %v3664_v16 = vsel %vm3619_vm5, %v7225_v2, %v3612_v50  ;;  %v3665_v55 = vsel %vm3619_vm5, %v3612_v50, %v3614_v49  ;;  %v3618_v2 = vpop.permute.xlu0 %3617  ;;  %v530_v51 = vand.u32 15, %v7398_v45  ;;  %vm663_vm12 = vcmp.ge.s32.totalorder %v523_v59, 1 }
 0x2f0   : > { %4739 = vmatprep.subr.msk.mxu0 %vm1935_vm0, %v3665_v55  ;;  %v516_v50 = vand.u32 15, %v7404_v12  ;;  %vm661_vm14 = vcmp.ge.s32.totalorder %v509_v40, 1  ;;  %vm672_vm6 = vcmp.le.s32.totalorder %v474_v44, 14 }
 0x2f1   : > { %4737 = vmatpush1.msk.msra.mxu1 %vm1935_vm0, %v3662_v21  ;;  %4740 = vmatpush1.msk.msra.mxu0 %vm1935_vm0, %v3664_v16  ;;  %vm664_vm13 = vcmp.ge.s32.totalorder %v530_v51, 1  ;;  %v7908_v16 = vld [vmem:[#allocation9_spill] sm:$0xff] }
 0x2f2   : > { %4738 = vmatmul.mubr.msk.f32.vlgmr.msra.gmra.mrb[20].mxu1 %vm2043_vm4, %v7215_v53  ;;  %4840 = vmatprep.subr.bf16.mxu1 %v4839_v52  ;;  %v3616_v58 = vpop.permute.xlu1 %3615  ;;  %v551_v55 = vand.u32 15, %v7908_v16  ;;  %vm662_vm15 = vcmp.ge.s32.totalorder %v516_v50, 1 }
 0x2f3   : > { %4842 = vmatpush1.bf16.msra.mxu1 %v4841_v57  ;;  %v3667_v34 = vsel %vm3619_vm5, %v3616_v58, %v3618_v2  ;;  %4741 = vmatmul.mubr.msk.f32.vlgmr.msra.gmra.mrb[22].mxu0 %vm2043_vm4, %v7215_v53  ;;  %v3666_v39 = vsel %vm3619_vm5, %v3614_v49, %v3616_v58  ;;  %v7408_v49 = vadd.s32 1664, %v7903_v23 }
 0x2f4   : > { %4742 = vmatprep.subr.msk.mxu1 %vm1935_vm0, %v3667_v34  ;;  %4296 = vmatprep.mubr.f32.mxu1 %v7883_v32  ;;  %v7909_v34 = vld [vmem:[#allocation6_spill] sm:$0xff] }
 0x2f5   : > { %v558_v21 = vand.u32 15, %v7408_v49 }
 0x2f7   : > { %4743 = vmatpush1.msk.msra.mxu1 %vm1935_vm0, %v3666_v39  ;;  %v537_v39 = vand.u32 15, %v7909_v34  ;;  %vm667_vm0 = vcmp.ge.s32.totalorder %v551_v55, 1  ;;  %vm668_vm1 = vcmp.ge.s32.totalorder %v558_v21, 1  ;;  %v7921_v34 = vld [vmem:[#allocation2_spill] sm:$0xff] }
 0x2f8   : > { %4744 = vmatmul.mubr.msk.f32.vlgmr.msra.gmra.mrb[22].mxu1 %vm2043_vm4, %v7215_v53 }
 0x2f9   : > { %vm665_vm3 = vcmp.ge.s32.totalorder %v537_v39, 1 }
 0x301   : > { %v2216_v0 = vpop.f32.mrb[0].mxu1 }
 0x302   : > { %v2218_v28 = vpop.f32.mrb[1].mxu1  ;;  %v2681_v24 = vsel %vm657_vm10, %v2216_v0, 0.0  ;;  %vm673_vm10 = vcmp.le.s32.totalorder %v481_v33, 14 }
 0x303   : > { %v2682_v31 = vsel %vm658_vm11, %v2218_v28, 0.0  ;;  %vm674_vm11 = vcmp.le.s32.totalorder %v488_v30, 14 }
 0x306   : > { %v2287_v6 = vpop.f32.mrb[2].mxu0 }
 0x307   : > { %v2289_v9 = vpop.f32.mrb[3].mxu0  ;;  %v2683_v47 = vsel %vm659_vm2, %v2287_v6, 0.0  ;;  %v544_v6 = vand.u32 15, %v7418_v48  ;;  %vm675_vm2 = vcmp.le.s32.totalorder %v495_v35, 14 }
 0x308   : > { %v2684_v14 = vsel %vm660_vm9, %v2289_v9, 0.0  ;;  %vm676_vm9 = vcmp.le.s32.totalorder %v502_v7, 14 }
 0x309   : > { %vm666_vm4 = vcmp.ge.s32.totalorder %v544_v6, 1 }
 0x30a   : > { %v7342_v19 = vpop.f32.mrb[2].mxu1 }
 0x30b   : > { %v7344_v61 = vpop.f32.mrb[3].mxu1  ;;  %v2685_v28 = vsel %vm661_vm14, %v7342_v19, 0.0  ;;  %vm7507_vm14 = vcmp.le.s32.totalorder %v509_v40, 14 }
 0x30d   : > { %v2429_v15 = vpop.f32.mrb[4].mxu0 }
 0x30e   : > { %v2431_v17 = vpop.f32.mrb[5].mxu0  ;;  %v2687_v5 = vsel %vm663_vm12, %v2429_v15, 0.0  ;;  %v2686_v15 = vsel %vm662_vm15, %v7344_v61, 0.0  ;;  %vm679_vm12 = vcmp.le.s32.totalorder %v523_v59, 14  ;;  %vm678_vm15 = vcmp.le.s32.totalorder %v516_v50, 14 }
 0x30f   : > { %v2688_v57 = vsel %vm664_vm13, %v2431_v17, 0.0  ;;  %vm7500_vm13 = vcmp.le.s32.totalorder %v530_v51, 14 }
 0x311   : > { %v7346_v27 = vpop.f32.mrb[4].mxu1 }
 0x312   : > { %v7348_v36 = vpop.f32.mrb[5].mxu1 }
 0x315   : > { %v7350_v32 = vpop.f32.mrb[6].mxu0 }
 0x316   : > { %v7352_v20 = vpop.f32.mrb[7].mxu0 }
 0x317   : > { %v7354_v41 = vpop.f32.mrb[6].mxu1 }
 0x318   : > { %v7356_v53 = vpop.f32.mrb[7].mxu1 }
 0x37b   : > { %v3013_v46 = vpop.f32.mrb[8].mxu0 }
 0x37c   : > { %v7369_v54 = vadd.f32 %v3013_v46, %v2679_v8  ;;  %v3015_v56 = vpop.f32.mrb[9].mxu0 }
 0x37d   : > { %v7371_v10 = vadd.f32 %v3015_v56, %v2680_v22  ;;  %v7440_v22 = vadd.s32 1920, %v7903_v23  ;;  %v2691_v56 = vsel %vm667_vm0, %v7350_v32, 0.0  ;;  %vm7526_vm0 = vcmp.le.s32.totalorder %v537_v39, 14 }
 0x37f   : > { %v572_v32 = vand.u32 15, %v7440_v22 }
 0x381   : > { %vm670_vm7 = vcmp.ge.s32.totalorder %v572_v32, 1 }
 0x396   : > { %v3155_v62 = vpop.f32.mrb[10].mxu0 }
 0x397   : > { %v7391_v60 = vadd.f32 %v3155_v62, %v2683_v47  ;;  %v3157_v11 = vpop.f32.mrb[11].mxu0  ;;  %v2692_v47 = vsel %vm668_vm1, %v7352_v20, 0.0  ;;  %vm7533_vm1 = vcmp.le.s32.totalorder %v544_v6, 14 }
 0x398   : > { %v3084_v38 = vpop.f32.mrb[8].mxu1  ;;  %v7393_v4 = vadd.f32 %v3157_v11, %v2684_v14  ;;  %v7910_v14 = vld [vmem:[#allocation11_spill] sm:$0xff] }
 0x399   : > { %v7395_v42 = vadd.f32 %v3084_v38, %v2681_v24  ;;  %v3086_v29 = vpop.f32.mrb[9].mxu1  ;;  %v565_v11 = vand.u32 15, %v7910_v14  ;;  %v2689_v38 = vsel %vm665_vm3, %v7346_v27, 0.0  ;;  %vm7539_vm3 = vcmp.le.s32.totalorder %v551_v55, 14 }
 0x39a   : > { %v7400_v26 = vadd.f32 %v3086_v29, %v2682_v31  ;;  %v2690_v29 = vsel %vm666_vm4, %v7348_v36, 0.0  ;;  %vm7554_vm4 = vcmp.le.s32.totalorder %v558_v21, 14 }
 0x39b   : > { %vm669_vm5 = vcmp.ge.s32.totalorder %v565_v11, 1 }
 0x3a4   : > { %v3297_v52 = vpop.f32.mrb[12].mxu0 }
 0x3a5   : > { %v7425_v2 = vadd.f32 %v3297_v52, %v2687_v5  ;;  %v3299_v58 = vpop.f32.mrb[13].mxu0 }
 0x3a6   : > { %v7428_v0 = vadd.f32 %v3299_v58, %v2688_v57  ;;  %v7470_v58 = vpop.permute.xlu1 %4370 }
 0x3a7   : > { %v3226_v9 = vpop.f32.mrb[10].mxu1 }
 0x3a8   : > { %v7437_v17 = vadd.f32 %v3226_v9, %v2685_v28  ;;  %v3228_v8 = vpop.f32.mrb[11].mxu1  ;;  %v2693_v28 = vsel %vm669_vm5, %v7354_v41, 0.0  ;;  %vm7580_vm5 = vcmp.le.s32.totalorder %v572_v32, 14 }
 0x3a9   : > { %v7442_v46 = vadd.f32 %v3228_v8, %v2686_v15  ;;  %v2694_v15 = vsel %vm670_vm7, %v7356_v53, 0.0 }
 0x3aa   : > { %v3439_v19 = vpop.f32.mrb[14].mxu0 }
 0x3ab   : > { %v7450_v61 = vadd.f32 %v3439_v19, %v2691_v56  ;;  %v3441_v62 = vpop.f32.mrb[15].mxu0 }
 0x3ac   : > { %v7453_v24 = vadd.f32 %v3441_v62, %v2692_v47 }
 0x3ad   : > { %v3368_v31 = vpop.f32.mrb[12].mxu1 }
 0x3ae   : > { %v7458_v5 = vadd.f32 %v3368_v31, %v2689_v38  ;;  %v3370_v20 = vpop.f32.mrb[13].mxu1 }
 0x3af   : > { %v7460_v52 = vadd.f32 %v3370_v20, %v2690_v29 }
 0x3b0   : > { %v3801_v27 = vpop.f32.mrb[16].mxu0 }
 0x3b1   : > { %v4335_v57 = vsel %vm671_vm8, %v3801_v27, 0.0  ;;  %v3803_v36 = vpop.f32.mrb[17].mxu0  ;;  %vm7570_vm8 = vcmp.le.s32.totalorder %v565_v11, 14 }
 0x3b2   : > { %v4351_v9 = vadd.f32 %v4335_v57, %v7369_v54  ;;  %v4336_v43 = vsel %vm672_vm6, %v3803_v36, 0.0 }
 0x3b3   : > { %v3510_v23 = vpop.f32.mrb[14].mxu1  ;;  %v4352_v13 = vadd.f32 %v4336_v43, %v7371_v10 }
 0x3b4   : > { %v7475_v8 = vadd.f32 %v3510_v23, %v2693_v28  ;;  %v3512_v44 = vpop.f32.mrb[15].mxu1  ;;  %v4373_v19 = vadd.f32 %v7470_v58, %v4351_v9 }
 0x3b5   : > { %v7478_v56 = vadd.f32 %v3512_v44, %v2694_v15  ;;  %v4374_v41 = vadd.f32 %v7470_v58, %v4352_v13 }
 0x3b6   : > { %v3943_v54 = vpop.f32.mrb[18].mxu0  ;;  %v4389_v53 = vmax.f32 %v4373_v19, 0.0 }
 0x3b7   : > { %v4339_v47 = vsel %vm675_vm2, %v3943_v54, 0.0  ;;  %v3945_v10 = vpop.f32.mrb[19].mxu0  ;;  %v4390_v62 = vmax.f32 %v4374_v41, 0.0 }
 0x3b8   : > { %v4355_v25 = vadd.f32 %v4339_v47, %v7391_v60  ;;  %v4340_v38 = vsel %vm676_vm9, %v3945_v10, 0.0 }
 0x3b9   : > { %v3872_v35 = vpop.f32.mrb[16].mxu1  ;;  %v4356_v63 = vadd.f32 %v4340_v38, %v7393_v4  ;;  %v4421_v29 = vcombine.low %v4389_v53, %v4390_v62 }
 0x3ba   : > { %v4337_v31 = vsel %vm673_vm10, %v3872_v35, 0.0  ;;  %v3874_v7 = vpop.f32.mrb[17].mxu1  ;;  %v4377_v20 = vadd.f32 %v7470_v58, %v4355_v25 }
 0x3bb   : > { %v4353_v1 = vadd.f32 %v4337_v31, %v7395_v42  ;;  %v4338_v33 = vsel %vm674_vm11, %v3874_v7, 0.0  ;;  %v4378_v37 = vadd.f32 %v7470_v58, %v4356_v63  ;;  %v4429_v39 = vrot.slane %v4421_v29, %v7921_v34 }
 0x3bc   : > { %v4354_v30 = vadd.f32 %v4338_v33, %v7400_v26  ;;  %v4393_v4 = vmax.f32 %v4377_v20, 0.0 }
 0x3bd   : > { %v4375_v27 = vadd.f32 %v7470_v58, %v4353_v1  ;;  %v4085_v3 = vpop.f32.mrb[20].mxu0  ;;  %v4394_v59 = vmax.f32 %v4378_v37, 0.0 }
 0x3be   : > { %v4376_v57 = vadd.f32 %v7470_v58, %v4354_v30  ;;  %v4343_v26 = vsel %vm679_vm12, %v4085_v3, 0.0  ;;  %v4087_v45 = vpop.f32.mrb[21].mxu0 }
 0x3bf   : > { %v4391_v51 = vmax.f32 %v4375_v27, 0.0  ;;  %v4014_v36 = vpop.f32.mrb[18].mxu1  ;;  %v4359_v28 = vadd.f32 %v4343_v26, %v7425_v2  ;;  %v4344_v18 = vsel %vm7500_vm13, %v4087_v45, 0.0  ;;  %v4438_v40 = vcombine.low %v4393_v4, %v4394_v59 }
 0x3c0   : > { %v4392_v9 = vmax.f32 %v4376_v57, 0.0  ;;  %v4341_v23 = vsel %vm7507_vm14, %v4014_v36, 0.0  ;;  %v4016_v43 = vpop.f32.mrb[19].mxu1  ;;  %v4360_v15 = vadd.f32 %v4344_v18, %v7428_v0 }
 0x3c1   : > { %v4357_v12 = vadd.f32 %v4341_v23, %v7437_v17  ;;  %v4381_v50 = vadd.f32 %v7470_v58, %v4359_v28  ;;  %v4342_v13 = vsel %vm678_vm15, %v4016_v43, 0.0 }
 0x3c2   : > { %v4422_v44 = vcombine.low %v4391_v51, %v4392_v9  ;;  %v4358_v2 = vadd.f32 %v4342_v13, %v7442_v46  ;;  %v4382_v19 = vadd.f32 %v7470_v58, %v4360_v15 }
 0x3c3   : > { %v4379_v54 = vadd.f32 %v7470_v58, %v4357_v12  ;;  %v4397_v0 = vmax.f32 %v4381_v50, 0.0 }
 0x3c4   : > { %v4436_v53 = vrot.slane %v4422_v44, %v7921_v34  ;;  %v4380_v47 = vadd.f32 %v7470_v58, %v4358_v2  ;;  %v4398_v10 = vmax.f32 %v4382_v19, 0.0 }
 0x3c5   : > { %v4395_v48 = vmax.f32 %v4379_v54, 0.0  ;;  %v4156_v6 = vpop.f32.mrb[20].mxu1 }
 0x3c6   : > { %v4437_v55 = vcombine.low %v4429_v39, %v4436_v53  ;;  %v4396_v62 = vmax.f32 %v4380_v47, 0.0  ;;  %v4455_v25 = vcombine.low %v4397_v0, %v4398_v10  ;;  %v4345_v35 = vsel %vm7526_vm0, %v4156_v6, 0.0  ;;  %v4158_v38 = vpop.f32.mrb[21].mxu1  ;;  %v4227_v31 = vpop.f32.mrb[22].mxu0 }
 0x3c7   : > { %v4361_v63 = vadd.f32 %v4345_v35, %v7458_v5  ;;  %v4346_v7 = vsel %vm7533_vm1, %v4158_v38, 0.0  ;;  %v4347_v49 = vsel %vm7539_vm3, %v4227_v31, 0.0  ;;  %v4229_v21 = vpop.f32.mrb[23].mxu0  ;;  %v4446_v5 = vrot.slane %v4438_v40, %v7921_v34 }
 0x3c8   : > { %4493 = vst [vmem:[%s7550_s17] sm:$0xff] %v4437_v55  ;;  %v4439_v29 = vcombine.low %v4395_v48, %v4396_v62  ;;  %v4362_v20 = vadd.f32 %v4346_v7, %v7460_v52  ;;  %v4363_v1 = vadd.f32 %v4347_v49, %v7450_v61  ;;  %v4348_v30 = vsel %vm7554_vm4, %v4229_v21, 0.0 }
 0x3c9   : > { %v4383_v37 = vadd.f32 %v7470_v58, %v4361_v63  ;;  %v4364_v60 = vadd.f32 %v4348_v30, %v7453_v24  ;;  %v4463_v28 = vrot.slane %v4455_v25, %v7921_v34 }
 0x3ca   : > { %v4453_v61 = vrot.slane %v4439_v29, %v7921_v34  ;;  %v4384_v14 = vadd.f32 %v7470_v58, %v4362_v20  ;;  %v4385_v11 = vadd.f32 %v7470_v58, %v4363_v1 }
 0x3cb   : > { %v4399_v4 = vmax.f32 %v4383_v37, 0.0  ;;  %v4298_v27 = vpop.f32.mrb[22].mxu1  ;;  %v4386_v57 = vadd.f32 %v7470_v58, %v4364_v60 }
 0x3cc   : > { %v4454_v42 = vcombine.low %v4446_v5, %v4453_v61  ;;  %v4400_v3 = vmax.f32 %v4384_v14, 0.0  ;;  %v4401_v59 = vmax.f32 %v4385_v11, 0.0  ;;  %v4300_v22 = vpop.f32.mrb[23].mxu1  ;;  %v4349_v32 = vsel %vm7570_vm8, %v4298_v27, 0.0 }
 0x3cd   : > { %v4350_v26 = vsel %vm7580_vm5, %v4300_v22, 0.0  ;;  %v4402_v51 = vmax.f32 %v4386_v57, 0.0  ;;  %v4365_v24 = vadd.f32 %v4349_v32, %v7475_v8 }
 0x3ce   : > { %4494 = vst [vmem:[%s7550_s17 + $0x8] sm:$0xff] %v4454_v42  ;;  %v4456_v45 = vcombine.low %v4399_v4, %v4400_v3  ;;  %v4366_v36 = vadd.f32 %v4350_v26, %v7478_v56 }
 0x3cf   : > { %v4472_v40 = vcombine.low %v4401_v59, %v4402_v51  ;;  %v4387_v9 = vadd.f32 %v7470_v58, %v4365_v24 }
 0x3d0   : > { %v4470_v18 = vrot.slane %v4456_v45, %v7921_v34  ;;  %v4388_v23 = vadd.f32 %v7470_v58, %v4366_v36 }
 0x3d1   : > { %v4403_v15 = vmax.f32 %v4387_v9, 0.0  ;;  %v4480_v13 = vrot.slane %v4472_v40, %v7921_v34 }
 0x3d2   : > { %v4471_v43 = vcombine.low %v4463_v28, %v4470_v18  ;;  %v4404_v12 = vmax.f32 %v4388_v23, 0.0 }
 0x3d4   : > { %4495 = vst [vmem:[%s7550_s17 + $0x10] sm:$0xff] %v4471_v43  ;;  %v4473_v50 = vcombine.low %v4403_v15, %v4404_v12 }
 0x3d6   : > { %v4487_v8 = vrot.slane %v4473_v50, %v7921_v34 }
 0x3d8   : > { %v4488_v44 = vcombine.low %v4480_v13, %v4487_v8 }
 0x3da   : > { %4496 = vst [vmem:[%s7550_s17 + $0x18] sm:$0xff] %v4488_v44 }
 0x3db PF: > { %s17_s28 = sadd.s32 1, %s5317_s28   ;;  %s7928_s24 = smov %s5309_s26 }
 0x3dc   : > { %p14_p13 = scmp.ge.s32.totalorder %s17_s28, 6   ;;  %s7929_s25 = smov %s5313_s27 }
 0x3dd   : > { %s7930_s26 = smov %s7933_s29  ;;  %s7931_s27 = smov %s7937_s30 }
 0x3de   :  { %16 = sbr.rel (!%p14_p13) target bundleno = 3 (0x3), region = 86 }

</bundles_post_ra>
